<compile_context>
chip_gen: v6e
topology: v6e:2x2x1
jax: 0.10.0
libtpu: 0.0.40
codegen_flags: <defaults>
</compile_context>

<pallas_src>
import jax
import jax.numpy as jnp
from jax import lax
from jax.experimental import pallas as pl
from jax.experimental.pallas import tpu as pltpu

# ----- model hyperparameters (small, lane-dense, consistent with the module) -----
INPUT_SIZE = 40        # embedding num_embeddings (token id range), as in the module
EMBEDDING_SIZE = 128   # module uses 150; 128 keeps lanes dense at small scale
HIDDEN_SIZE = 128      # module uses 256
NUM_LAYERS = 3
VOCAB_SIZE = 128
BATCH = 2
SEQ = 8


# ---------------------------------------------------------------------------
# Fused Pallas kernel: layer-wavefront over 3 tanh RNN layers + per-step fc
# ---------------------------------------------------------------------------
def _wavefront_rnn_fc_kernel(x_ref, w_aug_ref, bias_ref, w_fc_ref, b_fc_ref, out_ref):
    """Whole forward pass (after embedding) in one kernel.

    x_ref:     (T*B, E)      time-major embedded input (row = t*B + b)
    w_aug_ref: (3H + E, 3H)  block-structured wavefront weights:
                               rows l*H:(l+1)*H, cols l*H:(l+1)*H        -> W_hh^l
                               rows l*H:(l+1)*H, cols (l+1)*H:(l+2)*H    -> W_ih^{l+1}
                               rows 3H:3H+E,     cols 0:H                -> W_ih^0
    bias_ref:  (1, 3H)       concat_l (b_ih^l + b_hh^l)
    w_fc_ref:  (H, V), b_fc_ref: (1, V)
    out_ref:   (T*B, V)      time-major logits
    """
    B, T, H, L, E = BATCH, SEQ, HIDDEN_SIZE, NUM_LAYERS, EMBEDDING_SIZE

    w_aug = w_aug_ref[...]     # loaded once, reused by every wavefront step
    bias = bias_ref[...]
    w_fc = w_fc_ref[...]
    b_fc = b_fc_ref[...]

    lane = lax.broadcasted_iota(jnp.int32, (B, L * H), 1)   # hoisted prologue mask index
    state = jnp.zeros((B, L * H), jnp.float32)               # [h^0 | h^1 | h^2], vreg-resident
    x_zero = jnp.zeros((B, E), jnp.float32)

    # Wavefront step s computes, in one fused matmul + tanh:
    #   layer 0 @ t = s,   layer 1 @ t = s-1,   layer 2 @ t = s-2
    # (T + L - 1 = 10 dependent steps instead of T*L = 24).
    for s in range(T + L - 1):
        x_s = x_ref[pl.ds(s * B, B), :] if s < T else x_zero        # (B, E), off-chain load
        lhs = jnp.concatenate([state, x_s], axis=1)                  # (B, 3H+E), lane-aligned
        state = jnp.tanh(
            jnp.dot(lhs, w_aug, preferred_element_type=jnp.float32) + bias
        )

        if s < L - 1:
            # Layers that have not started yet must keep h_{-1} == 0; otherwise
            # tanh(bias) would leak into their first real timestep.
            state = jnp.where(lane < (s + 1) * H, state, 0.0)

        t = s - (L - 1)
        if t >= 0:
            # Top layer just produced h^{L-1}_t -> final linear layer, store logits.
            # These fc matmuls/stores are independent of the recurrence chain.
            h_top = state[:, (L - 1) * H:]                           # (B, H) lane slice
            logits = jnp.dot(h_top, w_fc, preferred_element_type=jnp.float32) + b_fc
            out_ref[pl.ds(t * B, B), :] = logits.astype(out_ref.dtype)


def _vmem_spec():
    return pl.BlockSpec(memory_space=pltpu.MemorySpace.VMEM)


# ---------------------------------------------------------------------------
# Parameters / wrappers
# ---------------------------------------------------------------------------
def init_params(key):
    """Deterministic parameter init (PyTorch-style uniform bounds)."""
    params = {}
    ks = jax.random.split(key, 4 + 4 * NUM_LAYERS)
    ki = iter(ks)

    # Embedding: N(0,1) like nn.Embedding default.
    params["embedding"] = jax.random.normal(
        next(ki), (INPUT_SIZE, EMBEDDING_SIZE), jnp.float32
    )

    bound = 1.0 / (HIDDEN_SIZE ** 0.5)
    for l in range(NUM_LAYERS):
        d_in = EMBEDDING_SIZE if l == 0 else HIDDEN_SIZE
        # Stored pre-transposed: (d_in, H) and (H, H) so the kernel does x @ W.
        params[f"w_ih_{l}"] = jax.random.uniform(
            next(ki), (d_in, HIDDEN_SIZE), jnp.float32, -bound, bound
        )
        params[f"w_hh_{l}"] = jax.random.uniform(
            next(ki), (HIDDEN_SIZE, HIDDEN_SIZE), jnp.float32, -bound, bound
        )
        b_ih = jax.random.uniform(next(ki), (HIDDEN_SIZE,), jnp.float32, -bound, bound)
        b_hh = jax.random.uniform(next(ki), (HIDDEN_SIZE,), jnp.float32, -bound, bound)
        params[f"b_{l}"] = (b_ih + b_hh).reshape(1, HIDDEN_SIZE)

    params["w_fc"] = jax.random.uniform(
        next(ki), (HIDDEN_SIZE, VOCAB_SIZE), jnp.float32, -bound, bound
    )
    params["b_fc"] = jax.random.uniform(
        next(ki), (VOCAB_SIZE,), jnp.float32, -bound, bound
    ).reshape(1, VOCAB_SIZE)
    return params


@jax.jit
def rnn_forward(x_tokens, params):
    B, T = x_tokens.shape
    H, E, L = HIDDEN_SIZE, EMBEDDING_SIZE, NUM_LAYERS

    # Embedding lookup (gather) + time-major flattening: layout glue in plain JAX.
    emb = params["embedding"][x_tokens]                                  # (B, T, E)
    x2d = jnp.transpose(emb, (1, 0, 2)).reshape(T * B, E)                # row = t*B + b

    # Build the block-structured wavefront weight matrix host-side (tiny, fuses in XLA).
    #   new_state[:, l*H:(l+1)*H] = tanh( h^{l-1}_t @ W_ih^l + h^l_{t-1} @ W_hh^l + b^l )
    # with h^{-1}_t := embedded input, carried by the augmented rows 3H:3H+E.
    w_big = jnp.zeros((L * H, L * H), jnp.float32)
    for l in range(L):
        w_big = w_big.at[l * H:(l + 1) * H, l * H:(l + 1) * H].set(params[f"w_hh_{l}"])
        if l + 1 < L:
            w_big = w_big.at[l * H:(l + 1) * H, (l + 1) * H:(l + 2) * H].set(
                params[f"w_ih_{l + 1}"]
            )
    w_in = jnp.zeros((E, L * H), jnp.float32).at[:, 0:H].set(params["w_ih_0"])
    w_aug = jnp.concatenate([w_big, w_in], axis=0)                       # (3H+E, 3H)
    bias_all = jnp.concatenate([params[f"b_{l}"] for l in range(L)], axis=1)  # (1, 3H)

    inputs = [x2d, w_aug, bias_all, params["w_fc"], params["b_fc"]]

    out2d = pl.pallas_call(
        _wavefront_rnn_fc_kernel,
        out_shape=jax.ShapeDtypeStruct((T * B, VOCAB_SIZE), jnp.float32),
        in_specs=[_vmem_spec() for _ in inputs],
        out_specs=_vmem_spec(),
        # Working set ~0.5 MiB: no grid, no scratch, no extra pipelining needed.
    )(*inputs)

    # Tiny layout-only epilogue back to PyTorch batch_first semantics.
    return out2d.reshape(T, B, VOCAB_SIZE).transpose(1, 0, 2)            # (B, T, V)


def rnn_forward_reference(x_tokens, params):
    """Plain-JAX reference matching nn.RNN(tanh, batch_first) + fc (f32, HIGHEST)."""
    emb = params["embedding"][x_tokens]           # (B, T, E)
    x = jnp.transpose(emb, (1, 0, 2))             # (T, B, E)
    for l in range(NUM_LAYERS):
        w_ih = params[f"w_ih_{l}"]
        w_hh = params[f"w_hh_{l}"]
        b = params[f"b_{l}"]

        def step(h, x_t, w_ih=w_ih, w_hh=w_hh, b=b):
            h_new = jnp.tanh(
                jnp.dot(x_t, w_ih, precision=lax.Precision.HIGHEST)
                + jnp.dot(h, w_hh, precision=lax.Precision.HIGHEST)
                + b
            )
            return h_new, h_new

        h0 = jnp.zeros((x.shape[1], HIDDEN_SIZE), jnp.float32)
        _, x = lax.scan(step, h0, x)
    out = jnp.dot(x, params["w_fc"], precision=lax.Precision.HIGHEST) + params["b_fc"]
    return jnp.transpose(out, (1, 0, 2))


if __name__ == "__main__":
    key = jax.random.PRNGKey(0)
    k_tok, k_par = jax.random.split(key)

    x = jax.random.randint(k_tok, (BATCH, SEQ), 0, INPUT_SIZE, dtype=jnp.int32)
    params = init_params(k_par)

    out = jax.block_until_ready(rnn_forward(x, params))
    assert out.shape == (BATCH, SEQ, VOCAB_SIZE), out.shape

    ref = jax.block_until_ready(rnn_forward_reference(x, params))
    max_err = float(jnp.max(jnp.abs(out - ref)))
    assert jnp.allclose(out, ref, rtol=2e-4, atol=2e-4), max_err

    print("KERNEL_OK")
</pallas_src>

<mosaic_0001>
module attributes {stable_mosaic.version = 11 : i64} {
  func.func @_wavefront_rnn_fc_kernel(%arg0: memref<16x128xf32, #tpu.memory_space<vmem>>, %arg1: memref<512x384xf32, #tpu.memory_space<vmem>>, %arg2: memref<1x384xf32, #tpu.memory_space<vmem>>, %arg3: memref<128x128xf32, #tpu.memory_space<vmem>>, %arg4: memref<1x128xf32, #tpu.memory_space<vmem>>, %arg5: memref<16x128xf32, #tpu.memory_space<vmem>>) attributes {dimension_semantics = [], scalar_prefetch = 0 : i64, scratch_operands = 0 : i64, tpu.core_type = #tpu.core_type<tc>} {
    %c0 = arith.constant 0 : index
    %c0_0 = arith.constant 0 : index
    %0 = vector.load %arg1[%c0, %c0_0] : memref<512x384xf32, #tpu.memory_space<vmem>>, vector<512x384xf32>
    %c0_1 = arith.constant 0 : index
    %c0_2 = arith.constant 0 : index
    %1 = vector.load %arg2[%c0_1, %c0_2] : memref<1x384xf32, #tpu.memory_space<vmem>>, vector<1x384xf32>
    %c0_3 = arith.constant 0 : index
    %c0_4 = arith.constant 0 : index
    %2 = vector.load %arg3[%c0_3, %c0_4] : memref<128x128xf32, #tpu.memory_space<vmem>>, vector<128x128xf32>
    %c0_5 = arith.constant 0 : index
    %c0_6 = arith.constant 0 : index
    %3 = vector.load %arg4[%c0_5, %c0_6] : memref<1x128xf32, #tpu.memory_space<vmem>>, vector<1x128xf32>
    %4 = tpu.iota {dimensions = array<i32: 1>} : vector<2x384xi32>
    %cst = arith.constant 0.000000e+00 : f32
    %5 = vector.broadcast %cst : f32 to vector<2x384xf32>
    %cst_7 = arith.constant 0.000000e+00 : f32
    %6 = vector.broadcast %cst_7 : f32 to vector<2x128xf32>
    %c0_8 = arith.constant 0 : index
    %c0_9 = arith.constant 0 : index
    %7 = vector.load %arg0[%c0_8, %c0_9] : memref<16x128xf32, #tpu.memory_space<vmem>>, vector<2x128xf32>
    %8 = tpu.concatenate %5, %7 in 1 : vector<2x384xf32>, vector<2x128xf32> -> vector<2x512xf32>
    %cst_10 = arith.constant dense<0.000000e+00> : vector<2x384xf32>
    %9 = tpu.matmul %8, %0, %cst_10 {dimension_numbers = #tpu.dot_dimension_numbers<[1], [0], [0], [1], [0, 0, 1, 1], [], []>} : vector<2x512xf32>, vector<512x384xf32>, vector<2x384xf32> -> vector<2x384xf32>
    %10 = vector.broadcast %1 : vector<1x384xf32> to vector<2x384xf32>
    %11 = arith.addf %9, %10 : vector<2x384xf32>
    %12 = math.tanh %11 : vector<2x384xf32>
    %c128_i32 = arith.constant 128 : i32
    %13 = vector.broadcast %c128_i32 : i32 to vector<2x384xi32>
    %14 = arith.cmpi slt, %4, %13 : vector<2x384xi32>
    %cst_11 = arith.constant 0.000000e+00 : f32
    %15 = vector.broadcast %cst_11 : f32 to vector<2x384xf32>
    %16 = arith.select %14, %12, %15 : vector<2x384xi1>, vector<2x384xf32>
    %c2 = arith.constant 2 : index
    %c0_12 = arith.constant 0 : index
    %17 = vector.load %arg0[%c2, %c0_12] : memref<16x128xf32, #tpu.memory_space<vmem>>, vector<2x128xf32>
    %18 = tpu.concatenate %16, %17 in 1 : vector<2x384xf32>, vector<2x128xf32> -> vector<2x512xf32>
    %cst_13 = arith.constant dense<0.000000e+00> : vector<2x384xf32>
    %19 = tpu.matmul %18, %0, %cst_13 {dimension_numbers = #tpu.dot_dimension_numbers<[1], [0], [0], [1], [0, 0, 1, 1], [], []>} : vector<2x512xf32>, vector<512x384xf32>, vector<2x384xf32> -> vector<2x384xf32>
    %20 = vector.broadcast %1 : vector<1x384xf32> to vector<2x384xf32>
    %21 = arith.addf %19, %20 : vector<2x384xf32>
    %22 = math.tanh %21 : vector<2x384xf32>
    %c256_i32 = arith.constant 256 : i32
    %23 = vector.broadcast %c256_i32 : i32 to vector<2x384xi32>
    %24 = arith.cmpi slt, %4, %23 : vector<2x384xi32>
    %cst_14 = arith.constant 0.000000e+00 : f32
    %25 = vector.broadcast %cst_14 : f32 to vector<2x384xf32>
    %26 = arith.select %24, %22, %25 : vector<2x384xi1>, vector<2x384xf32>
    %c4 = arith.constant 4 : index
    %c0_15 = arith.constant 0 : index
    %27 = vector.load %arg0[%c4, %c0_15] : memref<16x128xf32, #tpu.memory_space<vmem>>, vector<2x128xf32>
    %28 = tpu.concatenate %26, %27 in 1 : vector<2x384xf32>, vector<2x128xf32> -> vector<2x512xf32>
    %cst_16 = arith.constant dense<0.000000e+00> : vector<2x384xf32>
    %29 = tpu.matmul %28, %0, %cst_16 {dimension_numbers = #tpu.dot_dimension_numbers<[1], [0], [0], [1], [0, 0, 1, 1], [], []>} : vector<2x512xf32>, vector<512x384xf32>, vector<2x384xf32> -> vector<2x384xf32>
    %30 = vector.broadcast %1 : vector<1x384xf32> to vector<2x384xf32>
    %31 = arith.addf %29, %30 : vector<2x384xf32>
    %32 = math.tanh %31 : vector<2x384xf32>
    %33 = vector.extract_strided_slice %32 {offsets = [0, 256], sizes = [2, 128], strides = [1, 1]} : vector<2x384xf32> to vector<2x128xf32>
    %cst_17 = arith.constant dense<0.000000e+00> : vector<2x128xf32>
    %34 = tpu.matmul %33, %2, %cst_17 {dimension_numbers = #tpu.dot_dimension_numbers<[1], [0], [0], [1], [0, 0, 1, 1], [], []>} : vector<2x128xf32>, vector<128x128xf32>, vector<2x128xf32> -> vector<2x128xf32>
    %35 = vector.broadcast %3 : vector<1x128xf32> to vector<2x128xf32>
    %36 = arith.addf %34, %35 : vector<2x128xf32>
    %c0_18 = arith.constant 0 : index
    %c0_19 = arith.constant 0 : index
    %37 = vector.load %arg5[%c0_18, %c0_19] : memref<16x128xf32, #tpu.memory_space<vmem>>, vector<2x128xf32>
    tpu.vector_store %arg5[%c0_18, %c0_19], %36 {strides = array<i32>} : memref<16x128xf32, #tpu.memory_space<vmem>>, vector<2x128xf32>,
    %c6 = arith.constant 6 : index
    %c0_20 = arith.constant 0 : index
    %38 = vector.load %arg0[%c6, %c0_20] : memref<16x128xf32, #tpu.memory_space<vmem>>, vector<2x128xf32>
    %39 = tpu.concatenate %32, %38 in 1 : vector<2x384xf32>, vector<2x128xf32> -> vector<2x512xf32>
    %cst_21 = arith.constant dense<0.000000e+00> : vector<2x384xf32>
    %40 = tpu.matmul %39, %0, %cst_21 {dimension_numbers = #tpu.dot_dimension_numbers<[1], [0], [0], [1], [0, 0, 1, 1], [], []>} : vector<2x512xf32>, vector<512x384xf32>, vector<2x384xf32> -> vector<2x384xf32>
    %41 = vector.broadcast %1 : vector<1x384xf32> to vector<2x384xf32>
    %42 = arith.addf %40, %41 : vector<2x384xf32>
    %43 = math.tanh %42 : vector<2x384xf32>
    %44 = vector.extract_strided_slice %43 {offsets = [0, 256], sizes = [2, 128], strides = [1, 1]} : vector<2x384xf32> to vector<2x128xf32>
    %cst_22 = arith.constant dense<0.000000e+00> : vector<2x128xf32>
    %45 = tpu.matmul %44, %2, %cst_22 {dimension_numbers = #tpu.dot_dimension_numbers<[1], [0], [0], [1], [0, 0, 1, 1], [], []>} : vector<2x128xf32>, vector<128x128xf32>, vector<2x128xf32> -> vector<2x128xf32>
    %46 = vector.broadcast %3 : vector<1x128xf32> to vector<2x128xf32>
    %47 = arith.addf %45, %46 : vector<2x128xf32>
    %c2_23 = arith.constant 2 : index
    %c0_24 = arith.constant 0 : index
    %48 = vector.load %arg5[%c2_23, %c0_24] : memref<16x128xf32, #tpu.memory_space<vmem>>, vector<2x128xf32>
    tpu.vector_store %arg5[%c2_23, %c0_24], %47 {strides = array<i32>} : memref<16x128xf32, #tpu.memory_space<vmem>>, vector<2x128xf32>,
    %c8 = arith.constant 8 : index
    %c0_25 = arith.constant 0 : index
    %49 = vector.load %arg0[%c8, %c0_25] : memref<16x128xf32, #tpu.memory_space<vmem>>, vector<2x128xf32>
    %50 = tpu.concatenate %43, %49 in 1 : vector<2x384xf32>, vector<2x128xf32> -> vector<2x512xf32>
    %cst_26 = arith.constant dense<0.000000e+00> : vector<2x384xf32>
    %51 = tpu.matmul %50, %0, %cst_26 {dimension_numbers = #tpu.dot_dimension_numbers<[1], [0], [0], [1], [0, 0, 1, 1], [], []>} : vector<2x512xf32>, vector<512x384xf32>, vector<2x384xf32> -> vector<2x384xf32>
    %52 = vector.broadcast %1 : vector<1x384xf32> to vector<2x384xf32>
    %53 = arith.addf %51, %52 : vector<2x384xf32>
    %54 = math.tanh %53 : vector<2x384xf32>
    %55 = vector.extract_strided_slice %54 {offsets = [0, 256], sizes = [2, 128], strides = [1, 1]} : vector<2x384xf32> to vector<2x128xf32>
    %cst_27 = arith.constant dense<0.000000e+00> : vector<2x128xf32>
    %56 = tpu.matmul %55, %2, %cst_27 {dimension_numbers = #tpu.dot_dimension_numbers<[1], [0], [0], [1], [0, 0, 1, 1], [], []>} : vector<2x128xf32>, vector<128x128xf32>, vector<2x128xf32> -> vector<2x128xf32>
    %57 = vector.broadcast %3 : vector<1x128xf32> to vector<2x128xf32>
    %58 = arith.addf %56, %57 : vector<2x128xf32>
    %c4_28 = arith.constant 4 : index
    %c0_29 = arith.constant 0 : index
    %59 = vector.load %arg5[%c4_28, %c0_29] : memref<16x128xf32, #tpu.memory_space<vmem>>, vector<2x128xf32>
    tpu.vector_store %arg5[%c4_28, %c0_29], %58 {strides = array<i32>} : memref<16x128xf32, #tpu.memory_space<vmem>>, vector<2x128xf32>,
    %c10 = arith.constant 10 : index
    %c0_30 = arith.constant 0 : index
    %60 = vector.load %arg0[%c10, %c0_30] : memref<16x128xf32, #tpu.memory_space<vmem>>, vector<2x128xf32>
    %61 = tpu.concatenate %54, %60 in 1 : vector<2x384xf32>, vector<2x128xf32> -> vector<2x512xf32>
    %cst_31 = arith.constant dense<0.000000e+00> : vector<2x384xf32>
    %62 = tpu.matmul %61, %0, %cst_31 {dimension_numbers = #tpu.dot_dimension_numbers<[1], [0], [0], [1], [0, 0, 1, 1], [], []>} : vector<2x512xf32>, vector<512x384xf32>, vector<2x384xf32> -> vector<2x384xf32>
    %63 = vector.broadcast %1 : vector<1x384xf32> to vector<2x384xf32>
    %64 = arith.addf %62, %63 : vector<2x384xf32>
    %65 = math.tanh %64 : vector<2x384xf32>
    %66 = vector.extract_strided_slice %65 {offsets = [0, 256], sizes = [2, 128], strides = [1, 1]} : vector<2x384xf32> to vector<2x128xf32>
    %cst_32 = arith.constant dense<0.000000e+00> : vector<2x128xf32>
    %67 = tpu.matmul %66, %2, %cst_32 {dimension_numbers = #tpu.dot_dimension_numbers<[1], [0], [0], [1], [0, 0, 1, 1], [], []>} : vector<2x128xf32>, vector<128x128xf32>, vector<2x128xf32> -> vector<2x128xf32>
    %68 = vector.broadcast %3 : vector<1x128xf32> to vector<2x128xf32>
    %69 = arith.addf %67, %68 : vector<2x128xf32>
    %c6_33 = arith.constant 6 : index
    %c0_34 = arith.constant 0 : index
    %70 = vector.load %arg5[%c6_33, %c0_34] : memref<16x128xf32, #tpu.memory_space<vmem>>, vector<2x128xf32>
    tpu.vector_store %arg5[%c6_33, %c0_34], %69 {strides = array<i32>} : memref<16x128xf32, #tpu.memory_space<vmem>>, vector<2x128xf32>,
    %c12 = arith.constant 12 : index
    %c0_35 = arith.constant 0 : index
    %71 = vector.load %arg0[%c12, %c0_35] : memref<16x128xf32, #tpu.memory_space<vmem>>, vector<2x128xf32>
    %72 = tpu.concatenate %65, %71 in 1 : vector<2x384xf32>, vector<2x128xf32> -> vector<2x512xf32>
    %cst_36 = arith.constant dense<0.000000e+00> : vector<2x384xf32>
    %73 = tpu.matmul %72, %0, %cst_36 {dimension_numbers = #tpu.dot_dimension_numbers<[1], [0], [0], [1], [0, 0, 1, 1], [], []>} : vector<2x512xf32>, vector<512x384xf32>, vector<2x384xf32> -> vector<2x384xf32>
    %74 = vector.broadcast %1 : vector<1x384xf32> to vector<2x384xf32>
    %75 = arith.addf %73, %74 : vector<2x384xf32>
    %76 = math.tanh %75 : vector<2x384xf32>
    %77 = vector.extract_strided_slice %76 {offsets = [0, 256], sizes = [2, 128], strides = [1, 1]} : vector<2x384xf32> to vector<2x128xf32>
    %cst_37 = arith.constant dense<0.000000e+00> : vector<2x128xf32>
    %78 = tpu.matmul %77, %2, %cst_37 {dimension_numbers = #tpu.dot_dimension_numbers<[1], [0], [0], [1], [0, 0, 1, 1], [], []>} : vector<2x128xf32>, vector<128x128xf32>, vector<2x128xf32> -> vector<2x128xf32>
    %79 = vector.broadcast %3 : vector<1x128xf32> to vector<2x128xf32>
    %80 = arith.addf %78, %79 : vector<2x128xf32>
    %c8_38 = arith.constant 8 : index
    %c0_39 = arith.constant 0 : index
    %81 = vector.load %arg5[%c8_38, %c0_39] : memref<16x128xf32, #tpu.memory_space<vmem>>, vector<2x128xf32>
    tpu.vector_store %arg5[%c8_38, %c0_39], %80 {strides = array<i32>} : memref<16x128xf32, #tpu.memory_space<vmem>>, vector<2x128xf32>,
    %c14 = arith.constant 14 : index
    %c0_40 = arith.constant 0 : index
    %82 = vector.load %arg0[%c14, %c0_40] : memref<16x128xf32, #tpu.memory_space<vmem>>, vector<2x128xf32>
    %83 = tpu.concatenate %76, %82 in 1 : vector<2x384xf32>, vector<2x128xf32> -> vector<2x512xf32>
    %cst_41 = arith.constant dense<0.000000e+00> : vector<2x384xf32>
    %84 = tpu.matmul %83, %0, %cst_41 {dimension_numbers = #tpu.dot_dimension_numbers<[1], [0], [0], [1], [0, 0, 1, 1], [], []>} : vector<2x512xf32>, vector<512x384xf32>, vector<2x384xf32> -> vector<2x384xf32>
    %85 = vector.broadcast %1 : vector<1x384xf32> to vector<2x384xf32>
    %86 = arith.addf %84, %85 : vector<2x384xf32>
    %87 = math.tanh %86 : vector<2x384xf32>
    %88 = vector.extract_strided_slice %87 {offsets = [0, 256], sizes = [2, 128], strides = [1, 1]} : vector<2x384xf32> to vector<2x128xf32>
    %cst_42 = arith.constant dense<0.000000e+00> : vector<2x128xf32>
    %89 = tpu.matmul %88, %2, %cst_42 {dimension_numbers = #tpu.dot_dimension_numbers<[1], [0], [0], [1], [0, 0, 1, 1], [], []>} : vector<2x128xf32>, vector<128x128xf32>, vector<2x128xf32> -> vector<2x128xf32>
    %90 = vector.broadcast %3 : vector<1x128xf32> to vector<2x128xf32>
    %91 = arith.addf %89, %90 : vector<2x128xf32>
    %c10_43 = arith.constant 10 : index
    %c0_44 = arith.constant 0 : index
    %92 = vector.load %arg5[%c10_43, %c0_44] : memref<16x128xf32, #tpu.memory_space<vmem>>, vector<2x128xf32>
    tpu.vector_store %arg5[%c10_43, %c0_44], %91 {strides = array<i32>} : memref<16x128xf32, #tpu.memory_space<vmem>>, vector<2x128xf32>,
    %93 = tpu.concatenate %87, %6 in 1 : vector<2x384xf32>, vector<2x128xf32> -> vector<2x512xf32>
    %cst_45 = arith.constant dense<0.000000e+00> : vector<2x384xf32>
    %94 = tpu.matmul %93, %0, %cst_45 {dimension_numbers = #tpu.dot_dimension_numbers<[1], [0], [0], [1], [0, 0, 1, 1], [], []>} : vector<2x512xf32>, vector<512x384xf32>, vector<2x384xf32> -> vector<2x384xf32>
    %95 = vector.broadcast %1 : vector<1x384xf32> to vector<2x384xf32>
    %96 = arith.addf %94, %95 : vector<2x384xf32>
    %97 = math.tanh %96 : vector<2x384xf32>
    %98 = vector.extract_strided_slice %97 {offsets = [0, 256], sizes = [2, 128], strides = [1, 1]} : vector<2x384xf32> to vector<2x128xf32>
    %cst_46 = arith.constant dense<0.000000e+00> : vector<2x128xf32>
    %99 = tpu.matmul %98, %2, %cst_46 {dimension_numbers = #tpu.dot_dimension_numbers<[1], [0], [0], [1], [0, 0, 1, 1], [], []>} : vector<2x128xf32>, vector<128x128xf32>, vector<2x128xf32> -> vector<2x128xf32>
    %100 = vector.broadcast %3 : vector<1x128xf32> to vector<2x128xf32>
    %101 = arith.addf %99, %100 : vector<2x128xf32>
    %c12_47 = arith.constant 12 : index
    %c0_48 = arith.constant 0 : index
    %102 = vector.load %arg5[%c12_47, %c0_48] : memref<16x128xf32, #tpu.memory_space<vmem>>, vector<2x128xf32>
    tpu.vector_store %arg5[%c12_47, %c0_48], %101 {strides = array<i32>} : memref<16x128xf32, #tpu.memory_space<vmem>>, vector<2x128xf32>,
    %103 = tpu.concatenate %97, %6 in 1 : vector<2x384xf32>, vector<2x128xf32> -> vector<2x512xf32>
    %cst_49 = arith.constant dense<0.000000e+00> : vector<2x384xf32>
    %104 = tpu.matmul %103, %0, %cst_49 {dimension_numbers = #tpu.dot_dimension_numbers<[1], [0], [0], [1], [0, 0, 1, 1], [], []>} : vector<2x512xf32>, vector<512x384xf32>, vector<2x384xf32> -> vector<2x384xf32>
    %105 = vector.broadcast %1 : vector<1x384xf32> to vector<2x384xf32>
    %106 = arith.addf %104, %105 : vector<2x384xf32>
    %107 = math.tanh %106 : vector<2x384xf32>
    %108 = vector.extract_strided_slice %107 {offsets = [0, 256], sizes = [2, 128], strides = [1, 1]} : vector<2x384xf32> to vector<2x128xf32>
    %cst_50 = arith.constant dense<0.000000e+00> : vector<2x128xf32>
    %109 = tpu.matmul %108, %2, %cst_50 {dimension_numbers = #tpu.dot_dimension_numbers<[1], [0], [0], [1], [0, 0, 1, 1], [], []>} : vector<2x128xf32>, vector<128x128xf32>, vector<2x128xf32> -> vector<2x128xf32>
    %110 = vector.broadcast %3 : vector<1x128xf32> to vector<2x128xf32>
    %111 = arith.addf %109, %110 : vector<2x128xf32>
    %c14_51 = arith.constant 14 : index
    %c0_52 = arith.constant 0 : index
    %112 = vector.load %arg5[%c14_51, %c0_52] : memref<16x128xf32, #tpu.memory_space<vmem>>, vector<2x128xf32>
    tpu.vector_store %arg5[%c14_51, %c0_52], %111 {strides = array<i32>} : memref<16x128xf32, #tpu.memory_space<vmem>>, vector<2x128xf32>,
    return
  }
}

</mosaic_0001>

<bundles_post_ra>
// kernel: rnn_forward.1
= control target key start
LH: loop header
LB: loop body
LE: loop exit
PB: predicated region body
PF: predicated region fallthrough
CT: control target
= control target key end

     0   :  { %v11771_v3 = vmov 0.0   ;;  %vm5352_vm0 = vmmov 0   ;;  %s11765_s1 = inlined_call_operand.vmem [shape: f32[512,384], index: 1, kind: input, shape index: {}]   ;;  %s11766_s0 = inlined_call_operand.vmem [shape: f32[16,128], index: 0, kind: input, shape index: {}]   ;;  %s11767_s2 = inlined_call_operand.vmem [shape: f32[1,384], index: 2, kind: input, shape index: {}]   ;;  %s11768_s3 = inlined_call_operand.vmem [shape: f32[128,128], index: 3, kind: input, shape index: {}]   ;;  %s11769_s4 = inlined_call_operand.vmem [shape: f32[1,128], index: 4, kind: input, shape index: {}]   ;;  %s11770_s5 = inlined_call_operand.vmem [shape: f32[16,128], index: 5, kind: output, shape index: {}]  }
   0x1   :  { %v5386_v0 = vld [vmem:[%s11765_s1 + $0x170] sm:$0xff]  ;;  %v5396_v2 = vld [vmem:[%s11765_s1 + $0x168] sm:$0xff]  ;;  %315 = vmatprep.mubr.f32.mxu0 %v11771_v3  ;;  %v5409_v5 = vld [vmem:[%s11765_s1 + $0x158] sm:$0xff] }
   0x2   :  { %v5391_v1 = vld [vmem:[%s11765_s1 + $0x470] sm:$0xff]  ;;  %251 = vmatprep.subr.mxu0 %v5386_v0  ;;  %v5404_v4 = vld [vmem:[%s11765_s1 + $0x468] sm:$0xff]  ;;  %v5414_v6 = vld [vmem:[%s11765_s1 + $0x458] sm:$0xff] }
   0x3   :  { %322 = vmatprep.subr.mxu1 %v5391_v1  ;;  %252 = vmatpush1.msra.mxu0 %v5396_v2  ;;  %v5421_v7 = vld [vmem:[%s11765_s1 + $0x150] sm:$0xff]  ;;  %v5431_v9 = vld [vmem:[%s11765_s1 + $0x140] sm:$0xff]  ;;  %v5443_v11 = vld [vmem:[%s11765_s1 + $0x138] sm:$0xff] }
   0x4   :  { %323 = vmatpush1.msra.mxu1 %v5404_v4  ;;  %v5426_v8 = vld [vmem:[%s11765_s1 + $0x450] sm:$0xff]  ;;  %253 = vmatprep.subr.mxu0 %v5409_v5  ;;  %v5438_v10 = vld [vmem:[%s11765_s1 + $0x440] sm:$0xff]  ;;  %v5448_v12 = vld [vmem:[%s11765_s1 + $0x438] sm:$0xff] }
   0x5   :  { %324 = vmatprep.subr.mxu1 %v5414_v6  ;;  %254 = vmatpush1.msra.mxu0 %v5421_v7  ;;  %v5455_v13 = vld [vmem:[%s11765_s1 + $0x128] sm:$0xff]  ;;  %v5467_v15 = vld [vmem:[%s11765_s1 + $0x120] sm:$0xff]  ;;  %v5479_v17 = vld [vmem:[%s11765_s1 + $0x110] sm:$0xff] }
   0x6   :  { %325 = vmatpush1.msra.mxu1 %v5426_v8  ;;  %v5460_v14 = vld [vmem:[%s11765_s1 + $0x428] sm:$0xff]  ;;  %255 = vmatprep.subr.mxu0 %v5431_v9  ;;  %v5472_v16 = vld [vmem:[%s11765_s1 + $0x420] sm:$0xff]  ;;  %v5484_v18 = vld [vmem:[%s11765_s1 + $0x410] sm:$0xff] }
   0x7   :  { %326 = vmatprep.subr.mxu1 %v5438_v10  ;;  %256 = vmatpush1.msra.mxu0 %v5443_v11  ;;  %v5491_v19 = vld [vmem:[%s11765_s1 + $0x108] sm:$0xff]  ;;  %v5503_v21 = vld [vmem:[%s11765_s1 + $0xf8] sm:$0xff]  ;;  %v5515_v23 = vld [vmem:[%s11765_s1 + $0xf0] sm:$0xff] }
   0x8   :  { %327 = vmatpush1.msra.mxu1 %v5448_v12  ;;  %257 = vmatprep.subr.mxu0 %v5455_v13  ;;  %v5496_v20 = vld [vmem:[%s11765_s1 + $0x408] sm:$0xff]  ;;  %v5508_v22 = vld [vmem:[%s11765_s1 + $0x3f8] sm:$0xff]  ;;  %v5520_v24 = vld [vmem:[%s11765_s1 + $0x3f0] sm:$0xff] }
   0x9   :  { %328 = vmatprep.subr.mxu1 %v5460_v14  ;;  %258 = vmatpush1.msra.mxu0 %v5467_v15  ;;  %v5527_v25 = vld [vmem:[%s11765_s1 + $0xe0] sm:$0xff]  ;;  %v5539_v27 = vld [vmem:[%s11765_s1 + $0xd8] sm:$0xff]  ;;  %v5551_v29 = vld [vmem:[%s11765_s1 + $0xc8] sm:$0xff] }
   0xa   :  { %329 = vmatpush1.msra.mxu1 %v5472_v16  ;;  %259 = vmatprep.subr.mxu0 %v5479_v17  ;;  %v5532_v26 = vld [vmem:[%s11765_s1 + $0x3e0] sm:$0xff]  ;;  %v5544_v28 = vld [vmem:[%s11765_s1 + $0x3d8] sm:$0xff]  ;;  %v5556_v30 = vld [vmem:[%s11765_s1 + $0x3c8] sm:$0xff] }
   0xb   :  { %330 = vmatprep.subr.mxu1 %v5484_v18  ;;  %260 = vmatpush1.msra.mxu0 %v5491_v19  ;;  %v5563_v31 = vld [vmem:[%s11765_s1 + $0xc0] sm:$0xff]  ;;  %v5575_v33 = vld [vmem:[%s11765_s1 + $0xb0] sm:$0xff]  ;;  %v5587_v35 = vld [vmem:[%s11765_s1 + $0xa8] sm:$0xff] }
   0xc   :  { %331 = vmatpush1.msra.mxu1 %v5496_v20  ;;  %261 = vmatprep.subr.mxu0 %v5503_v21  ;;  %v5568_v32 = vld [vmem:[%s11765_s1 + $0x3c0] sm:$0xff]  ;;  %v5580_v34 = vld [vmem:[%s11765_s1 + $0x3b0] sm:$0xff]  ;;  %v5592_v36 = vld [vmem:[%s11765_s1 + $0x3a8] sm:$0xff] }
   0xd   :  { %332 = vmatprep.subr.mxu1 %v5508_v22  ;;  %262 = vmatpush1.msra.mxu0 %v5515_v23  ;;  %v5599_v37 = vld [vmem:[%s11765_s1 + $0x98] sm:$0xff]  ;;  %v5611_v39 = vld [vmem:[%s11765_s1 + $0x90] sm:$0xff]  ;;  %v5623_v41 = vld [vmem:[%s11765_s1 + $0x80] sm:$0xff] }
   0xe   :  { %333 = vmatpush1.msra.mxu1 %v5520_v24  ;;  %263 = vmatprep.subr.mxu0 %v5527_v25  ;;  %v5604_v38 = vld [vmem:[%s11765_s1 + $0x398] sm:$0xff]  ;;  %v5616_v40 = vld [vmem:[%s11765_s1 + $0x390] sm:$0xff]  ;;  %v5628_v42 = vld [vmem:[%s11765_s1 + $0x380] sm:$0xff] }
   0xf   :  { %334 = vmatprep.subr.mxu1 %v5532_v26  ;;  %264 = vmatpush1.msra.mxu0 %v5539_v27  ;;  %v5635_v43 = vld [vmem:[%s11765_s1 + $0x78] sm:$0xff]  ;;  %v5647_v45 = vld [vmem:[%s11765_s1 + $0x68] sm:$0xff]  ;;  %v5659_v47 = vld [vmem:[%s11765_s1 + $0x60] sm:$0xff] }
  0x10   :  { %335 = vmatpush1.msra.mxu1 %v5544_v28  ;;  %265 = vmatprep.subr.mxu0 %v5551_v29  ;;  %v5640_v44 = vld [vmem:[%s11765_s1 + $0x378] sm:$0xff]  ;;  %v5652_v46 = vld [vmem:[%s11765_s1 + $0x368] sm:$0xff]  ;;  %v5664_v48 = vld [vmem:[%s11765_s1 + $0x360] sm:$0xff] }
  0x11   :  { %336 = vmatprep.subr.mxu1 %v5556_v30  ;;  %266 = vmatpush1.msra.mxu0 %v5563_v31  ;;  %v5671_v49 = vld [vmem:[%s11765_s1 + $0x50] sm:$0xff]  ;;  %v5683_v51 = vld [vmem:[%s11765_s1 + $0x48] sm:$0xff]  ;;  %v5695_v53 = vld [vmem:[%s11765_s1 + $0x38] sm:$0xff] }
  0x12   :  { %337 = vmatpush1.msra.mxu1 %v5568_v32  ;;  %267 = vmatprep.subr.mxu0 %v5575_v33  ;;  %v5676_v50 = vld [vmem:[%s11765_s1 + $0x350] sm:$0xff]  ;;  %v5688_v52 = vld [vmem:[%s11765_s1 + $0x348] sm:$0xff]  ;;  %v5700_v54 = vld [vmem:[%s11765_s1 + $0x338] sm:$0xff] }
  0x13   :  { %338 = vmatprep.subr.mxu1 %v5580_v34  ;;  %268 = vmatpush1.msra.mxu0 %v5587_v35  ;;  %12486 = vst [vmem:[#allocation2_spill] sm:$0xff] %v5700_v54  ;;  %v5707_v55 = vld [vmem:[%s11765_s1 + $0x30] sm:$0xff]  ;;  %v5719_v57 = vld [vmem:[%s11765_s1 + $0x20] sm:$0xff]  ;;  %v5731_v59 = vld [vmem:[%s11765_s1 + $0x18] sm:$0xff] }
  0x14   :  { %339 = vmatpush1.msra.mxu1 %v5592_v36  ;;  %269 = vmatprep.subr.mxu0 %v5599_v37  ;;  %v5712_v56 = vld [vmem:[%s11765_s1 + $0x330] sm:$0xff]  ;;  %12488 = vst [vmem:[#allocation4_spill] sm:$0xff] %v5719_v57  ;;  %v5724_v58 = vld [vmem:[%s11765_s1 + $0x320] sm:$0xff]  ;;  %12490 = vst [vmem:[#allocation6_spill] sm:$0xff] %v5731_v59 }
  0x15   :  { %340 = vmatprep.subr.mxu1 %v5604_v38  ;;  %270 = vmatpush1.msra.mxu0 %v5611_v39  ;;  %12487 = vst [vmem:[#allocation3_spill] sm:$0xff] %v5712_v56  ;;  %12489 = vst [vmem:[#allocation5_spill] sm:$0xff] %v5724_v58  ;;  %v5736_v60 = vld [vmem:[%s11765_s1 + $0x318] sm:$0xff]  ;;  %v5743_v61 = vld [vmem:[%s11765_s1 + $0x8] sm:$0xff] }
  0x16   :  { %341 = vmatpush1.msra.mxu1 %v5616_v40  ;;  %271 = vmatprep.subr.mxu0 %v5623_v41  ;;  %12491 = vst [vmem:[#allocation7_spill] sm:$0xff] %v5736_v60  ;;  %12492 = vst [vmem:[#allocation8_spill] sm:$0xff] %v5743_v61  ;;  %v5748_v62 = vld [vmem:[%s11765_s1 + $0x308] sm:$0xff]  ;;  %v5755_v63 = vld [vmem:[%s11765_s1] sm:$0xff] }
  0x17   :  { %342 = vmatprep.subr.mxu1 %v5628_v42  ;;  %272 = vmatpush1.msra.mxu0 %v5635_v43  ;;  %12493 = vst [vmem:[#allocation9_spill] sm:$0xff] %v5748_v62  ;;  %12494 = vst [vmem:[#allocation10_spill] sm:$0xff] %v5755_v63  ;;  %v5760_v3 = vld [vmem:[%s11765_s1 + $0x300] sm:$0xff] }
  0x18   :  { %343 = vmatpush1.msra.mxu1 %v5640_v44  ;;  %273 = vmatprep.subr.mxu0 %v5647_v45  ;;  %12495 = vst [vmem:[#allocation11_spill] sm:$0xff] %v5760_v3 }
  0x19   :  { %344 = vmatprep.subr.mxu1 %v5652_v46  ;;  %274 = vmatpush1.msra.mxu0 %v5659_v47 }
  0x1a   :  { %345 = vmatpush1.msra.mxu1 %v5664_v48  ;;  %275 = vmatprep.subr.mxu0 %v5671_v49 }
  0x1b   :  { %346 = vmatprep.subr.mxu1 %v5676_v50  ;;  %276 = vmatpush1.msra.mxu0 %v5683_v51 }
  0x1c   :  { %347 = vmatpush1.msra.mxu1 %v5688_v52  ;;  %277 = vmatprep.subr.mxu0 %v5695_v53 }
  0x1d   :  { %348 = vmatprep.subr.mxu1 %v5700_v54  ;;  %278 = vmatpush1.msra.mxu0 %v5707_v55  ;;  %v6201_v54 = vld [vmem:[%s11765_s1 + $0x2c8] sm:$0xff] }
  0x1e   :  { %349 = vmatpush1.msra.mxu1 %v5712_v56  ;;  %279 = vmatprep.subr.mxu0 %v5719_v57  ;;  %v5767_v56 = vld [vmem:[%s11765_s1 + $0x2f0] sm:$0xff]  ;;  %v6194_v57 = vld [vmem:[%s11765_s1 + $0x5e0] sm:$0xff]  ;;  %12568 = vst [vmem:[#allocation83_spill] sm:$0xff] %v6201_v54 }
  0x1f   :  { %350 = vmatprep.subr.mxu1 %v5724_v58  ;;  %280 = vmatpush1.msra.mxu0 %v5731_v59  ;;  %12496 = vst [vmem:[#allocation12_spill] sm:$0xff] %v5767_v56  ;;  %v5772_v58 = vld [vmem:[%s11765_s1 + $0x5f0] sm:$0xff]  ;;  %v5779_v59 = vld [vmem:[%s11765_s1 + $0x2e8] sm:$0xff]  ;;  %12567 = vst [vmem:[#allocation82_spill] sm:$0xff] %v6194_v57 }
  0x20   :  { %351 = vmatpush1.msra.mxu1 %v5736_v60  ;;  %12497 = vst [vmem:[#allocation13_spill] sm:$0xff] %v5772_v58  ;;  %281 = vmatprep.subr.mxu0 %v5743_v61  ;;  %12498 = vst [vmem:[#allocation14_spill] sm:$0xff] %v5779_v59  ;;  %v5784_v60 = vld [vmem:[%s11765_s1 + $0x5e8] sm:$0xff]  ;;  %v5791_v61 = vld [vmem:[%s11765_s1 + $0x2d8] sm:$0xff] }
  0x21   :  { %352 = vmatprep.subr.mxu1 %v5748_v62  ;;  %12499 = vst [vmem:[#allocation15_spill] sm:$0xff] %v5784_v60  ;;  %282 = vmatpush1.msra.mxu0 %v5755_v63  ;;  %12500 = vst [vmem:[#allocation16_spill] sm:$0xff] %v5791_v61  ;;  %v5796_v62 = vld [vmem:[%s11765_s1 + $0x5d8] sm:$0xff]  ;;  %v5803_v63 = vld [vmem:[%s11765_s1 + $0x2d0] sm:$0xff] }
  0x22   :  { %353 = vmatpush1.msra.mxu1 %v5760_v3  ;;  %12501 = vst [vmem:[#allocation17_spill] sm:$0xff] %v5796_v62  ;;  %283 = vmatprep.subr.mxu0 %v5767_v56  ;;  %12502 = vst [vmem:[#allocation18_spill] sm:$0xff] %v5803_v63  ;;  %v5808_v3 = vld [vmem:[%s11765_s1 + $0x5d0] sm:$0xff]  ;;  %v5815_v56 = vld [vmem:[%s11765_s1 + $0x2c0] sm:$0xff] }
  0x23   :  { %354 = vmatprep.subr.mxu1 %v5772_v58  ;;  %12503 = vst [vmem:[#allocation19_spill] sm:$0xff] %v5808_v3  ;;  %284 = vmatpush2.msra.mxu0 %v5779_v59  ;;  %12504 = vst [vmem:[#allocation20_spill] sm:$0xff] %v5815_v56  ;;  %v5820_v58 = vld [vmem:[%s11765_s1 + $0x5c0] sm:$0xff]  ;;  %v5827_v59 = vld [vmem:[%s11765_s1 + $0x2b8] sm:$0xff] }
  0x24   :  { %355 = vmatpush2.msra.mxu1 %v5784_v60  ;;  %12505 = vst [vmem:[#allocation21_spill] sm:$0xff] %v5820_v58  ;;  %285 = vmatprep.subr.mxu0 %v5791_v61  ;;  %12506 = vst [vmem:[#allocation22_spill] sm:$0xff] %v5827_v59  ;;  %v5832_v60 = vld [vmem:[%s11765_s1 + $0x5b8] sm:$0xff]  ;;  %v5839_v61 = vld [vmem:[%s11765_s1 + $0x2a8] sm:$0xff] }
  0x25   :  { %356 = vmatprep.subr.mxu1 %v5796_v62  ;;  %12507 = vst [vmem:[#allocation23_spill] sm:$0xff] %v5832_v60  ;;  %286 = vmatpush2.msra.mxu0 %v5803_v63  ;;  %12508 = vst [vmem:[#allocation24_spill] sm:$0xff] %v5839_v61  ;;  %v5844_v62 = vld [vmem:[%s11765_s1 + $0x5a8] sm:$0xff]  ;;  %v5851_v63 = vld [vmem:[%s11765_s1 + $0x2a0] sm:$0xff] }
  0x26   :  { %357 = vmatpush2.msra.mxu1 %v5808_v3  ;;  %12509 = vst [vmem:[#allocation25_spill] sm:$0xff] %v5844_v62  ;;  %287 = vmatprep.subr.mxu0 %v5815_v56  ;;  %12510 = vst [vmem:[#allocation26_spill] sm:$0xff] %v5851_v63  ;;  %v5856_v3 = vld [vmem:[%s11765_s1 + $0x5a0] sm:$0xff]  ;;  %v5863_v56 = vld [vmem:[%s11765_s1 + $0x290] sm:$0xff] }
  0x27   :  { %358 = vmatprep.subr.mxu1 %v5820_v58  ;;  %12511 = vst [vmem:[#allocation27_spill] sm:$0xff] %v5856_v3  ;;  %288 = vmatpush2.msra.mxu0 %v5827_v59  ;;  %12512 = vst [vmem:[#allocation28_spill] sm:$0xff] %v5863_v56  ;;  %v5868_v58 = vld [vmem:[%s11765_s1 + $0x590] sm:$0xff]  ;;  %v5875_v59 = vld [vmem:[%s11765_s1 + $0x288] sm:$0xff] }
  0x28   :  { %359 = vmatpush2.msra.mxu1 %v5832_v60  ;;  %12513 = vst [vmem:[#allocation29_spill] sm:$0xff] %v5868_v58  ;;  %289 = vmatprep.subr.mxu0 %v5839_v61  ;;  %12514 = vst [vmem:[#allocation30_spill] sm:$0xff] %v5875_v59  ;;  %v5880_v60 = vld [vmem:[%s11765_s1 + $0x588] sm:$0xff]  ;;  %v5887_v61 = vld [vmem:[%s11765_s1 + $0x278] sm:$0xff] }
  0x29   :  { %360 = vmatprep.subr.mxu1 %v5844_v62  ;;  %12515 = vst [vmem:[#allocation31_spill] sm:$0xff] %v5880_v60  ;;  %290 = vmatpush2.msra.mxu0 %v5851_v63  ;;  %12516 = vst [vmem:[#allocation32_spill] sm:$0xff] %v5887_v61  ;;  %v5892_v62 = vld [vmem:[%s11765_s1 + $0x578] sm:$0xff]  ;;  %v5899_v63 = vld [vmem:[%s11765_s1 + $0x270] sm:$0xff] }
  0x2a   :  { %361 = vmatpush2.msra.mxu1 %v5856_v3  ;;  %12517 = vst [vmem:[#allocation33_spill] sm:$0xff] %v5892_v62  ;;  %291 = vmatprep.subr.mxu0 %v5863_v56  ;;  %12518 = vst [vmem:[#allocation34_spill] sm:$0xff] %v5899_v63  ;;  %v5904_v3 = vld [vmem:[%s11765_s1 + $0x570] sm:$0xff]  ;;  %v5911_v56 = vld [vmem:[%s11765_s1 + $0x260] sm:$0xff] }
  0x2b   :  { %362 = vmatprep.subr.mxu1 %v5868_v58  ;;  %12519 = vst [vmem:[#allocation35_spill] sm:$0xff] %v5904_v3  ;;  %292 = vmatpush2.msra.mxu0 %v5875_v59  ;;  %12520 = vst [vmem:[#allocation36_spill] sm:$0xff] %v5911_v56  ;;  %v5916_v58 = vld [vmem:[%s11765_s1 + $0x560] sm:$0xff]  ;;  %v5923_v59 = vld [vmem:[%s11765_s1 + $0x258] sm:$0xff] }
  0x2c   :  { %363 = vmatpush2.msra.mxu1 %v5880_v60  ;;  %12521 = vst [vmem:[#allocation37_spill] sm:$0xff] %v5916_v58  ;;  %293 = vmatprep.subr.mxu0 %v5887_v61  ;;  %12522 = vst [vmem:[#allocation38_spill] sm:$0xff] %v5923_v59  ;;  %v5928_v60 = vld [vmem:[%s11765_s1 + $0x558] sm:$0xff]  ;;  %v5935_v61 = vld [vmem:[%s11765_s1 + $0x248] sm:$0xff] }
  0x2d   :  { %364 = vmatprep.subr.mxu1 %v5892_v62  ;;  %12523 = vst [vmem:[#allocation39_spill] sm:$0xff] %v5928_v60  ;;  %294 = vmatpush2.msra.mxu0 %v5899_v63  ;;  %12524 = vst [vmem:[#allocation40_spill] sm:$0xff] %v5935_v61  ;;  %v5940_v62 = vld [vmem:[%s11765_s1 + $0x548] sm:$0xff]  ;;  %v5947_v63 = vld [vmem:[%s11765_s1 + $0x240] sm:$0xff] }
  0x2e   :  { %365 = vmatpush2.msra.mxu1 %v5904_v3  ;;  %12525 = vst [vmem:[#allocation41_spill] sm:$0xff] %v5940_v62  ;;  %295 = vmatprep.subr.mxu0 %v5911_v56  ;;  %12526 = vst [vmem:[#allocation42_spill] sm:$0xff] %v5947_v63  ;;  %v5952_v3 = vld [vmem:[%s11765_s1 + $0x540] sm:$0xff]  ;;  %v5959_v56 = vld [vmem:[%s11765_s1 + $0x230] sm:$0xff] }
  0x2f   :  { %366 = vmatprep.subr.mxu1 %v5916_v58  ;;  %12527 = vst [vmem:[#allocation43_spill] sm:$0xff] %v5952_v3  ;;  %296 = vmatpush2.msra.mxu0 %v5923_v59  ;;  %12528 = vst [vmem:[#allocation44_spill] sm:$0xff] %v5959_v56  ;;  %v5964_v58 = vld [vmem:[%s11765_s1 + $0x530] sm:$0xff]  ;;  %v5971_v59 = vld [vmem:[%s11765_s1 + $0x228] sm:$0xff] }
  0x30   :  { %367 = vmatpush2.msra.mxu1 %v5928_v60  ;;  %12529 = vst [vmem:[#allocation45_spill] sm:$0xff] %v5964_v58  ;;  %297 = vmatprep.subr.mxu0 %v5935_v61  ;;  %12530 = vst [vmem:[#allocation46_spill] sm:$0xff] %v5971_v59  ;;  %v5976_v60 = vld [vmem:[%s11765_s1 + $0x528] sm:$0xff]  ;;  %v5983_v61 = vld [vmem:[%s11765_s1 + $0x218] sm:$0xff] }
  0x31   :  { %368 = vmatprep.subr.mxu1 %v5940_v62  ;;  %12531 = vst [vmem:[#allocation47_spill] sm:$0xff] %v5976_v60  ;;  %298 = vmatpush2.msra.mxu0 %v5947_v63  ;;  %12532 = vst [vmem:[#allocation48_spill] sm:$0xff] %v5983_v61  ;;  %v5988_v62 = vld [vmem:[%s11765_s1 + $0x518] sm:$0xff]  ;;  %v5995_v63 = vld [vmem:[%s11765_s1 + $0x210] sm:$0xff] }
  0x32   :  { %369 = vmatpush2.msra.mxu1 %v5952_v3  ;;  %12533 = vst [vmem:[#allocation49_spill] sm:$0xff] %v5988_v62  ;;  %299 = vmatprep.subr.mxu0 %v5959_v56  ;;  %12534 = vst [vmem:[#allocation50_spill] sm:$0xff] %v5995_v63  ;;  %v6000_v3 = vld [vmem:[%s11765_s1 + $0x510] sm:$0xff]  ;;  %v6007_v56 = vld [vmem:[%s11765_s1 + $0x200] sm:$0xff] }
  0x33   :  { %370 = vmatprep.subr.mxu1 %v5964_v58  ;;  %12535 = vst [vmem:[#allocation51_spill] sm:$0xff] %v6000_v3  ;;  %300 = vmatpush2.msra.mxu0 %v5971_v59  ;;  %12536 = vst [vmem:[#allocation52_spill] sm:$0xff] %v6007_v56  ;;  %v6012_v58 = vld [vmem:[%s11765_s1 + $0x500] sm:$0xff]  ;;  %v6019_v59 = vld [vmem:[%s11765_s1 + $0x1f8] sm:$0xff] }
  0x34   :  { %371 = vmatpush2.msra.mxu1 %v5976_v60  ;;  %12537 = vst [vmem:[#allocation53_spill] sm:$0xff] %v6012_v58  ;;  %301 = vmatprep.subr.mxu0 %v5983_v61  ;;  %12538 = vst [vmem:[#allocation54_spill] sm:$0xff] %v6019_v59  ;;  %v6024_v60 = vld [vmem:[%s11765_s1 + $0x4f8] sm:$0xff]  ;;  %v6031_v61 = vld [vmem:[%s11765_s1 + $0x1e8] sm:$0xff] }
  0x35   :  { %372 = vmatprep.subr.mxu1 %v5988_v62  ;;  %12539 = vst [vmem:[#allocation55_spill] sm:$0xff] %v6024_v60  ;;  %302 = vmatpush2.msra.mxu0 %v5995_v63  ;;  %12540 = vst [vmem:[#allocation56_spill] sm:$0xff] %v6031_v61  ;;  %v6036_v62 = vld [vmem:[%s11765_s1 + $0x4e8] sm:$0xff]  ;;  %v6043_v63 = vld [vmem:[%s11765_s1 + $0x1e0] sm:$0xff] }
  0x36   :  { %373 = vmatpush2.msra.mxu1 %v6000_v3  ;;  %12541 = vst [vmem:[#allocation57_spill] sm:$0xff] %v6036_v62  ;;  %303 = vmatprep.subr.mxu0 %v6007_v56  ;;  %12542 = vst [vmem:[#allocation58_spill] sm:$0xff] %v6043_v63  ;;  %v6048_v3 = vld [vmem:[%s11765_s1 + $0x4e0] sm:$0xff]  ;;  %v6055_v56 = vld [vmem:[%s11765_s1 + $0x1d0] sm:$0xff] }
  0x37   :  { %374 = vmatprep.subr.mxu1 %v6012_v58  ;;  %12543 = vst [vmem:[#allocation59_spill] sm:$0xff] %v6048_v3  ;;  %304 = vmatpush2.msra.mxu0 %v6019_v59  ;;  %12544 = vst [vmem:[#allocation60_spill] sm:$0xff] %v6055_v56  ;;  %v6060_v58 = vld [vmem:[%s11765_s1 + $0x4d0] sm:$0xff]  ;;  %v6067_v59 = vld [vmem:[%s11765_s1 + $0x1c8] sm:$0xff] }
  0x38   :  { %375 = vmatpush2.msra.mxu1 %v6024_v60  ;;  %12545 = vst [vmem:[#allocation61_spill] sm:$0xff] %v6060_v58  ;;  %305 = vmatprep.subr.mxu0 %v6031_v61  ;;  %12546 = vst [vmem:[#allocation62_spill] sm:$0xff] %v6067_v59  ;;  %v6072_v60 = vld [vmem:[%s11765_s1 + $0x4c8] sm:$0xff]  ;;  %v6079_v61 = vld [vmem:[%s11765_s1 + $0x1b8] sm:$0xff] }
  0x39   :  { %376 = vmatprep.subr.mxu1 %v6036_v62  ;;  %12547 = vst [vmem:[#allocation63_spill] sm:$0xff] %v6072_v60  ;;  %306 = vmatpush2.msra.mxu0 %v6043_v63  ;;  %12548 = vst [vmem:[#allocation64_spill] sm:$0xff] %v6079_v61  ;;  %v6084_v62 = vld [vmem:[%s11765_s1 + $0x4b8] sm:$0xff]  ;;  %v6091_v63 = vld [vmem:[%s11765_s1 + $0x1b0] sm:$0xff] }
  0x3a   :  { %377 = vmatpush2.msra.mxu1 %v6048_v3  ;;  %12549 = vst [vmem:[#allocation65_spill] sm:$0xff] %v6084_v62  ;;  %307 = vmatprep.subr.mxu0 %v6055_v56  ;;  %12550 = vst [vmem:[#allocation66_spill] sm:$0xff] %v6091_v63  ;;  %v6096_v3 = vld [vmem:[%s11765_s1 + $0x4b0] sm:$0xff]  ;;  %v6103_v56 = vld [vmem:[%s11765_s1 + $0x1a0] sm:$0xff] }
  0x3b   :  { %378 = vmatprep.subr.mxu1 %v6060_v58  ;;  %12551 = vst [vmem:[#allocation67_spill] sm:$0xff] %v6096_v3  ;;  %308 = vmatpush2.msra.mxu0 %v6067_v59  ;;  %12552 = vst [vmem:[#allocation68_spill] sm:$0xff] %v6103_v56  ;;  %v6108_v58 = vld [vmem:[%s11765_s1 + $0x4a0] sm:$0xff]  ;;  %v6115_v59 = vld [vmem:[%s11765_s1 + $0x198] sm:$0xff] }
  0x3c   :  { %379 = vmatpush2.msra.mxu1 %v6072_v60  ;;  %12553 = vst [vmem:[#allocation69_spill] sm:$0xff] %v6108_v58  ;;  %309 = vmatprep.subr.mxu0 %v6079_v61  ;;  %12554 = vst [vmem:[#allocation70_spill] sm:$0xff] %v6115_v59  ;;  %v6120_v60 = vld [vmem:[%s11765_s1 + $0x498] sm:$0xff]  ;;  %v6127_v61 = vld [vmem:[%s11765_s1 + $0x188] sm:$0xff] }
  0x3d   :  { %380 = vmatprep.subr.mxu1 %v6084_v62  ;;  %12555 = vst [vmem:[#allocation71_spill] sm:$0xff] %v6120_v60  ;;  %310 = vmatpush2.msra.mxu0 %v6091_v63  ;;  %12556 = vst [vmem:[#allocation72_spill] sm:$0xff] %v6127_v61  ;;  %v6132_v62 = vld [vmem:[%s11765_s1 + $0x488] sm:$0xff]  ;;  %v6139_v63 = vld [vmem:[%s11765_s1 + $0x180] sm:$0xff] }
  0x3e   :  { %381 = vmatpush2.msra.mxu1 %v6096_v3  ;;  %12557 = vst [vmem:[#allocation73_spill] sm:$0xff] %v6132_v62  ;;  %311 = vmatprep.subr.mxu0 %v6103_v56  ;;  %12558 = vst [vmem:[#allocation74_spill] sm:$0xff] %v6139_v63  ;;  %v6144_v3 = vld [vmem:[%s11765_s1 + $0x480] sm:$0xff] }
  0x3f   :  { %382 = vmatprep.subr.mxu1 %v6108_v58  ;;  %12559 = vst [vmem:[#allocation75_spill] sm:$0xff] %v6144_v3  ;;  %312 = vmatpush2.msra.mxu0 %v6115_v59  ;;  %v6151_v56 = vld [vmem:[%s11766_s0] sm:$0x3]  ;;  %v6158_v58 = vld [vmem:[%s11765_s1 + $0x2f8] sm:$0xff] }
  0x40   :  { %383 = vmatpush2.msra.mxu1 %v6120_v60  ;;  %313 = vmatprep.subr.mxu0 %v6127_v61  ;;  %12560 = vst [vmem:[#allocation76_spill] sm:$0xff] %v6158_v58  ;;  %v6165_v60 = vld [vmem:[%s11765_s1 + $0x178] sm:$0xff]  ;;  %v6189_v59 = vld [vmem:[%s11765_s1 + $0x160] sm:$0xff] }
  0x41   :  { %384 = vmatprep.subr.mxu1 %v6132_v62  ;;  %314 = vmatpush2.msra.mxu0 %v6139_v63  ;;  %12561 = vst [vmem:[#allocation77_spill] sm:$0xff] %v6165_v60  ;;  %v6170_v61 = vld [vmem:[%s11765_s1 + $0x5f8] sm:$0xff]  ;;  %v12563_v62 = vmov 0.0   ;;  %v6177_v63 = vld [vmem:[%s11765_s1 + $0x2e0] sm:$0xff]  ;;  %12566 = vst [vmem:[#allocation81_spill] sm:$0xff] %v6189_v59 }
  0x42   :  { %385 = vmatpush2.msra.mxu1 %v6144_v3  ;;  %12562 = vst [vmem:[#allocation78_spill] sm:$0xff] %v6170_v61  ;;  %386 = vmatprep.mubr.f32.mxu1 %v6151_v56  ;;  %12564 = vst [vmem:[#allocation79_spill] sm:$0xff] %v6177_v63  ;;  %v6182_v3 = vld [vmem:[%s11765_s1 + $0x478] sm:$0xff] }
  0x43   :  { %316 = vmatmul.mubr.f32.vlgmr.msra.gmra.mxu0 %v12563_v62  ;;  %12565 = vst [vmem:[#allocation80_spill] sm:$0xff] %v6182_v3  ;;  %387 = vmatmul.mubr.f32.vlgmr.msra.gmra.mxu1 %v12563_v62 }
  0x44   :  { %3555 = vmatprep.subr.mxu0 %v6158_v58  ;;  %3590 = vmatprep.subr.mxu1 %v6170_v61  ;;  %v6206_v58 = vld [vmem:[%s11765_s1 + $0x460] sm:$0xff]  ;;  %v6218_v61 = vld [vmem:[%s11765_s1 + $0x5c8] sm:$0xff] }
  0x45   :  { %3556 = vmatpush3.msra.mxu0 %v6165_v60  ;;  %12569 = vst [vmem:[#allocation84_spill] sm:$0xff] %v6206_v58  ;;  %3591 = vmatpush3.msra.mxu1 %v6182_v3  ;;  %v6213_v60 = vld [vmem:[%s11765_s1 + $0x148] sm:$0xff]  ;;  %12571 = vst [vmem:[#allocation86_spill] sm:$0xff] %v6218_v61 }
  0x46   :  { %3557 = vmatprep.subr.mxu0 %v6177_v63  ;;  %12570 = vst [vmem:[#allocation85_spill] sm:$0xff] %v6213_v60  ;;  %3592 = vmatprep.subr.mxu1 %v6194_v57  ;;  %v6225_v63 = vld [vmem:[%s11765_s1 + $0x2b0] sm:$0xff]  ;;  %v6230_v3 = vld [vmem:[%s11765_s1 + $0x448] sm:$0xff] }
  0x47   :  { %3558 = vmatpush3.msra.mxu0 %v6189_v59  ;;  %12572 = vst [vmem:[#allocation87_spill] sm:$0xff] %v6225_v63  ;;  %12573 = vst [vmem:[#allocation88_spill] sm:$0xff] %v6230_v3  ;;  %3593 = vmatpush3.msra.mxu1 %v6206_v58  ;;  %v6237_v59 = vld [vmem:[%s11765_s1 + $0x130] sm:$0xff] }
  0x48   :  { %3559 = vmatprep.subr.mxu0 %v6201_v54  ;;  %12574 = vst [vmem:[#allocation89_spill] sm:$0xff] %v6237_v59  ;;  %v6242_v57 = vld [vmem:[%s11765_s1 + $0x5b0] sm:$0xff]  ;;  %3594 = vmatprep.subr.mxu1 %v6218_v61  ;;  %v6249_v54 = vld [vmem:[%s11765_s1 + $0x298] sm:$0xff] }
  0x49   :  { %12575 = vst [vmem:[#allocation90_spill] sm:$0xff] %v6242_v57  ;;  %3560 = vmatpush3.msra.mxu0 %v6213_v60  ;;  %12576 = vst [vmem:[#allocation91_spill] sm:$0xff] %v6249_v54  ;;  %v6254_v58 = vld [vmem:[%s11765_s1 + $0x430] sm:$0xff]  ;;  %3595 = vmatpush3.msra.mxu1 %v6230_v3  ;;  %v6261_v60 = vld [vmem:[%s11765_s1 + $0x118] sm:$0xff] }
  0x4a   :  { %12577 = vst [vmem:[#allocation92_spill] sm:$0xff] %v6254_v58  ;;  %3561 = vmatprep.subr.mxu0 %v6225_v63  ;;  %12578 = vst [vmem:[#allocation93_spill] sm:$0xff] %v6261_v60  ;;  %v6266_v61 = vld [vmem:[%s11765_s1 + $0x598] sm:$0xff]  ;;  %3596 = vmatprep.subr.mxu1 %v6242_v57  ;;  %v6273_v63 = vld [vmem:[%s11765_s1 + $0x280] sm:$0xff] }
  0x4b   :  { %12579 = vst [vmem:[#allocation94_spill] sm:$0xff] %v6266_v61  ;;  %3562 = vmatpush3.msra.mxu0 %v6237_v59  ;;  %12580 = vst [vmem:[#allocation95_spill] sm:$0xff] %v6273_v63  ;;  %v6278_v3 = vld [vmem:[%s11765_s1 + $0x418] sm:$0xff]  ;;  %3597 = vmatpush3.msra.mxu1 %v6254_v58  ;;  %v6285_v59 = vld [vmem:[%s11765_s1 + $0x100] sm:$0xff] }
  0x4c   :  { %12581 = vst [vmem:[#allocation96_spill] sm:$0xff] %v6278_v3  ;;  %3563 = vmatprep.subr.mxu0 %v6249_v54  ;;  %12582 = vst [vmem:[#allocation97_spill] sm:$0xff] %v6285_v59  ;;  %v6290_v57 = vld [vmem:[%s11765_s1 + $0x580] sm:$0xff]  ;;  %3598 = vmatprep.subr.mxu1 %v6266_v61  ;;  %v6297_v54 = vld [vmem:[%s11765_s1 + $0x268] sm:$0xff] }
  0x4d   :  { %12583 = vst [vmem:[#allocation98_spill] sm:$0xff] %v6290_v57  ;;  %3564 = vmatpush3.msra.mxu0 %v6261_v60  ;;  %12584 = vst [vmem:[#allocation99_spill] sm:$0xff] %v6297_v54  ;;  %v6302_v58 = vld [vmem:[%s11765_s1 + $0x400] sm:$0xff]  ;;  %3599 = vmatpush3.msra.mxu1 %v6278_v3  ;;  %v6309_v60 = vld [vmem:[%s11765_s1 + $0xe8] sm:$0xff] }
  0x4e   :  { %12585 = vst [vmem:[#allocation100_spill] sm:$0xff] %v6302_v58  ;;  %3565 = vmatprep.subr.mxu0 %v6273_v63  ;;  %12586 = vst [vmem:[#allocation101_spill] sm:$0xff] %v6309_v60  ;;  %v6314_v61 = vld [vmem:[%s11765_s1 + $0x568] sm:$0xff]  ;;  %3600 = vmatprep.subr.mxu1 %v6290_v57  ;;  %v6321_v63 = vld [vmem:[%s11765_s1 + $0x250] sm:$0xff] }
  0x4f   :  { %12587 = vst [vmem:[#allocation102_spill] sm:$0xff] %v6314_v61  ;;  %3566 = vmatpush3.msra.mxu0 %v6285_v59  ;;  %12588 = vst [vmem:[#allocation103_spill] sm:$0xff] %v6321_v63  ;;  %v6326_v3 = vld [vmem:[%s11765_s1 + $0x3e8] sm:$0xff]  ;;  %3601 = vmatpush3.msra.mxu1 %v6302_v58  ;;  %v6333_v59 = vld [vmem:[%s11765_s1 + $0xd0] sm:$0xff] }
  0x50   :  { %12589 = vst [vmem:[#allocation104_spill] sm:$0xff] %v6326_v3  ;;  %3567 = vmatprep.subr.mxu0 %v6297_v54  ;;  %12590 = vst [vmem:[#allocation105_spill] sm:$0xff] %v6333_v59  ;;  %v6338_v57 = vld [vmem:[%s11765_s1 + $0x550] sm:$0xff]  ;;  %3602 = vmatprep.subr.mxu1 %v6314_v61  ;;  %v6345_v54 = vld [vmem:[%s11765_s1 + $0x238] sm:$0xff] }
  0x51   :  { %12591 = vst [vmem:[#allocation106_spill] sm:$0xff] %v6338_v57  ;;  %3568 = vmatpush3.msra.mxu0 %v6309_v60  ;;  %12592 = vst [vmem:[#allocation107_spill] sm:$0xff] %v6345_v54  ;;  %v6350_v58 = vld [vmem:[%s11765_s1 + $0x3d0] sm:$0xff]  ;;  %3603 = vmatpush3.msra.mxu1 %v6326_v3  ;;  %v6357_v60 = vld [vmem:[%s11765_s1 + $0xb8] sm:$0xff] }
  0x52   :  { %12593 = vst [vmem:[#allocation108_spill] sm:$0xff] %v6350_v58  ;;  %3569 = vmatprep.subr.mxu0 %v6321_v63  ;;  %12594 = vst [vmem:[#allocation109_spill] sm:$0xff] %v6357_v60  ;;  %v6362_v61 = vld [vmem:[%s11765_s1 + $0x538] sm:$0xff]  ;;  %3604 = vmatprep.subr.mxu1 %v6338_v57  ;;  %v6369_v63 = vld [vmem:[%s11765_s1 + $0x220] sm:$0xff] }
  0x53   :  { %12595 = vst [vmem:[#allocation110_spill] sm:$0xff] %v6362_v61  ;;  %3570 = vmatpush3.msra.mxu0 %v6333_v59  ;;  %12596 = vst [vmem:[#allocation111_spill] sm:$0xff] %v6369_v63  ;;  %v6374_v3 = vld [vmem:[%s11765_s1 + $0x3b8] sm:$0xff]  ;;  %3605 = vmatpush3.msra.mxu1 %v6350_v58  ;;  %v6381_v59 = vld [vmem:[%s11765_s1 + $0xa0] sm:$0xff] }
  0x54   :  { %12597 = vst [vmem:[#allocation112_spill] sm:$0xff] %v6374_v3  ;;  %3571 = vmatprep.subr.mxu0 %v6345_v54  ;;  %12598 = vst [vmem:[#allocation113_spill] sm:$0xff] %v6381_v59  ;;  %v6386_v57 = vld [vmem:[%s11765_s1 + $0x520] sm:$0xff]  ;;  %3606 = vmatprep.subr.mxu1 %v6362_v61  ;;  %v6393_v54 = vld [vmem:[%s11765_s1 + $0x208] sm:$0xff] }
  0x55   :  { %12599 = vst [vmem:[#allocation114_spill] sm:$0xff] %v6386_v57  ;;  %3572 = vmatpush3.msra.mxu0 %v6357_v60  ;;  %12600 = vst [vmem:[#allocation115_spill] sm:$0xff] %v6393_v54  ;;  %v6398_v58 = vld [vmem:[%s11765_s1 + $0x3a0] sm:$0xff]  ;;  %3607 = vmatpush3.msra.mxu1 %v6374_v3  ;;  %v6405_v60 = vld [vmem:[%s11765_s1 + $0x88] sm:$0xff] }
  0x56   :  { %12601 = vst [vmem:[#allocation116_spill] sm:$0xff] %v6398_v58  ;;  %3573 = vmatprep.subr.mxu0 %v6369_v63  ;;  %12602 = vst [vmem:[#allocation117_spill] sm:$0xff] %v6405_v60  ;;  %v6410_v61 = vld [vmem:[%s11765_s1 + $0x508] sm:$0xff]  ;;  %3608 = vmatprep.subr.mxu1 %v6386_v57  ;;  %v6417_v63 = vld [vmem:[%s11765_s1 + $0x1f0] sm:$0xff] }
  0x57   :  { %12603 = vst [vmem:[#allocation118_spill] sm:$0xff] %v6410_v61  ;;  %3574 = vmatpush3.msra.mxu0 %v6381_v59  ;;  %12604 = vst [vmem:[#allocation119_spill] sm:$0xff] %v6417_v63  ;;  %v6422_v3 = vld [vmem:[%s11765_s1 + $0x388] sm:$0xff]  ;;  %3609 = vmatpush3.msra.mxu1 %v6398_v58  ;;  %v6429_v59 = vld [vmem:[%s11765_s1 + $0x70] sm:$0xff] }
  0x58   :  { %12605 = vst [vmem:[#allocation120_spill] sm:$0xff] %v6422_v3  ;;  %3575 = vmatprep.subr.mxu0 %v6393_v54  ;;  %12606 = vst [vmem:[#allocation121_spill] sm:$0xff] %v6429_v59  ;;  %v6434_v57 = vld [vmem:[%s11765_s1 + $0x4f0] sm:$0xff]  ;;  %3610 = vmatprep.subr.mxu1 %v6410_v61  ;;  %v6441_v54 = vld [vmem:[%s11765_s1 + $0x1d8] sm:$0xff] }
  0x59   :  { %12607 = vst [vmem:[#allocation122_spill] sm:$0xff] %v6434_v57  ;;  %3576 = vmatpush3.msra.mxu0 %v6405_v60  ;;  %12608 = vst [vmem:[#allocation123_spill] sm:$0xff] %v6441_v54  ;;  %v6446_v58 = vld [vmem:[%s11765_s1 + $0x370] sm:$0xff]  ;;  %3611 = vmatpush3.msra.mxu1 %v6422_v3  ;;  %v6453_v60 = vld [vmem:[%s11765_s1 + $0x58] sm:$0xff] }
  0x5a   :  { %12609 = vst [vmem:[#allocation124_spill] sm:$0xff] %v6446_v58  ;;  %3577 = vmatprep.subr.mxu0 %v6417_v63  ;;  %12610 = vst [vmem:[#allocation125_spill] sm:$0xff] %v6453_v60  ;;  %v6458_v61 = vld [vmem:[%s11765_s1 + $0x4d8] sm:$0xff]  ;;  %3612 = vmatprep.subr.mxu1 %v6434_v57  ;;  %v6465_v63 = vld [vmem:[%s11765_s1 + $0x1c0] sm:$0xff] }
  0x5b   :  { %12611 = vst [vmem:[#allocation126_spill] sm:$0xff] %v6458_v61  ;;  %3578 = vmatpush3.msra.mxu0 %v6429_v59  ;;  %12612 = vst [vmem:[#allocation127_spill] sm:$0xff] %v6465_v63  ;;  %v6470_v3 = vld [vmem:[%s11765_s1 + $0x358] sm:$0xff]  ;;  %3613 = vmatpush3.msra.mxu1 %v6446_v58  ;;  %v6477_v59 = vld [vmem:[%s11765_s1 + $0x40] sm:$0xff] }
  0x5c   :  { %12613 = vst [vmem:[#allocation128_spill] sm:$0xff] %v6470_v3  ;;  %3579 = vmatprep.subr.mxu0 %v6441_v54  ;;  %12614 = vst [vmem:[#allocation129_spill] sm:$0xff] %v6477_v59  ;;  %v6482_v57 = vld [vmem:[%s11765_s1 + $0x4c0] sm:$0xff]  ;;  %3614 = vmatprep.subr.mxu1 %v6458_v61  ;;  %v6489_v54 = vld [vmem:[%s11765_s1 + $0x1a8] sm:$0xff] }
  0x5d   :  { %12615 = vst [vmem:[#allocation130_spill] sm:$0xff] %v6482_v57  ;;  %3580 = vmatpush3.msra.mxu0 %v6453_v60  ;;  %12616 = vst [vmem:[#allocation131_spill] sm:$0xff] %v6489_v54  ;;  %v6494_v58 = vld [vmem:[%s11765_s1 + $0x340] sm:$0xff]  ;;  %3615 = vmatpush3.msra.mxu1 %v6470_v3  ;;  %v6501_v60 = vld [vmem:[%s11765_s1 + $0x28] sm:$0xff] }
  0x5e   :  { %12617 = vst [vmem:[#allocation132_spill] sm:$0xff] %v6494_v58  ;;  %3581 = vmatprep.subr.mxu0 %v6465_v63  ;;  %12618 = vst [vmem:[#allocation133_spill] sm:$0xff] %v6501_v60  ;;  %v6506_v61 = vld [vmem:[%s11765_s1 + $0x4a8] sm:$0xff]  ;;  %3616 = vmatprep.subr.mxu1 %v6482_v57  ;;  %v6513_v63 = vld [vmem:[%s11765_s1 + $0x190] sm:$0xff] }
  0x5f   :  { %3582 = vmatpush3.msra.mxu0 %v6477_v59  ;;  %12619 = vst [vmem:[#allocation134_spill] sm:$0xff] %v6513_v63  ;;  %v6518_v3 = vld [vmem:[%s11765_s1 + $0x328] sm:$0xff]  ;;  %3617 = vmatpush3.msra.mxu1 %v6494_v58  ;;  %v6525_v59 = vld [vmem:[%s11765_s1 + $0x10] sm:$0xff] }
  0x60   :  { %3583 = vmatprep.subr.mxu0 %v6489_v54  ;;  %12620 = vst [vmem:[#allocation135_spill] sm:$0xff] %v6525_v59  ;;  %3618 = vmatprep.subr.mxu1 %v6506_v61  ;;  %v6532_v57 = vld [vmem:[%s11765_s1 + $0x490] sm:$0xff] }
  0x61   :  { %3584 = vmatpush3.msra.mxu0 %v6501_v60  ;;  %12621 = vst [vmem:[#allocation136_spill] sm:$0xff] %v6532_v57  ;;  %3619 = vmatpush3.msra.mxu1 %v6518_v3  ;;  %v6539_v54 = vld [vmem:[%s11765_s1 + $0x310] sm:$0xff]  ;;  %v12708_v60 = vld [vmem:[#allocation98_spill] sm:$0xff] }
  0x62   :  { %3585 = vmatprep.subr.mxu0 %v6513_v63  ;;  %12622 = vst [vmem:[#allocation137_spill] sm:$0xff] %v6539_v54  ;;  %457 = vmatprep.mubr.f32.mxu0 %v12563_v62  ;;  %v12707_v63 = vld [vmem:[#allocation96_spill] sm:$0xff] }
  0x63   :  { %3586 = vmatpush3.msra.mxu0 %v6525_v59  ;;  %3620 = vmatprep.subr.mxu1 %v6532_v57  ;;  %v12705_v59 = vld [vmem:[#allocation92_spill] sm:$0xff] }
  0x64   :  { %458 = vmatmul.mubr.f32.vlgmr.msra.gmra.mxu0 %v12563_v62  ;;  %3621 = vmatpush3.msra.mxu1 %v6539_v54 }
  0x65   :  { %543 = vmatprep.subr.mxu0 %v5386_v0  ;;  %527 = vmatprep.mubr.f32.mxu1 %v6151_v56  ;;  %v12623_v0 = vld [vmem:[#allocation2_spill] sm:$0xff]  ;;  %v12669_v56 = vld [vmem:[#allocation47_spill] sm:$0xff] }
  0x66   :  { %544 = vmatpush1.msra.mxu0 %v5396_v2  ;;  %614 = vmatprep.subr.mxu1 %v5391_v1  ;;  %v12624_v1 = vld [vmem:[#allocation4_spill] sm:$0xff]  ;;  %v12625_v2 = vld [vmem:[#allocation3_spill] sm:$0xff] }
  0x67   :  { %528 = vmatmul.mubr.f32.vlgmr.msra.gmra.mxu1 %v12563_v62  ;;  %545 = vmatprep.subr.mxu0 %v5409_v5  ;;  %v12627_v5 = vld [vmem:[#allocation5_spill] sm:$0xff] }
  0x68   :  { %615 = vmatpush1.msra.mxu1 %v5404_v4  ;;  %546 = vmatpush1.msra.mxu0 %v5421_v7  ;;  %v12626_v4 = vld [vmem:[#allocation6_spill] sm:$0xff]  ;;  %v12629_v7 = vld [vmem:[#allocation7_spill] sm:$0xff] }
  0x69   :  { %616 = vmatprep.subr.mxu1 %v5414_v6  ;;  %547 = vmatprep.subr.mxu0 %v5431_v9  ;;  %v12628_v6 = vld [vmem:[#allocation8_spill] sm:$0xff]  ;;  %v12631_v9 = vld [vmem:[#allocation9_spill] sm:$0xff] }
  0x6a   :  { %617 = vmatpush1.msra.mxu1 %v5426_v8  ;;  %548 = vmatpush1.msra.mxu0 %v5443_v11  ;;  %v12630_v8 = vld [vmem:[#allocation10_spill] sm:$0xff]  ;;  %v12633_v11 = vld [vmem:[#allocation11_spill] sm:$0xff] }
  0x6b   :  { %618 = vmatprep.subr.mxu1 %v5438_v10  ;;  %549 = vmatprep.subr.mxu0 %v5455_v13  ;;  %v12632_v10 = vld [vmem:[#allocation12_spill] sm:$0xff]  ;;  %v12635_v13 = vld [vmem:[#allocation13_spill] sm:$0xff] }
  0x6c   :  { %619 = vmatpush1.msra.mxu1 %v5448_v12  ;;  %550 = vmatpush1.msra.mxu0 %v5467_v15  ;;  %v12634_v12 = vld [vmem:[#allocation14_spill] sm:$0xff]  ;;  %v12637_v15 = vld [vmem:[#allocation15_spill] sm:$0xff] }
  0x6d   :  { %620 = vmatprep.subr.mxu1 %v5460_v14  ;;  %551 = vmatprep.subr.mxu0 %v5479_v17  ;;  %v12636_v14 = vld [vmem:[#allocation16_spill] sm:$0xff]  ;;  %v12639_v17 = vld [vmem:[#allocation17_spill] sm:$0xff] }
  0x6e   :  { %621 = vmatpush1.msra.mxu1 %v5472_v16  ;;  %552 = vmatpush1.msra.mxu0 %v5491_v19  ;;  %v12638_v16 = vld [vmem:[#allocation18_spill] sm:$0xff]  ;;  %v12641_v19 = vld [vmem:[#allocation19_spill] sm:$0xff] }
  0x6f   :  { %622 = vmatprep.subr.mxu1 %v5484_v18  ;;  %553 = vmatprep.subr.mxu0 %v5503_v21  ;;  %v12640_v18 = vld [vmem:[#allocation20_spill] sm:$0xff]  ;;  %v12643_v21 = vld [vmem:[#allocation21_spill] sm:$0xff] }
  0x70   :  { %623 = vmatpush1.msra.mxu1 %v5496_v20  ;;  %554 = vmatpush1.msra.mxu0 %v5515_v23  ;;  %v12642_v20 = vld [vmem:[#allocation22_spill] sm:$0xff]  ;;  %v12645_v23 = vld [vmem:[#allocation23_spill] sm:$0xff] }
  0x71   :  { %624 = vmatprep.subr.mxu1 %v5508_v22  ;;  %555 = vmatprep.subr.mxu0 %v5527_v25  ;;  %v12644_v22 = vld [vmem:[#allocation24_spill] sm:$0xff]  ;;  %v12647_v25 = vld [vmem:[#allocation25_spill] sm:$0xff] }
  0x72   :  { %625 = vmatpush1.msra.mxu1 %v5520_v24  ;;  %556 = vmatpush1.msra.mxu0 %v5539_v27  ;;  %v12646_v24 = vld [vmem:[#allocation26_spill] sm:$0xff]  ;;  %v12649_v27 = vld [vmem:[#allocation27_spill] sm:$0xff] }
  0x73   :  { %626 = vmatprep.subr.mxu1 %v5532_v26  ;;  %557 = vmatprep.subr.mxu0 %v5551_v29  ;;  %v12648_v26 = vld [vmem:[#allocation28_spill] sm:$0xff]  ;;  %v12651_v29 = vld [vmem:[#allocation29_spill] sm:$0xff] }
  0x74   :  { %627 = vmatpush1.msra.mxu1 %v5544_v28  ;;  %558 = vmatpush1.msra.mxu0 %v5563_v31  ;;  %v12650_v28 = vld [vmem:[#allocation30_spill] sm:$0xff]  ;;  %v12653_v31 = vld [vmem:[#allocation31_spill] sm:$0xff] }
  0x75   :  { %628 = vmatprep.subr.mxu1 %v5556_v30  ;;  %559 = vmatprep.subr.mxu0 %v5575_v33  ;;  %v12652_v30 = vld [vmem:[#allocation32_spill] sm:$0xff]  ;;  %v12655_v33 = vld [vmem:[#allocation33_spill] sm:$0xff] }
  0x76   :  { %629 = vmatpush1.msra.mxu1 %v5568_v32  ;;  %560 = vmatpush1.msra.mxu0 %v5587_v35  ;;  %v12654_v32 = vld [vmem:[#allocation34_spill] sm:$0xff]  ;;  %v12657_v35 = vld [vmem:[#allocation35_spill] sm:$0xff] }
  0x77   :  { %630 = vmatprep.subr.mxu1 %v5580_v34  ;;  %561 = vmatprep.subr.mxu0 %v5599_v37  ;;  %v12656_v34 = vld [vmem:[#allocation36_spill] sm:$0xff]  ;;  %v12659_v37 = vld [vmem:[#allocation37_spill] sm:$0xff] }
  0x78   :  { %631 = vmatpush1.msra.mxu1 %v5592_v36  ;;  %562 = vmatpush1.msra.mxu0 %v5611_v39  ;;  %v12658_v36 = vld [vmem:[#allocation38_spill] sm:$0xff]  ;;  %v12660_v39 = vld [vmem:[#allocation40_spill] sm:$0xff] }
  0x79   :  { %632 = vmatprep.subr.mxu1 %v5604_v38  ;;  %563 = vmatprep.subr.mxu0 %v5623_v41  ;;  %v12661_v41 = vld [vmem:[#allocation39_spill] sm:$0xff] }
  0x7a   :  { %633 = vmatpush1.msra.mxu1 %v5616_v40  ;;  %564 = vmatpush1.msra.mxu0 %v5635_v43  ;;  %v12662_v43 = vld [vmem:[#allocation42_spill] sm:$0xff] }
  0x7b   :  { %634 = vmatprep.subr.mxu1 %v5628_v42  ;;  %565 = vmatprep.subr.mxu0 %v5647_v45  ;;  %v12663_v45 = vld [vmem:[#allocation41_spill] sm:$0xff] }
  0x7c   :  { %635 = vmatpush1.msra.mxu1 %v5640_v44  ;;  %566 = vmatpush1.msra.mxu0 %v5659_v47  ;;  %v12664_v47 = vld [vmem:[#allocation44_spill] sm:$0xff] }
  0x7d   :  { %636 = vmatprep.subr.mxu1 %v5652_v46  ;;  %567 = vmatprep.subr.mxu0 %v5671_v49  ;;  %v12665_v49 = vld [vmem:[#allocation43_spill] sm:$0xff] }
  0x7e   :  { %637 = vmatpush1.msra.mxu1 %v5664_v48  ;;  %568 = vmatpush1.msra.mxu0 %v5683_v51  ;;  %v12666_v51 = vld [vmem:[#allocation46_spill] sm:$0xff] }
  0x7f   :  { %638 = vmatprep.subr.mxu1 %v5676_v50  ;;  %569 = vmatprep.subr.mxu0 %v5695_v53  ;;  %v12667_v53 = vld [vmem:[#allocation45_spill] sm:$0xff] }
  0x80   :  { %639 = vmatpush1.msra.mxu1 %v5688_v52  ;;  %570 = vmatpush1.msra.mxu0 %v5707_v55  ;;  %v12668_v55 = vld [vmem:[#allocation48_spill] sm:$0xff] }
  0x81   :  { %640 = vmatprep.subr.mxu1 %v12623_v0  ;;  %571 = vmatprep.subr.mxu0 %v12624_v1  ;;  %v12670_v1 = vld [vmem:[#allocation50_spill] sm:$0xff] }
  0x82   :  { %641 = vmatpush1.msra.mxu1 %v12625_v2  ;;  %572 = vmatpush1.msra.mxu0 %v12626_v4  ;;  %v12671_v4 = vld [vmem:[#allocation49_spill] sm:$0xff] }
  0x83   :  { %642 = vmatprep.subr.mxu1 %v12627_v5  ;;  %573 = vmatprep.subr.mxu0 %v12628_v6  ;;  %v12672_v6 = vld [vmem:[#allocation52_spill] sm:$0xff] }
  0x84   :  { %643 = vmatpush1.msra.mxu1 %v12629_v7  ;;  %574 = vmatpush1.msra.mxu0 %v12630_v8  ;;  %v12673_v8 = vld [vmem:[#allocation51_spill] sm:$0xff] }
  0x85   :  { %644 = vmatprep.subr.mxu1 %v12631_v9  ;;  %575 = vmatprep.subr.mxu0 %v12632_v10  ;;  %v12674_v10 = vld [vmem:[#allocation54_spill] sm:$0xff] }
  0x86   :  { %645 = vmatpush1.msra.mxu1 %v12633_v11  ;;  %576 = vmatpush2.msra.mxu0 %v12634_v12  ;;  %v12675_v12 = vld [vmem:[#allocation53_spill] sm:$0xff] }
  0x87   :  { %646 = vmatprep.subr.mxu1 %v12635_v13  ;;  %577 = vmatprep.subr.mxu0 %v12636_v14  ;;  %v12676_v14 = vld [vmem:[#allocation56_spill] sm:$0xff] }
  0x88   :  { %647 = vmatpush2.msra.mxu1 %v12637_v15  ;;  %578 = vmatpush2.msra.mxu0 %v12638_v16  ;;  %v12677_v16 = vld [vmem:[#allocation55_spill] sm:$0xff] }
  0x89   :  { %648 = vmatprep.subr.mxu1 %v12639_v17  ;;  %579 = vmatprep.subr.mxu0 %v12640_v18  ;;  %v12678_v18 = vld [vmem:[#allocation58_spill] sm:$0xff] }
  0x8a   :  { %649 = vmatpush2.msra.mxu1 %v12641_v19  ;;  %580 = vmatpush2.msra.mxu0 %v12642_v20  ;;  %v12679_v20 = vld [vmem:[#allocation57_spill] sm:$0xff] }
  0x8b   :  { %650 = vmatprep.subr.mxu1 %v12643_v21  ;;  %581 = vmatprep.subr.mxu0 %v12644_v22  ;;  %v12680_v22 = vld [vmem:[#allocation60_spill] sm:$0xff] }
  0x8c   :  { %651 = vmatpush2.msra.mxu1 %v12645_v23  ;;  %582 = vmatpush2.msra.mxu0 %v12646_v24  ;;  %v12681_v24 = vld [vmem:[#allocation59_spill] sm:$0xff] }
  0x8d   :  { %652 = vmatprep.subr.mxu1 %v12647_v25  ;;  %583 = vmatprep.subr.mxu0 %v12648_v26  ;;  %v12682_v26 = vld [vmem:[#allocation62_spill] sm:$0xff] }
  0x8e   :  { %653 = vmatpush2.msra.mxu1 %v12649_v27  ;;  %584 = vmatpush2.msra.mxu0 %v12650_v28  ;;  %v12683_v28 = vld [vmem:[#allocation61_spill] sm:$0xff] }
  0x8f   :  { %654 = vmatprep.subr.mxu1 %v12651_v29  ;;  %585 = vmatprep.subr.mxu0 %v12652_v30  ;;  %v12684_v30 = vld [vmem:[#allocation64_spill] sm:$0xff] }
  0x90   :  { %655 = vmatpush2.msra.mxu1 %v12653_v31  ;;  %586 = vmatpush2.msra.mxu0 %v12654_v32  ;;  %v12685_v32 = vld [vmem:[#allocation63_spill] sm:$0xff] }
  0x91   :  { %656 = vmatprep.subr.mxu1 %v12655_v33  ;;  %587 = vmatprep.subr.mxu0 %v12656_v34  ;;  %v12686_v34 = vld [vmem:[#allocation66_spill] sm:$0xff] }
  0x92   :  { %657 = vmatpush2.msra.mxu1 %v12657_v35  ;;  %588 = vmatpush2.msra.mxu0 %v12658_v36  ;;  %v12687_v36 = vld [vmem:[#allocation65_spill] sm:$0xff] }
  0x93   :  { %658 = vmatprep.subr.mxu1 %v12659_v37  ;;  %589 = vmatprep.subr.mxu0 %v12660_v39  ;;  %v12688_v39 = vld [vmem:[#allocation68_spill] sm:$0xff] }
  0x94   :  { %659 = vmatpush2.msra.mxu1 %v12661_v41  ;;  %590 = vmatpush2.msra.mxu0 %v12662_v43  ;;  %v12689_v43 = vld [vmem:[#allocation67_spill] sm:$0xff] }
  0x95   :  { %660 = vmatprep.subr.mxu1 %v12663_v45  ;;  %591 = vmatprep.subr.mxu0 %v12664_v47  ;;  %v12690_v47 = vld [vmem:[#allocation70_spill] sm:$0xff] }
  0x96   :  { %661 = vmatpush2.msra.mxu1 %v12665_v49  ;;  %592 = vmatpush2.msra.mxu0 %v12666_v51  ;;  %v12691_v51 = vld [vmem:[#allocation69_spill] sm:$0xff] }
  0x97   :  { %662 = vmatprep.subr.mxu1 %v12667_v53  ;;  %593 = vmatprep.subr.mxu0 %v12668_v55  ;;  %v12692_v55 = vld [vmem:[#allocation72_spill] sm:$0xff] }
  0x98   :  { %663 = vmatpush2.msra.mxu1 %v12669_v56  ;;  %594 = vmatpush2.msra.mxu0 %v12670_v1  ;;  %v12693_v1 = vld [vmem:[#allocation71_spill] sm:$0xff] }
  0x99   :  { %664 = vmatprep.subr.mxu1 %v12671_v4  ;;  %595 = vmatprep.subr.mxu0 %v12672_v6  ;;  %v542_v6 = vld [vmem:[%s11766_s0 + $0x2] sm:$0x3] }
  0x9a   :  { %665 = vmatpush2.msra.mxu1 %v12673_v8  ;;  %596 = vmatpush2.msra.mxu0 %v12674_v10  ;;  %v12694_v10 = vld [vmem:[#allocation74_spill] sm:$0xff] }
  0x9b   :  { %666 = vmatprep.subr.mxu1 %v12675_v12  ;;  %597 = vmatprep.subr.mxu0 %v12676_v14  ;;  %v12695_v14 = vld [vmem:[#allocation73_spill] sm:$0xff] }
  0x9c   :  { %667 = vmatpush2.msra.mxu1 %v12677_v16  ;;  %598 = vmatpush2.msra.mxu0 %v12678_v18  ;;  %v12696_v18 = vld [vmem:[#allocation75_spill] sm:$0xff] }
  0x9d   :  { %668 = vmatprep.subr.mxu1 %v12679_v20  ;;  %599 = vmatprep.subr.mxu0 %v12680_v22  ;;  %v12697_v22 = vld [vmem:[#allocation76_spill] sm:$0xff] }
  0x9e   :  { %669 = vmatpush2.msra.mxu1 %v12681_v24  ;;  %600 = vmatpush2.msra.mxu0 %v12682_v26  ;;  %v12698_v26 = vld [vmem:[#allocation78_spill] sm:$0xff] }
  0x9f   :  { %670 = vmatprep.subr.mxu1 %v12683_v28  ;;  %601 = vmatprep.subr.mxu0 %v12684_v30  ;;  %v12699_v30 = vld [vmem:[#allocation80_spill] sm:$0xff] }
  0xa0   :  { %671 = vmatpush2.msra.mxu1 %v12685_v32  ;;  %602 = vmatpush2.msra.mxu0 %v12686_v34  ;;  %v12704_v34 = vld [vmem:[#allocation90_spill] sm:$0xff] }
  0xa1   :  { %672 = vmatprep.subr.mxu1 %v12687_v36  ;;  %603 = vmatprep.subr.mxu0 %v12688_v39  ;;  %v12703_v39 = vld [vmem:[#allocation88_spill] sm:$0xff] }
  0xa2   :  { %673 = vmatpush2.msra.mxu1 %v12689_v43  ;;  %604 = vmatpush2.msra.mxu0 %v12690_v47  ;;  %v12701_v47 = vld [vmem:[#allocation84_spill] sm:$0xff] }
  0xa3   :  { %674 = vmatprep.subr.mxu1 %v12691_v51  ;;  %605 = vmatprep.subr.mxu0 %v12692_v55  ;;  %v12700_v55 = vld [vmem:[#allocation82_spill] sm:$0xff] }
  0xa4   :  { %675 = vmatpush2.msra.mxu1 %v12693_v1  ;;  %606 = vmatpush2.msra.mxu0 %v12694_v10  ;;  %v12702_v10 = vld [vmem:[#allocation86_spill] sm:$0xff] }
  0xa5   :  { %676 = vmatprep.subr.mxu1 %v12695_v14  ;;  %607 = vmatprep.mubr.f32.mxu0 %v12563_v62 }
  0xa6   :  { %677 = vmatpush2.msra.mxu1 %v12696_v18  ;;  %678 = vmatprep.mubr.f32.mxu1 %v542_v6 }
  0xa7   :  { %3625 = vmatprep.subr.mxu0 %v12697_v22  ;;  %679 = vmatmul.mubr.f32.vlgmr.msra.gmra.mxu1 %v12563_v62  ;;  %v12706_v22 = vld [vmem:[#allocation94_spill] sm:$0xff] }
  0xa8   :  { %3660 = vmatprep.subr.mxu1 %v12698_v26  ;;  %819 = vmatprep.mubr.f32.mxu1 %v542_v6  ;;  %v12710_v6 = vld [vmem:[#allocation102_spill] sm:$0xff] }
  0xa9   :  { %3661 = vmatpush3.msra.mxu1 %v12699_v30  ;;  %v12709_v30 = vld [vmem:[#allocation100_spill] sm:$0xff] }
  0xaa   :  { %3662 = vmatprep.subr.mxu1 %v12700_v55  ;;  %v12711_v55 = vld [vmem:[#allocation104_spill] sm:$0xff] }
  0xab   :  { %3663 = vmatpush3.msra.mxu1 %v12701_v47  ;;  %v12712_v47 = vld [vmem:[#allocation106_spill] sm:$0xff] }
  0xac   :  { %3664 = vmatprep.subr.mxu1 %v12702_v10  ;;  %v12713_v10 = vld [vmem:[#allocation108_spill] sm:$0xff] }
  0xad   :  { %3665 = vmatpush3.msra.mxu1 %v12703_v39  ;;  %v12714_v39 = vld [vmem:[#allocation110_spill] sm:$0xff] }
  0xae   :  { %3666 = vmatprep.subr.mxu1 %v12704_v34  ;;  %v12715_v34 = vld [vmem:[#allocation112_spill] sm:$0xff] }
  0xaf   :  { %3667 = vmatpush3.msra.mxu1 %v12705_v59  ;;  %v12716_v59 = vld [vmem:[#allocation114_spill] sm:$0xff] }
  0xb0   :  { %3668 = vmatprep.subr.mxu1 %v12706_v22  ;;  %v12717_v22 = vld [vmem:[#allocation116_spill] sm:$0xff] }
  0xb1   :  { %3669 = vmatpush3.msra.mxu1 %v12707_v63  ;;  %v12718_v63 = vld [vmem:[#allocation118_spill] sm:$0xff] }
  0xb2   :  { %3670 = vmatprep.subr.mxu1 %v12708_v60  ;;  %v12719_v60 = vld [vmem:[#allocation120_spill] sm:$0xff] }
  0xb3   :  { %3671 = vmatpush3.msra.mxu1 %v12709_v30  ;;  %v12720_v30 = vld [vmem:[#allocation122_spill] sm:$0xff] }
  0xb4   :  { %3672 = vmatprep.subr.mxu1 %v12710_v6  ;;  %v12721_v6 = vld [vmem:[#allocation124_spill] sm:$0xff] }
  0xb5   :  { %3673 = vmatpush3.msra.mxu1 %v12711_v55  ;;  %v12722_v55 = vld [vmem:[#allocation126_spill] sm:$0xff] }
  0xb6   :  { %3674 = vmatprep.subr.mxu1 %v12712_v47  ;;  %v12723_v47 = vld [vmem:[#allocation128_spill] sm:$0xff] }
  0xb7   :  { %3675 = vmatpush3.msra.mxu1 %v12713_v10  ;;  %v12724_v10 = vld [vmem:[#allocation130_spill] sm:$0xff] }
  0xb8   :  { %3676 = vmatprep.subr.mxu1 %v12714_v39 }
  0xb9   :  { %3677 = vmatpush3.msra.mxu1 %v12715_v34 }
  0xba   :  { %3678 = vmatprep.subr.mxu1 %v12716_v59 }
  0xbb   :  { %3679 = vmatpush3.msra.mxu1 %v12717_v22 }
  0xbc   :  { %3680 = vmatprep.subr.mxu1 %v12718_v63 }
  0xbd   :  { %3681 = vmatpush3.msra.mxu1 %v12719_v60 }
  0xbe   :  { %3682 = vmatprep.subr.mxu1 %v12720_v30 }
  0xbf   :  { %3683 = vmatpush3.msra.mxu1 %v12721_v6  ;;  %v6717_v6 = vld [vmem:[%s11765_s1 + $0x470] sm:$0xff] }
  0xc0   :  { %3684 = vmatprep.subr.mxu1 %v12722_v55  ;;  %12725 = vst [vmem:[#allocation2_spill] sm:$0xff] %v6717_v6 }
  0xc1   :  { %3685 = vmatpush3.msra.mxu1 %v12723_v47 }
  0xc2   :  { %3686 = vmatprep.subr.mxu1 %v12724_v10 }
  0xc3   :  { %3687 = vmatpush3.msra.mxu1 %v6494_v58  ;;  %v6724_v58 = vld [vmem:[%s11765_s1 + $0x468] sm:$0xff] }
  0xc4   :  { %3688 = vmatprep.subr.mxu1 %v6506_v61  ;;  %12726 = vst [vmem:[#allocation4_spill] sm:$0xff] %v6724_v58 }
  0xc5   :  { %3689 = vmatpush3.msra.mxu1 %v6518_v3 }
  0xc6   :  { %3690 = vmatprep.subr.mxu1 %v6532_v57  ;;  %v6742_v57 = vld [vmem:[%s11765_s1 + $0x440] sm:$0xff] }
  0xc7   :  { %3691 = vmatpush3.msra.mxu1 %v6539_v54  ;;  %v6730_v54 = vld [vmem:[%s11765_s1 + $0x458] sm:$0xff]  ;;  %12729 = vst [vmem:[#allocation5_spill] sm:$0xff] %v6742_v57 }
  0xc8   :  { %906 = vmatprep.subr.mxu1 %v6717_v6  ;;  %820 = vmatmul.mubr.f32.vlgmr.msra.gmra.mxu1 %v12563_v62  ;;  %12727 = vst [vmem:[#allocation3_spill] sm:$0xff] %v6730_v54  ;;  %v6736_v6 = vld [vmem:[%s11765_s1 + $0x450] sm:$0xff] }
  0xc9   :  { %907 = vmatpush1.msra.mxu1 %v6724_v58  ;;  %12728 = vst [vmem:[#allocation6_spill] sm:$0xff] %v6736_v6  ;;  %v6748_v58 = vld [vmem:[%s11765_s1 + $0x438] sm:$0xff] }
  0xca   :  { %908 = vmatprep.subr.mxu1 %v6730_v54  ;;  %12730 = vst [vmem:[#allocation8_spill] sm:$0xff] %v6748_v58  ;;  %v6754_v54 = vld [vmem:[%s11765_s1 + $0x428] sm:$0xff] }
  0xcb   :  { %909 = vmatpush1.msra.mxu1 %v6736_v6  ;;  %12731 = vst [vmem:[#allocation7_spill] sm:$0xff] %v6754_v54  ;;  %v6760_v6 = vld [vmem:[%s11765_s1 + $0x420] sm:$0xff] }
  0xcc   :  { %910 = vmatprep.subr.mxu1 %v6742_v57  ;;  %12732 = vst [vmem:[#allocation10_spill] sm:$0xff] %v6760_v6  ;;  %v6766_v57 = vld [vmem:[%s11765_s1 + $0x410] sm:$0xff] }
  0xcd   :  { %911 = vmatpush1.msra.mxu1 %v6748_v58  ;;  %12733 = vst [vmem:[#allocation9_spill] sm:$0xff] %v6766_v57  ;;  %v6772_v58 = vld [vmem:[%s11765_s1 + $0x408] sm:$0xff] }
  0xce   :  { %912 = vmatprep.subr.mxu1 %v6754_v54  ;;  %12734 = vst [vmem:[#allocation12_spill] sm:$0xff] %v6772_v58  ;;  %v6778_v54 = vld [vmem:[%s11765_s1 + $0x3f8] sm:$0xff] }
  0xcf   :  { %913 = vmatpush1.msra.mxu1 %v6760_v6  ;;  %12735 = vst [vmem:[#allocation11_spill] sm:$0xff] %v6778_v54  ;;  %v6784_v6 = vld [vmem:[%s11765_s1 + $0x3f0] sm:$0xff] }
  0xd0   :  { %914 = vmatprep.subr.mxu1 %v6766_v57  ;;  %12736 = vst [vmem:[#allocation14_spill] sm:$0xff] %v6784_v6  ;;  %v6790_v57 = vld [vmem:[%s11765_s1 + $0x3e0] sm:$0xff] }
  0xd1   :  { %915 = vmatpush1.msra.mxu1 %v6772_v58  ;;  %12737 = vst [vmem:[#allocation13_spill] sm:$0xff] %v6790_v57  ;;  %v6796_v58 = vld [vmem:[%s11765_s1 + $0x3d8] sm:$0xff] }
  0xd2   :  { %916 = vmatprep.subr.mxu1 %v6778_v54  ;;  %12738 = vst [vmem:[#allocation16_spill] sm:$0xff] %v6796_v58  ;;  %v6802_v54 = vld [vmem:[%s11765_s1 + $0x3c8] sm:$0xff] }
  0xd3   :  { %917 = vmatpush1.msra.mxu1 %v6784_v6  ;;  %12739 = vst [vmem:[#allocation15_spill] sm:$0xff] %v6802_v54  ;;  %v6808_v6 = vld [vmem:[%s11765_s1 + $0x3c0] sm:$0xff] }
  0xd4   :  { %918 = vmatprep.subr.mxu1 %v6790_v57  ;;  %12740 = vst [vmem:[#allocation18_spill] sm:$0xff] %v6808_v6  ;;  %v6814_v57 = vld [vmem:[%s11765_s1 + $0x3b0] sm:$0xff] }
  0xd5   :  { %919 = vmatpush1.msra.mxu1 %v6796_v58  ;;  %12741 = vst [vmem:[#allocation17_spill] sm:$0xff] %v6814_v57  ;;  %v6820_v58 = vld [vmem:[%s11765_s1 + $0x3a8] sm:$0xff] }
  0xd6   :  { %920 = vmatprep.subr.mxu1 %v6802_v54  ;;  %12742 = vst [vmem:[#allocation20_spill] sm:$0xff] %v6820_v58  ;;  %v7199_v54 = vld [vmem:[%s11765_s1 + $0x240] sm:$0xff] }
  0xd7   :  { %921 = vmatpush1.msra.mxu1 %v6808_v6  ;;  %v7193_v6 = vld [vmem:[%s11765_s1 + $0x248] sm:$0xff]  ;;  %12823 = vst [vmem:[#allocation73_spill] sm:$0xff] %v7199_v54 }
  0xd8   :  { %922 = vmatprep.subr.mxu1 %v6814_v57  ;;  %v7187_v57 = vld [vmem:[%s11765_s1 + $0x258] sm:$0xff]  ;;  %12822 = vst [vmem:[#allocation71_spill] sm:$0xff] %v7193_v6 }
  0xd9   :  { %923 = vmatpush1.msra.mxu1 %v6820_v58  ;;  %v7181_v58 = vld [vmem:[%s11765_s1 + $0x260] sm:$0xff]  ;;  %12821 = vst [vmem:[#allocation69_spill] sm:$0xff] %v7187_v57 }
  0xda   :  { %924 = vmatprep.subr.mxu1 %v5604_v38  ;;  %v236_v38 = vlaneseq  ;;  %12820 = vst [vmem:[#allocation67_spill] sm:$0xff] %v7181_v58 }
  0xdb   :  { %925 = vmatpush1.msra.mxu1 %v5616_v40 }
  0xdc   :  { %926 = vmatprep.subr.mxu1 %v5628_v42  ;;  %v6853_v40 = vshrl.u32 %v236_v38, 7  ;;  %v6917_v38 = vld [vmem:[%s11765_s1 + $0x170] sm:$0xff] }
  0xdd   :  { %927 = vmatpush1.msra.mxu1 %v5640_v44  ;;  %v6864_v44 = vld [vmem:[%s11767_s2] sm:$0x7] }
  0xde   :  { %928 = vmatprep.subr.mxu1 %v5652_v46  ;;  %12743 = vst [vmem:[#allocation19_spill] sm:$0xff] %v6853_v40  ;;  %v238_v42 = vsub.s32 0, %v6853_v40  ;;  %12744 = vst [vmem:[#allocation22_spill] sm:$0xff] %v6864_v44  ;;  %v7217_v40 = vld [vmem:[%s11765_s1 + $0x218] sm:$0xff] }
  0xdf   :  { %929 = vmatpush1.msra.mxu1 %v5664_v48  ;;  %12826 = vst [vmem:[#allocation110_spill] sm:$0xff] %v7217_v40 }
  0xe0   :  { %930 = vmatprep.subr.mxu1 %v5676_v50  ;;  %v6870_v46 = vrot.slane %v6864_v44, %v238_v42  ;;  %v6923_v42 = vld [vmem:[%s11765_s1 + $0x168] sm:$0xff] }
  0xe1   :  { %931 = vmatpush1.msra.mxu1 %v5688_v52  ;;  %12777 = vst [vmem:[#allocation24_spill] sm:$0xff] %v6923_v42  ;;  %v7211_v44 = vld [vmem:[%s11765_s1 + $0x228] sm:$0xff] }
  0xe2   :  { %932 = vmatprep.subr.mxu1 %v12623_v0  ;;  %12745 = vst [vmem:[#allocation21_spill] sm:$0xff] %v6870_v46  ;;  %12825 = vst [vmem:[#allocation78_spill] sm:$0xff] %v7211_v44 }
  0xe3   :  { %933 = vmatpush1.msra.mxu1 %v12625_v2 }
  0xe4   :  { %934 = vmatprep.subr.mxu1 %v12627_v5 }
  0xe5   :  { %935 = vmatpush1.msra.mxu1 %v12629_v7 }
  0xe6   :  { %936 = vmatprep.subr.mxu1 %v12631_v9  ;;  %v12746_v9 = vld [vmem:[#allocation77_spill] sm:$0xff] }
  0xe7   :  { %937 = vmatpush1.msra.mxu1 %v12633_v11  ;;  %v12747_v11 = vld [vmem:[#allocation79_spill] sm:$0xff] }
  0xe8   :  { %938 = vmatprep.subr.mxu1 %v12635_v13  ;;  %v12748_v13 = vld [vmem:[#allocation81_spill] sm:$0xff] }
  0xe9   :  { %939 = vmatpush2.msra.mxu1 %v12637_v15  ;;  %v12749_v15 = vld [vmem:[#allocation83_spill] sm:$0xff] }
  0xea   :  { %940 = vmatprep.subr.mxu1 %v12639_v17  ;;  %v12750_v17 = vld [vmem:[#allocation85_spill] sm:$0xff] }
  0xeb   :  { %941 = vmatpush2.msra.mxu1 %v12641_v19  ;;  %v12751_v19 = vld [vmem:[#allocation87_spill] sm:$0xff] }
  0xec   :  { %942 = vmatprep.subr.mxu1 %v12643_v21  ;;  %v12752_v21 = vld [vmem:[#allocation89_spill] sm:$0xff] }
  0xed   :  { %943 = vmatpush2.msra.mxu1 %v12645_v23  ;;  %v12753_v23 = vld [vmem:[#allocation91_spill] sm:$0xff] }
  0xee   :  { %944 = vmatprep.subr.mxu1 %v12647_v25  ;;  %v12754_v25 = vld [vmem:[#allocation93_spill] sm:$0xff] }
  0xef   :  { %945 = vmatpush2.msra.mxu1 %v12649_v27  ;;  %v12755_v27 = vld [vmem:[#allocation95_spill] sm:$0xff] }
  0xf0   :  { %946 = vmatprep.subr.mxu1 %v12651_v29  ;;  %v12756_v29 = vld [vmem:[#allocation97_spill] sm:$0xff] }
  0xf1   :  { %947 = vmatpush2.msra.mxu1 %v12653_v31  ;;  %v12757_v31 = vld [vmem:[#allocation99_spill] sm:$0xff] }
  0xf2   :  { %948 = vmatprep.subr.mxu1 %v12655_v33  ;;  %v12758_v33 = vld [vmem:[#allocation101_spill] sm:$0xff] }
  0xf3   :  { %949 = vmatpush2.msra.mxu1 %v12657_v35  ;;  %v12759_v35 = vld [vmem:[#allocation103_spill] sm:$0xff] }
  0xf4   :  { %950 = vmatprep.subr.mxu1 %v12659_v37 }
  0xf5   :  { %951 = vmatpush2.msra.mxu1 %v12661_v41  ;;  %v12760_v41 = vld [vmem:[#allocation105_spill] sm:$0xff] }
  0xf6   :  { %952 = vmatprep.subr.mxu1 %v12663_v45  ;;  %v12761_v45 = vld [vmem:[#allocation107_spill] sm:$0xff] }
  0xf7   :  { %953 = vmatpush2.msra.mxu1 %v12665_v49 }
  0xf8   :  { %954 = vmatprep.subr.mxu1 %v12667_v53  ;;  %v12762_v53 = vld [vmem:[#allocation109_spill] sm:$0xff] }
  0xf9   :  { %955 = vmatpush2.msra.mxu1 %v12669_v56 }
  0xfa   :  { %956 = vmatprep.subr.mxu1 %v12671_v4  ;;  %v12763_v4 = vld [vmem:[#allocation111_spill] sm:$0xff] }
  0xfb   :  { %957 = vmatpush2.msra.mxu1 %v12673_v8  ;;  %v12764_v8 = vld [vmem:[#allocation113_spill] sm:$0xff] }
  0xfc   :  { %958 = vmatprep.subr.mxu1 %v12675_v12 }
  0xfd   :  { %959 = vmatpush2.msra.mxu1 %v12677_v16  ;;  %v12765_v16 = vld [vmem:[#allocation115_spill] sm:$0xff] }
  0xfe   :  { %960 = vmatprep.subr.mxu1 %v12679_v20  ;;  %v12766_v20 = vld [vmem:[#allocation117_spill] sm:$0xff] }
  0xff   :  { %961 = vmatpush2.msra.mxu1 %v12681_v24  ;;  %v12767_v24 = vld [vmem:[#allocation119_spill] sm:$0xff] }
 0x100   :  { %962 = vmatprep.subr.mxu1 %v12683_v28  ;;  %v12768_v28 = vld [vmem:[#allocation121_spill] sm:$0xff] }
 0x101   :  { %963 = vmatpush2.msra.mxu1 %v12685_v32  ;;  %v12769_v32 = vld [vmem:[#allocation123_spill] sm:$0xff] }
 0x102   :  { %964 = vmatprep.subr.mxu1 %v12687_v36  ;;  %v12770_v36 = vld [vmem:[#allocation125_spill] sm:$0xff] }
 0x103   :  { %v317_v48 = vpop.f32.mrf.mxu0  ;;  %965 = vmatpush2.msra.mxu1 %v12689_v43  ;;  %v388_v52 = vpop.f32.mrf.mxu1  ;;  %v12771_v43 = vld [vmem:[#allocation127_spill] sm:$0xff] }
 0x104   :  { %v318_v50 = vadd.f32 %v317_v48, %v6870_v46  ;;  %966 = vmatprep.subr.mxu1 %v12691_v51  ;;  %v12772_v51 = vld [vmem:[#allocation129_spill] sm:$0xff]  ;;  %v7205_v46 = vld [vmem:[%s11765_s1 + $0x230] sm:$0xff] }
 0x105   :  { %v319_v0 = vpop.f32.mrf.mxu0  ;;  %967 = vmatpush2.msra.mxu1 %v12693_v1  ;;  %v390_v5 = vpop.f32.mrf.mxu1  ;;  %v12773_v1 = vld [vmem:[#allocation131_spill] sm:$0xff]  ;;  %v6929_v48 = vld [vmem:[%s11765_s1 + $0x158] sm:$0xff]  ;;  %12824 = vst [vmem:[#allocation75_spill] sm:$0xff] %v7205_v46 }
 0x106   :  { %v389_v2 = vadd.f32 %v388_v52, %v318_v50  ;;  %968 = vmatprep.subr.mxu1 %v12695_v14  ;;  %v12774_v14 = vld [vmem:[#allocation133_spill] sm:$0xff]  ;;  %12778 = vst [vmem:[#allocation23_spill] sm:$0xff] %v6929_v48  ;;  %v6935_v50 = vld [vmem:[%s11765_s1 + $0x150] sm:$0xff]  ;;  %v6941_v52 = vld [vmem:[%s11765_s1 + $0x140] sm:$0xff] }
 0x107   :  { %969 = vmatpush2.msra.mxu1 %v12696_v18  ;;  %v12775_v18 = vld [vmem:[#allocation134_spill] sm:$0xff]  ;;  %12779 = vst [vmem:[#allocation26_spill] sm:$0xff] %v6935_v50  ;;  %12780 = vst [vmem:[#allocation25_spill] sm:$0xff] %v6941_v52  ;;  %v6947_v0 = vld [vmem:[%s11765_s1 + $0x138] sm:$0xff] }
 0x108   :  { %4673 = vtanh.f32 %v389_v2  ;;  %3730 = vmatprep.subr.mxu1 %v12698_v26  ;;  %v12776_v26 = vld [vmem:[#allocation135_spill] sm:$0xff]  ;;  %12781 = vst [vmem:[#allocation28_spill] sm:$0xff] %v6947_v0  ;;  %v6959_v5 = vld [vmem:[%s11765_s1 + $0x120] sm:$0xff] }
 0x109   :  { %v6953_v2 = vld [vmem:[%s11765_s1 + $0x128] sm:$0xff]  ;;  %12783 = vst [vmem:[#allocation30_spill] sm:$0xff] %v6959_v5 }
 0x10a   :  { %12782 = vst [vmem:[#allocation27_spill] sm:$0xff] %v6953_v2 }
 0x115   :  { %v4674_v7 = vpop.eup %4673 }
 0x116   :  { %608 = vmatmul.mubr.f32.vlgmr.msra.gmra.mxu0 %v4674_v7 }
 0x117   :  { %3626 = vmatpush3.msra.mxu0 %v12746_v9  ;;  %749 = vmatprep.mubr.f32.mxu0 %v12563_v62  ;;  %v6971_v9 = vld [vmem:[%s11765_s1 + $0x108] sm:$0xff] }
 0x118   :  { %3627 = vmatprep.subr.mxu0 %v12747_v11  ;;  %12785 = vst [vmem:[#allocation32_spill] sm:$0xff] %v6971_v9  ;;  %v6977_v11 = vld [vmem:[%s11765_s1 + $0xf8] sm:$0xff] }
 0x119   :  { %3628 = vmatpush3.msra.mxu0 %v12748_v13  ;;  %12786 = vst [vmem:[#allocation31_spill] sm:$0xff] %v6977_v11  ;;  %v6983_v13 = vld [vmem:[%s11765_s1 + $0xf0] sm:$0xff] }
 0x11a   :  { %3629 = vmatprep.subr.mxu0 %v12749_v15  ;;  %12787 = vst [vmem:[#allocation34_spill] sm:$0xff] %v6983_v13  ;;  %v6989_v15 = vld [vmem:[%s11765_s1 + $0xe0] sm:$0xff] }
 0x11b   :  { %3630 = vmatpush3.msra.mxu0 %v12750_v17  ;;  %12788 = vst [vmem:[#allocation33_spill] sm:$0xff] %v6989_v15  ;;  %v6995_v17 = vld [vmem:[%s11765_s1 + $0xd8] sm:$0xff] }
 0x11c   :  { %3631 = vmatprep.subr.mxu0 %v12751_v19  ;;  %12789 = vst [vmem:[#allocation36_spill] sm:$0xff] %v6995_v17  ;;  %v7001_v19 = vld [vmem:[%s11765_s1 + $0xc8] sm:$0xff] }
 0x11d   :  { %3632 = vmatpush3.msra.mxu0 %v12752_v21  ;;  %12790 = vst [vmem:[#allocation35_spill] sm:$0xff] %v7001_v19  ;;  %v7007_v21 = vld [vmem:[%s11765_s1 + $0xc0] sm:$0xff] }
 0x11e   :  { %3633 = vmatprep.subr.mxu0 %v12753_v23  ;;  %12791 = vst [vmem:[#allocation38_spill] sm:$0xff] %v7007_v21  ;;  %v7013_v23 = vld [vmem:[%s11765_s1 + $0xb0] sm:$0xff] }
 0x11f   :  { %3634 = vmatpush3.msra.mxu0 %v12754_v25  ;;  %12792 = vst [vmem:[#allocation37_spill] sm:$0xff] %v7013_v23  ;;  %v7019_v25 = vld [vmem:[%s11765_s1 + $0xa8] sm:$0xff] }
 0x120   :  { %3635 = vmatprep.subr.mxu0 %v12755_v27  ;;  %12793 = vst [vmem:[#allocation40_spill] sm:$0xff] %v7019_v25  ;;  %v7025_v27 = vld [vmem:[%s11765_s1 + $0x98] sm:$0xff] }
 0x121   :  { %3636 = vmatpush3.msra.mxu0 %v12756_v29  ;;  %12794 = vst [vmem:[#allocation39_spill] sm:$0xff] %v7025_v27  ;;  %v7031_v29 = vld [vmem:[%s11765_s1 + $0x90] sm:$0xff] }
 0x122   :  { %3637 = vmatprep.subr.mxu0 %v12757_v31  ;;  %12795 = vst [vmem:[#allocation42_spill] sm:$0xff] %v7031_v29  ;;  %v7037_v31 = vld [vmem:[%s11765_s1 + $0x80] sm:$0xff] }
 0x123   :  { %3638 = vmatpush3.msra.mxu0 %v12758_v33  ;;  %12796 = vst [vmem:[#allocation41_spill] sm:$0xff] %v7037_v31  ;;  %v7043_v33 = vld [vmem:[%s11765_s1 + $0x78] sm:$0xff] }
 0x124   :  { %3639 = vmatprep.subr.mxu0 %v12759_v35  ;;  %v3587_v37 = vpop.f32.mrf.mxu0  ;;  %12797 = vst [vmem:[#allocation44_spill] sm:$0xff] %v7043_v33  ;;  %v7049_v35 = vld [vmem:[%s11765_s1 + $0x68] sm:$0xff] }
 0x125   :  { %3640 = vmatpush3.msra.mxu0 %v12760_v41  ;;  %12798 = vst [vmem:[#allocation43_spill] sm:$0xff] %v7049_v35  ;;  %v7055_v37 = vld [vmem:[%s11765_s1 + $0x60] sm:$0xff]  ;;  %v7061_v41 = vld [vmem:[%s11765_s1 + $0x50] sm:$0xff] }
 0x126   :  { %3641 = vmatprep.subr.mxu0 %v12761_v45  ;;  %v3588_v49 = vpop.f32.mrf.mxu0  ;;  %12799 = vst [vmem:[#allocation46_spill] sm:$0xff] %v7055_v37  ;;  %12800 = vst [vmem:[#allocation45_spill] sm:$0xff] %v7061_v41  ;;  %v7067_v45 = vld [vmem:[%s11765_s1 + $0x48] sm:$0xff] }
 0x127   :  { %3642 = vmatpush3.msra.mxu0 %v12762_v53  ;;  %v3622_v56 = vpop.f32.mrf.mxu1  ;;  %12801 = vst [vmem:[#allocation48_spill] sm:$0xff] %v7067_v45  ;;  %v7073_v49 = vld [vmem:[%s11765_s1 + $0x38] sm:$0xff]  ;;  %v7079_v53 = vld [vmem:[%s11765_s1 + $0x30] sm:$0xff] }
 0x128   :  { %3643 = vmatprep.subr.mxu0 %v12763_v4  ;;  %12802 = vst [vmem:[#allocation47_spill] sm:$0xff] %v7073_v49  ;;  %12803 = vst [vmem:[#allocation50_spill] sm:$0xff] %v7079_v53  ;;  %v7085_v56 = vld [vmem:[%s11765_s1 + $0x20] sm:$0xff]  ;;  %v7091_v4 = vld [vmem:[%s11765_s1 + $0x18] sm:$0xff] }
 0x129   :  { %3644 = vmatpush3.msra.mxu0 %v12764_v8  ;;  %v3623_v12 = vpop.f32.mrf.mxu1  ;;  %12804 = vst [vmem:[#allocation49_spill] sm:$0xff] %v7085_v56  ;;  %12805 = vst [vmem:[#allocation52_spill] sm:$0xff] %v7091_v4  ;;  %v7097_v8 = vld [vmem:[%s11765_s1 + $0x8] sm:$0xff] }
 0x12a   :  { %3645 = vmatprep.subr.mxu0 %v12765_v16  ;;  %12806 = vst [vmem:[#allocation51_spill] sm:$0xff] %v7097_v8  ;;  %v7103_v12 = vld [vmem:[%s11765_s1] sm:$0xff]  ;;  %v7109_v16 = vld [vmem:[%s11765_s1 + $0x2f0] sm:$0xff] }
 0x12b   :  { %3646 = vmatpush3.msra.mxu0 %v12766_v20  ;;  %12807 = vst [vmem:[#allocation54_spill] sm:$0xff] %v7103_v12  ;;  %12808 = vst [vmem:[#allocation53_spill] sm:$0xff] %v7109_v16  ;;  %v7115_v20 = vld [vmem:[%s11765_s1 + $0x2e8] sm:$0xff] }
 0x12c   :  { %3647 = vmatprep.subr.mxu0 %v12767_v24  ;;  %12809 = vst [vmem:[#allocation56_spill] sm:$0xff] %v7115_v20  ;;  %v7121_v24 = vld [vmem:[%s11765_s1 + $0x2d8] sm:$0xff] }
 0x12d   :  { %3648 = vmatpush3.msra.mxu0 %v12768_v28  ;;  %12810 = vst [vmem:[#allocation55_spill] sm:$0xff] %v7121_v24  ;;  %v7127_v28 = vld [vmem:[%s11765_s1 + $0x2d0] sm:$0xff] }
 0x12e   :  { %3649 = vmatprep.subr.mxu0 %v12769_v32  ;;  %12811 = vst [vmem:[#allocation58_spill] sm:$0xff] %v7127_v28  ;;  %v7133_v32 = vld [vmem:[%s11765_s1 + $0x2c0] sm:$0xff] }
 0x12f   :  { %3650 = vmatpush3.msra.mxu0 %v12770_v36  ;;  %12812 = vst [vmem:[#allocation57_spill] sm:$0xff] %v7133_v32  ;;  %v7139_v36 = vld [vmem:[%s11765_s1 + $0x2b8] sm:$0xff] }
 0x130   :  { %3651 = vmatprep.subr.mxu0 %v12771_v43  ;;  %12813 = vst [vmem:[#allocation60_spill] sm:$0xff] %v7139_v36  ;;  %v7145_v43 = vld [vmem:[%s11765_s1 + $0x2a8] sm:$0xff] }
 0x131   :  { %3652 = vmatpush3.msra.mxu0 %v12772_v51  ;;  %12814 = vst [vmem:[#allocation59_spill] sm:$0xff] %v7145_v43  ;;  %v7151_v51 = vld [vmem:[%s11765_s1 + $0x2a0] sm:$0xff] }
 0x132   :  { %3653 = vmatprep.subr.mxu0 %v12773_v1  ;;  %12815 = vst [vmem:[#allocation62_spill] sm:$0xff] %v7151_v51  ;;  %v7157_v1 = vld [vmem:[%s11765_s1 + $0x290] sm:$0xff] }
 0x133   :  { %3654 = vmatpush3.msra.mxu0 %v12774_v14  ;;  %12816 = vst [vmem:[#allocation61_spill] sm:$0xff] %v7157_v1  ;;  %v7163_v14 = vld [vmem:[%s11765_s1 + $0x288] sm:$0xff] }
 0x134   :  { %3655 = vmatprep.subr.mxu0 %v12775_v18  ;;  %12817 = vst [vmem:[#allocation64_spill] sm:$0xff] %v7163_v14  ;;  %v7169_v18 = vld [vmem:[%s11765_s1 + $0x278] sm:$0xff] }
 0x135   :  { %3656 = vmatpush3.msra.mxu0 %v12776_v26  ;;  %12818 = vst [vmem:[#allocation63_spill] sm:$0xff] %v7169_v18  ;;  %v7175_v26 = vld [vmem:[%s11765_s1 + $0x270] sm:$0xff] }
 0x136   :  { %750 = vmatmul.mubr.f32.vlgmr.msra.gmra.mxu0 %v4674_v7  ;;  %835 = vmatprep.subr.mxu0 %v6917_v38  ;;  %v6965_v7 = vld [vmem:[%s11765_s1 + $0x110] sm:$0xff]  ;;  %12819 = vst [vmem:[#allocation65_spill] sm:$0xff] %v7175_v26 }
 0x137   :  { %836 = vmatpush1.msra.mxu0 %v6923_v42  ;;  %12784 = vst [vmem:[#allocation29_spill] sm:$0xff] %v6965_v7 }
 0x138   :  { %837 = vmatprep.subr.mxu0 %v6929_v48 }
 0x139   :  { %838 = vmatpush1.msra.mxu0 %v6935_v50 }
 0x13a   :  { %839 = vmatprep.subr.mxu0 %v6941_v52 }
 0x13b   :  { %840 = vmatpush1.msra.mxu0 %v6947_v0 }
 0x13c   :  { %841 = vmatprep.subr.mxu0 %v6953_v2 }
 0x13d   :  { %842 = vmatpush1.msra.mxu0 %v6959_v5 }
 0x13e   :  { %843 = vmatprep.subr.mxu0 %v6965_v7 }
 0x13f   :  { %844 = vmatpush1.msra.mxu0 %v6971_v9 }
 0x140   :  { %845 = vmatprep.subr.mxu0 %v6977_v11 }
 0x141   :  { %846 = vmatpush1.msra.mxu0 %v6983_v13 }
 0x142   :  { %847 = vmatprep.subr.mxu0 %v6989_v15 }
 0x143   :  { %848 = vmatpush1.msra.mxu0 %v6995_v17 }
 0x144   :  { %849 = vmatprep.subr.mxu0 %v7001_v19 }
 0x145   :  { %850 = vmatpush1.msra.mxu0 %v7007_v21 }
 0x146   :  { %851 = vmatprep.subr.mxu0 %v7013_v23 }
 0x147   :  { %852 = vmatpush1.msra.mxu0 %v7019_v25 }
 0x148   :  { %853 = vmatprep.subr.mxu0 %v7025_v27 }
 0x149   :  { %854 = vmatpush1.msra.mxu0 %v7031_v29 }
 0x14a   :  { %855 = vmatprep.subr.mxu0 %v7037_v31 }
 0x14b   :  { %856 = vmatpush1.msra.mxu0 %v7043_v33 }
 0x14c   :  { %857 = vmatprep.subr.mxu0 %v7049_v35 }
 0x14d   :  { %858 = vmatpush1.msra.mxu0 %v7055_v37 }
 0x14e   :  { %859 = vmatprep.subr.mxu0 %v7061_v41 }
 0x14f   :  { %860 = vmatpush1.msra.mxu0 %v7067_v45 }
 0x150   :  { %861 = vmatprep.subr.mxu0 %v7073_v49 }
 0x151   :  { %862 = vmatpush1.msra.mxu0 %v7079_v53 }
 0x152   :  { %863 = vmatprep.subr.mxu0 %v7085_v56 }
 0x153   :  { %864 = vmatpush1.msra.mxu0 %v7091_v4 }
 0x154   :  { %865 = vmatprep.subr.mxu0 %v7097_v8 }
 0x155   :  { %866 = vmatpush1.msra.mxu0 %v7103_v12 }
 0x156   :  { %867 = vmatprep.subr.mxu0 %v7109_v16 }
 0x157   :  { %868 = vmatpush2.msra.mxu0 %v7115_v20 }
 0x158   :  { %869 = vmatprep.subr.mxu0 %v7121_v24 }
 0x159   :  { %870 = vmatpush2.msra.mxu0 %v7127_v28 }
 0x15a   :  { %871 = vmatprep.subr.mxu0 %v7133_v32 }
 0x15b   :  { %872 = vmatpush2.msra.mxu0 %v7139_v36 }
 0x15c   :  { %873 = vmatprep.subr.mxu0 %v7145_v43 }
 0x15d   :  { %874 = vmatpush2.msra.mxu0 %v7151_v51  ;;  %v12846_v51 = vld [vmem:[#allocation74_spill] sm:$0xff] }
 0x15e   :  { %875 = vmatprep.subr.mxu0 %v7157_v1  ;;  %v12845_v1 = vld [vmem:[#allocation92_spill] sm:$0xff] }
 0x15f   :  { %876 = vmatpush2.msra.mxu0 %v7163_v14  ;;  %v12844_v14 = vld [vmem:[#allocation72_spill] sm:$0xff] }
 0x160   :  { %877 = vmatprep.subr.mxu0 %v7169_v18  ;;  %v12841_v18 = vld [vmem:[#allocation88_spill] sm:$0xff] }
 0x161   :  { %878 = vmatpush2.msra.mxu0 %v7175_v26  ;;  %v12840_v26 = vld [vmem:[#allocation68_spill] sm:$0xff] }
 0x162   :  { %879 = vmatprep.subr.mxu0 %v7181_v58  ;;  %v12837_v58 = vld [vmem:[#allocation84_spill] sm:$0xff] }
 0x163   :  { %880 = vmatpush2.msra.mxu0 %v7187_v57  ;;  %v12835_v57 = vld [vmem:[#allocation82_spill] sm:$0xff] }
 0x164   :  { %881 = vmatprep.subr.mxu0 %v7193_v6  ;;  %v12833_v6 = vld [vmem:[#allocation80_spill] sm:$0xff] }
 0x165   :  { %882 = vmatpush2.msra.mxu0 %v7199_v54  ;;  %v7223_v54 = vld [vmem:[%s11765_s1 + $0x210] sm:$0xff] }
 0x166   :  { %883 = vmatprep.subr.mxu0 %v7205_v46  ;;  %12827 = vst [vmem:[#allocation112_spill] sm:$0xff] %v7223_v54  ;;  %v7229_v46 = vld [vmem:[%s11765_s1 + $0x200] sm:$0xff] }
 0x167   :  { %884 = vmatpush2.msra.mxu0 %v7211_v44  ;;  %12828 = vst [vmem:[#allocation114_spill] sm:$0xff] %v7229_v46  ;;  %v7235_v44 = vld [vmem:[%s11765_s1 + $0x1f8] sm:$0xff] }
 0x168   :  { %885 = vmatprep.subr.mxu0 %v7217_v40  ;;  %12829 = vst [vmem:[#allocation116_spill] sm:$0xff] %v7235_v44  ;;  %v834_v40 = vld [vmem:[%s11766_s0 + $0x4] sm:$0x3] }
 0x169   :  { %886 = vmatpush2.msra.mxu0 %v7223_v54  ;;  %v7244_v54 = vld [vmem:[%s11765_s1 + $0x1e8] sm:$0xff]  ;;  %970 = vmatprep.mubr.f32.mxu1 %v834_v40 }
 0x16a   :  { %887 = vmatprep.subr.mxu0 %v7229_v46  ;;  %12830 = vst [vmem:[#allocation118_spill] sm:$0xff] %v7244_v54  ;;  %v7250_v46 = vld [vmem:[%s11765_s1 + $0x1e0] sm:$0xff]  ;;  %971 = vmatmul.mubr.f32.vlgmr.msra.gmra.mxu1 %v12563_v62 }
 0x16b   :  { %888 = vmatpush2.msra.mxu0 %v7235_v44  ;;  %12831 = vst [vmem:[#allocation120_spill] sm:$0xff] %v7250_v46  ;;  %v7257_v44 = vld [vmem:[%s11765_s1 + $0x1d0] sm:$0xff]  ;;  %3731 = vmatpush3.msra.mxu1 %v12833_v6  ;;  %v12839_v6 = vld [vmem:[#allocation86_spill] sm:$0xff] }
 0x16c   :  { %889 = vmatprep.subr.mxu0 %v7244_v54  ;;  %12832 = vst [vmem:[#allocation122_spill] sm:$0xff] %v7257_v44  ;;  %v7264_v54 = vld [vmem:[%s11765_s1 + $0x1c8] sm:$0xff]  ;;  %3732 = vmatprep.subr.mxu1 %v12835_v57  ;;  %v12843_v57 = vld [vmem:[#allocation90_spill] sm:$0xff] }
 0x16d   :  { %890 = vmatpush2.msra.mxu0 %v7250_v46  ;;  %12834 = vst [vmem:[#allocation126_spill] sm:$0xff] %v7264_v54  ;;  %v7271_v46 = vld [vmem:[%s11765_s1 + $0x1b8] sm:$0xff]  ;;  %3733 = vmatpush3.msra.mxu1 %v12837_v58  ;;  %v12848_v58 = vld [vmem:[#allocation76_spill] sm:$0xff] }
 0x16e   :  { %891 = vmatprep.subr.mxu0 %v7257_v44  ;;  %12836 = vst [vmem:[#allocation128_spill] sm:$0xff] %v7271_v46  ;;  %v12838_v44 = vld [vmem:[#allocation66_spill] sm:$0xff]  ;;  %3734 = vmatprep.subr.mxu1 %v12839_v6 }
 0x16f   :  { %892 = vmatpush2.msra.mxu0 %v7264_v54  ;;  %3735 = vmatpush3.msra.mxu1 %v12841_v18  ;;  %v12842_v54 = vld [vmem:[#allocation70_spill] sm:$0xff]  ;;  %v12851_v18 = vld [vmem:[#allocation100_spill] sm:$0xff] }
 0x170   :  { %893 = vmatprep.subr.mxu0 %v7271_v46  ;;  %3736 = vmatprep.subr.mxu1 %v12843_v57  ;;  %v12847_v46 = vld [vmem:[#allocation94_spill] sm:$0xff]  ;;  %v12867_v57 = vld [vmem:[#allocation71_spill] sm:$0xff] }
 0x171   :  { %894 = vmatpush2.msra.mxu0 %v12838_v44  ;;  %3737 = vmatpush3.msra.mxu1 %v12845_v1  ;;  %v12849_v44 = vld [vmem:[#allocation96_spill] sm:$0xff]  ;;  %v12850_v6 = vld [vmem:[#allocation98_spill] sm:$0xff] }
 0x172   :  { %895 = vmatprep.subr.mxu0 %v12840_v26  ;;  %3738 = vmatprep.subr.mxu1 %v12847_v46  ;;  %v12853_v26 = vld [vmem:[#allocation104_spill] sm:$0xff] }
 0x173   :  { %896 = vmatpush2.msra.mxu0 %v12842_v54  ;;  %3739 = vmatpush3.msra.mxu1 %v12849_v44  ;;  %v12852_v54 = vld [vmem:[#allocation102_spill] sm:$0xff]  ;;  %v12855_v1 = vld [vmem:[#allocation108_spill] sm:$0xff]  ;;  %v12869_v44 = vld [vmem:[#allocation75_spill] sm:$0xff] }
 0x174   :  { %897 = vmatprep.subr.mxu0 %v12844_v14  ;;  %3740 = vmatprep.subr.mxu1 %v12850_v6  ;;  %v12854_v14 = vld [vmem:[#allocation106_spill] sm:$0xff]  ;;  %v12856_v46 = vld [vmem:[#allocation124_spill] sm:$0xff] }
 0x175   :  { %898 = vmatpush2.msra.mxu0 %v12846_v51  ;;  %1111 = vmatprep.mubr.f32.mxu1 %v834_v40  ;;  %v7298_v40 = vpop.f32.mrf.mxu1  ;;  %v12870_v6 = vld [vmem:[#allocation78_spill] sm:$0xff] }
 0x176   :  { %3695 = vmatprep.subr.mxu0 %v12848_v58  ;;  %3741 = vmatpush3.msra.mxu1 %v12851_v18  ;;  %v12868_v58 = vld [vmem:[#allocation73_spill] sm:$0xff]  ;;  %v12871_v18 = vld [vmem:[#allocation110_spill] sm:$0xff] }
 0x177   :  { %3742 = vmatprep.subr.mxu1 %v12852_v54  ;;  %v7304_v51 = vpop.f32.mrf.mxu1  ;;  %v12872_v54 = vld [vmem:[#allocation112_spill] sm:$0xff] }
 0x178   :  { %3743 = vmatpush3.msra.mxu1 %v12853_v26  ;;  %v12873_v26 = vld [vmem:[#allocation114_spill] sm:$0xff] }
 0x179   :  { %3744 = vmatprep.subr.mxu1 %v12854_v14  ;;  %v12874_v14 = vld [vmem:[#allocation116_spill] sm:$0xff] }
 0x17a   :  { %3745 = vmatpush3.msra.mxu1 %v12855_v1  ;;  %v12875_v1 = vld [vmem:[#allocation118_spill] sm:$0xff] }
 0x17b   :  { %3746 = vmatprep.subr.mxu1 %v12714_v39  ;;  %v12859_v39 = vld [vmem:[#allocation137_spill] sm:$0xff] }
 0x17c   :  { %3747 = vmatpush3.msra.mxu1 %v12715_v34 }
 0x17d   :  { %3748 = vmatprep.subr.mxu1 %v12716_v59  ;;  %v12857_v59 = vld [vmem:[#allocation132_spill] sm:$0xff] }
 0x17e   :  { %3749 = vmatpush3.msra.mxu1 %v12717_v22  ;;  %v12865_v22 = vld [vmem:[#allocation67_spill] sm:$0xff] }
 0x17f   :  { %3750 = vmatprep.subr.mxu1 %v12718_v63  ;;  %v12858_v63 = vld [vmem:[#allocation136_spill] sm:$0xff] }
 0x180   :  { %3751 = vmatpush3.msra.mxu1 %v12719_v60 }
 0x181   :  { %3752 = vmatprep.subr.mxu1 %v12720_v30  ;;  %v12866_v30 = vld [vmem:[#allocation69_spill] sm:$0xff] }
 0x182   :  { %3753 = vmatpush3.msra.mxu1 %v12856_v46  ;;  %v12876_v46 = vld [vmem:[#allocation120_spill] sm:$0xff] }
 0x183   :  { %3754 = vmatprep.subr.mxu1 %v12722_v55  ;;  %v12863_v55 = vld [vmem:[#allocation63_spill] sm:$0xff] }
 0x184   :  { %3755 = vmatpush3.msra.mxu1 %v12723_v47  ;;  %v12862_v47 = vld [vmem:[#allocation64_spill] sm:$0xff] }
 0x185   :  { %3756 = vmatprep.subr.mxu1 %v12724_v10  ;;  %v12864_v10 = vld [vmem:[#allocation65_spill] sm:$0xff] }
 0x186   :  { %3757 = vmatpush3.msra.mxu1 %v12857_v59  ;;  %v12877_v59 = vld [vmem:[#allocation122_spill] sm:$0xff] }
 0x187   :  { %3758 = vmatprep.subr.mxu1 %v6506_v61  ;;  %v12861_v61 = vld [vmem:[#allocation61_spill] sm:$0xff] }
 0x188   :  { %v3692_v34 = vpop.f32.mrf.mxu1  ;;  %3759 = vmatpush3.msra.mxu1 %v6518_v3  ;;  %v12860_v3 = vld [vmem:[#allocation62_spill] sm:$0xff] }
 0x189   :  { %3760 = vmatprep.subr.mxu1 %v12858_v63  ;;  %v12878_v34 = vld [vmem:[#allocation126_spill] sm:$0xff]  ;;  %v7376_v63 = vld [vmem:[%s11765_s1 + $0x1b0] sm:$0xff] }
 0x18a   :  { %v3693_v60 = vpop.f32.mrf.mxu1  ;;  %3761 = vmatpush3.msra.mxu1 %v12859_v39  ;;  %12880 = vst [vmem:[#allocation130_spill] sm:$0xff] %v7376_v63  ;;  %v7382_v39 = vld [vmem:[%s11765_s1 + $0x1a0] sm:$0xff] }
 0x18b   :  { %1112 = vmatmul.mubr.f32.vlgmr.msra.gmra.mxu1 %v12563_v62  ;;  %1198 = vmatprep.subr.mxu1 %v6917_v38  ;;  %v12879_v60 = vld [vmem:[#allocation128_spill] sm:$0xff]  ;;  %12881 = vst [vmem:[#allocation77_spill] sm:$0xff] %v7382_v39 }
 0x18c   :  { %1199 = vmatpush1.msra.mxu1 %v6923_v42 }
 0x18d   :  { %1200 = vmatprep.subr.mxu1 %v6929_v48 }
 0x18e   :  { %1201 = vmatpush1.msra.mxu1 %v6935_v50 }
 0x18f   :  { %1202 = vmatprep.subr.mxu1 %v6941_v52 }
 0x190   :  { %1203 = vmatpush1.msra.mxu1 %v6947_v0 }
 0x191   :  { %1204 = vmatprep.subr.mxu1 %v6953_v2 }
 0x192   :  { %1205 = vmatpush1.msra.mxu1 %v6959_v5 }
 0x193   :  { %1206 = vmatprep.subr.mxu1 %v6965_v7 }
 0x194   :  { %1207 = vmatpush1.msra.mxu1 %v6971_v9 }
 0x195   :  { %1208 = vmatprep.subr.mxu1 %v6977_v11 }
 0x196   :  { %1209 = vmatpush1.msra.mxu1 %v6983_v13  ;;  %v12894_v13 = vld [vmem:[#allocation2_spill] sm:$0xff] }
 0x197   :  { %1210 = vmatprep.subr.mxu1 %v6989_v15  ;;  %v7716_v15 = vld [vmem:[%s11768_s3] sm:$0xff] }
 0x198   :  { %1211 = vmatpush1.msra.mxu1 %v6995_v17  ;;  %v7709_v17 = vld [vmem:[%s11768_s3 + $0x8] sm:$0xff]  ;;  %12893 = vst [vmem:[#allocation95_spill] sm:$0xff] %v7716_v15 }
 0x199   :  { %1212 = vmatprep.subr.mxu1 %v7001_v19  ;;  %v7702_v19 = vld [vmem:[%s11768_s3 + $0x10] sm:$0xff]  ;;  %12892 = vst [vmem:[#allocation93_spill] sm:$0xff] %v7709_v17 }
 0x19a   :  { %1213 = vmatpush1.msra.mxu1 %v7007_v21  ;;  %v7695_v21 = vld [vmem:[%s11768_s3 + $0x18] sm:$0xff]  ;;  %12891 = vst [vmem:[#allocation91_spill] sm:$0xff] %v7702_v19 }
 0x19b   :  { %1214 = vmatprep.subr.mxu1 %v7013_v23  ;;  %v7688_v23 = vld [vmem:[%s11768_s3 + $0x20] sm:$0xff]  ;;  %12890 = vst [vmem:[#allocation89_spill] sm:$0xff] %v7695_v21 }
 0x19c   :  { %1215 = vmatpush1.msra.mxu1 %v7019_v25  ;;  %v7681_v25 = vld [vmem:[%s11768_s3 + $0x28] sm:$0xff]  ;;  %12889 = vst [vmem:[#allocation87_spill] sm:$0xff] %v7688_v23 }
 0x19d   :  { %1216 = vmatprep.subr.mxu1 %v7025_v27  ;;  %v7674_v27 = vld [vmem:[%s11768_s3 + $0x30] sm:$0xff] }
 0x19e   :  { %1217 = vmatpush1.msra.mxu1 %v7031_v29  ;;  %v7667_v29 = vld [vmem:[%s11768_s3 + $0x38] sm:$0xff] }
 0x19f   :  { %1218 = vmatprep.subr.mxu1 %v7037_v31  ;;  %v7660_v31 = vld [vmem:[%s11768_s3 + $0x40] sm:$0xff] }
 0x1a0   :  { %1219 = vmatpush1.msra.mxu1 %v7043_v33  ;;  %v7653_v33 = vld [vmem:[%s11768_s3 + $0x48] sm:$0xff] }
 0x1a1   :  { %1220 = vmatprep.subr.mxu1 %v7049_v35  ;;  %v7646_v35 = vld [vmem:[%s11768_s3 + $0x50] sm:$0xff] }
 0x1a2   :  { %1221 = vmatpush1.msra.mxu1 %v7055_v37  ;;  %v7639_v37 = vld [vmem:[%s11768_s3 + $0x58] sm:$0xff] }
 0x1a3   :  { %1222 = vmatprep.subr.mxu1 %v7061_v41  ;;  %v7632_v41 = vld [vmem:[%s11768_s3 + $0x60] sm:$0xff] }
 0x1a4   :  { %1223 = vmatpush1.msra.mxu1 %v7067_v45  ;;  %v7618_v45 = vld [vmem:[%s11768_s3 + $0x70] sm:$0xff] }
 0x1a5   :  { %1224 = vmatprep.subr.mxu1 %v7073_v49  ;;  %v7611_v49 = vld [vmem:[%s11768_s3 + $0x78] sm:$0xff] }
 0x1a6   :  { %1225 = vmatpush1.msra.mxu1 %v7079_v53  ;;  %v7603_v53 = vld [vmem:[%s11765_s1 + $0x10] sm:$0xff] }
 0x1a7   :  { %1226 = vmatprep.subr.mxu1 %v7085_v56  ;;  %v7597_v56 = vld [vmem:[%s11765_s1 + $0x190] sm:$0xff] }
 0x1a8   :  { %1227 = vmatpush1.msra.mxu1 %v7091_v4  ;;  %v7591_v4 = vld [vmem:[%s11765_s1 + $0x28] sm:$0xff] }
 0x1a9   :  { %1228 = vmatprep.subr.mxu1 %v7097_v8  ;;  %v7585_v8 = vld [vmem:[%s11765_s1 + $0x1a8] sm:$0xff] }
 0x1aa   :  { %1229 = vmatpush1.msra.mxu1 %v7103_v12  ;;  %v7579_v12 = vld [vmem:[%s11765_s1 + $0x40] sm:$0xff] }
 0x1ab   :  { %1230 = vmatprep.subr.mxu1 %v7109_v16  ;;  %v7573_v16 = vld [vmem:[%s11765_s1 + $0x1c0] sm:$0xff] }
 0x1ac   :  { %1231 = vmatpush2.msra.mxu1 %v7115_v20  ;;  %v7567_v20 = vld [vmem:[%s11765_s1 + $0x58] sm:$0xff] }
 0x1ad   :  { %1232 = vmatprep.subr.mxu1 %v7121_v24  ;;  %v7561_v24 = vld [vmem:[%s11765_s1 + $0x1d8] sm:$0xff] }
 0x1ae   :  { %1233 = vmatpush2.msra.mxu1 %v7127_v28  ;;  %v7555_v28 = vld [vmem:[%s11765_s1 + $0x70] sm:$0xff] }
 0x1af   :  { %1234 = vmatprep.subr.mxu1 %v7133_v32  ;;  %v7549_v32 = vld [vmem:[%s11765_s1 + $0x1f0] sm:$0xff] }
 0x1b0   :  { %1235 = vmatpush2.msra.mxu1 %v7139_v36  ;;  %v7543_v36 = vld [vmem:[%s11765_s1 + $0x88] sm:$0xff] }
 0x1b1   :  { %1236 = vmatprep.subr.mxu1 %v7145_v43  ;;  %v7537_v43 = vld [vmem:[%s11765_s1 + $0x208] sm:$0xff] }
 0x1b2   :  { %1237 = vmatpush2.msra.mxu1 %v12860_v3  ;;  %v7531_v3 = vld [vmem:[%s11765_s1 + $0xa0] sm:$0xff] }
 0x1b3   :  { %1238 = vmatprep.subr.mxu1 %v12861_v61  ;;  %v7525_v61 = vld [vmem:[%s11765_s1 + $0x220] sm:$0xff] }
 0x1b4   :  { %1239 = vmatpush2.msra.mxu1 %v12862_v47  ;;  %v7519_v47 = vld [vmem:[%s11765_s1 + $0xb8] sm:$0xff] }
 0x1b5   :  { %1240 = vmatprep.subr.mxu1 %v12863_v55  ;;  %v7513_v55 = vld [vmem:[%s11765_s1 + $0x238] sm:$0xff] }
 0x1b6   :  { %1241 = vmatpush2.msra.mxu1 %v12864_v10  ;;  %v7501_v10 = vld [vmem:[%s11765_s1 + $0x250] sm:$0xff] }
 0x1b7   :  { %1242 = vmatprep.subr.mxu1 %v12865_v22  ;;  %v7489_v22 = vld [vmem:[%s11765_s1 + $0x268] sm:$0xff] }
 0x1b8   :  { %1243 = vmatpush2.msra.mxu1 %v12866_v30 }
 0x1b9   :  { %1244 = vmatprep.subr.mxu1 %v12867_v57  ;;  %v7483_v57 = vld [vmem:[%s11765_s1 + $0x100] sm:$0xff] }
 0x1ba   :  { %1245 = vmatpush2.msra.mxu1 %v12868_v58 }
 0x1bb   :  { %1246 = vmatprep.subr.mxu1 %v12869_v44 }
 0x1bc   :  { %1247 = vmatpush2.msra.mxu1 %v12870_v6 }
 0x1bd   :  { %1248 = vmatprep.subr.mxu1 %v12871_v18 }
 0x1be   :  { %1249 = vmatpush2.msra.mxu1 %v12872_v54 }
 0x1bf   :  { %1250 = vmatprep.subr.mxu1 %v12873_v26 }
 0x1c0   :  { %1251 = vmatpush2.msra.mxu1 %v12874_v14  ;;  %v12888_v14 = vld [vmem:[#allocation21_spill] sm:$0xff] }
 0x1c1   :  { %1252 = vmatprep.subr.mxu1 %v12875_v1 }
 0x1c2   :  { %1253 = vmatpush2.msra.mxu1 %v12876_v46  ;;  %v12887_v46 = vld [vmem:[#allocation22_spill] sm:$0xff] }
 0x1c3   :  { %1254 = vmatprep.subr.mxu1 %v12877_v59 }
 0x1c4   :  { %1255 = vmatpush2.msra.mxu1 %v12878_v34  ;;  %v7388_v34 = vld [vmem:[%s11765_s1 + $0x198] sm:$0xff] }
 0x1c5   :  { %1256 = vmatprep.subr.mxu1 %v12879_v60  ;;  %12882 = vst [vmem:[#allocation79_spill] sm:$0xff] %v7388_v34  ;;  %v7394_v60 = vld [vmem:[%s11765_s1 + $0x188] sm:$0xff] }
 0x1c6   :  { %1257 = vmatpush2.msra.mxu1 %v7376_v63  ;;  %12883 = vst [vmem:[#allocation81_spill] sm:$0xff] %v7394_v60  ;;  %v7400_v63 = vld [vmem:[%s11765_s1 + $0x180] sm:$0xff] }
 0x1c7   :  { %1258 = vmatprep.subr.mxu1 %v7382_v39  ;;  %12884 = vst [vmem:[#allocation83_spill] sm:$0xff] %v7400_v63  ;;  %v7406_v39 = vld [vmem:[%s11765_s1 + $0x2f8] sm:$0xff] }
 0x1c8   :  { %1259 = vmatpush2.msra.mxu1 %v7388_v34  ;;  %12885 = vst [vmem:[#allocation85_spill] sm:$0xff] %v7406_v39  ;;  %v12886_v34 = vld [vmem:[#allocation19_spill] sm:$0xff] }
 0x1c9   :  { %1260 = vmatprep.subr.mxu1 %v7394_v60  ;;  %v242_v59 = vsub.s32 1, %v12886_v34 }
 0x1ca   :  { %1261 = vmatpush2.msra.mxu1 %v7400_v63 }
 0x1cb   :  { %3782 = vmatprep.subr.mxu1 %v7406_v39  ;;  %v7411_v1 = vrot.slane %v12887_v46, %v242_v59  ;;  %v7423_v59 = vld [vmem:[%s11765_s1 + $0x178] sm:$0xff]  ;;  %v7477_v39 = vld [vmem:[%s11765_s1 + $0x280] sm:$0xff] }
 0x1d6   :  { %v609_v60 = vpop.f32.mrf.mxu0 }
 0x1d7   :  { %v610_v26 = vadd.f32 %v609_v60, %v12888_v14  ;;  %v7471_v60 = vld [vmem:[%s11765_s1 + $0x118] sm:$0xff] }
 0x1d8   :  { %v611_v54 = vpop.f32.mrf.mxu0 }
 0x1d9   :  { %v612_v18 = vadd.f32 %v611_v54, %v7411_v1  ;;  %v681_v63 = vadd.f32 %v7298_v40, %v610_v26  ;;  %v7429_v40 = vld [vmem:[%s11765_s1 + $0x2e0] sm:$0xff]  ;;  %v7459_v54 = vld [vmem:[%s11765_s1 + $0x130] sm:$0xff]  ;;  %v7465_v26 = vld [vmem:[%s11765_s1 + $0x298] sm:$0xff] }
 0x1db   :  { %v683_v6 = vadd.f32 %v7304_v51, %v612_v18  ;;  %v7435_v51 = vld [vmem:[%s11765_s1 + $0x160] sm:$0xff]  ;;  %v7453_v18 = vld [vmem:[%s11765_s1 + $0x2b0] sm:$0xff] }
 0x1dd   :  { %4675 = vtanh.f32 %v683_v6  ;;  %v7441_v6 = vld [vmem:[%s11765_s1 + $0x2c8] sm:$0xff] }
 0x1de   :  { %4677 = vtanh.f32 %v681_v63 }
 0x1ea   :  { %v4676_v44 = vpop.eup %4675 }
 0x1eb   :  { %v7417_v58 = vpop.eup %4677  ;;  %899 = vmatprep.mubr.f32.mxu0 %v4676_v44 }
 0x1ec   :  { %900 = vmatmul.mubr.f32.vlgmr.msra.gmra.mxu0 %v7417_v58 }
 0x1ed   :  { %3696 = vmatpush3.msra.mxu0 %v7423_v59  ;;  %1041 = vmatprep.mubr.f32.mxu0 %v4676_v44  ;;  %v7447_v44 = vld [vmem:[%s11765_s1 + $0x148] sm:$0xff] }
 0x1ee   :  { %3697 = vmatprep.subr.mxu0 %v7429_v40 }
 0x1ef   :  { %3698 = vmatpush3.msra.mxu0 %v7435_v51 }
 0x1f0   :  { %3699 = vmatprep.subr.mxu0 %v7441_v6 }
 0x1f1   :  { %3700 = vmatpush3.msra.mxu0 %v7447_v44 }
 0x1f2   :  { %3701 = vmatprep.subr.mxu0 %v7453_v18 }
 0x1f3   :  { %3702 = vmatpush3.msra.mxu0 %v7459_v54 }
 0x1f4   :  { %3703 = vmatprep.subr.mxu0 %v7465_v26 }
 0x1f5   :  { %3704 = vmatpush3.msra.mxu0 %v7471_v60 }
 0x1f6   :  { %v3657_v63 = vpop.f32.mrf.mxu0  ;;  %3705 = vmatprep.subr.mxu0 %v7477_v39 }
 0x1f7   :  { %3706 = vmatpush3.msra.mxu0 %v7483_v57  ;;  %v7495_v63 = vld [vmem:[%s11765_s1 + $0xe8] sm:$0xff] }
 0x1f8   :  { %v3658_v30 = vpop.f32.mrf.mxu0  ;;  %3707 = vmatprep.subr.mxu0 %v7489_v22 }
 0x1f9   :  { %3708 = vmatpush3.msra.mxu0 %v7495_v63  ;;  %v7507_v30 = vld [vmem:[%s11765_s1 + $0xd0] sm:$0xff] }
 0x1fa   :  { %3709 = vmatprep.subr.mxu0 %v7501_v10 }
 0x1fb   :  { %3710 = vmatpush3.msra.mxu0 %v7507_v30 }
 0x1fc   :  { %3711 = vmatprep.subr.mxu0 %v7513_v55 }
 0x1fd   :  { %3712 = vmatpush3.msra.mxu0 %v7519_v47 }
 0x1fe   :  { %3713 = vmatprep.subr.mxu0 %v7525_v61 }
 0x1ff   :  { %3714 = vmatpush3.msra.mxu0 %v7531_v3 }
 0x200   :  { %3715 = vmatprep.subr.mxu0 %v7537_v43 }
 0x201   :  { %3716 = vmatpush3.msra.mxu0 %v7543_v36 }
 0x202   :  { %3717 = vmatprep.subr.mxu0 %v7549_v32 }
 0x203   :  { %3718 = vmatpush3.msra.mxu0 %v7555_v28 }
 0x204   :  { %3719 = vmatprep.subr.mxu0 %v7561_v24 }
 0x205   :  { %3720 = vmatpush3.msra.mxu0 %v7567_v20 }
 0x206   :  { %3721 = vmatprep.subr.mxu0 %v7573_v16 }
 0x207   :  { %3722 = vmatpush3.msra.mxu0 %v7579_v12 }
 0x208   :  { %3723 = vmatprep.subr.mxu0 %v7585_v8 }
 0x209   :  { %3724 = vmatpush3.msra.mxu0 %v7591_v4 }
 0x20a   :  { %3725 = vmatprep.subr.mxu0 %v7597_v56 }
 0x20b   :  { %3726 = vmatpush3.msra.mxu0 %v7603_v53 }
 0x20c   :  { %1042 = vmatmul.mubr.f32.vlgmr.msra.gmra.mxu0 %v7417_v58  ;;  %4391 = vmatprep.subr.mxu0 %v12563_v62  ;;  %v7625_v58 = vld [vmem:[%s11768_s3 + $0x68] sm:$0xff] }
 0x20d   :  { %4392 = vmatpush3.msra.mxu0 %v7611_v49  ;;  %4423 = vmatprep.mubr.msk.f32.mxu0 %vm5352_vm0, %v12563_v62 }
 0x20e   :  { %4393 = vmatprep.subr.mxu0 %v12563_v62 }
 0x20f   :  { %4394 = vmatpush3.msra.mxu0 %v7618_v45 }
 0x210   :  { %4395 = vmatprep.subr.mxu0 %v12563_v62 }
 0x211   :  { %4396 = vmatpush3.msra.mxu0 %v7625_v58 }
 0x212   :  { %4397 = vmatprep.subr.mxu0 %v12563_v62 }
 0x213   :  { %4398 = vmatpush3.msra.mxu0 %v7632_v41 }
 0x214   :  { %4399 = vmatprep.subr.mxu0 %v12563_v62 }
 0x215   :  { %4400 = vmatpush3.msra.mxu0 %v7639_v37 }
 0x216   :  { %4401 = vmatprep.subr.mxu0 %v12563_v62 }
 0x217   :  { %4402 = vmatpush3.msra.mxu0 %v7646_v35 }
 0x218   :  { %4403 = vmatprep.subr.mxu0 %v12563_v62 }
 0x219   :  { %4404 = vmatpush3.msra.mxu0 %v7653_v33 }
 0x21a   :  { %4405 = vmatprep.subr.mxu0 %v12563_v62 }
 0x21b   :  { %4406 = vmatpush3.msra.mxu0 %v7660_v31 }
 0x21c   :  { %4407 = vmatprep.subr.mxu0 %v12563_v62 }
 0x21d   :  { %4408 = vmatpush3.msra.mxu0 %v7667_v29 }
 0x21e   :  { %4409 = vmatprep.subr.mxu0 %v12563_v62 }
 0x21f   :  { %4410 = vmatpush3.msra.mxu0 %v7674_v27 }
 0x220   :  { %4411 = vmatprep.subr.mxu0 %v12563_v62 }
 0x221   :  { %4412 = vmatpush3.msra.mxu0 %v7681_v25 }
 0x222   :  { %4413 = vmatprep.subr.mxu0 %v12563_v62 }
 0x223   :  { %4414 = vmatpush3.msra.mxu0 %v7688_v23 }
 0x224   :  { %4415 = vmatprep.subr.mxu0 %v12563_v62 }
 0x225   :  { %4416 = vmatpush3.msra.mxu0 %v7695_v21 }
 0x226   :  { %4417 = vmatprep.subr.mxu0 %v12563_v62 }
 0x227   :  { %4418 = vmatpush3.msra.mxu0 %v7702_v19 }
 0x228   :  { %4419 = vmatprep.subr.mxu0 %v12563_v62 }
 0x229   :  { %4420 = vmatpush3.msra.mxu0 %v7709_v17 }
 0x22a   :  { %4421 = vmatprep.subr.mxu0 %v12563_v62  ;;  %v972_v9 = vpop.f32.mrf.mxu1 }
 0x22b   :  { %4422 = vmatpush3.msra.mxu0 %v7716_v15 }
 0x22c   :  { %1269 = vmatprep.subr.mxu0 %v12894_v13  ;;  %v974_v52 = vpop.f32.mrf.mxu1 }
 0x2ac   :  { %v901_v11 = vpop.f32.mrf.mxu0 }
 0x2ad   :  { %v902_v7 = vadd.f32 %v901_v11, %v12888_v14 }
 0x2ae   :  { %v903_v5 = vpop.f32.mrf.mxu0 }
 0x2af   :  { %v904_v2 = vadd.f32 %v903_v5, %v7411_v1  ;;  %v973_v0 = vadd.f32 %v972_v9, %v902_v7 }
 0x2b1   :  { %v975_v50 = vadd.f32 %v974_v52, %v904_v2  ;;  %v3762_v52 = vpop.f32.mrf.mxu1 }
 0x2b3   :  { %4679 = vtanh.f32 %v975_v50  ;;  %v246_v50 = vsub.s32 2, %v12886_v34  ;;  %v3763_v5 = vpop.f32.mrf.mxu1 }
 0x2b4   :  { %4681 = vtanh.f32 %v973_v0  ;;  %v3764_v11 = vadd.f32 %v3763_v5, %v3762_v52  ;;  %v12896_v52 = vld [vmem:[#allocation3_spill] sm:$0xff] }
 0x2b5   :  { %v7737_v0 = vrot.slane %v12887_v46, %v246_v50  ;;  %v7763_v46 = vld [vmem:[%s11766_s0 + $0x6] sm:$0x3]  ;;  %v12895_v50 = vld [vmem:[#allocation4_spill] sm:$0xff]  ;;  %v12900_v5 = vld [vmem:[#allocation7_spill] sm:$0xff] }
 0x2c0   :  { %v4680_v48 = vpop.eup %4679 }
 0x2c1   :  { %v4682_v42 = vpop.eup %4681  ;;  %1262 = vmatprep.mubr.f32.mxu1 %v4680_v48 }
 0x2c2   :  { %1263 = vmatmul.mubr.f32.vlgmr.msra.gmra.mxu1 %v4682_v42 }
 0x2c3   :  { %3783 = vmatpush3.msra.mxu1 %v7423_v59  ;;  %1404 = vmatprep.mubr.f32.mxu1 %v4680_v48 }
 0x2c4   :  { %3784 = vmatprep.subr.mxu1 %v7429_v40 }
 0x2c5   :  { %3785 = vmatpush3.msra.mxu1 %v7435_v51 }
 0x2c6   :  { %3786 = vmatprep.subr.mxu1 %v7441_v6 }
 0x2c7   :  { %3787 = vmatpush3.msra.mxu1 %v7447_v44 }
 0x2c8   :  { %3788 = vmatprep.subr.mxu1 %v7453_v18 }
 0x2c9   :  { %3789 = vmatpush3.msra.mxu1 %v7459_v54 }
 0x2ca   :  { %3790 = vmatprep.subr.mxu1 %v7465_v26 }
 0x2cb   :  { %3791 = vmatpush3.msra.mxu1 %v7471_v60 }
 0x2cc   :  { %v3727_v48 = vpop.f32.mrf.mxu0  ;;  %3792 = vmatprep.subr.mxu1 %v7477_v39 }
 0x2cd   :  { %3793 = vmatpush3.msra.mxu1 %v7483_v57 }
 0x2ce   :  { %v3728_v2 = vpop.f32.mrf.mxu0  ;;  %3794 = vmatprep.subr.mxu1 %v7489_v22 }
 0x2cf   :  { %v3729_v7 = vadd.f32 %v3728_v2, %v3727_v48  ;;  %3795 = vmatpush3.msra.mxu1 %v7495_v63  ;;  %v12897_v48 = vld [vmem:[#allocation6_spill] sm:$0xff]  ;;  %v12898_v2 = vld [vmem:[#allocation5_spill] sm:$0xff] }
 0x2d0   :  { %3796 = vmatprep.subr.mxu1 %v7501_v10 }
 0x2d1   :  { %v1044_v9 = vadd.f32 %v3729_v7, %v7737_v0  ;;  %3797 = vmatpush3.msra.mxu1 %v7507_v30  ;;  %v12901_v7 = vld [vmem:[#allocation10_spill] sm:$0xff] }
 0x2d2   :  { %3798 = vmatprep.subr.mxu1 %v7513_v55 }
 0x2d3   :  { %v1114_v13 = vadd.f32 %v3764_v11, %v1044_v9  ;;  %3799 = vmatpush3.msra.mxu1 %v7519_v47  ;;  %v12902_v9 = vld [vmem:[#allocation9_spill] sm:$0xff]  ;;  %v12903_v11 = vld [vmem:[#allocation12_spill] sm:$0xff] }
 0x2d4   :  { %3800 = vmatprep.subr.mxu1 %v7525_v61 }
 0x2d5   :  { %4683 = vtanh.f32 %v1114_v13  ;;  %3801 = vmatpush3.msra.mxu1 %v7531_v3  ;;  %v12904_v13 = vld [vmem:[#allocation11_spill] sm:$0xff] }
 0x2d6   :  { %3802 = vmatprep.subr.mxu1 %v7537_v43 }
 0x2d7   :  { %3803 = vmatpush3.msra.mxu1 %v7543_v36 }
 0x2d8   :  { %3804 = vmatprep.subr.mxu1 %v7549_v32 }
 0x2d9   :  { %3805 = vmatpush3.msra.mxu1 %v7555_v28 }
 0x2da   :  { %3806 = vmatprep.subr.mxu1 %v7561_v24 }
 0x2db   :  { %3807 = vmatpush3.msra.mxu1 %v7567_v20 }
 0x2dc   :  { %3808 = vmatprep.subr.mxu1 %v7573_v16 }
 0x2dd   :  { %3809 = vmatpush3.msra.mxu1 %v7579_v12 }
 0x2de   :  { %3810 = vmatprep.subr.mxu1 %v7585_v8 }
 0x2df   :  { %3811 = vmatpush3.msra.mxu1 %v7591_v4 }
 0x2e0   :  { %3812 = vmatprep.subr.mxu1 %v7597_v56 }
 0x2e1   :  { %3813 = vmatpush3.msra.mxu1 %v7603_v53 }
 0x2e2   :  { %v7765_v34 = vpop.eup %4683  ;;  %1405 = vmatmul.mubr.f32.vlgmr.msra.gmra.mxu1 %v4682_v42  ;;  %4426 = vmatprep.subr.mxu1 %v12563_v62  ;;  %v12899_v42 = vld [vmem:[#allocation8_spill] sm:$0xff] }
 0x2e3   :  { %4424 = vmatmul.mubr.f32.vlgmr.msra.gmra.mxu0 %v7765_v34  ;;  %4427 = vmatpush3.msra.mxu1 %v7611_v49 }
 0x2e4   :  { %1270 = vmatpush1.msra.mxu0 %v12895_v50  ;;  %1333 = vmatprep.mubr.f32.mxu0 %v7763_v46  ;;  %v12905_v50 = vld [vmem:[#allocation14_spill] sm:$0xff] }
 0x2e5   :  { %1271 = vmatprep.subr.mxu0 %v12896_v52  ;;  %4428 = vmatprep.subr.mxu1 %v12563_v62  ;;  %v12906_v52 = vld [vmem:[#allocation13_spill] sm:$0xff] }
 0x2e6   :  { %1272 = vmatpush1.msra.mxu0 %v12897_v48  ;;  %4429 = vmatpush3.msra.mxu1 %v7618_v45  ;;  %v12907_v48 = vld [vmem:[#allocation16_spill] sm:$0xff] }
 0x2e7   :  { %1273 = vmatprep.subr.mxu0 %v12898_v2  ;;  %4430 = vmatprep.subr.mxu1 %v12563_v62  ;;  %v12908_v2 = vld [vmem:[#allocation15_spill] sm:$0xff] }
 0x2e8   :  { %1274 = vmatpush1.msra.mxu0 %v12899_v42  ;;  %4431 = vmatpush3.msra.mxu1 %v7625_v58  ;;  %v12909_v42 = vld [vmem:[#allocation18_spill] sm:$0xff] }
 0x2e9   :  { %1275 = vmatprep.subr.mxu0 %v12900_v5  ;;  %4432 = vmatprep.subr.mxu1 %v12563_v62  ;;  %v12910_v5 = vld [vmem:[#allocation17_spill] sm:$0xff] }
 0x2ea   :  { %1276 = vmatpush1.msra.mxu0 %v12901_v7  ;;  %4433 = vmatpush3.msra.mxu1 %v7632_v41  ;;  %v12911_v7 = vld [vmem:[#allocation20_spill] sm:$0xff] }
 0x2eb   :  { %1277 = vmatprep.subr.mxu0 %v12902_v9  ;;  %4434 = vmatprep.subr.mxu1 %v12563_v62  ;;  %v7807_v9 = vld [vmem:[%s11765_s1 + $0x398] sm:$0xff] }
 0x2ec   :  { %1278 = vmatpush1.msra.mxu0 %v12903_v11  ;;  %4435 = vmatpush3.msra.mxu1 %v7639_v37  ;;  %v7814_v11 = vld [vmem:[%s11765_s1 + $0x390] sm:$0xff] }
 0x2ed   :  { %1279 = vmatprep.subr.mxu0 %v12904_v13  ;;  %4436 = vmatprep.subr.mxu1 %v12563_v62  ;;  %v7821_v13 = vld [vmem:[%s11765_s1 + $0x380] sm:$0xff] }
 0x2ee   :  { %1280 = vmatpush1.msra.mxu0 %v12905_v50  ;;  %4437 = vmatpush3.msra.mxu1 %v7646_v35  ;;  %v7828_v50 = vld [vmem:[%s11765_s1 + $0x378] sm:$0xff] }
 0x2ef   :  { %1281 = vmatprep.subr.mxu0 %v12906_v52  ;;  %4438 = vmatprep.subr.mxu1 %v12563_v62  ;;  %v7835_v52 = vld [vmem:[%s11765_s1 + $0x368] sm:$0xff] }
 0x2f0   :  { %1282 = vmatpush1.msra.mxu0 %v12907_v48  ;;  %4439 = vmatpush3.msra.mxu1 %v7653_v33  ;;  %12912 = vst [vmem:[#allocation97_spill] sm:$0xff] %v7835_v52  ;;  %v7842_v48 = vld [vmem:[%s11765_s1 + $0x360] sm:$0xff] }
 0x2f1   :  { %1283 = vmatprep.subr.mxu0 %v12908_v2  ;;  %4440 = vmatprep.subr.mxu1 %v12563_v62  ;;  %12913 = vst [vmem:[#allocation99_spill] sm:$0xff] %v7842_v48  ;;  %v7849_v2 = vld [vmem:[%s11765_s1 + $0x350] sm:$0xff] }
 0x2f2   :  { %1284 = vmatpush1.msra.mxu0 %v12909_v42  ;;  %4441 = vmatpush3.msra.mxu1 %v7660_v31  ;;  %12914 = vst [vmem:[#allocation101_spill] sm:$0xff] %v7849_v2  ;;  %v7856_v42 = vld [vmem:[%s11765_s1 + $0x348] sm:$0xff] }
 0x2f3   :  { %1285 = vmatprep.subr.mxu0 %v12910_v5  ;;  %4442 = vmatprep.subr.mxu1 %v12563_v62  ;;  %12915 = vst [vmem:[#allocation103_spill] sm:$0xff] %v7856_v42  ;;  %v7863_v5 = vld [vmem:[%s11765_s1 + $0x338] sm:$0xff] }
 0x2f4   :  { %1286 = vmatpush1.msra.mxu0 %v12911_v7  ;;  %4443 = vmatpush3.msra.mxu1 %v7667_v29  ;;  %12916 = vst [vmem:[#allocation105_spill] sm:$0xff] %v7863_v5  ;;  %v7870_v7 = vld [vmem:[%s11765_s1 + $0x330] sm:$0xff] }
 0x2f5   :  { %1287 = vmatprep.subr.mxu0 %v7807_v9  ;;  %4444 = vmatprep.subr.mxu1 %v12563_v62  ;;  %12917 = vst [vmem:[#allocation107_spill] sm:$0xff] %v7870_v7 }
 0x2f6   :  { %1288 = vmatpush1.msra.mxu0 %v7814_v11  ;;  %4445 = vmatpush3.msra.mxu1 %v7674_v27 }
 0x2f7   :  { %1289 = vmatprep.subr.mxu0 %v7821_v13  ;;  %4446 = vmatprep.subr.mxu1 %v12563_v62 }
 0x2f8   :  { %1290 = vmatpush1.msra.mxu0 %v7828_v50  ;;  %4447 = vmatpush3.msra.mxu1 %v7681_v25 }
 0x2f9   :  { %1291 = vmatprep.subr.mxu0 %v7835_v52  ;;  %4448 = vmatprep.subr.mxu1 %v12563_v62 }
 0x2fa   :  { %1292 = vmatpush1.msra.mxu0 %v7842_v48  ;;  %4449 = vmatpush3.msra.mxu1 %v7688_v23 }
 0x2fb   :  { %1293 = vmatprep.subr.mxu0 %v7849_v2  ;;  %4450 = vmatprep.subr.mxu1 %v12563_v62  ;;  %v12994_v2 = vld [vmem:[#allocation29_spill] sm:$0xff] }
 0x2fc   :  { %1294 = vmatpush1.msra.mxu0 %v7856_v42  ;;  %4451 = vmatpush3.msra.mxu1 %v7695_v21  ;;  %v7877_v21 = vld [vmem:[%s11765_s1 + $0x320] sm:$0xff] }
 0x2fd   :  { %1295 = vmatprep.subr.mxu0 %v7863_v5  ;;  %4452 = vmatprep.subr.mxu1 %v12563_v62  ;;  %12918 = vst [vmem:[#allocation109_spill] sm:$0xff] %v7877_v21  ;;  %v7884_v5 = vld [vmem:[%s11765_s1 + $0x318] sm:$0xff]  ;;  %v12993_v42 = vld [vmem:[#allocation30_spill] sm:$0xff] }
 0x2fe   :  { %1296 = vmatpush1.msra.mxu0 %v7870_v7  ;;  %4453 = vmatpush3.msra.mxu1 %v7702_v19  ;;  %12919 = vst [vmem:[#allocation111_spill] sm:$0xff] %v7884_v5  ;;  %v7891_v19 = vld [vmem:[%s11765_s1 + $0x308] sm:$0xff] }
 0x2ff   :  { %1297 = vmatprep.subr.mxu0 %v7877_v21  ;;  %4454 = vmatprep.subr.mxu1 %v12563_v62  ;;  %12920 = vst [vmem:[#allocation113_spill] sm:$0xff] %v7891_v19  ;;  %v7898_v21 = vld [vmem:[%s11765_s1 + $0x300] sm:$0xff]  ;;  %v12992_v7 = vld [vmem:[#allocation27_spill] sm:$0xff] }
 0x300   :  { %1298 = vmatpush1.msra.mxu0 %v7884_v5  ;;  %4455 = vmatpush3.msra.mxu1 %v7709_v17  ;;  %12921 = vst [vmem:[#allocation115_spill] sm:$0xff] %v7898_v21  ;;  %v7905_v17 = vld [vmem:[%s11765_s1 + $0x5f0] sm:$0xff]  ;;  %v12990_v5 = vld [vmem:[#allocation25_spill] sm:$0xff] }
 0x301   :  { %1299 = vmatprep.subr.mxu0 %v7891_v19  ;;  %4456 = vmatprep.subr.mxu1 %v12563_v62  ;;  %12922 = vst [vmem:[#allocation117_spill] sm:$0xff] %v7905_v17  ;;  %v7913_v19 = vld [vmem:[%s11765_s1 + $0x5e8] sm:$0xff] }
 0x302   :  { %1300 = vmatpush1.msra.mxu0 %v7898_v21  ;;  %4457 = vmatpush3.msra.mxu1 %v7716_v15  ;;  %12923 = vst [vmem:[#allocation119_spill] sm:$0xff] %v7913_v19  ;;  %v7919_v15 = vld [vmem:[%s11765_s1 + $0x470] sm:$0xff] }
 0x303   :  { %1301 = vmatprep.subr.mxu0 %v7905_v17  ;;  %4458 = vmatprep.mubr.msk.f32.mxu1 %vm5352_vm0, %v12563_v62  ;;  %12924 = vst [vmem:[#allocation121_spill] sm:$0xff] %v7919_v15  ;;  %v7925_v17 = vld [vmem:[%s11765_s1 + $0x5d8] sm:$0xff]  ;;  %v7931_v21 = vld [vmem:[%s11765_s1 + $0x5d0] sm:$0xff] }
 0x304   :  { %1302 = vmatpush2.msra.mxu0 %v7913_v19  ;;  %1626 = vmatprep.subr.mxu1 %v7919_v15  ;;  %12925 = vst [vmem:[#allocation123_spill] sm:$0xff] %v7925_v17  ;;  %12926 = vst [vmem:[#allocation125_spill] sm:$0xff] %v7931_v21  ;;  %v7937_v19 = vld [vmem:[%s11765_s1 + $0x5c0] sm:$0xff]  ;;  %v7943_v15 = vld [vmem:[%s11765_s1 + $0x5b8] sm:$0xff] }
 0x305   :  { %1303 = vmatprep.subr.mxu0 %v7925_v17  ;;  %12927 = vst [vmem:[#allocation127_spill] sm:$0xff] %v7937_v19  ;;  %12928 = vst [vmem:[#allocation129_spill] sm:$0xff] %v7943_v15  ;;  %v7949_v17 = vld [vmem:[%s11765_s1 + $0x5a8] sm:$0xff] }
 0x306   :  { %1304 = vmatpush2.msra.mxu0 %v7931_v21  ;;  %12929 = vst [vmem:[#allocation131_spill] sm:$0xff] %v7949_v17  ;;  %v7955_v21 = vld [vmem:[%s11765_s1 + $0x5a0] sm:$0xff] }
 0x307   :  { %1305 = vmatprep.subr.mxu0 %v7937_v19  ;;  %12930 = vst [vmem:[#allocation133_spill] sm:$0xff] %v7955_v21  ;;  %v7961_v19 = vld [vmem:[%s11765_s1 + $0x590] sm:$0xff] }
 0x308   :  { %1306 = vmatpush2.msra.mxu0 %v7943_v15  ;;  %12931 = vst [vmem:[#allocation134_spill] sm:$0xff] %v7961_v19  ;;  %v7967_v15 = vld [vmem:[%s11765_s1 + $0x588] sm:$0xff] }
 0x309   :  { %1307 = vmatprep.subr.mxu0 %v7949_v17  ;;  %12932 = vst [vmem:[#allocation135_spill] sm:$0xff] %v7967_v15  ;;  %v7973_v17 = vld [vmem:[%s11765_s1 + $0x578] sm:$0xff] }
 0x30a   :  { %1308 = vmatpush2.msra.mxu0 %v7955_v21  ;;  %12933 = vst [vmem:[#allocation80_spill] sm:$0xff] %v7973_v17  ;;  %v7979_v21 = vld [vmem:[%s11765_s1 + $0x570] sm:$0xff] }
 0x30b   :  { %1309 = vmatprep.subr.mxu0 %v7961_v19  ;;  %12934 = vst [vmem:[#allocation82_spill] sm:$0xff] %v7979_v21  ;;  %v7985_v19 = vld [vmem:[%s11765_s1 + $0x560] sm:$0xff] }
 0x30c   :  { %1310 = vmatpush2.msra.mxu0 %v7967_v15  ;;  %12935 = vst [vmem:[#allocation84_spill] sm:$0xff] %v7985_v19  ;;  %v7991_v15 = vld [vmem:[%s11765_s1 + $0x558] sm:$0xff] }
 0x30d   :  { %1311 = vmatprep.subr.mxu0 %v7973_v17  ;;  %12936 = vst [vmem:[#allocation66_spill] sm:$0xff] %v7991_v15  ;;  %v7997_v17 = vld [vmem:[%s11765_s1 + $0x548] sm:$0xff] }
 0x30e   :  { %1312 = vmatpush2.msra.mxu0 %v7979_v21  ;;  %12937 = vst [vmem:[#allocation86_spill] sm:$0xff] %v7997_v17  ;;  %v8003_v21 = vld [vmem:[%s11765_s1 + $0x540] sm:$0xff] }
 0x30f   :  { %1313 = vmatprep.subr.mxu0 %v7985_v19  ;;  %12938 = vst [vmem:[#allocation68_spill] sm:$0xff] %v8003_v21  ;;  %v8009_v19 = vld [vmem:[%s11765_s1 + $0x530] sm:$0xff] }
 0x310   :  { %1314 = vmatpush2.msra.mxu0 %v7991_v15  ;;  %12939 = vst [vmem:[#allocation88_spill] sm:$0xff] %v8009_v19  ;;  %v8015_v15 = vld [vmem:[%s11765_s1 + $0x528] sm:$0xff] }
 0x311   :  { %1315 = vmatprep.subr.mxu0 %v7997_v17  ;;  %12940 = vst [vmem:[#allocation70_spill] sm:$0xff] %v8015_v15  ;;  %v8021_v17 = vld [vmem:[%s11765_s1 + $0x518] sm:$0xff] }
 0x312   :  { %1316 = vmatpush2.msra.mxu0 %v8003_v21  ;;  %12941 = vst [vmem:[#allocation90_spill] sm:$0xff] %v8021_v17  ;;  %v8027_v21 = vld [vmem:[%s11765_s1 + $0x510] sm:$0xff] }
 0x313   :  { %1317 = vmatprep.subr.mxu0 %v8009_v19  ;;  %12942 = vst [vmem:[#allocation72_spill] sm:$0xff] %v8027_v21  ;;  %v8033_v19 = vld [vmem:[%s11765_s1 + $0x500] sm:$0xff] }
 0x314   :  { %1318 = vmatpush2.msra.mxu0 %v8015_v15  ;;  %12943 = vst [vmem:[#allocation92_spill] sm:$0xff] %v8033_v19  ;;  %v8039_v15 = vld [vmem:[%s11765_s1 + $0x4f8] sm:$0xff] }
 0x315   :  { %1319 = vmatprep.subr.mxu0 %v8021_v17  ;;  %12944 = vst [vmem:[#allocation74_spill] sm:$0xff] %v8039_v15  ;;  %v8045_v17 = vld [vmem:[%s11765_s1 + $0x4e8] sm:$0xff] }
 0x316   :  { %1320 = vmatpush2.msra.mxu0 %v8027_v21  ;;  %12945 = vst [vmem:[#allocation94_spill] sm:$0xff] %v8045_v17  ;;  %v8051_v21 = vld [vmem:[%s11765_s1 + $0x4e0] sm:$0xff] }
 0x317   :  { %1321 = vmatprep.subr.mxu0 %v8033_v19  ;;  %12946 = vst [vmem:[#allocation76_spill] sm:$0xff] %v8051_v21  ;;  %v8057_v19 = vld [vmem:[%s11765_s1 + $0x4d0] sm:$0xff] }
 0x318   :  { %1322 = vmatpush2.msra.mxu0 %v8039_v15  ;;  %12947 = vst [vmem:[#allocation96_spill] sm:$0xff] %v8057_v19  ;;  %v8063_v15 = vld [vmem:[%s11765_s1 + $0x4c8] sm:$0xff] }
 0x319   :  { %1323 = vmatprep.subr.mxu0 %v8045_v17  ;;  %12948 = vst [vmem:[#allocation98_spill] sm:$0xff] %v8063_v15  ;;  %v8069_v17 = vld [vmem:[%s11765_s1 + $0x4b8] sm:$0xff] }
 0x31a   :  { %1324 = vmatpush2.msra.mxu0 %v8051_v21  ;;  %12949 = vst [vmem:[#allocation100_spill] sm:$0xff] %v8069_v17  ;;  %v8075_v21 = vld [vmem:[%s11765_s1 + $0x4b0] sm:$0xff] }
 0x31b   :  { %1325 = vmatprep.subr.mxu0 %v8057_v19  ;;  %12950 = vst [vmem:[#allocation102_spill] sm:$0xff] %v8075_v21  ;;  %v8081_v19 = vld [vmem:[%s11765_s1 + $0x4a0] sm:$0xff] }
 0x31c   :  { %1326 = vmatpush2.msra.mxu0 %v8063_v15  ;;  %12951 = vst [vmem:[#allocation104_spill] sm:$0xff] %v8081_v19  ;;  %v8087_v15 = vld [vmem:[%s11765_s1 + $0x498] sm:$0xff] }
 0x31d   :  { %1327 = vmatprep.subr.mxu0 %v8069_v17  ;;  %12952 = vst [vmem:[#allocation106_spill] sm:$0xff] %v8087_v15  ;;  %v8093_v17 = vld [vmem:[%s11765_s1 + $0x488] sm:$0xff] }
 0x31e   :  { %1328 = vmatpush2.msra.mxu0 %v8075_v21  ;;  %12953 = vst [vmem:[#allocation108_spill] sm:$0xff] %v8093_v17  ;;  %v8099_v21 = vld [vmem:[%s11765_s1 + $0x480] sm:$0xff] }
 0x31f   :  { %1329 = vmatprep.subr.mxu0 %v8081_v19  ;;  %12954 = vst [vmem:[#allocation124_spill] sm:$0xff] %v8099_v21  ;;  %v12989_v19 = vld [vmem:[#allocation26_spill] sm:$0xff] }
 0x320   :  { %1330 = vmatpush2.msra.mxu0 %v8087_v15  ;;  %v8106_v15 = vld [vmem:[%s11765_s1 + $0x5f8] sm:$0xff] }
 0x321   :  { %1331 = vmatprep.subr.mxu0 %v8093_v17  ;;  %12955 = vst [vmem:[#allocation132_spill] sm:$0xff] %v8106_v15  ;;  %v8112_v17 = vld [vmem:[%s11765_s1 + $0x478] sm:$0xff] }
 0x322   :  { %1332 = vmatpush2.msra.mxu0 %v8099_v21  ;;  %12956 = vst [vmem:[#allocation136_spill] sm:$0xff] %v8112_v17  ;;  %v8119_v21 = vld [vmem:[%s11765_s1 + $0x5e0] sm:$0xff] }
 0x323   :  { %1334 = vmatmul.mubr.f32.vlgmr.msra.gmra.mxu0 %v7765_v34  ;;  %3817 = vmatprep.subr.mxu0 %v8106_v15  ;;  %12957 = vst [vmem:[#allocation137_spill] sm:$0xff] %v8119_v21  ;;  %v8125_v15 = vld [vmem:[%s11765_s1 + $0x460] sm:$0xff] }
 0x324   :  { %3818 = vmatpush3.msra.mxu0 %v8112_v17  ;;  %1474 = vmatprep.mubr.f32.mxu0 %v7763_v46  ;;  %12958 = vst [vmem:[#allocation19_spill] sm:$0xff] %v8125_v15  ;;  %v8131_v17 = vld [vmem:[%s11765_s1 + $0x5c8] sm:$0xff] }
 0x325   :  { %3819 = vmatprep.subr.mxu0 %v8119_v21  ;;  %12959 = vst [vmem:[#allocation22_spill] sm:$0xff] %v8131_v17  ;;  %v8137_v46 = vld [vmem:[%s11765_s1 + $0x448] sm:$0xff]  ;;  %v8143_v21 = vld [vmem:[%s11765_s1 + $0x5b0] sm:$0xff] }
 0x326   :  { %3820 = vmatpush3.msra.mxu0 %v8125_v15  ;;  %12960 = vst [vmem:[#allocation21_spill] sm:$0xff] %v8137_v46  ;;  %12961 = vst [vmem:[#allocation2_spill] sm:$0xff] %v8143_v21  ;;  %v8149_v15 = vld [vmem:[%s11765_s1 + $0x430] sm:$0xff] }
 0x327   :  { %3821 = vmatprep.subr.mxu0 %v8131_v17  ;;  %12962 = vst [vmem:[#allocation4_spill] sm:$0xff] %v8149_v15  ;;  %v8155_v17 = vld [vmem:[%s11765_s1 + $0x598] sm:$0xff] }
 0x328   :  { %3822 = vmatpush3.msra.mxu0 %v8137_v46  ;;  %12963 = vst [vmem:[#allocation3_spill] sm:$0xff] %v8155_v17  ;;  %v8161_v46 = vld [vmem:[%s11765_s1 + $0x418] sm:$0xff] }
 0x329   :  { %3823 = vmatprep.subr.mxu0 %v8143_v21  ;;  %12964 = vst [vmem:[#allocation6_spill] sm:$0xff] %v8161_v46  ;;  %v8167_v21 = vld [vmem:[%s11765_s1 + $0x580] sm:$0xff] }
 0x32a   :  { %3824 = vmatpush3.msra.mxu0 %v8149_v15  ;;  %12965 = vst [vmem:[#allocation5_spill] sm:$0xff] %v8167_v21  ;;  %v8173_v15 = vld [vmem:[%s11765_s1 + $0x400] sm:$0xff] }
 0x32b   :  { %3825 = vmatprep.subr.mxu0 %v8155_v17  ;;  %12966 = vst [vmem:[#allocation8_spill] sm:$0xff] %v8173_v15  ;;  %v8179_v17 = vld [vmem:[%s11765_s1 + $0x568] sm:$0xff] }
 0x32c   :  { %3826 = vmatpush3.msra.mxu0 %v8161_v46  ;;  %12967 = vst [vmem:[#allocation7_spill] sm:$0xff] %v8179_v17  ;;  %v8185_v46 = vld [vmem:[%s11765_s1 + $0x3e8] sm:$0xff] }
 0x32d   :  { %3827 = vmatprep.subr.mxu0 %v8167_v21  ;;  %12968 = vst [vmem:[#allocation10_spill] sm:$0xff] %v8185_v46  ;;  %v8191_v21 = vld [vmem:[%s11765_s1 + $0x550] sm:$0xff] }
 0x32e   :  { %3828 = vmatpush3.msra.mxu0 %v8173_v15  ;;  %12969 = vst [vmem:[#allocation9_spill] sm:$0xff] %v8191_v21  ;;  %v8197_v15 = vld [vmem:[%s11765_s1 + $0x3d0] sm:$0xff] }
 0x32f   :  { %3829 = vmatprep.subr.mxu0 %v8179_v17  ;;  %12970 = vst [vmem:[#allocation12_spill] sm:$0xff] %v8197_v15  ;;  %v8203_v17 = vld [vmem:[%s11765_s1 + $0x538] sm:$0xff] }
 0x330   :  { %3830 = vmatpush3.msra.mxu0 %v8185_v46  ;;  %12971 = vst [vmem:[#allocation11_spill] sm:$0xff] %v8203_v17  ;;  %v8209_v46 = vld [vmem:[%s11765_s1 + $0x3b8] sm:$0xff] }
 0x331   :  { %3831 = vmatprep.subr.mxu0 %v8191_v21  ;;  %12972 = vst [vmem:[#allocation14_spill] sm:$0xff] %v8209_v46  ;;  %v8215_v21 = vld [vmem:[%s11765_s1 + $0x520] sm:$0xff] }
 0x332   :  { %3832 = vmatpush3.msra.mxu0 %v8197_v15  ;;  %12973 = vst [vmem:[#allocation13_spill] sm:$0xff] %v8215_v21  ;;  %v8221_v15 = vld [vmem:[%s11765_s1 + $0x3a0] sm:$0xff] }
 0x333   :  { %3833 = vmatprep.subr.mxu0 %v8203_v17  ;;  %12974 = vst [vmem:[#allocation16_spill] sm:$0xff] %v8221_v15  ;;  %v8227_v17 = vld [vmem:[%s11765_s1 + $0x508] sm:$0xff] }
 0x334   :  { %3834 = vmatpush3.msra.mxu0 %v8209_v46  ;;  %12975 = vst [vmem:[#allocation15_spill] sm:$0xff] %v8227_v17  ;;  %v8233_v46 = vld [vmem:[%s11765_s1 + $0x388] sm:$0xff] }
 0x335   :  { %3835 = vmatprep.subr.mxu0 %v8215_v21  ;;  %12976 = vst [vmem:[#allocation18_spill] sm:$0xff] %v8233_v46  ;;  %v8239_v21 = vld [vmem:[%s11765_s1 + $0x4f0] sm:$0xff] }
 0x336   :  { %3836 = vmatpush3.msra.mxu0 %v8221_v15  ;;  %12977 = vst [vmem:[#allocation17_spill] sm:$0xff] %v8239_v21  ;;  %v8245_v15 = vld [vmem:[%s11765_s1 + $0x370] sm:$0xff] }
 0x337   :  { %3837 = vmatprep.subr.mxu0 %v8227_v17  ;;  %12978 = vst [vmem:[#allocation20_spill] sm:$0xff] %v8245_v15  ;;  %v8251_v17 = vld [vmem:[%s11765_s1 + $0x4d8] sm:$0xff] }
 0x338   :  { %3838 = vmatpush3.msra.mxu0 %v8233_v46  ;;  %12979 = vst [vmem:[#allocation138_spill] sm:$0xff] %v8251_v17  ;;  %v8257_v46 = vld [vmem:[%s11765_s1 + $0x358] sm:$0xff] }
 0x339   :  { %3839 = vmatprep.subr.mxu0 %v8239_v21  ;;  %12980 = vst [vmem:[#allocation139_spill] sm:$0xff] %v8257_v46  ;;  %v8263_v21 = vld [vmem:[%s11765_s1 + $0x4c0] sm:$0xff] }
 0x33a   :  { %3840 = vmatpush3.msra.mxu0 %v8245_v15  ;;  %12981 = vst [vmem:[#allocation140_spill] sm:$0xff] %v8263_v21  ;;  %v8269_v15 = vld [vmem:[%s11765_s1 + $0x340] sm:$0xff] }
 0x33b   :  { %3841 = vmatprep.subr.mxu0 %v8251_v17  ;;  %12982 = vst [vmem:[#allocation141_spill] sm:$0xff] %v8269_v15  ;;  %v8275_v17 = vld [vmem:[%s11765_s1 + $0x4a8] sm:$0xff] }
 0x33c   :  { %3842 = vmatpush3.msra.mxu0 %v8257_v46  ;;  %12983 = vst [vmem:[#allocation142_spill] sm:$0xff] %v8275_v17  ;;  %v8281_v46 = vld [vmem:[%s11765_s1 + $0x328] sm:$0xff] }
 0x33d   :  { %3843 = vmatprep.subr.mxu0 %v8263_v21  ;;  %12984 = vst [vmem:[#allocation143_spill] sm:$0xff] %v8281_v46  ;;  %v8287_v21 = vld [vmem:[%s11765_s1 + $0x490] sm:$0xff] }
 0x33e   :  { %3844 = vmatpush3.msra.mxu0 %v8269_v15  ;;  %12985 = vst [vmem:[#allocation144_spill] sm:$0xff] %v8287_v21  ;;  %v8293_v15 = vld [vmem:[%s11765_s1 + $0x310] sm:$0xff] }
 0x33f   :  { %3845 = vmatprep.subr.mxu0 %v8275_v17  ;;  %12986 = vst [vmem:[#allocation145_spill] sm:$0xff] %v8293_v15  ;;  %v12987_v17 = vld [vmem:[#allocation24_spill] sm:$0xff] }
 0x340   :  { %3846 = vmatpush3.msra.mxu0 %v8281_v46  ;;  %v12988_v46 = vld [vmem:[#allocation23_spill] sm:$0xff] }
 0x341   :  { %3847 = vmatprep.subr.mxu0 %v8287_v21  ;;  %v12991_v21 = vld [vmem:[#allocation28_spill] sm:$0xff] }
 0x342   :  { %3848 = vmatpush3.msra.mxu0 %v8293_v15  ;;  %v12995_v15 = vld [vmem:[#allocation32_spill] sm:$0xff] }
 0x343   :  { %1475 = vmatmul.mubr.f32.vlgmr.msra.gmra.mxu0 %v7765_v34  ;;  %1555 = vmatprep.subr.mxu0 %v6917_v38  ;;  %v12996_v34 = vld [vmem:[#allocation31_spill] sm:$0xff]  ;;  %v12997_v38 = vld [vmem:[#allocation34_spill] sm:$0xff] }
 0x344   :  { %1556 = vmatpush1.msra.mxu0 %v12987_v17  ;;  %v12998_v17 = vld [vmem:[#allocation33_spill] sm:$0xff] }
 0x345   :  { %1557 = vmatprep.subr.mxu0 %v12988_v46  ;;  %v12999_v46 = vld [vmem:[#allocation36_spill] sm:$0xff] }
 0x346   :  { %1558 = vmatpush1.msra.mxu0 %v12989_v19  ;;  %v13000_v19 = vld [vmem:[#allocation35_spill] sm:$0xff] }
 0x347   :  { %1559 = vmatprep.subr.mxu0 %v12990_v5  ;;  %v13001_v5 = vld [vmem:[#allocation38_spill] sm:$0xff] }
 0x348   :  { %1560 = vmatpush1.msra.mxu0 %v12991_v21  ;;  %v13002_v21 = vld [vmem:[#allocation37_spill] sm:$0xff] }
 0x349   :  { %1561 = vmatprep.subr.mxu0 %v12992_v7  ;;  %v13003_v7 = vld [vmem:[#allocation40_spill] sm:$0xff] }
 0x34a   :  { %1562 = vmatpush1.msra.mxu0 %v12993_v42  ;;  %v13004_v42 = vld [vmem:[#allocation39_spill] sm:$0xff] }
 0x34b   :  { %1563 = vmatprep.subr.mxu0 %v12994_v2  ;;  %v13005_v2 = vld [vmem:[#allocation42_spill] sm:$0xff] }
 0x34c   :  { %1564 = vmatpush1.msra.mxu0 %v12995_v15  ;;  %v13006_v15 = vld [vmem:[#allocation41_spill] sm:$0xff] }
 0x34d   :  { %1565 = vmatprep.subr.mxu0 %v12996_v34  ;;  %v13007_v34 = vld [vmem:[#allocation44_spill] sm:$0xff] }
 0x34e   :  { %1566 = vmatpush1.msra.mxu0 %v12997_v38  ;;  %v13008_v38 = vld [vmem:[#allocation43_spill] sm:$0xff] }
 0x34f   :  { %1567 = vmatprep.subr.mxu0 %v12998_v17  ;;  %v13009_v17 = vld [vmem:[#allocation46_spill] sm:$0xff] }
 0x350   :  { %1568 = vmatpush1.msra.mxu0 %v12999_v46  ;;  %v13010_v46 = vld [vmem:[#allocation45_spill] sm:$0xff] }
 0x351   :  { %1569 = vmatprep.subr.mxu0 %v13000_v19  ;;  %v13011_v19 = vld [vmem:[#allocation48_spill] sm:$0xff] }
 0x352   :  { %1570 = vmatpush1.msra.mxu0 %v13001_v5  ;;  %v13012_v5 = vld [vmem:[#allocation47_spill] sm:$0xff] }
 0x353   :  { %1571 = vmatprep.subr.mxu0 %v13002_v21  ;;  %v13013_v21 = vld [vmem:[#allocation50_spill] sm:$0xff] }
 0x354   :  { %1572 = vmatpush1.msra.mxu0 %v13003_v7  ;;  %v13014_v7 = vld [vmem:[#allocation49_spill] sm:$0xff] }
 0x355   :  { %1573 = vmatprep.subr.mxu0 %v13004_v42  ;;  %v13015_v42 = vld [vmem:[#allocation52_spill] sm:$0xff] }
 0x356   :  { %1574 = vmatpush1.msra.mxu0 %v13005_v2  ;;  %v13016_v2 = vld [vmem:[#allocation51_spill] sm:$0xff] }
 0x357   :  { %1575 = vmatprep.subr.mxu0 %v13006_v15  ;;  %v13017_v15 = vld [vmem:[#allocation54_spill] sm:$0xff] }
 0x358   :  { %1576 = vmatpush1.msra.mxu0 %v13007_v34  ;;  %v13018_v34 = vld [vmem:[#allocation53_spill] sm:$0xff] }
 0x359   :  { %1577 = vmatprep.subr.mxu0 %v13008_v38  ;;  %v13019_v38 = vld [vmem:[#allocation56_spill] sm:$0xff] }
 0x35a   :  { %1578 = vmatpush1.msra.mxu0 %v13009_v17  ;;  %v13020_v17 = vld [vmem:[#allocation55_spill] sm:$0xff] }
 0x35b   :  { %1579 = vmatprep.subr.mxu0 %v13010_v46  ;;  %v13021_v46 = vld [vmem:[#allocation58_spill] sm:$0xff] }
 0x35c   :  { %1580 = vmatpush1.msra.mxu0 %v13011_v19  ;;  %v13022_v19 = vld [vmem:[#allocation57_spill] sm:$0xff] }
 0x35d   :  { %1581 = vmatprep.subr.mxu0 %v13012_v5  ;;  %v13023_v5 = vld [vmem:[#allocation60_spill] sm:$0xff] }
 0x35e   :  { %1582 = vmatpush1.msra.mxu0 %v13013_v21  ;;  %v13024_v21 = vld [vmem:[#allocation59_spill] sm:$0xff] }
 0x35f   :  { %1583 = vmatprep.subr.mxu0 %v13014_v7  ;;  %v13025_v7 = vld [vmem:[#allocation62_spill] sm:$0xff] }
 0x360   :  { %1584 = vmatpush1.msra.mxu0 %v13015_v42  ;;  %v13026_v42 = vld [vmem:[#allocation61_spill] sm:$0xff] }
 0x361   :  { %1585 = vmatprep.subr.mxu0 %v13016_v2  ;;  %v13027_v2 = vld [vmem:[#allocation64_spill] sm:$0xff] }
 0x362   :  { %1586 = vmatpush1.msra.mxu0 %v13017_v15  ;;  %v13028_v15 = vld [vmem:[#allocation63_spill] sm:$0xff] }
 0x363   :  { %1587 = vmatprep.subr.mxu0 %v13018_v34  ;;  %v13029_v34 = vld [vmem:[#allocation65_spill] sm:$0xff] }
 0x364   :  { %1588 = vmatpush2.msra.mxu0 %v13019_v38  ;;  %v13030_v38 = vld [vmem:[#allocation67_spill] sm:$0xff] }
 0x365   :  { %1589 = vmatprep.subr.mxu0 %v13020_v17  ;;  %v13031_v17 = vld [vmem:[#allocation69_spill] sm:$0xff] }
 0x366   :  { %1590 = vmatpush2.msra.mxu0 %v13021_v46  ;;  %v13032_v46 = vld [vmem:[#allocation71_spill] sm:$0xff] }
 0x367   :  { %1591 = vmatprep.subr.mxu0 %v13022_v19  ;;  %v13033_v19 = vld [vmem:[#allocation73_spill] sm:$0xff] }
 0x368   :  { %1592 = vmatpush2.msra.mxu0 %v13023_v5  ;;  %v13034_v5 = vld [vmem:[#allocation75_spill] sm:$0xff] }
 0x369   :  { %1593 = vmatprep.subr.mxu0 %v13024_v21  ;;  %v13035_v21 = vld [vmem:[#allocation78_spill] sm:$0xff] }
 0x36a   :  { %1594 = vmatpush2.msra.mxu0 %v13025_v7  ;;  %v13036_v7 = vld [vmem:[#allocation110_spill] sm:$0xff] }
 0x36b   :  { %1595 = vmatprep.subr.mxu0 %v13026_v42  ;;  %v13037_v42 = vld [vmem:[#allocation112_spill] sm:$0xff] }
 0x36c   :  { %1596 = vmatpush2.msra.mxu0 %v13027_v2  ;;  %v13038_v2 = vld [vmem:[#allocation114_spill] sm:$0xff] }
 0x36d   :  { %1597 = vmatprep.subr.mxu0 %v13028_v15  ;;  %v13039_v15 = vld [vmem:[#allocation116_spill] sm:$0xff] }
 0x36e   :  { %1598 = vmatpush2.msra.mxu0 %v13029_v34  ;;  %v13040_v34 = vld [vmem:[#allocation118_spill] sm:$0xff] }
 0x36f   :  { %1599 = vmatprep.subr.mxu0 %v13030_v38  ;;  %v13041_v38 = vld [vmem:[#allocation120_spill] sm:$0xff] }
 0x370   :  { %1600 = vmatpush2.msra.mxu0 %v13031_v17  ;;  %v13042_v17 = vld [vmem:[#allocation122_spill] sm:$0xff] }
 0x371   :  { %1601 = vmatprep.subr.mxu0 %v13032_v46  ;;  %v13043_v46 = vld [vmem:[#allocation126_spill] sm:$0xff] }
 0x372   :  { %1602 = vmatpush2.msra.mxu0 %v13033_v19  ;;  %v13044_v19 = vld [vmem:[#allocation128_spill] sm:$0xff] }
 0x373   :  { %1603 = vmatprep.subr.mxu0 %v13034_v5  ;;  %v13045_v5 = vld [vmem:[#allocation130_spill] sm:$0xff] }
 0x374   :  { %1604 = vmatpush2.msra.mxu0 %v13035_v21  ;;  %v13046_v21 = vld [vmem:[#allocation77_spill] sm:$0xff] }
 0x375   :  { %1605 = vmatprep.subr.mxu0 %v13036_v7  ;;  %v13047_v7 = vld [vmem:[#allocation79_spill] sm:$0xff] }
 0x376   :  { %1606 = vmatpush2.msra.mxu0 %v13037_v42  ;;  %v13048_v42 = vld [vmem:[#allocation81_spill] sm:$0xff] }
 0x377   :  { %1607 = vmatprep.subr.mxu0 %v13038_v2  ;;  %v13049_v2 = vld [vmem:[#allocation83_spill] sm:$0xff] }
 0x378   :  { %1608 = vmatpush2.msra.mxu0 %v13039_v15  ;;  %v13050_v15 = vld [vmem:[#allocation85_spill] sm:$0xff] }
 0x379   :  { %1609 = vmatprep.subr.mxu0 %v13040_v34  ;;  %v8365_v34 = vld [vmem:[%s11769_s4] ss:$0 sm:$0xff] }
 0x37a   :  { %1610 = vmatpush2.msra.mxu0 %v13041_v38 }
 0x37b   :  { %1611 = vmatprep.subr.mxu0 %v13042_v17 }
 0x37c   :  { %1612 = vmatpush2.msra.mxu0 %v13043_v46 }
 0x37d   :  { %1613 = vmatprep.subr.mxu0 %v13044_v19 }
 0x37e   :  { %1614 = vmatpush2.msra.mxu0 %v13045_v5 }
 0x37f   :  { %1615 = vmatprep.subr.mxu0 %v13046_v21 }
 0x380   :  { %1616 = vmatpush2.msra.mxu0 %v13047_v7 }
 0x381   :  { %1617 = vmatprep.subr.mxu0 %v13048_v42 }
 0x382   :  { %1618 = vmatpush2.msra.mxu0 %v13049_v2  ;;  %v1264_v19 = vpop.f32.mrf.mxu1 }
 0x383   :  { %3869 = vmatprep.subr.mxu0 %v13050_v15  ;;  %v1265_v21 = vadd.f32 %v1264_v19, %v12888_v14  ;;  %v13076_v19 = vld [vmem:[#allocation135_spill] sm:$0xff] }
 0x384   :  { %v1266_v5 = vpop.f32.mrf.mxu1 }
 0x385   :  { %v1267_v42 = vadd.f32 %v1266_v5, %v7411_v1  ;;  %v13077_v5 = vld [vmem:[#allocation80_spill] sm:$0xff] }
 0x3a3   :  { %v1192_v38 = vpop.f32.mrf.mxu0 }
 0x3a4   :  { %v1193_v17 = vadd.f32 %v8365_v34, %v1192_v38  ;;  %v3814_v38 = vpop.f32.mrf.mxu1 }
 0x3a5   :  { %v4425_v46 = vpop.f32.mrf.mxu0 }
 0x3a6   :  { %1196 = vst [vmem:[%s11770_s5] sm:$0x3] %v1193_v17  ;;  %v13074_v17 = vld [vmem:[#allocation133_spill] sm:$0xff]  ;;  %v13075_v46 = vld [vmem:[#allocation134_spill] sm:$0xff] }
 0x3e3   :  { %v1335_v7 = vpop.f32.mrf.mxu0 }
 0x3e4   :  { %v1336_v2 = vadd.f32 %v1335_v7, %v1265_v21  ;;  %v13078_v21 = vld [vmem:[#allocation82_spill] sm:$0xff]  ;;  %v13079_v7 = vld [vmem:[#allocation84_spill] sm:$0xff] }
 0x3e5   :  { %v1337_v15 = vpop.f32.mrf.mxu0 }
 0x3e6   :  { %v1338_v23 = vadd.f32 %v1337_v15, %v1267_v42  ;;  %v13080_v42 = vld [vmem:[#allocation66_spill] sm:$0xff]  ;;  %v13082_v15 = vld [vmem:[#allocation68_spill] sm:$0xff] }
 0x3e8   :  { %4685 = vtanh.f32 %v1338_v23  ;;  %v3815_v23 = vpop.f32.mrf.mxu1 }
 0x3e9   :  { %4687 = vtanh.f32 %v1336_v2  ;;  %v13081_v2 = vld [vmem:[#allocation86_spill] sm:$0xff] }
 0x3f5   :  { %v4686_v48 = vpop.eup %4685 }
 0x3f6   :  { %v4688_v52 = vpop.eup %4687  ;;  %1619 = vmatprep.mubr.f32.mxu0 %v4686_v48 }
 0x3f7   :  { %1620 = vmatmul.mubr.f32.vlgmr.msra.gmra.mxu0 %v4688_v52 }
 0x3f8   :  { %3870 = vmatpush3.msra.mxu0 %v7423_v59  ;;  %1761 = vmatprep.mubr.f32.mxu0 %v4686_v48  ;;  %v3816_v59 = vadd.f32 %v3815_v23, %v3814_v38  ;;  %v13073_v48 = vld [vmem:[#allocation131_spill] sm:$0xff]  ;;  %v13083_v38 = vld [vmem:[#allocation88_spill] sm:$0xff]  ;;  %v13084_v23 = vld [vmem:[#allocation70_spill] sm:$0xff] }
 0x3f9   :  { %3871 = vmatprep.subr.mxu0 %v7429_v40 }
 0x3fa   :  { %3872 = vmatpush3.msra.mxu0 %v7435_v51 }
 0x3fb   :  { %3873 = vmatprep.subr.mxu0 %v7441_v6  ;;  %v1407_v6 = vadd.f32 %v3816_v59, %v7737_v0  ;;  %v13085_v59 = vld [vmem:[#allocation90_spill] sm:$0xff] }
 0x3fc   :  { %3874 = vmatpush3.msra.mxu0 %v7447_v44 }
 0x3fd   :  { %3875 = vmatprep.subr.mxu0 %v7453_v18 }
 0x3fe   :  { %3876 = vmatpush3.msra.mxu0 %v7459_v54  ;;  %v13062_v54 = vld [vmem:[#allocation93_spill] sm:$0xff] }
 0x3ff   :  { %3877 = vmatprep.subr.mxu0 %v7465_v26  ;;  %v13063_v26 = vld [vmem:[#allocation113_spill] sm:$0xff] }
 0x400   :  { %3878 = vmatpush3.msra.mxu0 %v7471_v60  ;;  %v13064_v60 = vld [vmem:[#allocation115_spill] sm:$0xff] }
 0x401   :  { %3879 = vmatprep.subr.mxu0 %v7477_v39  ;;  %v13061_v39 = vld [vmem:[#allocation111_spill] sm:$0xff] }
 0x402   :  { %3880 = vmatpush3.msra.mxu0 %v7483_v57  ;;  %v13060_v57 = vld [vmem:[#allocation109_spill] sm:$0xff] }
 0x403   :  { %3881 = vmatprep.subr.mxu0 %v7489_v22  ;;  %v3849_v40 = vpop.f32.mrf.mxu0  ;;  %v13059_v22 = vld [vmem:[#allocation91_spill] sm:$0xff] }
 0x404   :  { %3882 = vmatpush3.msra.mxu0 %v7495_v63  ;;  %v13065_v63 = vld [vmem:[#allocation95_spill] sm:$0xff] }
 0x405   :  { %3883 = vmatprep.subr.mxu0 %v7501_v10  ;;  %v3850_v51 = vpop.f32.mrf.mxu0  ;;  %v13057_v10 = vld [vmem:[#allocation105_spill] sm:$0xff] }
 0x406   :  { %v3851_v44 = vadd.f32 %v3850_v51, %v3849_v40  ;;  %3884 = vmatpush3.msra.mxu0 %v7507_v30  ;;  %v13066_v30 = vld [vmem:[#allocation117_spill] sm:$0xff]  ;;  %v13086_v40 = vld [vmem:[#allocation72_spill] sm:$0xff] }
 0x407   :  { %3885 = vmatprep.subr.mxu0 %v7513_v55  ;;  %v13056_v55 = vld [vmem:[#allocation89_spill] sm:$0xff]  ;;  %v13087_v51 = vld [vmem:[#allocation92_spill] sm:$0xff] }
 0x408   :  { %v1477_v18 = vadd.f32 %v3851_v44, %v1407_v6  ;;  %3886 = vmatpush3.msra.mxu0 %v7519_v47  ;;  %v13054_v47 = vld [vmem:[#allocation101_spill] sm:$0xff]  ;;  %v13088_v6 = vld [vmem:[#allocation74_spill] sm:$0xff] }
 0x409   :  { %3887 = vmatprep.subr.mxu0 %v7525_v61  ;;  %v13053_v61 = vld [vmem:[#allocation87_spill] sm:$0xff]  ;;  %v13089_v44 = vld [vmem:[#allocation94_spill] sm:$0xff] }
 0x40a   :  { %4689 = vtanh.f32 %v1477_v18  ;;  %3888 = vmatpush3.msra.mxu0 %v7531_v3  ;;  %v8530_v3 = vld [vmem:[%s11765_s1 + $0x3a8] sm:$0xff]  ;;  %v13090_v18 = vld [vmem:[#allocation76_spill] sm:$0xff] }
 0x40b   :  { %3889 = vmatprep.subr.mxu0 %v7537_v43  ;;  %v8516_v43 = vld [vmem:[%s11765_s1 + $0x3c0] sm:$0xff] }
 0x40c   :  { %3890 = vmatpush3.msra.mxu0 %v7543_v36  ;;  %v8502_v36 = vld [vmem:[%s11765_s1 + $0x3d8] sm:$0xff] }
 0x40d   :  { %3891 = vmatprep.subr.mxu0 %v7549_v32  ;;  %v8488_v32 = vld [vmem:[%s11765_s1 + $0x3f0] sm:$0xff] }
 0x40e   :  { %3892 = vmatpush3.msra.mxu0 %v7555_v28  ;;  %v8408_v28 = vld [vmem:[%s11766_s0 + $0x8] sm:$0x3] }
 0x40f   :  { %3893 = vmatprep.subr.mxu0 %v7561_v24 }
 0x410   :  { %3894 = vmatpush3.msra.mxu0 %v7567_v20  ;;  %v8474_v20 = vld [vmem:[%s11765_s1 + $0x408] sm:$0xff] }
 0x411   :  { %3895 = vmatprep.subr.mxu0 %v7573_v16  ;;  %v8467_v16 = vld [vmem:[%s11765_s1 + $0x410] sm:$0xff] }
 0x412   :  { %3896 = vmatpush3.msra.mxu0 %v7579_v12  ;;  %v8460_v12 = vld [vmem:[%s11765_s1 + $0x420] sm:$0xff] }
 0x413   :  { %3897 = vmatprep.subr.mxu0 %v7585_v8  ;;  %v8446_v8 = vld [vmem:[%s11765_s1 + $0x438] sm:$0xff] }
 0x414   :  { %3898 = vmatpush3.msra.mxu0 %v7591_v4  ;;  %v8439_v4 = vld [vmem:[%s11765_s1 + $0x440] sm:$0xff] }
 0x415   :  { %3899 = vmatprep.subr.mxu0 %v7597_v56  ;;  %v8418_v56 = vld [vmem:[%s11765_s1 + $0x468] sm:$0xff] }
 0x416   :  { %3900 = vmatpush3.msra.mxu0 %v7603_v53  ;;  %v8425_v53 = vld [vmem:[%s11765_s1 + $0x458] sm:$0xff] }
 0x417   :  { %v8410_v24 = vpop.eup %4689  ;;  %1762 = vmatmul.mubr.f32.vlgmr.msra.gmra.mxu0 %v4688_v52  ;;  %4461 = vmatprep.subr.mxu0 %v12563_v62  ;;  %v13072_v52 = vld [vmem:[#allocation129_spill] sm:$0xff] }
 0x418   :  { %4459 = vmatmul.mubr.f32.vlgmr.msra.gmra.mxu1 %v8410_v24  ;;  %4462 = vmatpush3.msra.mxu0 %v7611_v49  ;;  %v8432_v49 = vld [vmem:[%s11765_s1 + $0x450] sm:$0xff] }
 0x419   :  { %1627 = vmatpush1.msra.mxu1 %v8418_v56  ;;  %1690 = vmatprep.mubr.f32.mxu1 %v8408_v28 }
 0x41a   :  { %1628 = vmatprep.subr.mxu1 %v8425_v53  ;;  %4463 = vmatprep.subr.mxu0 %v12563_v62 }
 0x41b   :  { %1629 = vmatpush1.msra.mxu1 %v8432_v49  ;;  %4464 = vmatpush3.msra.mxu0 %v7618_v45  ;;  %v8453_v45 = vld [vmem:[%s11765_s1 + $0x428] sm:$0xff] }
 0x41c   :  { %1630 = vmatprep.subr.mxu1 %v8439_v4  ;;  %4465 = vmatprep.subr.mxu0 %v12563_v62 }
 0x41d   :  { %1631 = vmatpush1.msra.mxu1 %v8446_v8  ;;  %4466 = vmatpush3.msra.mxu0 %v7625_v58  ;;  %v13067_v58 = vld [vmem:[#allocation119_spill] sm:$0xff] }
 0x41e   :  { %1632 = vmatprep.subr.mxu1 %v8453_v45  ;;  %4467 = vmatprep.subr.mxu0 %v12563_v62 }
 0x41f   :  { %1633 = vmatpush1.msra.mxu1 %v8460_v12  ;;  %4468 = vmatpush3.msra.mxu0 %v7632_v41  ;;  %v8481_v41 = vld [vmem:[%s11765_s1 + $0x3f8] sm:$0xff] }
 0x420   :  { %1634 = vmatprep.subr.mxu1 %v8467_v16  ;;  %4469 = vmatprep.subr.mxu0 %v12563_v62 }
 0x421   :  { %1635 = vmatpush1.msra.mxu1 %v8474_v20  ;;  %4470 = vmatpush3.msra.mxu0 %v7639_v37  ;;  %v8495_v37 = vld [vmem:[%s11765_s1 + $0x3e0] sm:$0xff] }
 0x422   :  { %1636 = vmatprep.subr.mxu1 %v8481_v41  ;;  %4471 = vmatprep.subr.mxu0 %v12563_v62 }
 0x423   :  { %1637 = vmatpush1.msra.mxu1 %v8488_v32  ;;  %4472 = vmatpush3.msra.mxu0 %v7646_v35  ;;  %v8509_v35 = vld [vmem:[%s11765_s1 + $0x3c8] sm:$0xff] }
 0x424   :  { %1638 = vmatprep.subr.mxu1 %v8495_v37  ;;  %4473 = vmatprep.subr.mxu0 %v12563_v62 }
 0x425   :  { %1639 = vmatpush1.msra.mxu1 %v8502_v36  ;;  %4474 = vmatpush3.msra.mxu0 %v7653_v33  ;;  %v8523_v33 = vld [vmem:[%s11765_s1 + $0x3b0] sm:$0xff] }
 0x426   :  { %1640 = vmatprep.subr.mxu1 %v8509_v35  ;;  %4475 = vmatprep.subr.mxu0 %v12563_v62 }
 0x427   :  { %1641 = vmatpush1.msra.mxu1 %v8516_v43  ;;  %4476 = vmatpush3.msra.mxu0 %v7660_v31  ;;  %v13051_v31 = vld [vmem:[#allocation97_spill] sm:$0xff] }
 0x428   :  { %1642 = vmatprep.subr.mxu1 %v8523_v33  ;;  %4477 = vmatprep.subr.mxu0 %v12563_v62 }
 0x429   :  { %1643 = vmatpush1.msra.mxu1 %v8530_v3  ;;  %4478 = vmatpush3.msra.mxu0 %v7667_v29  ;;  %v13052_v29 = vld [vmem:[#allocation99_spill] sm:$0xff] }
 0x42a   :  { %1644 = vmatprep.subr.mxu1 %v7807_v9  ;;  %4479 = vmatprep.subr.mxu0 %v12563_v62  ;;  %v13068_v9 = vld [vmem:[#allocation121_spill] sm:$0xff] }
 0x42b   :  { %1645 = vmatpush1.msra.mxu1 %v7814_v11  ;;  %4480 = vmatpush3.msra.mxu0 %v7674_v27  ;;  %v13055_v27 = vld [vmem:[#allocation103_spill] sm:$0xff] }
 0x42c   :  { %1646 = vmatprep.subr.mxu1 %v7821_v13  ;;  %4481 = vmatprep.subr.mxu0 %v12563_v62  ;;  %v13069_v11 = vld [vmem:[#allocation123_spill] sm:$0xff]  ;;  %v13070_v13 = vld [vmem:[#allocation125_spill] sm:$0xff] }
 0x42d   :  { %1647 = vmatpush1.msra.mxu1 %v7828_v50  ;;  %4482 = vmatpush3.msra.mxu0 %v7681_v25  ;;  %v13058_v25 = vld [vmem:[#allocation107_spill] sm:$0xff] }
 0x42e   :  { %1648 = vmatprep.subr.mxu1 %v13051_v31  ;;  %4483 = vmatprep.subr.mxu0 %v12563_v62  ;;  %v13071_v50 = vld [vmem:[#allocation127_spill] sm:$0xff]  ;;  %v13091_v31 = vld [vmem:[#allocation96_spill] sm:$0xff] }
 0x42f   :  { %1649 = vmatpush1.msra.mxu1 %v13052_v29  ;;  %4484 = vmatpush3.msra.mxu0 %v13053_v61  ;;  %v13092_v29 = vld [vmem:[#allocation98_spill] sm:$0xff]  ;;  %v13093_v61 = vld [vmem:[#allocation100_spill] sm:$0xff] }
 0x430   :  { %1650 = vmatprep.subr.mxu1 %v13054_v47  ;;  %4485 = vmatprep.subr.mxu0 %v12563_v62  ;;  %v13094_v47 = vld [vmem:[#allocation102_spill] sm:$0xff] }
 0x431   :  { %1651 = vmatpush1.msra.mxu1 %v13055_v27  ;;  %4486 = vmatpush3.msra.mxu0 %v13056_v55  ;;  %v13095_v27 = vld [vmem:[#allocation104_spill] sm:$0xff]  ;;  %v13096_v55 = vld [vmem:[#allocation106_spill] sm:$0xff] }
 0x432   :  { %1652 = vmatprep.subr.mxu1 %v13057_v10  ;;  %4487 = vmatprep.subr.mxu0 %v12563_v62  ;;  %v13097_v10 = vld [vmem:[#allocation108_spill] sm:$0xff] }
 0x433   :  { %1653 = vmatpush1.msra.mxu1 %v13058_v25  ;;  %4488 = vmatpush3.msra.mxu0 %v13059_v22  ;;  %v13098_v25 = vld [vmem:[#allocation124_spill] sm:$0xff] }
 0x434   :  { %1654 = vmatprep.subr.mxu1 %v13060_v57  ;;  %4489 = vmatprep.subr.mxu0 %v12563_v62  ;;  %v13099_v22 = vld [vmem:[#allocation132_spill] sm:$0xff] }
 0x435   :  { %1655 = vmatpush1.msra.mxu1 %v13061_v39  ;;  %4490 = vmatpush3.msra.mxu0 %v13062_v54  ;;  %v13100_v57 = vld [vmem:[#allocation136_spill] sm:$0xff]  ;;  %v13101_v39 = vld [vmem:[#allocation137_spill] sm:$0xff]  ;;  %v13102_v54 = vld [vmem:[#allocation19_spill] sm:$0xff] }
 0x436   :  { %1656 = vmatprep.subr.mxu1 %v13063_v26  ;;  %4491 = vmatprep.subr.mxu0 %v12563_v62  ;;  %v13103_v26 = vld [vmem:[#allocation22_spill] sm:$0xff] }
 0x437   :  { %1657 = vmatpush1.msra.mxu1 %v13064_v60  ;;  %4492 = vmatpush3.msra.mxu0 %v13065_v63  ;;  %v13104_v60 = vld [vmem:[#allocation21_spill] sm:$0xff]  ;;  %v13105_v63 = vld [vmem:[#allocation2_spill] sm:$0xff] }
 0x438   :  { %1658 = vmatprep.subr.mxu1 %v13066_v30  ;;  %4493 = vmatprep.mubr.msk.f32.mxu0 %vm5352_vm0, %v12563_v62  ;;  %v13106_v30 = vld [vmem:[#allocation4_spill] sm:$0xff] }
 0x439   :  { %1659 = vmatpush2.msra.mxu1 %v13067_v58  ;;  %1983 = vmatprep.subr.mxu0 %v13068_v9  ;;  %v13107_v58 = vld [vmem:[#allocation3_spill] sm:$0xff]  ;;  %v13108_v9 = vld [vmem:[#allocation6_spill] sm:$0xff] }
 0x43a   :  { %1660 = vmatprep.subr.mxu1 %v13069_v11  ;;  %v13109_v11 = vld [vmem:[#allocation5_spill] sm:$0xff] }
 0x43b   :  { %1661 = vmatpush2.msra.mxu1 %v13070_v13  ;;  %v13110_v13 = vld [vmem:[#allocation8_spill] sm:$0xff] }
 0x43c   :  { %1662 = vmatprep.subr.mxu1 %v13071_v50  ;;  %v13112_v50 = vld [vmem:[#allocation10_spill] sm:$0xff] }
 0x43d   :  { %1663 = vmatpush2.msra.mxu1 %v13072_v52  ;;  %v13113_v52 = vld [vmem:[#allocation9_spill] sm:$0xff] }
 0x43e   :  { %1664 = vmatprep.subr.mxu1 %v13073_v48  ;;  %v13114_v48 = vld [vmem:[#allocation12_spill] sm:$0xff] }
 0x43f   :  { %1665 = vmatpush2.msra.mxu1 %v13074_v17  ;;  %v13115_v17 = vld [vmem:[#allocation11_spill] sm:$0xff] }
 0x440   :  { %1666 = vmatprep.subr.mxu1 %v13075_v46  ;;  %v13116_v46 = vld [vmem:[#allocation14_spill] sm:$0xff] }
 0x441   :  { %1667 = vmatpush2.msra.mxu1 %v13076_v19  ;;  %v13117_v19 = vld [vmem:[#allocation13_spill] sm:$0xff] }
 0x442   :  { %1668 = vmatprep.subr.mxu1 %v13077_v5  ;;  %v13118_v5 = vld [vmem:[#allocation16_spill] sm:$0xff] }
 0x443   :  { %1669 = vmatpush2.msra.mxu1 %v13078_v21  ;;  %v13119_v21 = vld [vmem:[#allocation15_spill] sm:$0xff] }
 0x444   :  { %1670 = vmatprep.subr.mxu1 %v13079_v7  ;;  %v13120_v7 = vld [vmem:[#allocation18_spill] sm:$0xff] }
 0x445   :  { %1671 = vmatpush2.msra.mxu1 %v13080_v42  ;;  %v13121_v42 = vld [vmem:[#allocation17_spill] sm:$0xff] }
 0x446   :  { %1672 = vmatprep.subr.mxu1 %v13081_v2  ;;  %v13122_v2 = vld [vmem:[#allocation20_spill] sm:$0xff] }
 0x447   :  { %1673 = vmatpush2.msra.mxu1 %v13082_v15  ;;  %v13123_v15 = vld [vmem:[#allocation138_spill] sm:$0xff] }
 0x448   :  { %1674 = vmatprep.subr.mxu1 %v13083_v38  ;;  %v13124_v38 = vld [vmem:[#allocation139_spill] sm:$0xff] }
 0x449   :  { %1675 = vmatpush2.msra.mxu1 %v13084_v23  ;;  %v13125_v23 = vld [vmem:[#allocation140_spill] sm:$0xff] }
 0x44a   :  { %1676 = vmatprep.subr.mxu1 %v13085_v59  ;;  %v13126_v59 = vld [vmem:[#allocation141_spill] sm:$0xff] }
 0x44b   :  { %1677 = vmatpush2.msra.mxu1 %v13086_v40  ;;  %v13127_v40 = vld [vmem:[#allocation142_spill] sm:$0xff] }
 0x44c   :  { %1678 = vmatprep.subr.mxu1 %v13087_v51  ;;  %v13128_v51 = vld [vmem:[#allocation143_spill] sm:$0xff] }
 0x44d   :  { %1679 = vmatpush2.msra.mxu1 %v13088_v6  ;;  %v13129_v6 = vld [vmem:[#allocation144_spill] sm:$0xff] }
 0x44e   :  { %1680 = vmatprep.subr.mxu1 %v13089_v44  ;;  %v13130_v44 = vld [vmem:[#allocation145_spill] sm:$0xff] }
 0x44f   :  { %1681 = vmatpush2.msra.mxu1 %v13090_v18  ;;  %v8635_v18 = vld [vmem:[%s11765_s1 + $0x170] sm:$0xff] }
 0x450   :  { %1682 = vmatprep.subr.mxu1 %v13091_v31  ;;  %v8641_v31 = vld [vmem:[%s11765_s1 + $0x168] sm:$0xff] }
 0x451   :  { %1683 = vmatpush2.msra.mxu1 %v13092_v29  ;;  %v8647_v29 = vld [vmem:[%s11765_s1 + $0x158] sm:$0xff] }
 0x452   :  { %1684 = vmatprep.subr.mxu1 %v13093_v61  ;;  %v8659_v61 = vld [vmem:[%s11765_s1 + $0x140] sm:$0xff] }
 0x453   :  { %1685 = vmatpush2.msra.mxu1 %v13094_v47  ;;  %v8665_v47 = vld [vmem:[%s11765_s1 + $0x138] sm:$0xff] }
 0x454   :  { %1686 = vmatprep.subr.mxu1 %v13095_v27  ;;  %v8671_v27 = vld [vmem:[%s11765_s1 + $0x128] sm:$0xff] }
 0x455   :  { %1687 = vmatpush2.msra.mxu1 %v13096_v55  ;;  %v8677_v55 = vld [vmem:[%s11765_s1 + $0x120] sm:$0xff] }
 0x456   :  { %1688 = vmatprep.subr.mxu1 %v13097_v10  ;;  %v8683_v10 = vld [vmem:[%s11765_s1 + $0x110] sm:$0xff] }
 0x457   :  { %1689 = vmatpush2.msra.mxu1 %v13098_v25  ;;  %v8689_v25 = vld [vmem:[%s11765_s1 + $0x108] sm:$0xff] }
 0x458   :  { %1691 = vmatmul.mubr.f32.vlgmr.msra.gmra.mxu1 %v8410_v24  ;;  %3904 = vmatprep.subr.mxu1 %v13099_v22  ;;  %v8695_v22 = vld [vmem:[%s11765_s1 + $0xf8] sm:$0xff] }
 0x459   :  { %3905 = vmatpush3.msra.mxu1 %v13100_v57  ;;  %1831 = vmatprep.mubr.f32.mxu1 %v8408_v28  ;;  %v13111_v28 = vld [vmem:[#allocation7_spill] sm:$0xff]  ;;  %v8701_v57 = vld [vmem:[%s11765_s1 + $0xf0] sm:$0xff] }
 0x45a   :  { %3906 = vmatprep.subr.mxu1 %v13101_v39  ;;  %v8707_v39 = vld [vmem:[%s11765_s1 + $0xe0] sm:$0xff] }
 0x45b   :  { %3907 = vmatpush3.msra.mxu1 %v13102_v54  ;;  %v8713_v54 = vld [vmem:[%s11765_s1 + $0xd8] sm:$0xff] }
 0x45c   :  { %3908 = vmatprep.subr.mxu1 %v13103_v26  ;;  %v8719_v26 = vld [vmem:[%s11765_s1 + $0xc8] sm:$0xff] }
 0x45d   :  { %3909 = vmatpush3.msra.mxu1 %v13104_v60  ;;  %v8725_v60 = vld [vmem:[%s11765_s1 + $0xc0] sm:$0xff] }
 0x45e   :  { %3910 = vmatprep.subr.mxu1 %v13105_v63  ;;  %v8731_v63 = vld [vmem:[%s11765_s1 + $0xb0] sm:$0xff] }
 0x45f   :  { %3911 = vmatpush3.msra.mxu1 %v13106_v30  ;;  %v8737_v30 = vld [vmem:[%s11765_s1 + $0xa8] sm:$0xff] }
 0x460   :  { %3912 = vmatprep.subr.mxu1 %v13107_v58  ;;  %v8743_v58 = vld [vmem:[%s11765_s1 + $0x98] sm:$0xff] }
 0x461   :  { %3913 = vmatpush3.msra.mxu1 %v13108_v9  ;;  %v8749_v9 = vld [vmem:[%s11765_s1 + $0x90] sm:$0xff] }
 0x462   :  { %3914 = vmatprep.subr.mxu1 %v13109_v11  ;;  %v8755_v11 = vld [vmem:[%s11765_s1 + $0x80] sm:$0xff] }
 0x463   :  { %3915 = vmatpush3.msra.mxu1 %v13110_v13  ;;  %v8761_v13 = vld [vmem:[%s11765_s1 + $0x78] sm:$0xff] }
 0x464   :  { %3916 = vmatprep.subr.mxu1 %v13111_v28  ;;  %v8767_v28 = vld [vmem:[%s11765_s1 + $0x68] sm:$0xff] }
 0x465   :  { %3917 = vmatpush3.msra.mxu1 %v13112_v50  ;;  %v8773_v50 = vld [vmem:[%s11765_s1 + $0x60] sm:$0xff] }
 0x466   :  { %3918 = vmatprep.subr.mxu1 %v13113_v52  ;;  %v8779_v52 = vld [vmem:[%s11765_s1 + $0x50] sm:$0xff] }
 0x467   :  { %3919 = vmatpush3.msra.mxu1 %v13114_v48  ;;  %v8785_v48 = vld [vmem:[%s11765_s1 + $0x48] sm:$0xff] }
 0x468   :  { %3920 = vmatprep.subr.mxu1 %v13115_v17  ;;  %v8791_v17 = vld [vmem:[%s11765_s1 + $0x38] sm:$0xff] }
 0x469   :  { %3921 = vmatpush3.msra.mxu1 %v13116_v46  ;;  %v8797_v46 = vld [vmem:[%s11765_s1 + $0x30] sm:$0xff] }
 0x46a   :  { %3922 = vmatprep.subr.mxu1 %v13117_v19  ;;  %v8803_v19 = vld [vmem:[%s11765_s1 + $0x20] sm:$0xff] }
 0x46b   :  { %3923 = vmatpush3.msra.mxu1 %v13118_v5  ;;  %v8809_v5 = vld [vmem:[%s11765_s1 + $0x18] sm:$0xff] }
 0x46c   :  { %3924 = vmatprep.subr.mxu1 %v13119_v21  ;;  %13131 = vst [vmem:[#allocation24_spill] sm:$0xff] %v8809_v5  ;;  %v8815_v21 = vld [vmem:[%s11765_s1 + $0x8] sm:$0xff] }
 0x46d   :  { %3925 = vmatpush3.msra.mxu1 %v13120_v7  ;;  %13132 = vst [vmem:[#allocation23_spill] sm:$0xff] %v8815_v21  ;;  %v8821_v7 = vld [vmem:[%s11765_s1] sm:$0xff] }
 0x46e   :  { %3926 = vmatprep.subr.mxu1 %v13121_v42  ;;  %13133 = vst [vmem:[#allocation26_spill] sm:$0xff] %v8821_v7  ;;  %v8827_v42 = vld [vmem:[%s11765_s1 + $0x2f0] sm:$0xff] }
 0x46f   :  { %3927 = vmatpush3.msra.mxu1 %v13122_v2  ;;  %13134 = vst [vmem:[#allocation25_spill] sm:$0xff] %v8827_v42  ;;  %v8833_v2 = vld [vmem:[%s11765_s1 + $0x2e8] sm:$0xff] }
 0x470   :  { %3928 = vmatprep.subr.mxu1 %v13123_v15  ;;  %13135 = vst [vmem:[#allocation28_spill] sm:$0xff] %v8833_v2  ;;  %v8839_v15 = vld [vmem:[%s11765_s1 + $0x2d8] sm:$0xff] }
 0x471   :  { %3929 = vmatpush3.msra.mxu1 %v13124_v38  ;;  %13136 = vst [vmem:[#allocation27_spill] sm:$0xff] %v8839_v15  ;;  %v8845_v38 = vld [vmem:[%s11765_s1 + $0x2d0] sm:$0xff] }
 0x472   :  { %3930 = vmatprep.subr.mxu1 %v13125_v23  ;;  %13137 = vst [vmem:[#allocation30_spill] sm:$0xff] %v8845_v38  ;;  %v8851_v23 = vld [vmem:[%s11765_s1 + $0x2c0] sm:$0xff] }
 0x473   :  { %3931 = vmatpush3.msra.mxu1 %v13126_v59  ;;  %13138 = vst [vmem:[#allocation29_spill] sm:$0xff] %v8851_v23  ;;  %v8857_v59 = vld [vmem:[%s11765_s1 + $0x2b8] sm:$0xff] }
 0x474   :  { %3932 = vmatprep.subr.mxu1 %v13127_v40  ;;  %13139 = vst [vmem:[#allocation32_spill] sm:$0xff] %v8857_v59  ;;  %v8863_v40 = vld [vmem:[%s11765_s1 + $0x2a8] sm:$0xff] }
 0x475   :  { %3933 = vmatpush3.msra.mxu1 %v13128_v51  ;;  %13140 = vst [vmem:[#allocation31_spill] sm:$0xff] %v8863_v40  ;;  %v8869_v51 = vld [vmem:[%s11765_s1 + $0x2a0] sm:$0xff] }
 0x476   :  { %3934 = vmatprep.subr.mxu1 %v13129_v6  ;;  %13141 = vst [vmem:[#allocation34_spill] sm:$0xff] %v8869_v51  ;;  %v8875_v6 = vld [vmem:[%s11765_s1 + $0x290] sm:$0xff] }
 0x477   :  { %3935 = vmatpush3.msra.mxu1 %v13130_v44  ;;  %13142 = vst [vmem:[#allocation33_spill] sm:$0xff] %v8875_v6  ;;  %v8881_v44 = vld [vmem:[%s11765_s1 + $0x288] sm:$0xff] }
 0x478   :  { %1832 = vmatmul.mubr.f32.vlgmr.msra.gmra.mxu1 %v8410_v24  ;;  %1912 = vmatprep.subr.mxu1 %v8635_v18  ;;  %v8653_v24 = vld [vmem:[%s11765_s1 + $0x150] sm:$0xff]  ;;  %13143 = vst [vmem:[#allocation36_spill] sm:$0xff] %v8881_v44 }
 0x479   :  { %1913 = vmatpush1.msra.mxu1 %v8641_v31 }
 0x47a   :  { %1914 = vmatprep.subr.mxu1 %v8647_v29 }
 0x47b   :  { %1915 = vmatpush1.msra.mxu1 %v8653_v24 }
 0x47c   :  { %1916 = vmatprep.subr.mxu1 %v8659_v61 }
 0x47d   :  { %1917 = vmatpush1.msra.mxu1 %v8665_v47 }
 0x47e   :  { %1918 = vmatprep.subr.mxu1 %v8671_v27 }
 0x47f   :  { %1919 = vmatpush1.msra.mxu1 %v8677_v55 }
 0x480   :  { %1920 = vmatprep.subr.mxu1 %v8683_v10 }
 0x481   :  { %1921 = vmatpush1.msra.mxu1 %v8689_v25 }
 0x482   :  { %1922 = vmatprep.subr.mxu1 %v8695_v22 }
 0x483   :  { %1923 = vmatpush1.msra.mxu1 %v8701_v57 }
 0x484   :  { %1924 = vmatprep.subr.mxu1 %v8707_v39 }
 0x485   :  { %1925 = vmatpush1.msra.mxu1 %v8713_v54 }
 0x486   :  { %1926 = vmatprep.subr.mxu1 %v8719_v26 }
 0x487   :  { %1927 = vmatpush1.msra.mxu1 %v8725_v60 }
 0x488   :  { %1928 = vmatprep.subr.mxu1 %v8731_v63 }
 0x489   :  { %1929 = vmatpush1.msra.mxu1 %v8737_v30 }
 0x48a   :  { %1930 = vmatprep.subr.mxu1 %v8743_v58 }
 0x48b   :  { %1931 = vmatpush1.msra.mxu1 %v8749_v9 }
 0x48c   :  { %1932 = vmatprep.subr.mxu1 %v8755_v11 }
 0x48d   :  { %1933 = vmatpush1.msra.mxu1 %v8761_v13 }
 0x48e   :  { %1934 = vmatprep.subr.mxu1 %v8767_v28 }
 0x48f   :  { %1935 = vmatpush1.msra.mxu1 %v8773_v50 }
 0x490   :  { %1936 = vmatprep.subr.mxu1 %v8779_v52 }
 0x491   :  { %1937 = vmatpush1.msra.mxu1 %v8785_v48 }
 0x492   :  { %1938 = vmatprep.subr.mxu1 %v8791_v17 }
 0x493   :  { %1939 = vmatpush1.msra.mxu1 %v8797_v46 }
 0x494   :  { %1940 = vmatprep.subr.mxu1 %v8803_v19 }
 0x495   :  { %1941 = vmatpush1.msra.mxu1 %v8809_v5 }
 0x496   :  { %1942 = vmatprep.subr.mxu1 %v8815_v21 }
 0x497   :  { %1943 = vmatpush1.msra.mxu1 %v8821_v7 }
 0x498   :  { %1944 = vmatprep.subr.mxu1 %v8827_v42 }
 0x499   :  { %1945 = vmatpush2.msra.mxu1 %v8833_v2 }
 0x49a   :  { %1946 = vmatprep.subr.mxu1 %v8839_v15 }
 0x49b   :  { %1947 = vmatpush2.msra.mxu1 %v8845_v38 }
 0x49c   :  { %1948 = vmatprep.subr.mxu1 %v8851_v23 }
 0x49d   :  { %1949 = vmatpush2.msra.mxu1 %v8857_v59 }
 0x49e   :  { %1950 = vmatprep.subr.mxu1 %v8863_v40  ;;  %v8887_v40 = vld [vmem:[%s11765_s1 + $0x278] sm:$0xff] }
 0x49f   :  { %1951 = vmatpush2.msra.mxu1 %v8869_v51  ;;  %13144 = vst [vmem:[#allocation35_spill] sm:$0xff] %v8887_v40  ;;  %v8893_v51 = vld [vmem:[%s11765_s1 + $0x270] sm:$0xff] }
 0x4a0   :  { %1952 = vmatprep.subr.mxu1 %v8875_v6  ;;  %13145 = vst [vmem:[#allocation38_spill] sm:$0xff] %v8893_v51  ;;  %v8899_v6 = vld [vmem:[%s11765_s1 + $0x260] sm:$0xff] }
 0x4a1   :  { %1953 = vmatpush2.msra.mxu1 %v8881_v44  ;;  %13146 = vst [vmem:[#allocation37_spill] sm:$0xff] %v8899_v6  ;;  %v8905_v44 = vld [vmem:[%s11765_s1 + $0x258] sm:$0xff] }
 0x4a2   :  { %1954 = vmatprep.subr.mxu1 %v8887_v40  ;;  %13147 = vst [vmem:[#allocation40_spill] sm:$0xff] %v8905_v44  ;;  %v8911_v40 = vld [vmem:[%s11765_s1 + $0x248] sm:$0xff] }
 0x4a3   :  { %1955 = vmatpush2.msra.mxu1 %v8893_v51  ;;  %13148 = vst [vmem:[#allocation39_spill] sm:$0xff] %v8911_v40  ;;  %v8917_v51 = vld [vmem:[%s11765_s1 + $0x240] sm:$0xff] }
 0x4a4   :  { %1956 = vmatprep.subr.mxu1 %v8899_v6  ;;  %13149 = vst [vmem:[#allocation42_spill] sm:$0xff] %v8917_v51  ;;  %v8923_v6 = vld [vmem:[%s11765_s1 + $0x230] sm:$0xff] }
 0x4a5   :  { %1957 = vmatpush2.msra.mxu1 %v8905_v44  ;;  %13150 = vst [vmem:[#allocation41_spill] sm:$0xff] %v8923_v6  ;;  %v8929_v44 = vld [vmem:[%s11765_s1 + $0x228] sm:$0xff] }
 0x4a6   :  { %1958 = vmatprep.subr.mxu1 %v8911_v40  ;;  %13151 = vst [vmem:[#allocation44_spill] sm:$0xff] %v8929_v44  ;;  %v8935_v40 = vld [vmem:[%s11765_s1 + $0x218] sm:$0xff] }
 0x4a7   :  { %1959 = vmatpush2.msra.mxu1 %v8917_v51  ;;  %13152 = vst [vmem:[#allocation43_spill] sm:$0xff] %v8935_v40  ;;  %v8941_v51 = vld [vmem:[%s11765_s1 + $0x210] sm:$0xff] }
 0x4a8   :  { %1960 = vmatprep.subr.mxu1 %v8923_v6  ;;  %13153 = vst [vmem:[#allocation46_spill] sm:$0xff] %v8941_v51  ;;  %v8947_v6 = vld [vmem:[%s11765_s1 + $0x200] sm:$0xff] }
 0x4a9   :  { %1961 = vmatpush2.msra.mxu1 %v8929_v44  ;;  %13154 = vst [vmem:[#allocation45_spill] sm:$0xff] %v8947_v6  ;;  %v8953_v44 = vld [vmem:[%s11765_s1 + $0x1f8] sm:$0xff] }
 0x4aa   :  { %1962 = vmatprep.subr.mxu1 %v8935_v40  ;;  %13155 = vst [vmem:[#allocation48_spill] sm:$0xff] %v8953_v44  ;;  %v8959_v40 = vld [vmem:[%s11765_s1 + $0x1e8] sm:$0xff] }
 0x4ab   :  { %1963 = vmatpush2.msra.mxu1 %v8941_v51  ;;  %13156 = vst [vmem:[#allocation47_spill] sm:$0xff] %v8959_v40  ;;  %v8965_v51 = vld [vmem:[%s11765_s1 + $0x1e0] sm:$0xff] }
 0x4ac   :  { %1964 = vmatprep.subr.mxu1 %v8947_v6  ;;  %13157 = vst [vmem:[#allocation50_spill] sm:$0xff] %v8965_v51  ;;  %v8971_v6 = vld [vmem:[%s11765_s1 + $0x1d0] sm:$0xff] }
 0x4ad   :  { %1965 = vmatpush2.msra.mxu1 %v8953_v44  ;;  %13158 = vst [vmem:[#allocation49_spill] sm:$0xff] %v8971_v6  ;;  %v8977_v44 = vld [vmem:[%s11765_s1 + $0x1c8] sm:$0xff] }
 0x4ae   :  { %1966 = vmatprep.subr.mxu1 %v8959_v40  ;;  %13159 = vst [vmem:[#allocation52_spill] sm:$0xff] %v8977_v44  ;;  %v8983_v40 = vld [vmem:[%s11765_s1 + $0x1b8] sm:$0xff] }
 0x4af   :  { %1967 = vmatpush2.msra.mxu1 %v8965_v51  ;;  %13160 = vst [vmem:[#allocation51_spill] sm:$0xff] %v8983_v40  ;;  %v8989_v51 = vld [vmem:[%s11765_s1 + $0x1b0] sm:$0xff] }
 0x4b0   :  { %1968 = vmatprep.subr.mxu1 %v8971_v6  ;;  %13161 = vst [vmem:[#allocation54_spill] sm:$0xff] %v8989_v51  ;;  %v8995_v6 = vld [vmem:[%s11765_s1 + $0x1a0] sm:$0xff] }
 0x4b1   :  { %1969 = vmatpush2.msra.mxu1 %v8977_v44  ;;  %13162 = vst [vmem:[#allocation53_spill] sm:$0xff] %v8995_v6  ;;  %v9001_v44 = vld [vmem:[%s11765_s1 + $0x198] sm:$0xff] }
 0x4b2   :  { %1970 = vmatprep.subr.mxu1 %v8983_v40  ;;  %13163 = vst [vmem:[#allocation56_spill] sm:$0xff] %v9001_v44  ;;  %v9007_v40 = vld [vmem:[%s11765_s1 + $0x188] sm:$0xff] }
 0x4b3   :  { %1971 = vmatpush2.msra.mxu1 %v8989_v51  ;;  %13164 = vst [vmem:[#allocation55_spill] sm:$0xff] %v9007_v40  ;;  %v9013_v51 = vld [vmem:[%s11765_s1 + $0x180] sm:$0xff] }
 0x4b4   :  { %1972 = vmatprep.subr.mxu1 %v8995_v6  ;;  %13165 = vst [vmem:[#allocation58_spill] sm:$0xff] %v9013_v51  ;;  %v9019_v6 = vld [vmem:[%s11765_s1 + $0x2f8] sm:$0xff] }
 0x4b5   :  { %1973 = vmatpush2.msra.mxu1 %v9001_v44  ;;  %13166 = vst [vmem:[#allocation57_spill] sm:$0xff] %v9019_v6 }
 0x4b6   :  { %1974 = vmatprep.subr.mxu1 %v9007_v40 }
 0x4b7   :  { %1975 = vmatpush2.msra.mxu1 %v9013_v51  ;;  %v1621_v40 = vpop.f32.mrf.mxu0 }
 0x4b8   :  { %3956 = vmatprep.subr.mxu1 %v9019_v6  ;;  %v1622_v15 = vadd.f32 %v1621_v40, %v12888_v14  ;;  %v9076_v40 = vld [vmem:[%s11765_s1 + $0x298] sm:$0xff] }
 0x4b9   :  { %v1623_v38 = vpop.f32.mrf.mxu0  ;;  %13170 = vst [vmem:[#allocation61_spill] sm:$0xff] %v9076_v40 }
 0x4ba   :  { %v1624_v2 = vadd.f32 %v1623_v38, %v7411_v1  ;;  %v9064_v38 = vld [vmem:[%s11765_s1 + $0x2b0] sm:$0xff] }
 0x4bb   :  { %13168 = vst [vmem:[#allocation59_spill] sm:$0xff] %v9064_v38 }
 0x4d8   :  { %v1549_v44 = vpop.f32.mrf.mxu1 }
 0x4d9   :  { %v1550_v59 = vadd.f32 %v8365_v34, %v1549_v44  ;;  %v9034_v34 = vld [vmem:[%s11765_s1 + $0x178] sm:$0xff] }
 0x4da   :  { %v4460_v23 = vpop.f32.mrf.mxu1 }
 0x4db   :  { %1553 = vst [vmem:[%s11770_s5 + $0x2] sm:$0x3] %v1550_v59  ;;  %v9070_v23 = vld [vmem:[%s11765_s1 + $0x130] sm:$0xff] }
 0x4dc   :  { %13169 = vst [vmem:[#allocation62_spill] sm:$0xff] %v9070_v23 }
 0x518   :  { %v1692_v51 = vpop.f32.mrf.mxu1 }
 0x519   :  { %v1693_v42 = vadd.f32 %v1692_v51, %v1622_v15  ;;  %v9058_v15 = vld [vmem:[%s11765_s1 + $0x148] sm:$0xff]  ;;  %v9082_v51 = vld [vmem:[%s11765_s1 + $0x118] sm:$0xff] }
 0x51a   :  { %v1694_v7 = vpop.f32.mrf.mxu1  ;;  %13167 = vst [vmem:[#allocation60_spill] sm:$0xff] %v9058_v15  ;;  %13171 = vst [vmem:[#allocation64_spill] sm:$0xff] %v9082_v51 }
 0x51b   :  { %v1695_v21 = vadd.f32 %v1694_v7, %v1624_v2  ;;  %v9040_v7 = vld [vmem:[%s11765_s1 + $0x2e0] sm:$0xff]  ;;  %v9052_v2 = vld [vmem:[%s11765_s1 + $0x2c8] sm:$0xff] }
 0x51d   :  { %4691 = vtanh.f32 %v1695_v21  ;;  %v9046_v21 = vld [vmem:[%s11765_s1 + $0x160] sm:$0xff] }
 0x51e   :  { %4693 = vtanh.f32 %v1693_v42  ;;  %v3901_v42 = vpop.f32.mrf.mxu0 }
 0x520   :  { %v3902_v59 = vpop.f32.mrf.mxu0 }
 0x521   :  { %v3903_v44 = vadd.f32 %v3902_v59, %v3901_v42  ;;  %v9112_v42 = vld [vmem:[%s11765_s1 + $0x250] sm:$0xff] }
 0x52a   :  { %v4692_v6 = vpop.eup %4691 }
 0x52b   :  { %v9028_v5 = vpop.eup %4693  ;;  %1976 = vmatprep.mubr.f32.mxu1 %v4692_v6 }
 0x52c   :  { %1977 = vmatmul.mubr.f32.vlgmr.msra.gmra.mxu1 %v9028_v5 }
 0x52d   :  { %3957 = vmatpush3.msra.mxu1 %v9034_v34  ;;  %2118 = vmatprep.mubr.f32.mxu1 %v4692_v6  ;;  %v9088_v6 = vld [vmem:[%s11765_s1 + $0x280] sm:$0xff] }
 0x52e   :  { %3958 = vmatprep.subr.mxu1 %v9040_v7  ;;  %13172 = vst [vmem:[#allocation63_spill] sm:$0xff] %v9088_v6 }
 0x52f   :  { %3959 = vmatpush3.msra.mxu1 %v9046_v21 }
 0x530   :  { %3960 = vmatprep.subr.mxu1 %v9052_v2 }
 0x531   :  { %3961 = vmatpush3.msra.mxu1 %v9058_v15 }
 0x532   :  { %3962 = vmatprep.subr.mxu1 %v9064_v38 }
 0x533   :  { %3963 = vmatpush3.msra.mxu1 %v9070_v23  ;;  %v9094_v23 = vld [vmem:[%s11765_s1 + $0x100] sm:$0xff] }
 0x534   :  { %3964 = vmatprep.subr.mxu1 %v9076_v40  ;;  %13173 = vst [vmem:[#allocation65_spill] sm:$0xff] %v9094_v23  ;;  %v9100_v40 = vld [vmem:[%s11765_s1 + $0x268] sm:$0xff] }
 0x535   :  { %3965 = vmatpush3.msra.mxu1 %v9082_v51  ;;  %13174 = vst [vmem:[#allocation67_spill] sm:$0xff] %v9100_v40 }
 0x536   :  { %3966 = vmatprep.subr.mxu1 %v9088_v6  ;;  %v9106_v6 = vld [vmem:[%s11765_s1 + $0xe8] sm:$0xff] }
 0x537   :  { %3967 = vmatpush3.msra.mxu1 %v9094_v23  ;;  %13175 = vst [vmem:[#allocation69_spill] sm:$0xff] %v9106_v6  ;;  %v1764_v23 = vadd.f32 %v3903_v44, %v7737_v0  ;;  %v9131_v44 = vld [vmem:[%s11765_s1 + $0xb8] sm:$0xff] }
 0x538   :  { %3968 = vmatprep.subr.mxu1 %v9100_v40  ;;  %v3936_v51 = vpop.f32.mrf.mxu1  ;;  %v9119_v40 = vld [vmem:[%s11765_s1 + $0xd0] sm:$0xff] }
 0x539   :  { %3969 = vmatpush3.msra.mxu1 %v9106_v6  ;;  %v9125_v6 = vld [vmem:[%s11765_s1 + $0x238] sm:$0xff] }
 0x53a   :  { %3970 = vmatprep.subr.mxu1 %v9112_v42  ;;  %v3937_v59 = vpop.f32.mrf.mxu1 }
 0x53b   :  { %v3938_v38 = vadd.f32 %v3937_v59, %v3936_v51  ;;  %3971 = vmatpush3.msra.mxu1 %v9119_v40  ;;  %v9137_v51 = vld [vmem:[%s11765_s1 + $0x220] sm:$0xff] }
 0x53c   :  { %3972 = vmatprep.subr.mxu1 %v9125_v6  ;;  %v9143_v59 = vld [vmem:[%s11765_s1 + $0xa0] sm:$0xff] }
 0x53d   :  { %v1834_v15 = vadd.f32 %v3938_v38, %v1764_v23  ;;  %3973 = vmatpush3.msra.mxu1 %v9131_v44  ;;  %13176 = vst [vmem:[#allocation71_spill] sm:$0xff] %v9143_v59  ;;  %v9149_v38 = vld [vmem:[%s11765_s1 + $0x208] sm:$0xff] }
 0x53e   :  { %3974 = vmatprep.subr.mxu1 %v9137_v51  ;;  %13177 = vst [vmem:[#allocation73_spill] sm:$0xff] %v9149_v38  ;;  %v9155_v23 = vld [vmem:[%s11765_s1 + $0x88] sm:$0xff] }
 0x53f   :  { %4695 = vtanh.f32 %v1834_v15  ;;  %3975 = vmatpush3.msra.mxu1 %v9143_v59  ;;  %13178 = vst [vmem:[#allocation75_spill] sm:$0xff] %v9155_v23  ;;  %v9161_v15 = vld [vmem:[%s11765_s1 + $0x1f0] sm:$0xff] }
 0x540   :  { %3976 = vmatprep.subr.mxu1 %v9149_v38  ;;  %13179 = vst [vmem:[#allocation78_spill] sm:$0xff] %v9161_v15  ;;  %v9167_v59 = vld [vmem:[%s11765_s1 + $0x70] sm:$0xff]  ;;  %v9173_v38 = vld [vmem:[%s11765_s1 + $0x1d8] sm:$0xff] }
 0x541   :  { %3977 = vmatpush3.msra.mxu1 %v9155_v23  ;;  %13180 = vst [vmem:[#allocation110_spill] sm:$0xff] %v9167_v59  ;;  %13181 = vst [vmem:[#allocation112_spill] sm:$0xff] %v9173_v38  ;;  %v9179_v23 = vld [vmem:[%s11765_s1 + $0x58] sm:$0xff] }
 0x542   :  { %3978 = vmatprep.subr.mxu1 %v9161_v15  ;;  %13182 = vst [vmem:[#allocation114_spill] sm:$0xff] %v9179_v23  ;;  %v9185_v15 = vld [vmem:[%s11765_s1 + $0x1c0] sm:$0xff] }
 0x543   :  { %3979 = vmatpush3.msra.mxu1 %v9167_v59  ;;  %13183 = vst [vmem:[#allocation116_spill] sm:$0xff] %v9185_v15  ;;  %v9191_v59 = vld [vmem:[%s11765_s1 + $0x40] sm:$0xff] }
 0x544   :  { %3980 = vmatprep.subr.mxu1 %v9173_v38  ;;  %13184 = vst [vmem:[#allocation118_spill] sm:$0xff] %v9191_v59  ;;  %v9197_v38 = vld [vmem:[%s11765_s1 + $0x1a8] sm:$0xff] }
 0x545   :  { %3981 = vmatpush3.msra.mxu1 %v9179_v23  ;;  %13185 = vst [vmem:[#allocation120_spill] sm:$0xff] %v9197_v38  ;;  %v9203_v23 = vld [vmem:[%s11765_s1 + $0x28] sm:$0xff] }
 0x546   :  { %3982 = vmatprep.subr.mxu1 %v9185_v15  ;;  %13186 = vst [vmem:[#allocation122_spill] sm:$0xff] %v9203_v23  ;;  %v9209_v15 = vld [vmem:[%s11765_s1 + $0x190] sm:$0xff] }
 0x547   :  { %3983 = vmatpush3.msra.mxu1 %v9191_v59  ;;  %13187 = vst [vmem:[#allocation126_spill] sm:$0xff] %v9209_v15  ;;  %v9215_v59 = vld [vmem:[%s11765_s1 + $0x10] sm:$0xff] }
 0x548   :  { %3984 = vmatprep.subr.mxu1 %v9197_v38  ;;  %v9221_v38 = vld [vmem:[%s11766_s0 + $0xa] sm:$0x3] }
 0x549   :  { %3985 = vmatpush3.msra.mxu1 %v9203_v23 }
 0x54a   :  { %3986 = vmatprep.subr.mxu1 %v9209_v15  ;;  %v9231_v15 = vld [vmem:[%s11768_s3 + $0x78] sm:$0xff] }
 0x54b   :  { %3987 = vmatpush3.msra.mxu1 %v9215_v59 }
 0x54c   :  { %v9223_v23 = vpop.eup %4695  ;;  %2119 = vmatmul.mubr.f32.vlgmr.msra.gmra.mxu1 %v9028_v5  ;;  %4496 = vmatprep.subr.mxu1 %v12563_v62  ;;  %v9242_v5 = vld [vmem:[%s11768_s3 + $0x70] sm:$0xff] }
 0x54d   :  { %4494 = vmatmul.mubr.f32.vlgmr.msra.gmra.mxu0 %v9223_v23  ;;  %4497 = vmatpush3.msra.mxu1 %v9231_v15 }
 0x54e   :  { %1984 = vmatpush1.msra.mxu0 %v8418_v56  ;;  %2047 = vmatprep.mubr.f32.mxu0 %v9221_v38  ;;  %v9251_v56 = vld [vmem:[%s11768_s3 + $0x68] sm:$0xff] }
 0x54f   :  { %1985 = vmatprep.subr.mxu0 %v8425_v53  ;;  %4498 = vmatprep.subr.mxu1 %v12563_v62  ;;  %v9260_v53 = vld [vmem:[%s11768_s3 + $0x60] sm:$0xff] }
 0x550   :  { %1986 = vmatpush1.msra.mxu0 %v8432_v49  ;;  %4499 = vmatpush3.msra.mxu1 %v9242_v5  ;;  %v9269_v49 = vld [vmem:[%s11768_s3 + $0x58] sm:$0xff] }
 0x551   :  { %1987 = vmatprep.subr.mxu0 %v8439_v4  ;;  %4500 = vmatprep.subr.mxu1 %v12563_v62  ;;  %v9278_v4 = vld [vmem:[%s11768_s3 + $0x50] sm:$0xff] }
 0x552   :  { %1988 = vmatpush1.msra.mxu0 %v8446_v8  ;;  %4501 = vmatpush3.msra.mxu1 %v9251_v56  ;;  %v9287_v8 = vld [vmem:[%s11768_s3 + $0x48] sm:$0xff] }
 0x553   :  { %1989 = vmatprep.subr.mxu0 %v8453_v45  ;;  %4502 = vmatprep.subr.mxu1 %v12563_v62  ;;  %v9296_v45 = vld [vmem:[%s11768_s3 + $0x40] sm:$0xff] }
 0x554   :  { %1990 = vmatpush1.msra.mxu0 %v8460_v12  ;;  %4503 = vmatpush3.msra.mxu1 %v9260_v53  ;;  %v9305_v12 = vld [vmem:[%s11768_s3 + $0x38] sm:$0xff] }
 0x555   :  { %1991 = vmatprep.subr.mxu0 %v8467_v16  ;;  %4504 = vmatprep.subr.mxu1 %v12563_v62  ;;  %v9311_v16 = vld [vmem:[%s11765_s1 + $0x398] sm:$0xff] }
 0x556   :  { %1992 = vmatpush1.msra.mxu0 %v8474_v20  ;;  %4505 = vmatpush3.msra.mxu1 %v9269_v49  ;;  %v9318_v20 = vld [vmem:[%s11765_s1 + $0x390] sm:$0xff] }
 0x557   :  { %1993 = vmatprep.subr.mxu0 %v8481_v41  ;;  %4506 = vmatprep.subr.mxu1 %v12563_v62  ;;  %v9324_v41 = vld [vmem:[%s11768_s3 + $0x30] sm:$0xff] }
 0x558   :  { %1994 = vmatpush1.msra.mxu0 %v8488_v32  ;;  %4507 = vmatpush3.msra.mxu1 %v9278_v4  ;;  %v9330_v32 = vld [vmem:[%s11765_s1 + $0x380] sm:$0xff] }
 0x559   :  { %1995 = vmatprep.subr.mxu0 %v8495_v37  ;;  %4508 = vmatprep.subr.mxu1 %v12563_v62  ;;  %v9337_v37 = vld [vmem:[%s11765_s1 + $0x378] sm:$0xff] }
 0x55a   :  { %1996 = vmatpush1.msra.mxu0 %v8502_v36  ;;  %4509 = vmatpush3.msra.mxu1 %v9287_v8  ;;  %v9343_v36 = vld [vmem:[%s11768_s3 + $0x28] sm:$0xff] }
 0x55b   :  { %1997 = vmatprep.subr.mxu0 %v8509_v35  ;;  %4510 = vmatprep.subr.mxu1 %v12563_v62  ;;  %v9349_v35 = vld [vmem:[%s11765_s1 + $0x368] sm:$0xff] }
 0x55c   :  { %1998 = vmatpush1.msra.mxu0 %v8516_v43  ;;  %4511 = vmatpush3.msra.mxu1 %v9296_v45  ;;  %13188 = vst [vmem:[#allocation128_spill] sm:$0xff] %v9349_v35  ;;  %v9356_v43 = vld [vmem:[%s11765_s1 + $0x360] sm:$0xff] }
 0x55d   :  { %1999 = vmatprep.subr.mxu0 %v8523_v33  ;;  %4512 = vmatprep.subr.mxu1 %v12563_v62  ;;  %13189 = vst [vmem:[#allocation130_spill] sm:$0xff] %v9356_v43  ;;  %v9362_v33 = vld [vmem:[%s11768_s3 + $0x20] sm:$0xff] }
 0x55e   :  { %2000 = vmatpush1.msra.mxu0 %v8530_v3  ;;  %4513 = vmatpush3.msra.mxu1 %v9305_v12  ;;  %13190 = vst [vmem:[#allocation77_spill] sm:$0xff] %v9362_v33  ;;  %v9368_v3 = vld [vmem:[%s11765_s1 + $0x350] sm:$0xff] }
 0x55f   :  { %2001 = vmatprep.subr.mxu0 %v9311_v16  ;;  %4514 = vmatprep.subr.mxu1 %v12563_v62  ;;  %13191 = vst [vmem:[#allocation79_spill] sm:$0xff] %v9368_v3 }
 0x560   :  { %2002 = vmatpush1.msra.mxu0 %v9318_v20  ;;  %4515 = vmatpush3.msra.mxu1 %v9324_v41 }
 0x561   :  { %2003 = vmatprep.subr.mxu0 %v9330_v32  ;;  %4516 = vmatprep.subr.mxu1 %v12563_v62 }
 0x562   :  { %2004 = vmatpush1.msra.mxu0 %v9337_v37  ;;  %4517 = vmatpush3.msra.mxu1 %v9343_v36 }
 0x563   :  { %2005 = vmatprep.subr.mxu0 %v9349_v35  ;;  %4518 = vmatprep.subr.mxu1 %v12563_v62  ;;  %v9470_v35 = vld [vmem:[%s11765_s1 + $0x5d0] sm:$0xff] }
 0x564   :  { %2006 = vmatpush1.msra.mxu0 %v9356_v43  ;;  %4519 = vmatpush3.msra.mxu1 %v9362_v33  ;;  %v9375_v43 = vld [vmem:[%s11765_s1 + $0x348] sm:$0xff]  ;;  %v9381_v33 = vld [vmem:[%s11768_s3 + $0x18] sm:$0xff]  ;;  %13207 = vst [vmem:[#allocation113_spill] sm:$0xff] %v9470_v35 }
 0x565   :  { %2007 = vmatprep.subr.mxu0 %v9368_v3  ;;  %4520 = vmatprep.subr.mxu1 %v12563_v62  ;;  %13192 = vst [vmem:[#allocation81_spill] sm:$0xff] %v9375_v43  ;;  %13193 = vst [vmem:[#allocation83_spill] sm:$0xff] %v9381_v33  ;;  %v9387_v3 = vld [vmem:[%s11765_s1 + $0x338] sm:$0xff] }
 0x566   :  { %2008 = vmatpush1.msra.mxu0 %v9375_v43  ;;  %4521 = vmatpush3.msra.mxu1 %v9381_v33  ;;  %13194 = vst [vmem:[#allocation85_spill] sm:$0xff] %v9387_v3  ;;  %v9394_v43 = vld [vmem:[%s11765_s1 + $0x330] sm:$0xff] }
 0x567   :  { %2009 = vmatprep.subr.mxu0 %v9387_v3  ;;  %4522 = vmatprep.subr.mxu1 %v12563_v62  ;;  %13195 = vst [vmem:[#allocation97_spill] sm:$0xff] %v9394_v43  ;;  %v9400_v33 = vld [vmem:[%s11768_s3 + $0x10] sm:$0xff]  ;;  %v9406_v3 = vld [vmem:[%s11765_s1 + $0x320] sm:$0xff] }
 0x568   :  { %2010 = vmatpush1.msra.mxu0 %v9394_v43  ;;  %13196 = vst [vmem:[#allocation99_spill] sm:$0xff] %v9400_v33  ;;  %4523 = vmatpush3.msra.mxu1 %v9400_v33  ;;  %13197 = vst [vmem:[#allocation87_spill] sm:$0xff] %v9406_v3  ;;  %v9413_v43 = vld [vmem:[%s11765_s1 + $0x318] sm:$0xff]  ;;  %v9419_v33 = vld [vmem:[%s11768_s3 + $0x8] sm:$0xff] }
 0x569   :  { %2011 = vmatprep.subr.mxu0 %v9406_v3  ;;  %4524 = vmatprep.subr.mxu1 %v12563_v62  ;;  %13198 = vst [vmem:[#allocation101_spill] sm:$0xff] %v9413_v43  ;;  %13199 = vst [vmem:[#allocation103_spill] sm:$0xff] %v9419_v33  ;;  %v9425_v3 = vld [vmem:[%s11765_s1 + $0x308] sm:$0xff] }
 0x56a   :  { %2012 = vmatpush1.msra.mxu0 %v9413_v43  ;;  %4525 = vmatpush3.msra.mxu1 %v9419_v33  ;;  %13200 = vst [vmem:[#allocation89_spill] sm:$0xff] %v9425_v3  ;;  %v9432_v43 = vld [vmem:[%s11765_s1 + $0x300] sm:$0xff] }
 0x56b   :  { %2013 = vmatprep.subr.mxu0 %v9425_v3  ;;  %4526 = vmatprep.subr.mxu1 %v12563_v62  ;;  %13201 = vst [vmem:[#allocation105_spill] sm:$0xff] %v9432_v43  ;;  %v9438_v33 = vld [vmem:[%s11768_s3] sm:$0xff]  ;;  %v9444_v3 = vld [vmem:[%s11765_s1 + $0x5f0] sm:$0xff] }
 0x56c   :  { %2014 = vmatpush1.msra.mxu0 %v9432_v43  ;;  %13202 = vst [vmem:[#allocation107_spill] sm:$0xff] %v9438_v33  ;;  %4527 = vmatpush3.msra.mxu1 %v9438_v33  ;;  %13203 = vst [vmem:[#allocation91_spill] sm:$0xff] %v9444_v3  ;;  %v9452_v43 = vld [vmem:[%s11765_s1 + $0x5e8] sm:$0xff]  ;;  %v9458_v33 = vld [vmem:[%s11765_s1 + $0x470] sm:$0xff] }
 0x56d   :  { %2015 = vmatprep.subr.mxu0 %v9444_v3  ;;  %4528 = vmatprep.mubr.msk.f32.mxu1 %vm5352_vm0, %v12563_v62  ;;  %13204 = vst [vmem:[#allocation109_spill] sm:$0xff] %v9452_v43  ;;  %13205 = vst [vmem:[#allocation111_spill] sm:$0xff] %v9458_v33  ;;  %v9464_v3 = vld [vmem:[%s11765_s1 + $0x5d8] sm:$0xff] }
 0x56e   :  { %2016 = vmatpush2.msra.mxu0 %v9452_v43  ;;  %2340 = vmatprep.subr.mxu1 %v9458_v33  ;;  %13206 = vst [vmem:[#allocation93_spill] sm:$0xff] %v9464_v3  ;;  %v9476_v43 = vld [vmem:[%s11765_s1 + $0x5c0] sm:$0xff]  ;;  %v9482_v33 = vld [vmem:[%s11765_s1 + $0x5b8] sm:$0xff] }
 0x56f   :  { %2017 = vmatprep.subr.mxu0 %v9464_v3  ;;  %13208 = vst [vmem:[#allocation115_spill] sm:$0xff] %v9476_v43  ;;  %13209 = vst [vmem:[#allocation95_spill] sm:$0xff] %v9482_v33  ;;  %v9488_v3 = vld [vmem:[%s11765_s1 + $0x5a8] sm:$0xff] }
 0x570   :  { %2018 = vmatpush2.msra.mxu0 %v9470_v35  ;;  %13210 = vst [vmem:[#allocation117_spill] sm:$0xff] %v9488_v3  ;;  %v9494_v35 = vld [vmem:[%s11765_s1 + $0x5a0] sm:$0xff] }
 0x571   :  { %2019 = vmatprep.subr.mxu0 %v9476_v43  ;;  %13211 = vst [vmem:[#allocation119_spill] sm:$0xff] %v9494_v35  ;;  %v9500_v43 = vld [vmem:[%s11765_s1 + $0x590] sm:$0xff] }
 0x572   :  { %2020 = vmatpush2.msra.mxu0 %v9482_v33  ;;  %13212 = vst [vmem:[#allocation121_spill] sm:$0xff] %v9500_v43  ;;  %v9506_v33 = vld [vmem:[%s11765_s1 + $0x588] sm:$0xff] }
 0x573   :  { %2021 = vmatprep.subr.mxu0 %v9488_v3  ;;  %13213 = vst [vmem:[#allocation123_spill] sm:$0xff] %v9506_v33  ;;  %v9512_v3 = vld [vmem:[%s11765_s1 + $0x578] sm:$0xff] }
 0x574   :  { %2022 = vmatpush2.msra.mxu0 %v9494_v35  ;;  %13214 = vst [vmem:[#allocation125_spill] sm:$0xff] %v9512_v3  ;;  %v9518_v35 = vld [vmem:[%s11765_s1 + $0x570] sm:$0xff] }
 0x575   :  { %2023 = vmatprep.subr.mxu0 %v9500_v43  ;;  %13215 = vst [vmem:[#allocation127_spill] sm:$0xff] %v9518_v35  ;;  %v9524_v43 = vld [vmem:[%s11765_s1 + $0x560] sm:$0xff] }
 0x576   :  { %2024 = vmatpush2.msra.mxu0 %v9506_v33  ;;  %13216 = vst [vmem:[#allocation129_spill] sm:$0xff] %v9524_v43  ;;  %v9530_v33 = vld [vmem:[%s11765_s1 + $0x558] sm:$0xff] }
 0x577   :  { %2025 = vmatprep.subr.mxu0 %v9512_v3  ;;  %13217 = vst [vmem:[#allocation131_spill] sm:$0xff] %v9530_v33  ;;  %v9536_v3 = vld [vmem:[%s11765_s1 + $0x548] sm:$0xff] }
 0x578   :  { %2026 = vmatpush2.msra.mxu0 %v9518_v35  ;;  %13218 = vst [vmem:[#allocation133_spill] sm:$0xff] %v9536_v3  ;;  %v9542_v35 = vld [vmem:[%s11765_s1 + $0x540] sm:$0xff] }
 0x579   :  { %2027 = vmatprep.subr.mxu0 %v9524_v43  ;;  %13219 = vst [vmem:[#allocation134_spill] sm:$0xff] %v9542_v35  ;;  %v9548_v43 = vld [vmem:[%s11765_s1 + $0x530] sm:$0xff] }
 0x57a   :  { %2028 = vmatpush2.msra.mxu0 %v9530_v33  ;;  %13220 = vst [vmem:[#allocation135_spill] sm:$0xff] %v9548_v43  ;;  %v9554_v33 = vld [vmem:[%s11765_s1 + $0x528] sm:$0xff] }
 0x57b   :  { %2029 = vmatprep.subr.mxu0 %v9536_v3  ;;  %13221 = vst [vmem:[#allocation80_spill] sm:$0xff] %v9554_v33  ;;  %v9560_v3 = vld [vmem:[%s11765_s1 + $0x518] sm:$0xff] }
 0x57c   :  { %2030 = vmatpush2.msra.mxu0 %v9542_v35  ;;  %13222 = vst [vmem:[#allocation82_spill] sm:$0xff] %v9560_v3  ;;  %v9566_v35 = vld [vmem:[%s11765_s1 + $0x510] sm:$0xff] }
 0x57d   :  { %2031 = vmatprep.subr.mxu0 %v9548_v43  ;;  %13223 = vst [vmem:[#allocation84_spill] sm:$0xff] %v9566_v35  ;;  %v9572_v43 = vld [vmem:[%s11765_s1 + $0x500] sm:$0xff] }
 0x57e   :  { %2032 = vmatpush2.msra.mxu0 %v9554_v33  ;;  %13224 = vst [vmem:[#allocation66_spill] sm:$0xff] %v9572_v43  ;;  %v9578_v33 = vld [vmem:[%s11765_s1 + $0x4f8] sm:$0xff] }
 0x57f   :  { %2033 = vmatprep.subr.mxu0 %v9560_v3  ;;  %13225 = vst [vmem:[#allocation86_spill] sm:$0xff] %v9578_v33  ;;  %v9584_v3 = vld [vmem:[%s11765_s1 + $0x4e8] sm:$0xff] }
 0x580   :  { %2034 = vmatpush2.msra.mxu0 %v9566_v35  ;;  %13226 = vst [vmem:[#allocation68_spill] sm:$0xff] %v9584_v3  ;;  %v9590_v35 = vld [vmem:[%s11765_s1 + $0x4e0] sm:$0xff] }
 0x581   :  { %2035 = vmatprep.subr.mxu0 %v9572_v43  ;;  %13227 = vst [vmem:[#allocation88_spill] sm:$0xff] %v9590_v35  ;;  %v9596_v43 = vld [vmem:[%s11765_s1 + $0x4d0] sm:$0xff] }
 0x582   :  { %2036 = vmatpush2.msra.mxu0 %v9578_v33  ;;  %13228 = vst [vmem:[#allocation70_spill] sm:$0xff] %v9596_v43  ;;  %v9602_v33 = vld [vmem:[%s11765_s1 + $0x4c8] sm:$0xff] }
 0x583   :  { %2037 = vmatprep.subr.mxu0 %v9584_v3  ;;  %13229 = vst [vmem:[#allocation90_spill] sm:$0xff] %v9602_v33  ;;  %v9608_v3 = vld [vmem:[%s11765_s1 + $0x4b8] sm:$0xff] }
 0x584   :  { %2038 = vmatpush2.msra.mxu0 %v9590_v35  ;;  %13230 = vst [vmem:[#allocation72_spill] sm:$0xff] %v9608_v3  ;;  %v9614_v35 = vld [vmem:[%s11765_s1 + $0x4b0] sm:$0xff] }
 0x585   :  { %2039 = vmatprep.subr.mxu0 %v9596_v43  ;;  %13231 = vst [vmem:[#allocation92_spill] sm:$0xff] %v9614_v35  ;;  %v9620_v43 = vld [vmem:[%s11765_s1 + $0x4a0] sm:$0xff] }
 0x586   :  { %2040 = vmatpush2.msra.mxu0 %v9602_v33  ;;  %v9626_v33 = vld [vmem:[%s11765_s1 + $0x498] sm:$0xff] }
 0x587   :  { %2041 = vmatprep.subr.mxu0 %v9608_v3  ;;  %13232 = vst [vmem:[#allocation74_spill] sm:$0xff] %v9626_v33  ;;  %v9632_v3 = vld [vmem:[%s11765_s1 + $0x488] sm:$0xff] }
 0x588   :  { %2042 = vmatpush2.msra.mxu0 %v9614_v35  ;;  %13233 = vst [vmem:[#allocation94_spill] sm:$0xff] %v9632_v3  ;;  %v9638_v35 = vld [vmem:[%s11765_s1 + $0x480] sm:$0xff] }
 0x589   :  { %2043 = vmatprep.subr.mxu0 %v9620_v43  ;;  %13234 = vst [vmem:[#allocation76_spill] sm:$0xff] %v9638_v35 }
 0x58a   :  { %2044 = vmatpush2.msra.mxu0 %v9626_v33  ;;  %v9645_v33 = vld [vmem:[%s11765_s1 + $0x5f8] sm:$0xff] }
 0x58b   :  { %2045 = vmatprep.subr.mxu0 %v9632_v3  ;;  %13235 = vst [vmem:[#allocation96_spill] sm:$0xff] %v9645_v33  ;;  %v9651_v3 = vld [vmem:[%s11765_s1 + $0x478] sm:$0xff] }
 0x58c   :  { %2046 = vmatpush2.msra.mxu0 %v9638_v35  ;;  %13236 = vst [vmem:[#allocation98_spill] sm:$0xff] %v9651_v3  ;;  %v9658_v35 = vld [vmem:[%s11765_s1 + $0x5e0] sm:$0xff] }
 0x58d   :  { %2048 = vmatmul.mubr.f32.vlgmr.msra.gmra.mxu0 %v9223_v23  ;;  %3991 = vmatprep.subr.mxu0 %v9645_v33  ;;  %13237 = vst [vmem:[#allocation100_spill] sm:$0xff] %v9658_v35  ;;  %v9664_v33 = vld [vmem:[%s11765_s1 + $0x460] sm:$0xff] }
 0x58e   :  { %3992 = vmatpush3.msra.mxu0 %v9651_v3  ;;  %2188 = vmatprep.mubr.f32.mxu0 %v9221_v38  ;;  %13238 = vst [vmem:[#allocation102_spill] sm:$0xff] %v9664_v33  ;;  %v9670_v3 = vld [vmem:[%s11765_s1 + $0x5c8] sm:$0xff] }
 0x58f   :  { %3993 = vmatprep.subr.mxu0 %v9658_v35  ;;  %13239 = vst [vmem:[#allocation104_spill] sm:$0xff] %v9670_v3  ;;  %v9676_v38 = vld [vmem:[%s11765_s1 + $0x448] sm:$0xff]  ;;  %v9682_v35 = vld [vmem:[%s11765_s1 + $0x5b0] sm:$0xff] }
 0x590   :  { %3994 = vmatpush3.msra.mxu0 %v9664_v33  ;;  %13240 = vst [vmem:[#allocation106_spill] sm:$0xff] %v9676_v38  ;;  %13241 = vst [vmem:[#allocation108_spill] sm:$0xff] %v9682_v35  ;;  %v9688_v33 = vld [vmem:[%s11765_s1 + $0x430] sm:$0xff] }
 0x591   :  { %3995 = vmatprep.subr.mxu0 %v9670_v3  ;;  %13242 = vst [vmem:[#allocation124_spill] sm:$0xff] %v9688_v33  ;;  %v9694_v3 = vld [vmem:[%s11765_s1 + $0x598] sm:$0xff] }
 0x592   :  { %3996 = vmatpush3.msra.mxu0 %v9676_v38  ;;  %13243 = vst [vmem:[#allocation132_spill] sm:$0xff] %v9694_v3  ;;  %v9700_v38 = vld [vmem:[%s11765_s1 + $0x418] sm:$0xff] }
 0x593   :  { %3997 = vmatprep.subr.mxu0 %v9682_v35  ;;  %13244 = vst [vmem:[#allocation136_spill] sm:$0xff] %v9700_v38  ;;  %v9706_v35 = vld [vmem:[%s11765_s1 + $0x580] sm:$0xff] }
 0x594   :  { %3998 = vmatpush3.msra.mxu0 %v9688_v33  ;;  %13245 = vst [vmem:[#allocation137_spill] sm:$0xff] %v9706_v35  ;;  %v9712_v33 = vld [vmem:[%s11765_s1 + $0x400] sm:$0xff] }
 0x595   :  { %3999 = vmatprep.subr.mxu0 %v9694_v3  ;;  %13246 = vst [vmem:[#allocation19_spill] sm:$0xff] %v9712_v33  ;;  %v9718_v3 = vld [vmem:[%s11765_s1 + $0x568] sm:$0xff] }
 0x596   :  { %4000 = vmatpush3.msra.mxu0 %v9700_v38  ;;  %13247 = vst [vmem:[#allocation22_spill] sm:$0xff] %v9718_v3  ;;  %v9724_v38 = vld [vmem:[%s11765_s1 + $0x3e8] sm:$0xff] }
 0x597   :  { %4001 = vmatprep.subr.mxu0 %v9706_v35  ;;  %13248 = vst [vmem:[#allocation21_spill] sm:$0xff] %v9724_v38  ;;  %v9730_v35 = vld [vmem:[%s11765_s1 + $0x550] sm:$0xff] }
 0x598   :  { %4002 = vmatpush3.msra.mxu0 %v9712_v33  ;;  %13249 = vst [vmem:[#allocation2_spill] sm:$0xff] %v9730_v35  ;;  %v9736_v33 = vld [vmem:[%s11765_s1 + $0x3d0] sm:$0xff] }
 0x599   :  { %4003 = vmatprep.subr.mxu0 %v9718_v3  ;;  %13250 = vst [vmem:[#allocation4_spill] sm:$0xff] %v9736_v33  ;;  %v9742_v3 = vld [vmem:[%s11765_s1 + $0x538] sm:$0xff] }
 0x59a   :  { %4004 = vmatpush3.msra.mxu0 %v9724_v38  ;;  %13251 = vst [vmem:[#allocation3_spill] sm:$0xff] %v9742_v3  ;;  %v9748_v38 = vld [vmem:[%s11765_s1 + $0x3b8] sm:$0xff] }
 0x59b   :  { %4005 = vmatprep.subr.mxu0 %v9730_v35  ;;  %13252 = vst [vmem:[#allocation6_spill] sm:$0xff] %v9748_v38  ;;  %v9754_v35 = vld [vmem:[%s11765_s1 + $0x520] sm:$0xff] }
 0x59c   :  { %4006 = vmatpush3.msra.mxu0 %v9736_v33  ;;  %13253 = vst [vmem:[#allocation5_spill] sm:$0xff] %v9754_v35  ;;  %v9760_v33 = vld [vmem:[%s11765_s1 + $0x3a0] sm:$0xff] }
 0x59d   :  { %4007 = vmatprep.subr.mxu0 %v9742_v3  ;;  %13254 = vst [vmem:[#allocation8_spill] sm:$0xff] %v9760_v33  ;;  %v9766_v3 = vld [vmem:[%s11765_s1 + $0x508] sm:$0xff] }
 0x59e   :  { %4008 = vmatpush3.msra.mxu0 %v9748_v38  ;;  %13255 = vst [vmem:[#allocation7_spill] sm:$0xff] %v9766_v3  ;;  %v9772_v38 = vld [vmem:[%s11765_s1 + $0x388] sm:$0xff] }
 0x59f   :  { %4009 = vmatprep.subr.mxu0 %v9754_v35  ;;  %13256 = vst [vmem:[#allocation10_spill] sm:$0xff] %v9772_v38  ;;  %v9778_v35 = vld [vmem:[%s11765_s1 + $0x4f0] sm:$0xff] }
 0x5a0   :  { %4010 = vmatpush3.msra.mxu0 %v9760_v33  ;;  %13257 = vst [vmem:[#allocation9_spill] sm:$0xff] %v9778_v35  ;;  %v9784_v33 = vld [vmem:[%s11765_s1 + $0x370] sm:$0xff] }
 0x5a1   :  { %4011 = vmatprep.subr.mxu0 %v9766_v3  ;;  %13258 = vst [vmem:[#allocation12_spill] sm:$0xff] %v9784_v33  ;;  %v9790_v3 = vld [vmem:[%s11765_s1 + $0x4d8] sm:$0xff] }
 0x5a2   :  { %4012 = vmatpush3.msra.mxu0 %v9772_v38  ;;  %13259 = vst [vmem:[#allocation11_spill] sm:$0xff] %v9790_v3  ;;  %v9796_v38 = vld [vmem:[%s11765_s1 + $0x358] sm:$0xff] }
 0x5a3   :  { %4013 = vmatprep.subr.mxu0 %v9778_v35  ;;  %13260 = vst [vmem:[#allocation14_spill] sm:$0xff] %v9796_v38  ;;  %v9802_v35 = vld [vmem:[%s11765_s1 + $0x4c0] sm:$0xff] }
 0x5a4   :  { %4014 = vmatpush3.msra.mxu0 %v9784_v33  ;;  %13261 = vst [vmem:[#allocation13_spill] sm:$0xff] %v9802_v35  ;;  %v9808_v33 = vld [vmem:[%s11765_s1 + $0x340] sm:$0xff] }
 0x5a5   :  { %4015 = vmatprep.subr.mxu0 %v9790_v3  ;;  %13262 = vst [vmem:[#allocation16_spill] sm:$0xff] %v9808_v33  ;;  %v9814_v3 = vld [vmem:[%s11765_s1 + $0x4a8] sm:$0xff] }
 0x5a6   :  { %4016 = vmatpush3.msra.mxu0 %v9796_v38  ;;  %v9820_v38 = vld [vmem:[%s11765_s1 + $0x328] sm:$0xff] }
 0x5a7   :  { %4017 = vmatprep.subr.mxu0 %v9802_v35  ;;  %v9826_v35 = vld [vmem:[%s11765_s1 + $0x490] sm:$0xff] }
 0x5a8   :  { %4018 = vmatpush3.msra.mxu0 %v9808_v33  ;;  %v9832_v33 = vld [vmem:[%s11765_s1 + $0x310] sm:$0xff] }
 0x5a9   :  { %4019 = vmatprep.subr.mxu0 %v9814_v3 }
 0x5aa   :  { %4020 = vmatpush3.msra.mxu0 %v9820_v38 }
 0x5ab   :  { %4021 = vmatprep.subr.mxu0 %v9826_v35 }
 0x5ac   :  { %4022 = vmatpush3.msra.mxu0 %v9832_v33 }
 0x5ad   :  { %2189 = vmatmul.mubr.f32.vlgmr.msra.gmra.mxu0 %v9223_v23  ;;  %2269 = vmatprep.subr.mxu0 %v8635_v18  ;;  %v13263_v18 = vld [vmem:[#allocation24_spill] sm:$0xff]  ;;  %v13292_v23 = vld [vmem:[#allocation51_spill] sm:$0xff] }
 0x5ae   :  { %2270 = vmatpush1.msra.mxu0 %v8641_v31  ;;  %v13264_v31 = vld [vmem:[#allocation23_spill] sm:$0xff] }
 0x5af   :  { %2271 = vmatprep.subr.mxu0 %v8647_v29  ;;  %v13265_v29 = vld [vmem:[#allocation26_spill] sm:$0xff] }
 0x5b0   :  { %2272 = vmatpush1.msra.mxu0 %v8653_v24  ;;  %v13266_v24 = vld [vmem:[#allocation25_spill] sm:$0xff] }
 0x5b1   :  { %2273 = vmatprep.subr.mxu0 %v8659_v61  ;;  %v13267_v61 = vld [vmem:[#allocation28_spill] sm:$0xff] }
 0x5b2   :  { %2274 = vmatpush1.msra.mxu0 %v8665_v47  ;;  %v13268_v47 = vld [vmem:[#allocation27_spill] sm:$0xff] }
 0x5b3   :  { %2275 = vmatprep.subr.mxu0 %v8671_v27  ;;  %v13269_v27 = vld [vmem:[#allocation30_spill] sm:$0xff] }
 0x5b4   :  { %2276 = vmatpush1.msra.mxu0 %v8677_v55  ;;  %v13270_v55 = vld [vmem:[#allocation29_spill] sm:$0xff] }
 0x5b5   :  { %2277 = vmatprep.subr.mxu0 %v8683_v10  ;;  %v13271_v10 = vld [vmem:[#allocation32_spill] sm:$0xff] }
 0x5b6   :  { %2278 = vmatpush1.msra.mxu0 %v8689_v25  ;;  %v13272_v25 = vld [vmem:[#allocation31_spill] sm:$0xff] }
 0x5b7   :  { %2279 = vmatprep.subr.mxu0 %v8695_v22  ;;  %v13273_v22 = vld [vmem:[#allocation34_spill] sm:$0xff] }
 0x5b8   :  { %2280 = vmatpush1.msra.mxu0 %v8701_v57  ;;  %v13274_v57 = vld [vmem:[#allocation33_spill] sm:$0xff] }
 0x5b9   :  { %2281 = vmatprep.subr.mxu0 %v8707_v39  ;;  %v13275_v39 = vld [vmem:[#allocation36_spill] sm:$0xff] }
 0x5ba   :  { %2282 = vmatpush1.msra.mxu0 %v8713_v54  ;;  %v13276_v54 = vld [vmem:[#allocation35_spill] sm:$0xff] }
 0x5bb   :  { %2283 = vmatprep.subr.mxu0 %v8719_v26  ;;  %v13277_v26 = vld [vmem:[#allocation38_spill] sm:$0xff] }
 0x5bc   :  { %2284 = vmatpush1.msra.mxu0 %v8725_v60  ;;  %v13278_v60 = vld [vmem:[#allocation37_spill] sm:$0xff] }
 0x5bd   :  { %2285 = vmatprep.subr.mxu0 %v8731_v63  ;;  %v13279_v63 = vld [vmem:[#allocation40_spill] sm:$0xff] }
 0x5be   :  { %2286 = vmatpush1.msra.mxu0 %v8737_v30  ;;  %v13280_v30 = vld [vmem:[#allocation39_spill] sm:$0xff] }
 0x5bf   :  { %2287 = vmatprep.subr.mxu0 %v8743_v58  ;;  %v13281_v58 = vld [vmem:[#allocation42_spill] sm:$0xff] }
 0x5c0   :  { %2288 = vmatpush1.msra.mxu0 %v8749_v9  ;;  %v13282_v9 = vld [vmem:[#allocation41_spill] sm:$0xff] }
 0x5c1   :  { %2289 = vmatprep.subr.mxu0 %v8755_v11  ;;  %v13283_v11 = vld [vmem:[#allocation44_spill] sm:$0xff] }
 0x5c2   :  { %2290 = vmatpush1.msra.mxu0 %v8761_v13  ;;  %v13284_v13 = vld [vmem:[#allocation43_spill] sm:$0xff] }
 0x5c3   :  { %2291 = vmatprep.subr.mxu0 %v8767_v28  ;;  %v13285_v28 = vld [vmem:[#allocation46_spill] sm:$0xff] }
 0x5c4   :  { %2292 = vmatpush1.msra.mxu0 %v8773_v50  ;;  %v13286_v50 = vld [vmem:[#allocation45_spill] sm:$0xff] }
 0x5c5   :  { %2293 = vmatprep.subr.mxu0 %v8779_v52  ;;  %v13287_v52 = vld [vmem:[#allocation48_spill] sm:$0xff] }
 0x5c6   :  { %2294 = vmatpush1.msra.mxu0 %v8785_v48  ;;  %v13288_v48 = vld [vmem:[#allocation47_spill] sm:$0xff] }
 0x5c7   :  { %2295 = vmatprep.subr.mxu0 %v8791_v17  ;;  %v13289_v17 = vld [vmem:[#allocation50_spill] sm:$0xff] }
 0x5c8   :  { %2296 = vmatpush1.msra.mxu0 %v8797_v46  ;;  %v13290_v46 = vld [vmem:[#allocation49_spill] sm:$0xff] }
 0x5c9   :  { %2297 = vmatprep.subr.mxu0 %v8803_v19  ;;  %v13291_v19 = vld [vmem:[#allocation52_spill] sm:$0xff] }
 0x5ca   :  { %2298 = vmatpush1.msra.mxu0 %v13263_v18  ;;  %v13293_v18 = vld [vmem:[#allocation54_spill] sm:$0xff] }
 0x5cb   :  { %2299 = vmatprep.subr.mxu0 %v13264_v31  ;;  %v13294_v31 = vld [vmem:[#allocation53_spill] sm:$0xff] }
 0x5cc   :  { %2300 = vmatpush1.msra.mxu0 %v13265_v29  ;;  %v13295_v29 = vld [vmem:[#allocation56_spill] sm:$0xff] }
 0x5cd   :  { %2301 = vmatprep.subr.mxu0 %v13266_v24  ;;  %v13296_v24 = vld [vmem:[#allocation55_spill] sm:$0xff] }
 0x5ce   :  { %2302 = vmatpush2.msra.mxu0 %v13267_v61  ;;  %v13297_v61 = vld [vmem:[#allocation58_spill] sm:$0xff] }
 0x5cf   :  { %2303 = vmatprep.subr.mxu0 %v13268_v47  ;;  %v13298_v47 = vld [vmem:[#allocation57_spill] sm:$0xff] }
 0x5d0   :  { %2304 = vmatpush2.msra.mxu0 %v13269_v27 }
 0x5d1   :  { %2305 = vmatprep.subr.mxu0 %v13270_v55  ;;  %v9904_v55 = vld [vmem:[%s11769_s4] ss:$0 sm:$0xff] }
 0x5d2   :  { %2306 = vmatpush2.msra.mxu0 %v13271_v10 }
 0x5d3   :  { %2307 = vmatprep.subr.mxu0 %v13272_v25 }
 0x5d4   :  { %2308 = vmatpush2.msra.mxu0 %v13273_v22 }
 0x5d5   :  { %2309 = vmatprep.subr.mxu0 %v13274_v57 }
 0x5d6   :  { %2310 = vmatpush2.msra.mxu0 %v13275_v39 }
 0x5d7   :  { %2311 = vmatprep.subr.mxu0 %v13276_v54 }
 0x5d8   :  { %2312 = vmatpush2.msra.mxu0 %v13277_v26 }
 0x5d9   :  { %2313 = vmatprep.subr.mxu0 %v13278_v60 }
 0x5da   :  { %2314 = vmatpush2.msra.mxu0 %v13279_v63 }
 0x5db   :  { %2315 = vmatprep.subr.mxu0 %v13280_v30 }
 0x5dc   :  { %2316 = vmatpush2.msra.mxu0 %v13281_v58 }
 0x5dd   :  { %2317 = vmatprep.subr.mxu0 %v13282_v9 }
 0x5de   :  { %2318 = vmatpush2.msra.mxu0 %v13283_v11 }
 0x5df   :  { %2319 = vmatprep.subr.mxu0 %v13284_v13  ;;  %v13299_v13 = vld [vmem:[#allocation60_spill] sm:$0xff] }
 0x5e0   :  { %2320 = vmatpush2.msra.mxu0 %v13285_v28  ;;  %v13300_v28 = vld [vmem:[#allocation59_spill] sm:$0xff] }
 0x5e1   :  { %2321 = vmatprep.subr.mxu0 %v13286_v50  ;;  %v13301_v50 = vld [vmem:[#allocation62_spill] sm:$0xff] }
 0x5e2   :  { %2322 = vmatpush2.msra.mxu0 %v13287_v52 }
 0x5e3   :  { %2323 = vmatprep.subr.mxu0 %v13288_v48  ;;  %v13302_v48 = vld [vmem:[#allocation61_spill] sm:$0xff] }
 0x5e4   :  { %2324 = vmatpush2.msra.mxu0 %v13289_v17  ;;  %v13303_v17 = vld [vmem:[#allocation64_spill] sm:$0xff] }
 0x5e5   :  { %2325 = vmatprep.subr.mxu0 %v13290_v46 }
 0x5e6   :  { %2326 = vmatpush2.msra.mxu0 %v13291_v19 }
 0x5e7   :  { %2327 = vmatprep.subr.mxu0 %v13292_v23 }
 0x5e8   :  { %2328 = vmatpush2.msra.mxu0 %v13293_v18 }
 0x5e9   :  { %2329 = vmatprep.subr.mxu0 %v13294_v31 }
 0x5ea   :  { %2330 = vmatpush2.msra.mxu0 %v13295_v29 }
 0x5eb   :  { %2331 = vmatprep.subr.mxu0 %v13296_v24  ;;  %v13308_v24 = vld [vmem:[#allocation71_spill] sm:$0xff] }
 0x5ec   :  { %2332 = vmatpush2.msra.mxu0 %v13297_v61  ;;  %v1978_v22 = vpop.f32.mrf.mxu1  ;;  %v13309_v61 = vld [vmem:[#allocation73_spill] sm:$0xff] }
 0x5ed   :  { %4043 = vmatprep.subr.mxu0 %v13298_v47  ;;  %v1979_v39 = vadd.f32 %v1978_v22, %v12888_v14  ;;  %v13310_v47 = vld [vmem:[#allocation75_spill] sm:$0xff]  ;;  %v13319_v22 = vld [vmem:[#allocation126_spill] sm:$0xff] }
 0x5ee   :  { %v1980_v57 = vpop.f32.mrf.mxu1 }
 0x5ef   :  { %v1981_v26 = vadd.f32 %v1980_v57, %v7411_v1  ;;  %v9947_v57 = vld [vmem:[%s11766_s0 + $0xc] sm:$0x3] }
 0x60c   :  { %v3988_v11 = vpop.f32.mrf.mxu1 }
 0x60d   :  { %v1906_v27 = vpop.f32.mrf.mxu0 }
 0x60e   :  { %v1907_v10 = vadd.f32 %v9904_v55, %v1906_v27  ;;  %v3989_v52 = vpop.f32.mrf.mxu1  ;;  %v13312_v27 = vld [vmem:[#allocation110_spill] sm:$0xff] }
 0x60f   :  { %v4495_v25 = vpop.f32.mrf.mxu0  ;;  %v3990_v46 = vadd.f32 %v3989_v52, %v3988_v11  ;;  %v10055_v11 = vld [vmem:[%s11765_s1 + $0x3c0] sm:$0xff]  ;;  %v13330_v52 = vld [vmem:[#allocation101_spill] sm:$0xff] }
 0x610   :  { %1910 = vst [vmem:[%s11770_s5 + $0x4] sm:$0x3] %v1907_v10  ;;  %v13313_v10 = vld [vmem:[#allocation112_spill] sm:$0xff]  ;;  %v13318_v25 = vld [vmem:[#allocation122_spill] sm:$0xff] }
 0x611   :  { %v2121_v18 = vadd.f32 %v3990_v46, %v7737_v0  ;;  %v13334_v46 = vld [vmem:[#allocation107_spill] sm:$0xff] }
 0x64d   :  { %v2049_v54 = vpop.f32.mrf.mxu0 }
 0x64e   :  { %v2050_v60 = vadd.f32 %v2049_v54, %v1979_v39  ;;  %v9957_v54 = vld [vmem:[%s11765_s1 + $0x468] sm:$0xff] }
 0x64f   :  { %v2051_v63 = vpop.f32.mrf.mxu0 }
 0x650   :  { %v2052_v30 = vadd.f32 %v2051_v63, %v1981_v26  ;;  %v9978_v26 = vld [vmem:[%s11765_s1 + $0x440] sm:$0xff] }
 0x651   :  { %v9999_v63 = vld [vmem:[%s11765_s1 + $0x420] sm:$0xff] }
 0x652   :  { %4697 = vtanh.f32 %v2052_v30  ;;  %v10013_v30 = vld [vmem:[%s11765_s1 + $0x408] sm:$0xff] }
 0x653   :  { %4699 = vtanh.f32 %v2050_v60  ;;  %v9985_v60 = vld [vmem:[%s11765_s1 + $0x438] sm:$0xff] }
 0x65f   :  { %v4698_v58 = vpop.eup %4697 }
 0x660   :  { %v4700_v9 = vpop.eup %4699  ;;  %2333 = vmatprep.mubr.f32.mxu0 %v4698_v58 }
 0x661   :  { %2334 = vmatmul.mubr.f32.vlgmr.msra.gmra.mxu0 %v4700_v9 }
 0x662   :  { %4044 = vmatpush3.msra.mxu0 %v9034_v34  ;;  %2475 = vmatprep.mubr.f32.mxu0 %v4698_v58  ;;  %v13304_v34 = vld [vmem:[#allocation63_spill] sm:$0xff]  ;;  %v10027_v58 = vld [vmem:[%s11765_s1 + $0x3f0] sm:$0xff] }
 0x663   :  { %4045 = vmatprep.subr.mxu0 %v9040_v7  ;;  %v13305_v7 = vld [vmem:[#allocation65_spill] sm:$0xff] }
 0x664   :  { %4046 = vmatpush3.msra.mxu0 %v9046_v21  ;;  %v13306_v21 = vld [vmem:[#allocation67_spill] sm:$0xff] }
 0x665   :  { %4047 = vmatprep.subr.mxu0 %v9052_v2  ;;  %v13307_v2 = vld [vmem:[#allocation69_spill] sm:$0xff] }
 0x666   :  { %4048 = vmatpush3.msra.mxu0 %v13299_v13  ;;  %v10069_v13 = vld [vmem:[%s11765_s1 + $0x3a8] sm:$0xff] }
 0x667   :  { %4049 = vmatprep.subr.mxu0 %v13300_v28  ;;  %v13323_v28 = vld [vmem:[#allocation79_spill] sm:$0xff] }
 0x668   :  { %4050 = vmatpush3.msra.mxu0 %v13301_v50  ;;  %v13329_v50 = vld [vmem:[#allocation87_spill] sm:$0xff] }
 0x669   :  { %4051 = vmatprep.subr.mxu0 %v13302_v48  ;;  %v13331_v48 = vld [vmem:[#allocation103_spill] sm:$0xff] }
 0x66a   :  { %4052 = vmatpush3.msra.mxu0 %v13303_v17  ;;  %v13332_v17 = vld [vmem:[#allocation89_spill] sm:$0xff] }
 0x66b   :  { %4053 = vmatprep.subr.mxu0 %v13304_v34  ;;  %v13333_v34 = vld [vmem:[#allocation105_spill] sm:$0xff] }
 0x66c   :  { %4054 = vmatpush3.msra.mxu0 %v13305_v7  ;;  %v13335_v7 = vld [vmem:[#allocation91_spill] sm:$0xff] }
 0x66d   :  { %4055 = vmatprep.subr.mxu0 %v13306_v21  ;;  %v4023_v19 = vpop.f32.mrf.mxu0  ;;  %v13336_v21 = vld [vmem:[#allocation109_spill] sm:$0xff] }
 0x66e   :  { %4056 = vmatpush3.msra.mxu0 %v13307_v2  ;;  %v13338_v2 = vld [vmem:[#allocation93_spill] sm:$0xff] }
 0x66f   :  { %4057 = vmatprep.subr.mxu0 %v9112_v42  ;;  %v4024_v23 = vpop.f32.mrf.mxu0  ;;  %v13311_v42 = vld [vmem:[#allocation78_spill] sm:$0xff] }
 0x670   :  { %v4025_v31 = vadd.f32 %v4024_v23, %v4023_v19  ;;  %4058 = vmatpush3.msra.mxu0 %v9119_v40  ;;  %v13314_v40 = vld [vmem:[#allocation114_spill] sm:$0xff]  ;;  %v13337_v19 = vld [vmem:[#allocation111_spill] sm:$0xff]  ;;  %v13339_v23 = vld [vmem:[#allocation113_spill] sm:$0xff] }
 0x671   :  { %4059 = vmatprep.subr.mxu0 %v9125_v6  ;;  %v13315_v6 = vld [vmem:[#allocation116_spill] sm:$0xff] }
 0x672   :  { %v2191_v29 = vadd.f32 %v4025_v31, %v2121_v18  ;;  %4060 = vmatpush3.msra.mxu0 %v9131_v44  ;;  %v13316_v44 = vld [vmem:[#allocation118_spill] sm:$0xff]  ;;  %v13340_v18 = vld [vmem:[#allocation115_spill] sm:$0xff] }
 0x673   :  { %4061 = vmatprep.subr.mxu0 %v9137_v51  ;;  %v13317_v51 = vld [vmem:[#allocation120_spill] sm:$0xff]  ;;  %v13341_v31 = vld [vmem:[#allocation95_spill] sm:$0xff] }
 0x674   :  { %4701 = vtanh.f32 %v2191_v29  ;;  %4062 = vmatpush3.msra.mxu0 %v13308_v24  ;;  %v13342_v29 = vld [vmem:[#allocation117_spill] sm:$0xff]  ;;  %v13343_v24 = vld [vmem:[#allocation119_spill] sm:$0xff] }
 0x675   :  { %4063 = vmatprep.subr.mxu0 %v13309_v61  ;;  %v13344_v61 = vld [vmem:[#allocation121_spill] sm:$0xff] }
 0x676   :  { %4064 = vmatpush3.msra.mxu0 %v13310_v47  ;;  %v13345_v47 = vld [vmem:[#allocation123_spill] sm:$0xff] }
 0x677   :  { %4065 = vmatprep.subr.mxu0 %v13311_v42  ;;  %v13346_v42 = vld [vmem:[#allocation125_spill] sm:$0xff] }
 0x678   :  { %4066 = vmatpush3.msra.mxu0 %v13312_v27  ;;  %v13347_v27 = vld [vmem:[#allocation127_spill] sm:$0xff] }
 0x679   :  { %4067 = vmatprep.subr.mxu0 %v13313_v10  ;;  %v13348_v10 = vld [vmem:[#allocation129_spill] sm:$0xff] }
 0x67a   :  { %4068 = vmatpush3.msra.mxu0 %v13314_v40  ;;  %v13349_v40 = vld [vmem:[#allocation131_spill] sm:$0xff] }
 0x67b   :  { %4069 = vmatprep.subr.mxu0 %v13315_v6  ;;  %v13350_v6 = vld [vmem:[#allocation133_spill] sm:$0xff] }
 0x67c   :  { %4070 = vmatpush3.msra.mxu0 %v13316_v44  ;;  %v13351_v44 = vld [vmem:[#allocation134_spill] sm:$0xff] }
 0x67d   :  { %4071 = vmatprep.subr.mxu0 %v13317_v51  ;;  %v13352_v51 = vld [vmem:[#allocation135_spill] sm:$0xff] }
 0x67e   :  { %4072 = vmatpush3.msra.mxu0 %v13318_v25  ;;  %v13353_v25 = vld [vmem:[#allocation80_spill] sm:$0xff] }
 0x67f   :  { %4073 = vmatprep.subr.mxu0 %v13319_v22  ;;  %v13354_v22 = vld [vmem:[#allocation82_spill] sm:$0xff] }
 0x680   :  { %4074 = vmatpush3.msra.mxu0 %v9215_v59  ;;  %v9964_v59 = vld [vmem:[%s11765_s1 + $0x458] sm:$0xff] }
 0x681   :  { %v9949_v39 = vpop.eup %4701  ;;  %2476 = vmatmul.mubr.f32.vlgmr.msra.gmra.mxu0 %v4700_v9  ;;  %4531 = vmatprep.subr.mxu0 %v12563_v62  ;;  %v10041_v9 = vld [vmem:[%s11765_s1 + $0x3d8] sm:$0xff] }
 0x682   :  { %4529 = vmatmul.mubr.f32.vlgmr.msra.gmra.mxu1 %v9949_v39  ;;  %4532 = vmatpush3.msra.mxu0 %v9231_v15  ;;  %v9971_v15 = vld [vmem:[%s11765_s1 + $0x450] sm:$0xff] }
 0x683   :  { %2341 = vmatpush1.msra.mxu1 %v9957_v54  ;;  %2404 = vmatprep.mubr.f32.mxu1 %v9947_v57 }
 0x684   :  { %2342 = vmatprep.subr.mxu1 %v9964_v59  ;;  %4533 = vmatprep.subr.mxu0 %v12563_v62 }
 0x685   :  { %2343 = vmatpush1.msra.mxu1 %v9971_v15  ;;  %4534 = vmatpush3.msra.mxu0 %v9242_v5  ;;  %v9992_v5 = vld [vmem:[%s11765_s1 + $0x428] sm:$0xff] }
 0x686   :  { %2344 = vmatprep.subr.mxu1 %v9978_v26  ;;  %4535 = vmatprep.subr.mxu0 %v12563_v62 }
 0x687   :  { %2345 = vmatpush1.msra.mxu1 %v9985_v60  ;;  %4536 = vmatpush3.msra.mxu0 %v9251_v56  ;;  %v10006_v56 = vld [vmem:[%s11765_s1 + $0x410] sm:$0xff] }
 0x688   :  { %2346 = vmatprep.subr.mxu1 %v9992_v5  ;;  %4537 = vmatprep.subr.mxu0 %v12563_v62 }
 0x689   :  { %2347 = vmatpush1.msra.mxu1 %v9999_v63  ;;  %4538 = vmatpush3.msra.mxu0 %v9260_v53  ;;  %v10020_v53 = vld [vmem:[%s11765_s1 + $0x3f8] sm:$0xff] }
 0x68a   :  { %2348 = vmatprep.subr.mxu1 %v10006_v56  ;;  %4539 = vmatprep.subr.mxu0 %v12563_v62 }
 0x68b   :  { %2349 = vmatpush1.msra.mxu1 %v10013_v30  ;;  %4540 = vmatpush3.msra.mxu0 %v9269_v49  ;;  %v10034_v49 = vld [vmem:[%s11765_s1 + $0x3e0] sm:$0xff] }
 0x68c   :  { %2350 = vmatprep.subr.mxu1 %v10020_v53  ;;  %4541 = vmatprep.subr.mxu0 %v12563_v62 }
 0x68d   :  { %2351 = vmatpush1.msra.mxu1 %v10027_v58  ;;  %4542 = vmatpush3.msra.mxu0 %v9278_v4  ;;  %v10048_v4 = vld [vmem:[%s11765_s1 + $0x3c8] sm:$0xff] }
 0x68e   :  { %2352 = vmatprep.subr.mxu1 %v10034_v49  ;;  %4543 = vmatprep.subr.mxu0 %v12563_v62 }
 0x68f   :  { %2353 = vmatpush1.msra.mxu1 %v10041_v9  ;;  %4544 = vmatpush3.msra.mxu0 %v9287_v8  ;;  %v10062_v8 = vld [vmem:[%s11765_s1 + $0x3b0] sm:$0xff] }
 0x690   :  { %2354 = vmatprep.subr.mxu1 %v10048_v4  ;;  %4545 = vmatprep.subr.mxu0 %v12563_v62 }
 0x691   :  { %2355 = vmatpush1.msra.mxu1 %v10055_v11  ;;  %4546 = vmatpush3.msra.mxu0 %v9296_v45  ;;  %v13320_v45 = vld [vmem:[#allocation128_spill] sm:$0xff] }
 0x692   :  { %2356 = vmatprep.subr.mxu1 %v10062_v8  ;;  %4547 = vmatprep.subr.mxu0 %v12563_v62 }
 0x693   :  { %2357 = vmatpush1.msra.mxu1 %v10069_v13  ;;  %4548 = vmatpush3.msra.mxu0 %v9305_v12  ;;  %v13321_v12 = vld [vmem:[#allocation130_spill] sm:$0xff] }
 0x694   :  { %2358 = vmatprep.subr.mxu1 %v9311_v16  ;;  %4549 = vmatprep.subr.mxu0 %v12563_v62  ;;  %v13322_v16 = vld [vmem:[#allocation77_spill] sm:$0xff] }
 0x695   :  { %2359 = vmatpush1.msra.mxu1 %v9318_v20  ;;  %4550 = vmatpush3.msra.mxu0 %v9324_v41  ;;  %v13324_v20 = vld [vmem:[#allocation81_spill] sm:$0xff]  ;;  %v13325_v41 = vld [vmem:[#allocation83_spill] sm:$0xff] }
 0x696   :  { %2360 = vmatprep.subr.mxu1 %v9330_v32  ;;  %4551 = vmatprep.subr.mxu0 %v12563_v62  ;;  %v13326_v32 = vld [vmem:[#allocation85_spill] sm:$0xff] }
 0x697   :  { %2361 = vmatpush1.msra.mxu1 %v9337_v37  ;;  %4552 = vmatpush3.msra.mxu0 %v9343_v36  ;;  %v13327_v37 = vld [vmem:[#allocation97_spill] sm:$0xff]  ;;  %v13328_v36 = vld [vmem:[#allocation99_spill] sm:$0xff] }
 0x698   :  { %2362 = vmatprep.subr.mxu1 %v13320_v45  ;;  %4553 = vmatprep.subr.mxu0 %v12563_v62  ;;  %v13355_v45 = vld [vmem:[#allocation84_spill] sm:$0xff] }
 0x699   :  { %2363 = vmatpush1.msra.mxu1 %v13321_v12  ;;  %4554 = vmatpush3.msra.mxu0 %v13322_v16  ;;  %v13356_v12 = vld [vmem:[#allocation66_spill] sm:$0xff] }
 0x69a   :  { %2364 = vmatprep.subr.mxu1 %v13323_v28  ;;  %4555 = vmatprep.subr.mxu0 %v12563_v62  ;;  %v13357_v16 = vld [vmem:[#allocation86_spill] sm:$0xff]  ;;  %v13358_v28 = vld [vmem:[#allocation68_spill] sm:$0xff] }
 0x69b   :  { %2365 = vmatpush1.msra.mxu1 %v13324_v20  ;;  %4556 = vmatpush3.msra.mxu0 %v13325_v41  ;;  %v13359_v20 = vld [vmem:[#allocation88_spill] sm:$0xff]  ;;  %v13360_v41 = vld [vmem:[#allocation70_spill] sm:$0xff] }
 0x69c   :  { %2366 = vmatprep.subr.mxu1 %v13326_v32  ;;  %4557 = vmatprep.subr.mxu0 %v12563_v62  ;;  %v13361_v32 = vld [vmem:[#allocation90_spill] sm:$0xff] }
 0x69d   :  { %2367 = vmatpush1.msra.mxu1 %v13327_v37  ;;  %4558 = vmatpush3.msra.mxu0 %v13328_v36  ;;  %v13362_v37 = vld [vmem:[#allocation72_spill] sm:$0xff] }
 0x69e   :  { %2368 = vmatprep.subr.mxu1 %v13329_v50  ;;  %4559 = vmatprep.subr.mxu0 %v12563_v62  ;;  %v13363_v36 = vld [vmem:[#allocation92_spill] sm:$0xff]  ;;  %v13364_v50 = vld [vmem:[#allocation74_spill] sm:$0xff] }
 0x69f   :  { %2369 = vmatpush1.msra.mxu1 %v13330_v52  ;;  %4560 = vmatpush3.msra.mxu0 %v13331_v48  ;;  %v13365_v52 = vld [vmem:[#allocation94_spill] sm:$0xff]  ;;  %v13366_v48 = vld [vmem:[#allocation76_spill] sm:$0xff] }
 0x6a0   :  { %2370 = vmatprep.subr.mxu1 %v13332_v17  ;;  %4561 = vmatprep.subr.mxu0 %v12563_v62  ;;  %v13367_v17 = vld [vmem:[#allocation96_spill] sm:$0xff] }
 0x6a1   :  { %2371 = vmatpush1.msra.mxu1 %v13333_v34  ;;  %4562 = vmatpush3.msra.mxu0 %v13334_v46  ;;  %v13368_v34 = vld [vmem:[#allocation98_spill] sm:$0xff]  ;;  %v13369_v46 = vld [vmem:[#allocation100_spill] sm:$0xff] }
 0x6a2   :  { %2372 = vmatprep.subr.mxu1 %v13335_v7  ;;  %4563 = vmatprep.mubr.msk.f32.mxu0 %vm5352_vm0, %v12563_v62  ;;  %v13370_v7 = vld [vmem:[#allocation102_spill] sm:$0xff] }
 0x6a3   :  { %2373 = vmatpush2.msra.mxu1 %v13336_v21  ;;  %2697 = vmatprep.subr.mxu0 %v13337_v19  ;;  %v13371_v21 = vld [vmem:[#allocation104_spill] sm:$0xff] }
 0x6a4   :  { %2374 = vmatprep.subr.mxu1 %v13338_v2  ;;  %v13373_v19 = vld [vmem:[#allocation108_spill] sm:$0xff] }
 0x6a5   :  { %2375 = vmatpush2.msra.mxu1 %v13339_v23  ;;  %v13374_v2 = vld [vmem:[#allocation124_spill] sm:$0xff] }
 0x6a6   :  { %2376 = vmatprep.subr.mxu1 %v13340_v18  ;;  %v13375_v23 = vld [vmem:[#allocation132_spill] sm:$0xff] }
 0x6a7   :  { %2377 = vmatpush2.msra.mxu1 %v13341_v31  ;;  %v13376_v18 = vld [vmem:[#allocation136_spill] sm:$0xff]  ;;  %v13377_v31 = vld [vmem:[#allocation137_spill] sm:$0xff] }
 0x6a8   :  { %2378 = vmatprep.subr.mxu1 %v13342_v29  ;;  %v13378_v29 = vld [vmem:[#allocation19_spill] sm:$0xff] }
 0x6a9   :  { %2379 = vmatpush2.msra.mxu1 %v13343_v24  ;;  %v13380_v24 = vld [vmem:[#allocation21_spill] sm:$0xff] }
 0x6aa   :  { %2380 = vmatprep.subr.mxu1 %v13344_v61  ;;  %v13381_v61 = vld [vmem:[#allocation2_spill] sm:$0xff] }
 0x6ab   :  { %2381 = vmatpush2.msra.mxu1 %v13345_v47  ;;  %v13382_v47 = vld [vmem:[#allocation4_spill] sm:$0xff] }
 0x6ac   :  { %2382 = vmatprep.subr.mxu1 %v13346_v42  ;;  %v13383_v42 = vld [vmem:[#allocation3_spill] sm:$0xff] }
 0x6ad   :  { %2383 = vmatpush2.msra.mxu1 %v13347_v27  ;;  %v13384_v27 = vld [vmem:[#allocation6_spill] sm:$0xff] }
 0x6ae   :  { %2384 = vmatprep.subr.mxu1 %v13348_v10  ;;  %v13385_v10 = vld [vmem:[#allocation5_spill] sm:$0xff] }
 0x6af   :  { %2385 = vmatpush2.msra.mxu1 %v13349_v40  ;;  %v13386_v40 = vld [vmem:[#allocation8_spill] sm:$0xff] }
 0x6b0   :  { %2386 = vmatprep.subr.mxu1 %v13350_v6  ;;  %v13387_v6 = vld [vmem:[#allocation7_spill] sm:$0xff] }
 0x6b1   :  { %2387 = vmatpush2.msra.mxu1 %v13351_v44  ;;  %v13388_v44 = vld [vmem:[#allocation10_spill] sm:$0xff] }
 0x6b2   :  { %2388 = vmatprep.subr.mxu1 %v13352_v51  ;;  %v13389_v51 = vld [vmem:[#allocation9_spill] sm:$0xff] }
 0x6b3   :  { %2389 = vmatpush2.msra.mxu1 %v13353_v25  ;;  %v13390_v25 = vld [vmem:[#allocation12_spill] sm:$0xff] }
 0x6b4   :  { %2390 = vmatprep.subr.mxu1 %v13354_v22  ;;  %v13391_v22 = vld [vmem:[#allocation11_spill] sm:$0xff] }
 0x6b5   :  { %2391 = vmatpush2.msra.mxu1 %v13355_v45  ;;  %v13392_v45 = vld [vmem:[#allocation14_spill] sm:$0xff] }
 0x6b6   :  { %2392 = vmatprep.subr.mxu1 %v13356_v12  ;;  %v13393_v12 = vld [vmem:[#allocation13_spill] sm:$0xff] }
 0x6b7   :  { %2393 = vmatpush2.msra.mxu1 %v13357_v16  ;;  %v13394_v16 = vld [vmem:[#allocation16_spill] sm:$0xff] }
 0x6b8   :  { %2394 = vmatprep.subr.mxu1 %v13358_v28  ;;  %v10174_v28 = vld [vmem:[%s11765_s1 + $0x170] sm:$0xff] }
 0x6b9   :  { %2395 = vmatpush2.msra.mxu1 %v13359_v20  ;;  %v10180_v20 = vld [vmem:[%s11765_s1 + $0x168] sm:$0xff] }
 0x6ba   :  { %2396 = vmatprep.subr.mxu1 %v13360_v41  ;;  %v10216_v41 = vld [vmem:[%s11765_s1 + $0x120] sm:$0xff] }
 0x6bb   :  { %2397 = vmatpush2.msra.mxu1 %v13361_v32  ;;  %v10222_v32 = vld [vmem:[%s11765_s1 + $0x110] sm:$0xff] }
 0x6bc   :  { %2398 = vmatprep.subr.mxu1 %v13362_v37  ;;  %v10228_v37 = vld [vmem:[%s11765_s1 + $0x108] sm:$0xff] }
 0x6bd   :  { %2399 = vmatpush2.msra.mxu1 %v13363_v36  ;;  %v10234_v36 = vld [vmem:[%s11765_s1 + $0xf8] sm:$0xff] }
 0x6be   :  { %2400 = vmatprep.subr.mxu1 %v9620_v43  ;;  %v13372_v43 = vld [vmem:[#allocation106_spill] sm:$0xff] }
 0x6bf   :  { %2401 = vmatpush2.msra.mxu1 %v13364_v50  ;;  %v10240_v50 = vld [vmem:[%s11765_s1 + $0xf0] sm:$0xff] }
 0x6c0   :  { %2402 = vmatprep.subr.mxu1 %v13365_v52  ;;  %v10246_v52 = vld [vmem:[%s11765_s1 + $0xe0] sm:$0xff] }
 0x6c1   :  { %2403 = vmatpush2.msra.mxu1 %v13366_v48  ;;  %v10252_v48 = vld [vmem:[%s11765_s1 + $0xd8] sm:$0xff] }
 0x6c2   :  { %2405 = vmatmul.mubr.f32.vlgmr.msra.gmra.mxu1 %v9949_v39  ;;  %4078 = vmatprep.subr.mxu1 %v13367_v17  ;;  %v10258_v17 = vld [vmem:[%s11765_s1 + $0xc8] sm:$0xff] }
 0x6c3   :  { %4079 = vmatpush3.msra.mxu1 %v13368_v34  ;;  %2545 = vmatprep.mubr.f32.mxu1 %v9947_v57  ;;  %v13379_v57 = vld [vmem:[#allocation22_spill] sm:$0xff] }
 0x6c4   :  { %4080 = vmatprep.subr.mxu1 %v13369_v46  ;;  %v10264_v34 = vld [vmem:[%s11765_s1 + $0xc0] sm:$0xff]  ;;  %v10270_v46 = vld [vmem:[%s11765_s1 + $0xb0] sm:$0xff] }
 0x6c5   :  { %4081 = vmatpush3.msra.mxu1 %v13370_v7  ;;  %v10276_v7 = vld [vmem:[%s11765_s1 + $0xa8] sm:$0xff] }
 0x6c6   :  { %4082 = vmatprep.subr.mxu1 %v13371_v21  ;;  %v10282_v21 = vld [vmem:[%s11765_s1 + $0x98] sm:$0xff] }
 0x6c7   :  { %4083 = vmatpush3.msra.mxu1 %v13372_v43  ;;  %v10288_v43 = vld [vmem:[%s11765_s1 + $0x90] sm:$0xff] }
 0x6c8   :  { %4084 = vmatprep.subr.mxu1 %v13373_v19  ;;  %v10294_v19 = vld [vmem:[%s11765_s1 + $0x80] sm:$0xff] }
 0x6c9   :  { %4085 = vmatpush3.msra.mxu1 %v13374_v2  ;;  %v10300_v2 = vld [vmem:[%s11765_s1 + $0x78] sm:$0xff] }
 0x6ca   :  { %4086 = vmatprep.subr.mxu1 %v13375_v23  ;;  %v10306_v23 = vld [vmem:[%s11765_s1 + $0x68] sm:$0xff] }
 0x6cb   :  { %4087 = vmatpush3.msra.mxu1 %v13376_v18  ;;  %v10312_v18 = vld [vmem:[%s11765_s1 + $0x60] sm:$0xff] }
 0x6cc   :  { %4088 = vmatprep.subr.mxu1 %v13377_v31  ;;  %v10318_v31 = vld [vmem:[%s11765_s1 + $0x50] sm:$0xff] }
 0x6cd   :  { %4089 = vmatpush3.msra.mxu1 %v13378_v29  ;;  %v10324_v29 = vld [vmem:[%s11765_s1 + $0x48] sm:$0xff] }
 0x6ce   :  { %4090 = vmatprep.subr.mxu1 %v13379_v57  ;;  %v10330_v57 = vld [vmem:[%s11765_s1 + $0x38] sm:$0xff] }
 0x6cf   :  { %4091 = vmatpush3.msra.mxu1 %v13380_v24  ;;  %v10336_v24 = vld [vmem:[%s11765_s1 + $0x30] sm:$0xff] }
 0x6d0   :  { %4092 = vmatprep.subr.mxu1 %v13381_v61  ;;  %v10342_v61 = vld [vmem:[%s11765_s1 + $0x20] sm:$0xff] }
 0x6d1   :  { %4093 = vmatpush3.msra.mxu1 %v13382_v47  ;;  %v10348_v47 = vld [vmem:[%s11765_s1 + $0x18] sm:$0xff] }
 0x6d2   :  { %4094 = vmatprep.subr.mxu1 %v13383_v42  ;;  %13395 = vst [vmem:[#allocation15_spill] sm:$0xff] %v10348_v47  ;;  %v10354_v42 = vld [vmem:[%s11765_s1 + $0x8] sm:$0xff] }
 0x6d3   :  { %4095 = vmatpush3.msra.mxu1 %v13384_v27  ;;  %13396 = vst [vmem:[#allocation18_spill] sm:$0xff] %v10354_v42  ;;  %v10360_v27 = vld [vmem:[%s11765_s1] sm:$0xff] }
 0x6d4   :  { %4096 = vmatprep.subr.mxu1 %v13385_v10  ;;  %13397 = vst [vmem:[#allocation17_spill] sm:$0xff] %v10360_v27  ;;  %v10366_v10 = vld [vmem:[%s11765_s1 + $0x2f0] sm:$0xff] }
 0x6d5   :  { %4097 = vmatpush3.msra.mxu1 %v13386_v40  ;;  %13398 = vst [vmem:[#allocation20_spill] sm:$0xff] %v10366_v10  ;;  %v10372_v40 = vld [vmem:[%s11765_s1 + $0x2e8] sm:$0xff] }
 0x6d6   :  { %4098 = vmatprep.subr.mxu1 %v13387_v6  ;;  %13399 = vst [vmem:[#allocation138_spill] sm:$0xff] %v10372_v40  ;;  %v10378_v6 = vld [vmem:[%s11765_s1 + $0x2d8] sm:$0xff] }
 0x6d7   :  { %4099 = vmatpush3.msra.mxu1 %v13388_v44  ;;  %13400 = vst [vmem:[#allocation139_spill] sm:$0xff] %v10378_v6  ;;  %v10384_v44 = vld [vmem:[%s11765_s1 + $0x2d0] sm:$0xff] }
 0x6d8   :  { %4100 = vmatprep.subr.mxu1 %v13389_v51  ;;  %13401 = vst [vmem:[#allocation140_spill] sm:$0xff] %v10384_v44  ;;  %v10390_v51 = vld [vmem:[%s11765_s1 + $0x2c0] sm:$0xff] }
 0x6d9   :  { %4101 = vmatpush3.msra.mxu1 %v13390_v25  ;;  %13402 = vst [vmem:[#allocation141_spill] sm:$0xff] %v10390_v51  ;;  %v10396_v25 = vld [vmem:[%s11765_s1 + $0x2b8] sm:$0xff] }
 0x6da   :  { %4102 = vmatprep.subr.mxu1 %v13391_v22  ;;  %13403 = vst [vmem:[#allocation142_spill] sm:$0xff] %v10396_v25  ;;  %v10402_v22 = vld [vmem:[%s11765_s1 + $0x2a8] sm:$0xff] }
 0x6db   :  { %4103 = vmatpush3.msra.mxu1 %v13392_v45  ;;  %13404 = vst [vmem:[#allocation143_spill] sm:$0xff] %v10402_v22  ;;  %v10408_v45 = vld [vmem:[%s11765_s1 + $0x2a0] sm:$0xff] }
 0x6dc   :  { %4104 = vmatprep.subr.mxu1 %v13393_v12  ;;  %13405 = vst [vmem:[#allocation144_spill] sm:$0xff] %v10408_v45  ;;  %v10414_v12 = vld [vmem:[%s11765_s1 + $0x290] sm:$0xff] }
 0x6dd   :  { %4105 = vmatpush3.msra.mxu1 %v13394_v16  ;;  %13406 = vst [vmem:[#allocation145_spill] sm:$0xff] %v10414_v12  ;;  %v10420_v16 = vld [vmem:[%s11765_s1 + $0x288] sm:$0xff] }
 0x6de   :  { %4106 = vmatprep.subr.mxu1 %v9814_v3  ;;  %v10198_v3 = vld [vmem:[%s11765_s1 + $0x140] sm:$0xff]  ;;  %13407 = vst [vmem:[#allocation24_spill] sm:$0xff] %v10420_v16 }
 0x6df   :  { %4107 = vmatpush3.msra.mxu1 %v9820_v38  ;;  %v10204_v38 = vld [vmem:[%s11765_s1 + $0x138] sm:$0xff] }
 0x6e0   :  { %4108 = vmatprep.subr.mxu1 %v9826_v35  ;;  %v10186_v35 = vld [vmem:[%s11765_s1 + $0x158] sm:$0xff] }
 0x6e1   :  { %4109 = vmatpush3.msra.mxu1 %v9832_v33  ;;  %v10192_v33 = vld [vmem:[%s11765_s1 + $0x150] sm:$0xff] }
 0x6e2   :  { %2546 = vmatmul.mubr.f32.vlgmr.msra.gmra.mxu1 %v9949_v39  ;;  %2626 = vmatprep.subr.mxu1 %v10174_v28  ;;  %v10210_v39 = vld [vmem:[%s11765_s1 + $0x128] sm:$0xff] }
 0x6e3   :  { %2627 = vmatpush1.msra.mxu1 %v10180_v20 }
 0x6e4   :  { %2628 = vmatprep.subr.mxu1 %v10186_v35 }
 0x6e5   :  { %2629 = vmatpush1.msra.mxu1 %v10192_v33 }
 0x6e6   :  { %2630 = vmatprep.subr.mxu1 %v10198_v3 }
 0x6e7   :  { %2631 = vmatpush1.msra.mxu1 %v10204_v38 }
 0x6e8   :  { %2632 = vmatprep.subr.mxu1 %v10210_v39 }
 0x6e9   :  { %2633 = vmatpush1.msra.mxu1 %v10216_v41 }
 0x6ea   :  { %2634 = vmatprep.subr.mxu1 %v10222_v32 }
 0x6eb   :  { %2635 = vmatpush1.msra.mxu1 %v10228_v37 }
 0x6ec   :  { %2636 = vmatprep.subr.mxu1 %v10234_v36 }
 0x6ed   :  { %2637 = vmatpush1.msra.mxu1 %v10240_v50 }
 0x6ee   :  { %2638 = vmatprep.subr.mxu1 %v10246_v52 }
 0x6ef   :  { %2639 = vmatpush1.msra.mxu1 %v10252_v48 }
 0x6f0   :  { %2640 = vmatprep.subr.mxu1 %v10258_v17 }
 0x6f1   :  { %2641 = vmatpush1.msra.mxu1 %v10264_v34 }
 0x6f2   :  { %2642 = vmatprep.subr.mxu1 %v10270_v46 }
 0x6f3   :  { %2643 = vmatpush1.msra.mxu1 %v10276_v7 }
 0x6f4   :  { %2644 = vmatprep.subr.mxu1 %v10282_v21 }
 0x6f5   :  { %2645 = vmatpush1.msra.mxu1 %v10288_v43 }
 0x6f6   :  { %2646 = vmatprep.subr.mxu1 %v10294_v19 }
 0x6f7   :  { %2647 = vmatpush1.msra.mxu1 %v10300_v2 }
 0x6f8   :  { %2648 = vmatprep.subr.mxu1 %v10306_v23 }
 0x6f9   :  { %2649 = vmatpush1.msra.mxu1 %v10312_v18 }
 0x6fa   :  { %2650 = vmatprep.subr.mxu1 %v10318_v31 }
 0x6fb   :  { %2651 = vmatpush1.msra.mxu1 %v10324_v29 }
 0x6fc   :  { %2652 = vmatprep.subr.mxu1 %v10330_v57 }
 0x6fd   :  { %2653 = vmatpush1.msra.mxu1 %v10336_v24 }
 0x6fe   :  { %2654 = vmatprep.subr.mxu1 %v10342_v61 }
 0x6ff   :  { %2655 = vmatpush1.msra.mxu1 %v10348_v47 }
 0x700   :  { %2656 = vmatprep.subr.mxu1 %v10354_v42 }
 0x701   :  { %2657 = vmatpush1.msra.mxu1 %v10360_v27 }
 0x702   :  { %2658 = vmatprep.subr.mxu1 %v10366_v10 }
 0x703   :  { %2659 = vmatpush2.msra.mxu1 %v10372_v40 }
 0x704   :  { %2660 = vmatprep.subr.mxu1 %v10378_v6 }
 0x705   :  { %2661 = vmatpush2.msra.mxu1 %v10384_v44 }
 0x706   :  { %2662 = vmatprep.subr.mxu1 %v10390_v51 }
 0x707   :  { %2663 = vmatpush2.msra.mxu1 %v10396_v25 }
 0x708   :  { %2664 = vmatprep.subr.mxu1 %v10402_v22  ;;  %v10426_v22 = vld [vmem:[%s11765_s1 + $0x278] sm:$0xff] }
 0x709   :  { %2665 = vmatpush2.msra.mxu1 %v10408_v45  ;;  %13408 = vst [vmem:[#allocation23_spill] sm:$0xff] %v10426_v22  ;;  %v10432_v45 = vld [vmem:[%s11765_s1 + $0x270] sm:$0xff] }
 0x70a   :  { %2666 = vmatprep.subr.mxu1 %v10414_v12  ;;  %13409 = vst [vmem:[#allocation26_spill] sm:$0xff] %v10432_v45  ;;  %v10438_v12 = vld [vmem:[%s11765_s1 + $0x260] sm:$0xff] }
 0x70b   :  { %2667 = vmatpush2.msra.mxu1 %v10420_v16  ;;  %13410 = vst [vmem:[#allocation25_spill] sm:$0xff] %v10438_v12  ;;  %v10444_v16 = vld [vmem:[%s11765_s1 + $0x258] sm:$0xff] }
 0x70c   :  { %2668 = vmatprep.subr.mxu1 %v10426_v22  ;;  %13411 = vst [vmem:[#allocation28_spill] sm:$0xff] %v10444_v16  ;;  %v10450_v22 = vld [vmem:[%s11765_s1 + $0x248] sm:$0xff] }
 0x70d   :  { %2669 = vmatpush2.msra.mxu1 %v10432_v45  ;;  %13412 = vst [vmem:[#allocation27_spill] sm:$0xff] %v10450_v22  ;;  %v10456_v45 = vld [vmem:[%s11765_s1 + $0x240] sm:$0xff] }
 0x70e   :  { %2670 = vmatprep.subr.mxu1 %v10438_v12  ;;  %13413 = vst [vmem:[#allocation30_spill] sm:$0xff] %v10456_v45  ;;  %v10462_v12 = vld [vmem:[%s11765_s1 + $0x230] sm:$0xff] }
 0x70f   :  { %2671 = vmatpush2.msra.mxu1 %v10444_v16  ;;  %13414 = vst [vmem:[#allocation29_spill] sm:$0xff] %v10462_v12  ;;  %v10468_v16 = vld [vmem:[%s11765_s1 + $0x228] sm:$0xff] }
 0x710   :  { %2672 = vmatprep.subr.mxu1 %v10450_v22  ;;  %13415 = vst [vmem:[#allocation32_spill] sm:$0xff] %v10468_v16  ;;  %v10474_v22 = vld [vmem:[%s11765_s1 + $0x218] sm:$0xff] }
 0x711   :  { %2673 = vmatpush2.msra.mxu1 %v10456_v45  ;;  %13416 = vst [vmem:[#allocation31_spill] sm:$0xff] %v10474_v22  ;;  %v10480_v45 = vld [vmem:[%s11765_s1 + $0x210] sm:$0xff] }
 0x712   :  { %2674 = vmatprep.subr.mxu1 %v10462_v12  ;;  %13417 = vst [vmem:[#allocation34_spill] sm:$0xff] %v10480_v45  ;;  %v10486_v12 = vld [vmem:[%s11765_s1 + $0x200] sm:$0xff] }
 0x713   :  { %2675 = vmatpush2.msra.mxu1 %v10468_v16  ;;  %13418 = vst [vmem:[#allocation33_spill] sm:$0xff] %v10486_v12  ;;  %v10492_v16 = vld [vmem:[%s11765_s1 + $0x1f8] sm:$0xff] }
 0x714   :  { %2676 = vmatprep.subr.mxu1 %v10474_v22  ;;  %13419 = vst [vmem:[#allocation36_spill] sm:$0xff] %v10492_v16  ;;  %v10498_v22 = vld [vmem:[%s11765_s1 + $0x1e8] sm:$0xff] }
 0x715   :  { %2677 = vmatpush2.msra.mxu1 %v10480_v45  ;;  %13420 = vst [vmem:[#allocation35_spill] sm:$0xff] %v10498_v22  ;;  %v10504_v45 = vld [vmem:[%s11765_s1 + $0x1e0] sm:$0xff] }
 0x716   :  { %2678 = vmatprep.subr.mxu1 %v10486_v12  ;;  %13421 = vst [vmem:[#allocation38_spill] sm:$0xff] %v10504_v45  ;;  %v10510_v12 = vld [vmem:[%s11765_s1 + $0x1d0] sm:$0xff] }
 0x717   :  { %2679 = vmatpush2.msra.mxu1 %v10492_v16  ;;  %13422 = vst [vmem:[#allocation37_spill] sm:$0xff] %v10510_v12  ;;  %v10516_v16 = vld [vmem:[%s11765_s1 + $0x1c8] sm:$0xff] }
 0x718   :  { %2680 = vmatprep.subr.mxu1 %v10498_v22  ;;  %13423 = vst [vmem:[#allocation40_spill] sm:$0xff] %v10516_v16  ;;  %v10522_v22 = vld [vmem:[%s11765_s1 + $0x1b8] sm:$0xff] }
 0x719   :  { %2681 = vmatpush2.msra.mxu1 %v10504_v45  ;;  %13424 = vst [vmem:[#allocation39_spill] sm:$0xff] %v10522_v22  ;;  %v10528_v45 = vld [vmem:[%s11765_s1 + $0x1b0] sm:$0xff] }
 0x71a   :  { %2682 = vmatprep.subr.mxu1 %v10510_v12  ;;  %13425 = vst [vmem:[#allocation42_spill] sm:$0xff] %v10528_v45  ;;  %v10534_v12 = vld [vmem:[%s11765_s1 + $0x1a0] sm:$0xff] }
 0x71b   :  { %2683 = vmatpush2.msra.mxu1 %v10516_v16  ;;  %13426 = vst [vmem:[#allocation41_spill] sm:$0xff] %v10534_v12  ;;  %v10540_v16 = vld [vmem:[%s11765_s1 + $0x198] sm:$0xff] }
 0x71c   :  { %2684 = vmatprep.subr.mxu1 %v10522_v22  ;;  %13427 = vst [vmem:[#allocation44_spill] sm:$0xff] %v10540_v16  ;;  %v10546_v22 = vld [vmem:[%s11765_s1 + $0x188] sm:$0xff] }
 0x71d   :  { %2685 = vmatpush2.msra.mxu1 %v10528_v45  ;;  %13428 = vst [vmem:[#allocation43_spill] sm:$0xff] %v10546_v22  ;;  %v10552_v45 = vld [vmem:[%s11765_s1 + $0x180] sm:$0xff] }
 0x71e   :  { %2686 = vmatprep.subr.mxu1 %v10534_v12  ;;  %13429 = vst [vmem:[#allocation46_spill] sm:$0xff] %v10552_v45  ;;  %v10558_v12 = vld [vmem:[%s11765_s1 + $0x2f8] sm:$0xff] }
 0x71f   :  { %2687 = vmatpush2.msra.mxu1 %v10540_v16  ;;  %13430 = vst [vmem:[#allocation45_spill] sm:$0xff] %v10558_v12 }
 0x720   :  { %2688 = vmatprep.subr.mxu1 %v10546_v22 }
 0x721   :  { %2689 = vmatpush2.msra.mxu1 %v10552_v45  ;;  %v2335_v22 = vpop.f32.mrf.mxu0 }
 0x722   :  { %4130 = vmatprep.subr.mxu1 %v10558_v12  ;;  %v2336_v6 = vadd.f32 %v2335_v22, %v12888_v14  ;;  %v10615_v22 = vld [vmem:[%s11765_s1 + $0x298] sm:$0xff] }
 0x723   :  { %v2337_v44 = vpop.f32.mrf.mxu0  ;;  %13434 = vst [vmem:[#allocation49_spill] sm:$0xff] %v10615_v22 }
 0x724   :  { %v2338_v40 = vadd.f32 %v2337_v44, %v7411_v1  ;;  %v10603_v44 = vld [vmem:[%s11765_s1 + $0x2b0] sm:$0xff] }
 0x725   :  { %13432 = vst [vmem:[#allocation47_spill] sm:$0xff] %v10603_v44 }
 0x742   :  { %v2263_v16 = vpop.f32.mrf.mxu1 }
 0x743   :  { %v2264_v25 = vadd.f32 %v9904_v55, %v2263_v16  ;;  %v10573_v55 = vld [vmem:[%s11765_s1 + $0x178] sm:$0xff] }
 0x744   :  { %v4530_v51 = vpop.f32.mrf.mxu1 }
 0x745   :  { %2267 = vst [vmem:[%s11770_s5 + $0x6] sm:$0x3] %v2264_v25  ;;  %v10609_v51 = vld [vmem:[%s11765_s1 + $0x130] sm:$0xff] }
 0x746   :  { %13433 = vst [vmem:[#allocation50_spill] sm:$0xff] %v10609_v51 }
 0x782   :  { %v2406_v45 = vpop.f32.mrf.mxu1 }
 0x783   :  { %v2407_v10 = vadd.f32 %v2406_v45, %v2336_v6  ;;  %v10597_v6 = vld [vmem:[%s11765_s1 + $0x148] sm:$0xff]  ;;  %v10621_v45 = vld [vmem:[%s11765_s1 + $0x118] sm:$0xff] }
 0x784   :  { %v2408_v27 = vpop.f32.mrf.mxu1  ;;  %13431 = vst [vmem:[#allocation48_spill] sm:$0xff] %v10597_v6  ;;  %13435 = vst [vmem:[#allocation52_spill] sm:$0xff] %v10621_v45 }
 0x785   :  { %v2409_v42 = vadd.f32 %v2408_v27, %v2338_v40  ;;  %v10579_v27 = vld [vmem:[%s11765_s1 + $0x2e0] sm:$0xff]  ;;  %v10591_v40 = vld [vmem:[%s11765_s1 + $0x2c8] sm:$0xff] }
 0x787   :  { %4703 = vtanh.f32 %v2409_v42  ;;  %v10585_v42 = vld [vmem:[%s11765_s1 + $0x160] sm:$0xff] }
 0x788   :  { %4705 = vtanh.f32 %v2407_v10  ;;  %v4075_v10 = vpop.f32.mrf.mxu0 }
 0x78a   :  { %v4076_v25 = vpop.f32.mrf.mxu0 }
 0x78b   :  { %v4077_v16 = vadd.f32 %v4076_v25, %v4075_v10  ;;  %v10651_v10 = vld [vmem:[%s11765_s1 + $0x250] sm:$0xff] }
 0x794   :  { %v4704_v12 = vpop.eup %4703 }
 0x795   :  { %v10567_v47 = vpop.eup %4705  ;;  %2690 = vmatprep.mubr.f32.mxu1 %v4704_v12 }
 0x796   :  { %2691 = vmatmul.mubr.f32.vlgmr.msra.gmra.mxu1 %v10567_v47 }
 0x797   :  { %4131 = vmatpush3.msra.mxu1 %v10573_v55  ;;  %2832 = vmatprep.mubr.f32.mxu1 %v4704_v12  ;;  %v10627_v12 = vld [vmem:[%s11765_s1 + $0x280] sm:$0xff] }
 0x798   :  { %4132 = vmatprep.subr.mxu1 %v10579_v27  ;;  %13436 = vst [vmem:[#allocation51_spill] sm:$0xff] %v10627_v12 }
 0x799   :  { %4133 = vmatpush3.msra.mxu1 %v10585_v42 }
 0x79a   :  { %4134 = vmatprep.subr.mxu1 %v10591_v40 }
 0x79b   :  { %4135 = vmatpush3.msra.mxu1 %v10597_v6 }
 0x79c   :  { %4136 = vmatprep.subr.mxu1 %v10603_v44 }
 0x79d   :  { %4137 = vmatpush3.msra.mxu1 %v10609_v51  ;;  %v10633_v51 = vld [vmem:[%s11765_s1 + $0x100] sm:$0xff] }
 0x79e   :  { %4138 = vmatprep.subr.mxu1 %v10615_v22  ;;  %13437 = vst [vmem:[#allocation54_spill] sm:$0xff] %v10633_v51  ;;  %v10639_v22 = vld [vmem:[%s11765_s1 + $0x268] sm:$0xff] }
 0x79f   :  { %4139 = vmatpush3.msra.mxu1 %v10621_v45  ;;  %13438 = vst [vmem:[#allocation53_spill] sm:$0xff] %v10639_v22 }
 0x7a0   :  { %4140 = vmatprep.subr.mxu1 %v10627_v12  ;;  %v10645_v12 = vld [vmem:[%s11765_s1 + $0xe8] sm:$0xff] }
 0x7a1   :  { %4141 = vmatpush3.msra.mxu1 %v10633_v51  ;;  %13439 = vst [vmem:[#allocation56_spill] sm:$0xff] %v10645_v12  ;;  %v2478_v51 = vadd.f32 %v4077_v16, %v7737_v0  ;;  %v10670_v16 = vld [vmem:[%s11765_s1 + $0xb8] sm:$0xff] }
 0x7a2   :  { %4142 = vmatprep.subr.mxu1 %v10639_v22  ;;  %v4110_v45 = vpop.f32.mrf.mxu1  ;;  %v10658_v22 = vld [vmem:[%s11765_s1 + $0xd0] sm:$0xff] }
 0x7a3   :  { %4143 = vmatpush3.msra.mxu1 %v10645_v12  ;;  %v10664_v12 = vld [vmem:[%s11765_s1 + $0x238] sm:$0xff] }
 0x7a4   :  { %4144 = vmatprep.subr.mxu1 %v10651_v10  ;;  %v4111_v25 = vpop.f32.mrf.mxu1 }
 0x7a5   :  { %v4112_v44 = vadd.f32 %v4111_v25, %v4110_v45  ;;  %4145 = vmatpush3.msra.mxu1 %v10658_v22  ;;  %v10676_v45 = vld [vmem:[%s11765_s1 + $0x220] sm:$0xff] }
 0x7a6   :  { %4146 = vmatprep.subr.mxu1 %v10664_v12  ;;  %v10682_v25 = vld [vmem:[%s11765_s1 + $0xa0] sm:$0xff] }
 0x7a7   :  { %v2548_v6 = vadd.f32 %v4112_v44, %v2478_v51  ;;  %4147 = vmatpush3.msra.mxu1 %v10670_v16  ;;  %13440 = vst [vmem:[#allocation55_spill] sm:$0xff] %v10682_v25  ;;  %v10688_v44 = vld [vmem:[%s11765_s1 + $0x208] sm:$0xff] }
 0x7a8   :  { %4148 = vmatprep.subr.mxu1 %v10676_v45  ;;  %13441 = vst [vmem:[#allocation58_spill] sm:$0xff] %v10688_v44  ;;  %v10694_v51 = vld [vmem:[%s11765_s1 + $0x88] sm:$0xff] }
 0x7a9   :  { %4707 = vtanh.f32 %v2548_v6  ;;  %4149 = vmatpush3.msra.mxu1 %v10682_v25  ;;  %13442 = vst [vmem:[#allocation57_spill] sm:$0xff] %v10694_v51  ;;  %v10700_v6 = vld [vmem:[%s11765_s1 + $0x1f0] sm:$0xff] }
 0x7aa   :  { %4150 = vmatprep.subr.mxu1 %v10688_v44  ;;  %13443 = vst [vmem:[#allocation60_spill] sm:$0xff] %v10700_v6  ;;  %v10706_v25 = vld [vmem:[%s11765_s1 + $0x70] sm:$0xff]  ;;  %v10712_v44 = vld [vmem:[%s11765_s1 + $0x1d8] sm:$0xff] }
 0x7ab   :  { %4151 = vmatpush3.msra.mxu1 %v10694_v51  ;;  %13444 = vst [vmem:[#allocation59_spill] sm:$0xff] %v10706_v25  ;;  %13445 = vst [vmem:[#allocation62_spill] sm:$0xff] %v10712_v44  ;;  %v10718_v51 = vld [vmem:[%s11765_s1 + $0x58] sm:$0xff] }
 0x7ac   :  { %4152 = vmatprep.subr.mxu1 %v10700_v6  ;;  %13446 = vst [vmem:[#allocation61_spill] sm:$0xff] %v10718_v51  ;;  %v10724_v6 = vld [vmem:[%s11765_s1 + $0x1c0] sm:$0xff] }
 0x7ad   :  { %4153 = vmatpush3.msra.mxu1 %v10706_v25  ;;  %13447 = vst [vmem:[#allocation64_spill] sm:$0xff] %v10724_v6  ;;  %v10730_v25 = vld [vmem:[%s11765_s1 + $0x40] sm:$0xff] }
 0x7ae   :  { %4154 = vmatprep.subr.mxu1 %v10712_v44  ;;  %13448 = vst [vmem:[#allocation63_spill] sm:$0xff] %v10730_v25  ;;  %v10736_v44 = vld [vmem:[%s11765_s1 + $0x1a8] sm:$0xff] }
 0x7af   :  { %4155 = vmatpush3.msra.mxu1 %v10718_v51  ;;  %13449 = vst [vmem:[#allocation65_spill] sm:$0xff] %v10736_v44  ;;  %v10742_v51 = vld [vmem:[%s11765_s1 + $0x28] sm:$0xff] }
 0x7b0   :  { %4156 = vmatprep.subr.mxu1 %v10724_v6  ;;  %13450 = vst [vmem:[#allocation67_spill] sm:$0xff] %v10742_v51  ;;  %v10748_v6 = vld [vmem:[%s11765_s1 + $0x190] sm:$0xff] }
 0x7b1   :  { %4157 = vmatpush3.msra.mxu1 %v10730_v25  ;;  %13451 = vst [vmem:[#allocation69_spill] sm:$0xff] %v10748_v6  ;;  %v10754_v25 = vld [vmem:[%s11765_s1 + $0x10] sm:$0xff] }
 0x7b2   :  { %4158 = vmatprep.subr.mxu1 %v10736_v44  ;;  %v10760_v44 = vld [vmem:[%s11766_s0 + $0xe] sm:$0x3] }
 0x7b3   :  { %4159 = vmatpush3.msra.mxu1 %v10742_v51 }
 0x7b4   :  { %4160 = vmatprep.subr.mxu1 %v10748_v6  ;;  %v10770_v6 = vld [vmem:[%s11768_s3 + $0x78] sm:$0xff] }
 0x7b5   :  { %4161 = vmatpush3.msra.mxu1 %v10754_v25 }
 0x7b6   :  { %v10762_v51 = vpop.eup %4707  ;;  %2833 = vmatmul.mubr.f32.vlgmr.msra.gmra.mxu1 %v10567_v47  ;;  %4566 = vmatprep.subr.mxu1 %v12563_v62  ;;  %v10781_v47 = vld [vmem:[%s11768_s3 + $0x70] sm:$0xff] }
 0x7b7   :  { %4564 = vmatmul.mubr.f32.vlgmr.msra.gmra.mxu0 %v10762_v51  ;;  %4567 = vmatpush3.msra.mxu1 %v10770_v6 }
 0x7b8   :  { %2698 = vmatpush1.msra.mxu0 %v9957_v54  ;;  %2761 = vmatprep.mubr.f32.mxu0 %v10760_v44  ;;  %v10790_v54 = vld [vmem:[%s11768_s3 + $0x68] sm:$0xff] }
 0x7b9   :  { %2699 = vmatprep.subr.mxu0 %v9964_v59  ;;  %4568 = vmatprep.subr.mxu1 %v12563_v62  ;;  %v10799_v59 = vld [vmem:[%s11768_s3 + $0x60] sm:$0xff] }
 0x7ba   :  { %2700 = vmatpush1.msra.mxu0 %v9971_v15  ;;  %4569 = vmatpush3.msra.mxu1 %v10781_v47  ;;  %v10808_v15 = vld [vmem:[%s11768_s3 + $0x58] sm:$0xff] }
 0x7bb   :  { %2701 = vmatprep.subr.mxu0 %v9978_v26  ;;  %4570 = vmatprep.subr.mxu1 %v12563_v62  ;;  %v10817_v26 = vld [vmem:[%s11768_s3 + $0x50] sm:$0xff] }
 0x7bc   :  { %2702 = vmatpush1.msra.mxu0 %v9985_v60  ;;  %4571 = vmatpush3.msra.mxu1 %v10790_v54  ;;  %v10826_v60 = vld [vmem:[%s11768_s3 + $0x48] sm:$0xff] }
 0x7bd   :  { %2703 = vmatprep.subr.mxu0 %v9992_v5  ;;  %4572 = vmatprep.subr.mxu1 %v12563_v62  ;;  %v10835_v5 = vld [vmem:[%s11768_s3 + $0x40] sm:$0xff] }
 0x7be   :  { %2704 = vmatpush1.msra.mxu0 %v9999_v63  ;;  %4573 = vmatpush3.msra.mxu1 %v10799_v59  ;;  %v10844_v63 = vld [vmem:[%s11768_s3 + $0x38] sm:$0xff] }
 0x7bf   :  { %2705 = vmatprep.subr.mxu0 %v10006_v56  ;;  %4574 = vmatprep.subr.mxu1 %v12563_v62  ;;  %v10850_v56 = vld [vmem:[%s11765_s1 + $0x398] sm:$0xff] }
 0x7c0   :  { %2706 = vmatpush1.msra.mxu0 %v10013_v30  ;;  %4575 = vmatpush3.msra.mxu1 %v10808_v15  ;;  %v10857_v30 = vld [vmem:[%s11765_s1 + $0x390] sm:$0xff] }
 0x7c1   :  { %2707 = vmatprep.subr.mxu0 %v10020_v53  ;;  %4576 = vmatprep.subr.mxu1 %v12563_v62  ;;  %v10863_v53 = vld [vmem:[%s11768_s3 + $0x30] sm:$0xff] }
 0x7c2   :  { %2708 = vmatpush1.msra.mxu0 %v10027_v58  ;;  %4577 = vmatpush3.msra.mxu1 %v10817_v26  ;;  %v10869_v58 = vld [vmem:[%s11765_s1 + $0x380] sm:$0xff] }
 0x7c3   :  { %2709 = vmatprep.subr.mxu0 %v10034_v49  ;;  %4578 = vmatprep.subr.mxu1 %v12563_v62  ;;  %v10876_v49 = vld [vmem:[%s11765_s1 + $0x378] sm:$0xff] }
 0x7c4   :  { %2710 = vmatpush1.msra.mxu0 %v10041_v9  ;;  %4579 = vmatpush3.msra.mxu1 %v10826_v60  ;;  %v10882_v9 = vld [vmem:[%s11768_s3 + $0x28] sm:$0xff] }
 0x7c5   :  { %2711 = vmatprep.subr.mxu0 %v10048_v4  ;;  %4580 = vmatprep.subr.mxu1 %v12563_v62  ;;  %13452 = vst [vmem:[#allocation71_spill] sm:$0xff] %v10882_v9  ;;  %v10888_v4 = vld [vmem:[%s11765_s1 + $0x368] sm:$0xff] }
 0x7c6   :  { %2712 = vmatpush1.msra.mxu0 %v10055_v11  ;;  %4581 = vmatpush3.msra.mxu1 %v10835_v5  ;;  %13453 = vst [vmem:[#allocation73_spill] sm:$0xff] %v10888_v4  ;;  %v10895_v11 = vld [vmem:[%s11765_s1 + $0x360] sm:$0xff] }
 0x7c7   :  { %2713 = vmatprep.subr.mxu0 %v10062_v8  ;;  %4582 = vmatprep.subr.mxu1 %v12563_v62  ;;  %13454 = vst [vmem:[#allocation75_spill] sm:$0xff] %v10895_v11  ;;  %v10901_v8 = vld [vmem:[%s11768_s3 + $0x20] sm:$0xff] }
 0x7c8   :  { %2714 = vmatpush1.msra.mxu0 %v10069_v13  ;;  %4583 = vmatpush3.msra.mxu1 %v10844_v63  ;;  %13455 = vst [vmem:[#allocation78_spill] sm:$0xff] %v10901_v8  ;;  %v10907_v13 = vld [vmem:[%s11765_s1 + $0x350] sm:$0xff] }
 0x7c9   :  { %2715 = vmatprep.subr.mxu0 %v10850_v56  ;;  %4584 = vmatprep.subr.mxu1 %v12563_v62  ;;  %13456 = vst [vmem:[#allocation110_spill] sm:$0xff] %v10907_v13 }
 0x7ca   :  { %2716 = vmatpush1.msra.mxu0 %v10857_v30  ;;  %4585 = vmatpush3.msra.mxu1 %v10863_v53 }
 0x7cb   :  { %2717 = vmatprep.subr.mxu0 %v10869_v58  ;;  %4586 = vmatprep.subr.mxu1 %v12563_v62 }
 0x7cc   :  { %2718 = vmatpush1.msra.mxu0 %v10876_v49  ;;  %4587 = vmatpush3.msra.mxu1 %v10882_v9 }
 0x7cd   :  { %2719 = vmatprep.subr.mxu0 %v10888_v4  ;;  %4588 = vmatprep.subr.mxu1 %v12563_v62  ;;  %v11000_v4 = vld [vmem:[%s11765_s1 + $0x5d8] sm:$0xff] }
 0x7ce   :  { %2720 = vmatpush1.msra.mxu0 %v10895_v11  ;;  %4589 = vmatpush3.msra.mxu1 %v10901_v8  ;;  %v10914_v11 = vld [vmem:[%s11765_s1 + $0x348] sm:$0xff]  ;;  %v10920_v8 = vld [vmem:[%s11768_s3 + $0x18] sm:$0xff]  ;;  %13470 = vst [vmem:[#allocation85_spill] sm:$0xff] %v11000_v4 }
 0x7cf   :  { %2721 = vmatprep.subr.mxu0 %v10907_v13  ;;  %4590 = vmatprep.subr.mxu1 %v12563_v62  ;;  %13457 = vst [vmem:[#allocation112_spill] sm:$0xff] %v10914_v11  ;;  %13458 = vst [vmem:[#allocation114_spill] sm:$0xff] %v10920_v8  ;;  %v10926_v13 = vld [vmem:[%s11765_s1 + $0x338] sm:$0xff] }
 0x7d0   :  { %2722 = vmatpush1.msra.mxu0 %v10914_v11  ;;  %4591 = vmatpush3.msra.mxu1 %v10920_v8  ;;  %13459 = vst [vmem:[#allocation116_spill] sm:$0xff] %v10926_v13  ;;  %v10933_v11 = vld [vmem:[%s11765_s1 + $0x330] sm:$0xff] }
 0x7d1   :  { %2723 = vmatprep.subr.mxu0 %v10926_v13  ;;  %4592 = vmatprep.subr.mxu1 %v12563_v62  ;;  %13460 = vst [vmem:[#allocation118_spill] sm:$0xff] %v10933_v11  ;;  %v10939_v8 = vld [vmem:[%s11768_s3 + $0x10] sm:$0xff]  ;;  %v10945_v13 = vld [vmem:[%s11765_s1 + $0x320] sm:$0xff] }
 0x7d2   :  { %2724 = vmatpush1.msra.mxu0 %v10933_v11  ;;  %13461 = vst [vmem:[#allocation120_spill] sm:$0xff] %v10939_v8  ;;  %4593 = vmatpush3.msra.mxu1 %v10939_v8  ;;  %13462 = vst [vmem:[#allocation122_spill] sm:$0xff] %v10945_v13  ;;  %v10952_v11 = vld [vmem:[%s11765_s1 + $0x318] sm:$0xff]  ;;  %v10958_v8 = vld [vmem:[%s11768_s3 + $0x8] sm:$0xff] }
 0x7d3   :  { %2725 = vmatprep.subr.mxu0 %v10945_v13  ;;  %4594 = vmatprep.subr.mxu1 %v12563_v62  ;;  %13463 = vst [vmem:[#allocation126_spill] sm:$0xff] %v10952_v11  ;;  %13464 = vst [vmem:[#allocation128_spill] sm:$0xff] %v10958_v8  ;;  %v10964_v13 = vld [vmem:[%s11765_s1 + $0x308] sm:$0xff] }
 0x7d4   :  { %2726 = vmatpush1.msra.mxu0 %v10952_v11  ;;  %4595 = vmatpush3.msra.mxu1 %v10958_v8  ;;  %13465 = vst [vmem:[#allocation130_spill] sm:$0xff] %v10964_v13  ;;  %v10971_v11 = vld [vmem:[%s11765_s1 + $0x300] sm:$0xff] }
 0x7d5   :  { %2727 = vmatprep.subr.mxu0 %v10964_v13  ;;  %4596 = vmatprep.subr.mxu1 %v12563_v62  ;;  %13466 = vst [vmem:[#allocation77_spill] sm:$0xff] %v10971_v11  ;;  %v10977_v8 = vld [vmem:[%s11768_s3] sm:$0xff]  ;;  %v10983_v13 = vld [vmem:[%s11765_s1 + $0x5f0] sm:$0xff] }
 0x7d6   :  { %2728 = vmatpush1.msra.mxu0 %v10971_v11  ;;  %13467 = vst [vmem:[#allocation79_spill] sm:$0xff] %v10977_v8  ;;  %4597 = vmatpush3.msra.mxu1 %v10977_v8  ;;  %13468 = vst [vmem:[#allocation81_spill] sm:$0xff] %v10983_v13  ;;  %v10991_v11 = vld [vmem:[%s11765_s1 + $0x5e8] sm:$0xff]  ;;  %v5270_v8 = vld [vmem:[%s11765_s1 + $0x470] sm:$0xff] }
 0x7d7   :  { %2729 = vmatprep.subr.mxu0 %v10983_v13  ;;  %4598 = vmatprep.mubr.msk.f32.mxu1 %vm5352_vm0, %v12563_v62  ;;  %13469 = vst [vmem:[#allocation83_spill] sm:$0xff] %v10991_v11  ;;  %v11006_v13 = vld [vmem:[%s11765_s1 + $0x5d0] sm:$0xff] }
 0x7d8   :  { %2730 = vmatpush2.msra.mxu0 %v10991_v11  ;;  %3053 = vmatprep.subr.mxu1 %v5270_v8  ;;  %13471 = vst [vmem:[#allocation97_spill] sm:$0xff] %v11006_v13  ;;  %v11012_v11 = vld [vmem:[%s11765_s1 + $0x5c0] sm:$0xff]  ;;  %v11018_v8 = vld [vmem:[%s11765_s1 + $0x5b8] sm:$0xff] }
 0x7d9   :  { %2731 = vmatprep.subr.mxu0 %v11000_v4  ;;  %13472 = vst [vmem:[#allocation99_spill] sm:$0xff] %v11012_v11  ;;  %13473 = vst [vmem:[#allocation87_spill] sm:$0xff] %v11018_v8  ;;  %v11024_v4 = vld [vmem:[%s11765_s1 + $0x5a8] sm:$0xff] }
 0x7da   :  { %2732 = vmatpush2.msra.mxu0 %v11006_v13  ;;  %13474 = vst [vmem:[#allocation101_spill] sm:$0xff] %v11024_v4  ;;  %v11030_v13 = vld [vmem:[%s11765_s1 + $0x5a0] sm:$0xff] }
 0x7db   :  { %2733 = vmatprep.subr.mxu0 %v11012_v11  ;;  %13475 = vst [vmem:[#allocation103_spill] sm:$0xff] %v11030_v13  ;;  %v11036_v11 = vld [vmem:[%s11765_s1 + $0x590] sm:$0xff] }
 0x7dc   :  { %2734 = vmatpush2.msra.mxu0 %v11018_v8  ;;  %13476 = vst [vmem:[#allocation89_spill] sm:$0xff] %v11036_v11  ;;  %v11042_v8 = vld [vmem:[%s11765_s1 + $0x588] sm:$0xff] }
 0x7dd   :  { %2735 = vmatprep.subr.mxu0 %v11024_v4  ;;  %13477 = vst [vmem:[#allocation105_spill] sm:$0xff] %v11042_v8  ;;  %v11048_v4 = vld [vmem:[%s11765_s1 + $0x578] sm:$0xff] }
 0x7de   :  { %2736 = vmatpush2.msra.mxu0 %v11030_v13  ;;  %13478 = vst [vmem:[#allocation107_spill] sm:$0xff] %v11048_v4  ;;  %v11054_v13 = vld [vmem:[%s11765_s1 + $0x570] sm:$0xff] }
 0x7df   :  { %2737 = vmatprep.subr.mxu0 %v11036_v11  ;;  %13479 = vst [vmem:[#allocation91_spill] sm:$0xff] %v11054_v13  ;;  %v11060_v11 = vld [vmem:[%s11765_s1 + $0x560] sm:$0xff] }
 0x7e0   :  { %2738 = vmatpush2.msra.mxu0 %v11042_v8  ;;  %13480 = vst [vmem:[#allocation109_spill] sm:$0xff] %v11060_v11  ;;  %v11066_v8 = vld [vmem:[%s11765_s1 + $0x558] sm:$0xff] }
 0x7e1   :  { %2739 = vmatprep.subr.mxu0 %v11048_v4  ;;  %13481 = vst [vmem:[#allocation111_spill] sm:$0xff] %v11066_v8  ;;  %v11072_v4 = vld [vmem:[%s11765_s1 + $0x548] sm:$0xff] }
 0x7e2   :  { %2740 = vmatpush2.msra.mxu0 %v11054_v13  ;;  %13482 = vst [vmem:[#allocation93_spill] sm:$0xff] %v11072_v4  ;;  %v11078_v13 = vld [vmem:[%s11765_s1 + $0x540] sm:$0xff] }
 0x7e3   :  { %2741 = vmatprep.subr.mxu0 %v11060_v11  ;;  %13483 = vst [vmem:[#allocation113_spill] sm:$0xff] %v11078_v13  ;;  %v11084_v11 = vld [vmem:[%s11765_s1 + $0x530] sm:$0xff] }
 0x7e4   :  { %2742 = vmatpush2.msra.mxu0 %v11066_v8  ;;  %13484 = vst [vmem:[#allocation115_spill] sm:$0xff] %v11084_v11  ;;  %v11090_v8 = vld [vmem:[%s11765_s1 + $0x528] sm:$0xff] }
 0x7e5   :  { %2743 = vmatprep.subr.mxu0 %v11072_v4  ;;  %13485 = vst [vmem:[#allocation95_spill] sm:$0xff] %v11090_v8  ;;  %v11096_v4 = vld [vmem:[%s11765_s1 + $0x518] sm:$0xff] }
 0x7e6   :  { %2744 = vmatpush2.msra.mxu0 %v11078_v13  ;;  %13486 = vst [vmem:[#allocation117_spill] sm:$0xff] %v11096_v4  ;;  %v11102_v13 = vld [vmem:[%s11765_s1 + $0x510] sm:$0xff] }
 0x7e7   :  { %2745 = vmatprep.subr.mxu0 %v11084_v11  ;;  %13487 = vst [vmem:[#allocation119_spill] sm:$0xff] %v11102_v13  ;;  %v11108_v11 = vld [vmem:[%s11765_s1 + $0x500] sm:$0xff] }
 0x7e8   :  { %2746 = vmatpush2.msra.mxu0 %v11090_v8  ;;  %13488 = vst [vmem:[#allocation121_spill] sm:$0xff] %v11108_v11  ;;  %v11114_v8 = vld [vmem:[%s11765_s1 + $0x4f8] sm:$0xff] }
 0x7e9   :  { %2747 = vmatprep.subr.mxu0 %v11096_v4  ;;  %13489 = vst [vmem:[#allocation123_spill] sm:$0xff] %v11114_v8  ;;  %v11120_v4 = vld [vmem:[%s11765_s1 + $0x4e8] sm:$0xff] }
 0x7ea   :  { %2748 = vmatpush2.msra.mxu0 %v11102_v13  ;;  %13490 = vst [vmem:[#allocation125_spill] sm:$0xff] %v11120_v4  ;;  %v11126_v13 = vld [vmem:[%s11765_s1 + $0x4e0] sm:$0xff] }
 0x7eb   :  { %2749 = vmatprep.subr.mxu0 %v11108_v11  ;;  %13491 = vst [vmem:[#allocation127_spill] sm:$0xff] %v11126_v13  ;;  %v11132_v11 = vld [vmem:[%s11765_s1 + $0x4d0] sm:$0xff] }
 0x7ec   :  { %2750 = vmatpush2.msra.mxu0 %v11114_v8  ;;  %13492 = vst [vmem:[#allocation129_spill] sm:$0xff] %v11132_v11  ;;  %v11138_v8 = vld [vmem:[%s11765_s1 + $0x4c8] sm:$0xff] }
 0x7ed   :  { %2751 = vmatprep.subr.mxu0 %v11120_v4  ;;  %13493 = vst [vmem:[#allocation131_spill] sm:$0xff] %v11138_v8  ;;  %v11144_v4 = vld [vmem:[%s11765_s1 + $0x4b8] sm:$0xff] }
 0x7ee   :  { %2752 = vmatpush2.msra.mxu0 %v11126_v13  ;;  %13494 = vst [vmem:[#allocation133_spill] sm:$0xff] %v11144_v4  ;;  %v11150_v13 = vld [vmem:[%s11765_s1 + $0x4b0] sm:$0xff] }
 0x7ef   :  { %2753 = vmatprep.subr.mxu0 %v11132_v11  ;;  %13495 = vst [vmem:[#allocation134_spill] sm:$0xff] %v11150_v13  ;;  %v11156_v11 = vld [vmem:[%s11765_s1 + $0x4a0] sm:$0xff] }
 0x7f0   :  { %2754 = vmatpush2.msra.mxu0 %v11138_v8  ;;  %13496 = vst [vmem:[#allocation135_spill] sm:$0xff] %v11156_v11  ;;  %v11162_v8 = vld [vmem:[%s11765_s1 + $0x498] sm:$0xff] }
 0x7f1   :  { %2755 = vmatprep.subr.mxu0 %v11144_v4  ;;  %13497 = vst [vmem:[#allocation80_spill] sm:$0xff] %v11162_v8  ;;  %v11168_v4 = vld [vmem:[%s11765_s1 + $0x488] sm:$0xff] }
 0x7f2   :  { %2756 = vmatpush2.msra.mxu0 %v11150_v13  ;;  %13498 = vst [vmem:[#allocation82_spill] sm:$0xff] %v11168_v4  ;;  %v11174_v13 = vld [vmem:[%s11765_s1 + $0x480] sm:$0xff] }
 0x7f3   :  { %2757 = vmatprep.subr.mxu0 %v11156_v11  ;;  %13499 = vst [vmem:[#allocation84_spill] sm:$0xff] %v11174_v13  ;;  %v11200_v11 = vld [vmem:[%s11765_s1 + $0x460] sm:$0xff] }
 0x7f4   :  { %2758 = vmatpush2.msra.mxu0 %v11162_v8  ;;  %v11181_v8 = vld [vmem:[%s11765_s1 + $0x5f8] sm:$0xff]  ;;  %13502 = vst [vmem:[#allocation68_spill] sm:$0xff] %v11200_v11 }
 0x7f5   :  { %2759 = vmatprep.subr.mxu0 %v11168_v4  ;;  %v11187_v4 = vld [vmem:[%s11765_s1 + $0x478] sm:$0xff] }
 0x7f6   :  { %2760 = vmatpush2.msra.mxu0 %v11174_v13  ;;  %13500 = vst [vmem:[#allocation66_spill] sm:$0xff] %v11187_v4  ;;  %v11194_v13 = vld [vmem:[%s11765_s1 + $0x5e0] sm:$0xff] }
 0x7f7   :  { %2762 = vmatmul.mubr.f32.vlgmr.msra.gmra.mxu0 %v10762_v51  ;;  %4165 = vmatprep.subr.mxu0 %v11181_v8  ;;  %13501 = vst [vmem:[#allocation86_spill] sm:$0xff] %v11194_v13 }
 0x7f8   :  { %4166 = vmatpush3.msra.mxu0 %v11187_v4  ;;  %2902 = vmatprep.mubr.f32.mxu0 %v10760_v44  ;;  %v11206_v4 = vld [vmem:[%s11765_s1 + $0x5c8] sm:$0xff] }
 0x7f9   :  { %4167 = vmatprep.subr.mxu0 %v11194_v13  ;;  %13503 = vst [vmem:[#allocation88_spill] sm:$0xff] %v11206_v4  ;;  %v11212_v44 = vld [vmem:[%s11765_s1 + $0x448] sm:$0xff]  ;;  %v11218_v13 = vld [vmem:[%s11765_s1 + $0x5b0] sm:$0xff] }
 0x7fa   :  { %4168 = vmatpush3.msra.mxu0 %v11200_v11  ;;  %13504 = vst [vmem:[#allocation70_spill] sm:$0xff] %v11212_v44  ;;  %13505 = vst [vmem:[#allocation90_spill] sm:$0xff] %v11218_v13  ;;  %v11224_v11 = vld [vmem:[%s11765_s1 + $0x430] sm:$0xff] }
 0x7fb   :  { %4169 = vmatprep.subr.mxu0 %v11206_v4  ;;  %13506 = vst [vmem:[#allocation72_spill] sm:$0xff] %v11224_v11  ;;  %v11230_v4 = vld [vmem:[%s11765_s1 + $0x598] sm:$0xff] }
 0x7fc   :  { %4170 = vmatpush3.msra.mxu0 %v11212_v44  ;;  %13507 = vst [vmem:[#allocation92_spill] sm:$0xff] %v11230_v4  ;;  %v11236_v44 = vld [vmem:[%s11765_s1 + $0x418] sm:$0xff] }
 0x7fd   :  { %4171 = vmatprep.subr.mxu0 %v11218_v13  ;;  %13508 = vst [vmem:[#allocation74_spill] sm:$0xff] %v11236_v44  ;;  %v11242_v13 = vld [vmem:[%s11765_s1 + $0x580] sm:$0xff] }
 0x7fe   :  { %4172 = vmatpush3.msra.mxu0 %v11224_v11  ;;  %13509 = vst [vmem:[#allocation94_spill] sm:$0xff] %v11242_v13  ;;  %v11248_v11 = vld [vmem:[%s11765_s1 + $0x400] sm:$0xff] }
 0x7ff   :  { %4173 = vmatprep.subr.mxu0 %v11230_v4  ;;  %13510 = vst [vmem:[#allocation76_spill] sm:$0xff] %v11248_v11  ;;  %v11254_v4 = vld [vmem:[%s11765_s1 + $0x568] sm:$0xff] }
 0x800   :  { %4174 = vmatpush3.msra.mxu0 %v11236_v44  ;;  %13511 = vst [vmem:[#allocation96_spill] sm:$0xff] %v11254_v4  ;;  %v11260_v44 = vld [vmem:[%s11765_s1 + $0x3e8] sm:$0xff] }
 0x801   :  { %4175 = vmatprep.subr.mxu0 %v11242_v13  ;;  %13512 = vst [vmem:[#allocation98_spill] sm:$0xff] %v11260_v44  ;;  %v11266_v13 = vld [vmem:[%s11765_s1 + $0x550] sm:$0xff] }
 0x802   :  { %4176 = vmatpush3.msra.mxu0 %v11248_v11  ;;  %13513 = vst [vmem:[#allocation100_spill] sm:$0xff] %v11266_v13  ;;  %v11272_v11 = vld [vmem:[%s11765_s1 + $0x3d0] sm:$0xff] }
 0x803   :  { %4177 = vmatprep.subr.mxu0 %v11254_v4  ;;  %13514 = vst [vmem:[#allocation102_spill] sm:$0xff] %v11272_v11  ;;  %v11278_v4 = vld [vmem:[%s11765_s1 + $0x538] sm:$0xff] }
 0x804   :  { %4178 = vmatpush3.msra.mxu0 %v11260_v44  ;;  %13515 = vst [vmem:[#allocation104_spill] sm:$0xff] %v11278_v4  ;;  %v11284_v44 = vld [vmem:[%s11765_s1 + $0x3b8] sm:$0xff] }
 0x805   :  { %4179 = vmatprep.subr.mxu0 %v11266_v13  ;;  %13516 = vst [vmem:[#allocation106_spill] sm:$0xff] %v11284_v44  ;;  %v11290_v13 = vld [vmem:[%s11765_s1 + $0x520] sm:$0xff] }
 0x806   :  { %4180 = vmatpush3.msra.mxu0 %v11272_v11  ;;  %13517 = vst [vmem:[#allocation108_spill] sm:$0xff] %v11290_v13  ;;  %v11296_v11 = vld [vmem:[%s11765_s1 + $0x3a0] sm:$0xff] }
 0x807   :  { %4181 = vmatprep.subr.mxu0 %v11278_v4  ;;  %13518 = vst [vmem:[#allocation124_spill] sm:$0xff] %v11296_v11  ;;  %v11302_v4 = vld [vmem:[%s11765_s1 + $0x508] sm:$0xff] }
 0x808   :  { %4182 = vmatpush3.msra.mxu0 %v11284_v44  ;;  %13519 = vst [vmem:[#allocation132_spill] sm:$0xff] %v11302_v4  ;;  %v11308_v44 = vld [vmem:[%s11765_s1 + $0x388] sm:$0xff] }
 0x809   :  { %4183 = vmatprep.subr.mxu0 %v11290_v13  ;;  %13520 = vst [vmem:[#allocation136_spill] sm:$0xff] %v11308_v44  ;;  %v11314_v13 = vld [vmem:[%s11765_s1 + $0x4f0] sm:$0xff] }
 0x80a   :  { %4184 = vmatpush3.msra.mxu0 %v11296_v11  ;;  %13521 = vst [vmem:[#allocation137_spill] sm:$0xff] %v11314_v13  ;;  %v11320_v11 = vld [vmem:[%s11765_s1 + $0x370] sm:$0xff] }
 0x80b   :  { %4185 = vmatprep.subr.mxu0 %v11302_v4  ;;  %13522 = vst [vmem:[#allocation19_spill] sm:$0xff] %v11320_v11  ;;  %v11326_v4 = vld [vmem:[%s11765_s1 + $0x4d8] sm:$0xff] }
 0x80c   :  { %4186 = vmatpush3.msra.mxu0 %v11308_v44  ;;  %13523 = vst [vmem:[#allocation22_spill] sm:$0xff] %v11326_v4  ;;  %v11332_v44 = vld [vmem:[%s11765_s1 + $0x358] sm:$0xff] }
 0x80d   :  { %4187 = vmatprep.subr.mxu0 %v11314_v13  ;;  %13524 = vst [vmem:[#allocation21_spill] sm:$0xff] %v11332_v44  ;;  %v11338_v13 = vld [vmem:[%s11765_s1 + $0x4c0] sm:$0xff] }
 0x80e   :  { %4188 = vmatpush3.msra.mxu0 %v11320_v11  ;;  %13525 = vst [vmem:[#allocation2_spill] sm:$0xff] %v11338_v13  ;;  %v11344_v11 = vld [vmem:[%s11765_s1 + $0x340] sm:$0xff] }
 0x80f   :  { %4189 = vmatprep.subr.mxu0 %v11326_v4  ;;  %13526 = vst [vmem:[#allocation4_spill] sm:$0xff] %v11344_v11  ;;  %v11350_v4 = vld [vmem:[%s11765_s1 + $0x4a8] sm:$0xff] }
 0x810   :  { %4190 = vmatpush3.msra.mxu0 %v11332_v44  ;;  %v11356_v44 = vld [vmem:[%s11765_s1 + $0x328] sm:$0xff] }
 0x811   :  { %4191 = vmatprep.subr.mxu0 %v11338_v13  ;;  %v11362_v13 = vld [vmem:[%s11765_s1 + $0x490] sm:$0xff] }
 0x812   :  { %4192 = vmatpush3.msra.mxu0 %v11344_v11  ;;  %v11368_v11 = vld [vmem:[%s11765_s1 + $0x310] sm:$0xff] }
 0x813   :  { %4193 = vmatprep.subr.mxu0 %v11350_v4 }
 0x814   :  { %4194 = vmatpush3.msra.mxu0 %v11356_v44 }
 0x815   :  { %4195 = vmatprep.subr.mxu0 %v11362_v13 }
 0x816   :  { %4196 = vmatpush3.msra.mxu0 %v11368_v11 }
 0x817   :  { %2903 = vmatmul.mubr.f32.vlgmr.msra.gmra.mxu0 %v10762_v51  ;;  %2982 = vmatprep.subr.mxu0 %v10174_v28  ;;  %v13527_v28 = vld [vmem:[#allocation15_spill] sm:$0xff] }
 0x818   :  { %2983 = vmatpush1.msra.mxu0 %v10180_v20  ;;  %v13528_v20 = vld [vmem:[#allocation18_spill] sm:$0xff]  ;;  %v13556_v51 = vld [vmem:[#allocation39_spill] sm:$0xff] }
 0x819   :  { %2984 = vmatprep.subr.mxu0 %v10186_v35  ;;  %v13529_v35 = vld [vmem:[#allocation17_spill] sm:$0xff] }
 0x81a   :  { %2985 = vmatpush1.msra.mxu0 %v10192_v33  ;;  %v13530_v33 = vld [vmem:[#allocation20_spill] sm:$0xff] }
 0x81b   :  { %2986 = vmatprep.subr.mxu0 %v10198_v3  ;;  %v13531_v3 = vld [vmem:[#allocation138_spill] sm:$0xff] }
 0x81c   :  { %2987 = vmatpush1.msra.mxu0 %v10204_v38  ;;  %v13532_v38 = vld [vmem:[#allocation139_spill] sm:$0xff] }
 0x81d   :  { %2988 = vmatprep.subr.mxu0 %v10210_v39  ;;  %v13533_v39 = vld [vmem:[#allocation140_spill] sm:$0xff] }
 0x81e   :  { %2989 = vmatpush1.msra.mxu0 %v10216_v41  ;;  %v13534_v41 = vld [vmem:[#allocation141_spill] sm:$0xff] }
 0x81f   :  { %2990 = vmatprep.subr.mxu0 %v10222_v32  ;;  %v13535_v32 = vld [vmem:[#allocation142_spill] sm:$0xff] }
 0x820   :  { %2991 = vmatpush1.msra.mxu0 %v10228_v37  ;;  %v13536_v37 = vld [vmem:[#allocation143_spill] sm:$0xff] }
 0x821   :  { %2992 = vmatprep.subr.mxu0 %v10234_v36  ;;  %v13537_v36 = vld [vmem:[#allocation144_spill] sm:$0xff] }
 0x822   :  { %2993 = vmatpush1.msra.mxu0 %v10240_v50  ;;  %v13538_v50 = vld [vmem:[#allocation145_spill] sm:$0xff] }
 0x823   :  { %2994 = vmatprep.subr.mxu0 %v10246_v52  ;;  %v13539_v52 = vld [vmem:[#allocation24_spill] sm:$0xff] }
 0x824   :  { %2995 = vmatpush1.msra.mxu0 %v10252_v48  ;;  %v13540_v48 = vld [vmem:[#allocation23_spill] sm:$0xff] }
 0x825   :  { %2996 = vmatprep.subr.mxu0 %v10258_v17  ;;  %v13541_v17 = vld [vmem:[#allocation26_spill] sm:$0xff] }
 0x826   :  { %2997 = vmatpush1.msra.mxu0 %v10264_v34  ;;  %v13542_v34 = vld [vmem:[#allocation25_spill] sm:$0xff] }
 0x827   :  { %2998 = vmatprep.subr.mxu0 %v10270_v46  ;;  %v13543_v46 = vld [vmem:[#allocation28_spill] sm:$0xff] }
 0x828   :  { %2999 = vmatpush1.msra.mxu0 %v10276_v7  ;;  %v13544_v7 = vld [vmem:[#allocation27_spill] sm:$0xff] }
 0x829   :  { %3000 = vmatprep.subr.mxu0 %v10282_v21  ;;  %v13545_v21 = vld [vmem:[#allocation30_spill] sm:$0xff] }
 0x82a   :  { %3001 = vmatpush1.msra.mxu0 %v10288_v43  ;;  %v13546_v43 = vld [vmem:[#allocation29_spill] sm:$0xff] }
 0x82b   :  { %3002 = vmatprep.subr.mxu0 %v10294_v19  ;;  %v13547_v19 = vld [vmem:[#allocation32_spill] sm:$0xff] }
 0x82c   :  { %3003 = vmatpush1.msra.mxu0 %v10300_v2  ;;  %v13548_v2 = vld [vmem:[#allocation31_spill] sm:$0xff] }
 0x82d   :  { %3004 = vmatprep.subr.mxu0 %v10306_v23  ;;  %v13549_v23 = vld [vmem:[#allocation34_spill] sm:$0xff] }
 0x82e   :  { %3005 = vmatpush1.msra.mxu0 %v10312_v18  ;;  %v13550_v18 = vld [vmem:[#allocation33_spill] sm:$0xff] }
 0x82f   :  { %3006 = vmatprep.subr.mxu0 %v10318_v31  ;;  %v13551_v31 = vld [vmem:[#allocation36_spill] sm:$0xff] }
 0x830   :  { %3007 = vmatpush1.msra.mxu0 %v10324_v29  ;;  %v13552_v29 = vld [vmem:[#allocation35_spill] sm:$0xff] }
 0x831   :  { %3008 = vmatprep.subr.mxu0 %v10330_v57  ;;  %v13553_v57 = vld [vmem:[#allocation38_spill] sm:$0xff] }
 0x832   :  { %3009 = vmatpush1.msra.mxu0 %v10336_v24  ;;  %v13554_v24 = vld [vmem:[#allocation37_spill] sm:$0xff] }
 0x833   :  { %3010 = vmatprep.subr.mxu0 %v10342_v61  ;;  %v13555_v61 = vld [vmem:[#allocation40_spill] sm:$0xff] }
 0x834   :  { %3011 = vmatpush1.msra.mxu0 %v13527_v28  ;;  %v13557_v28 = vld [vmem:[#allocation42_spill] sm:$0xff] }
 0x835   :  { %3012 = vmatprep.subr.mxu0 %v13528_v20  ;;  %v13558_v20 = vld [vmem:[#allocation41_spill] sm:$0xff] }
 0x836   :  { %3013 = vmatpush1.msra.mxu0 %v13529_v35  ;;  %v13559_v35 = vld [vmem:[#allocation44_spill] sm:$0xff] }
 0x837   :  { %3014 = vmatprep.subr.mxu0 %v13530_v33  ;;  %v13560_v33 = vld [vmem:[#allocation43_spill] sm:$0xff] }
 0x838   :  { %3015 = vmatpush2.msra.mxu0 %v13531_v3  ;;  %v13561_v3 = vld [vmem:[#allocation46_spill] sm:$0xff] }
 0x839   :  { %3016 = vmatprep.subr.mxu0 %v13532_v38  ;;  %v13562_v38 = vld [vmem:[#allocation45_spill] sm:$0xff] }
 0x83a   :  { %3017 = vmatpush2.msra.mxu0 %v13533_v39 }
 0x83b   :  { %3018 = vmatprep.subr.mxu0 %v13534_v41  ;;  %v11440_v41 = vld [vmem:[%s11769_s4] ss:$0 sm:$0xff] }
 0x83c   :  { %3019 = vmatpush2.msra.mxu0 %v13535_v32 }
 0x83d   :  { %3020 = vmatprep.subr.mxu0 %v13536_v37 }
 0x83e   :  { %3021 = vmatpush2.msra.mxu0 %v13537_v36 }
 0x83f   :  { %3022 = vmatprep.subr.mxu0 %v13538_v50 }
 0x840   :  { %3023 = vmatpush2.msra.mxu0 %v13539_v52 }
 0x841   :  { %3024 = vmatprep.subr.mxu0 %v13540_v48 }
 0x842   :  { %3025 = vmatpush2.msra.mxu0 %v13541_v17 }
 0x843   :  { %3026 = vmatprep.subr.mxu0 %v13542_v34 }
 0x844   :  { %3027 = vmatpush2.msra.mxu0 %v13543_v46 }
 0x845   :  { %3028 = vmatprep.subr.mxu0 %v13544_v7 }
 0x846   :  { %3029 = vmatpush2.msra.mxu0 %v13545_v21 }
 0x847   :  { %3030 = vmatprep.subr.mxu0 %v13546_v43 }
 0x848   :  { %3031 = vmatpush2.msra.mxu0 %v13547_v19 }
 0x849   :  { %3032 = vmatprep.subr.mxu0 %v13548_v2  ;;  %v13563_v2 = vld [vmem:[#allocation48_spill] sm:$0xff] }
 0x84a   :  { %3033 = vmatpush2.msra.mxu0 %v13549_v23  ;;  %v13564_v23 = vld [vmem:[#allocation47_spill] sm:$0xff] }
 0x84b   :  { %3034 = vmatprep.subr.mxu0 %v13550_v18  ;;  %v13565_v18 = vld [vmem:[#allocation50_spill] sm:$0xff] }
 0x84c   :  { %3035 = vmatpush2.msra.mxu0 %v13551_v31 }
 0x84d   :  { %3036 = vmatprep.subr.mxu0 %v13552_v29  ;;  %v13566_v29 = vld [vmem:[#allocation49_spill] sm:$0xff] }
 0x84e   :  { %3037 = vmatpush2.msra.mxu0 %v13553_v57  ;;  %v13567_v57 = vld [vmem:[#allocation52_spill] sm:$0xff] }
 0x84f   :  { %3038 = vmatprep.subr.mxu0 %v13554_v24  ;;  %v13568_v24 = vld [vmem:[#allocation51_spill] sm:$0xff] }
 0x850   :  { %3039 = vmatpush2.msra.mxu0 %v13555_v61 }
 0x851   :  { %3040 = vmatprep.subr.mxu0 %v13556_v51  ;;  %v13569_v51 = vld [vmem:[#allocation54_spill] sm:$0xff] }
 0x852   :  { %3041 = vmatpush2.msra.mxu0 %v13557_v28  ;;  %v13570_v28 = vld [vmem:[#allocation53_spill] sm:$0xff] }
 0x853   :  { %3042 = vmatprep.subr.mxu0 %v13558_v20 }
 0x854   :  { %3043 = vmatpush2.msra.mxu0 %v13559_v35  ;;  %v13571_v35 = vld [vmem:[#allocation56_spill] sm:$0xff] }
 0x855   :  { %3044 = vmatprep.subr.mxu0 %v13560_v33 }
 0x856   :  { %3045 = vmatpush2.msra.mxu0 %v13561_v3  ;;  %v2692_v36 = vpop.f32.mrf.mxu1 }
 0x857   :  { %4217 = vmatprep.subr.mxu0 %v13562_v38  ;;  %v2693_v52 = vadd.f32 %v2692_v36, %v12888_v14  ;;  %v13573_v36 = vld [vmem:[#allocation58_spill] sm:$0xff] }
 0x858   :  { %v2694_v50 = vpop.f32.mrf.mxu1 }
 0x859   :  { %v2695_v17 = vadd.f32 %v2694_v50, %v7411_v1  ;;  %v13574_v50 = vld [vmem:[#allocation57_spill] sm:$0xff] }
 0x876   :  { %v4162_v19 = vpop.f32.mrf.mxu1 }
 0x877   :  { %v2620_v39 = vpop.f32.mrf.mxu0 }
 0x878   :  { %v2621_v32 = vadd.f32 %v11440_v41, %v2620_v39  ;;  %v4163_v31 = vpop.f32.mrf.mxu1 }
 0x879   :  { %v4565_v37 = vpop.f32.mrf.mxu0  ;;  %v4164_v61 = vadd.f32 %v4163_v31, %v4162_v19  ;;  %v13582_v19 = vld [vmem:[#allocation67_spill] sm:$0xff]  ;;  %v13583_v31 = vld [vmem:[#allocation69_spill] sm:$0xff] }
 0x87a   :  { %2624 = vst [vmem:[%s11770_s5 + $0x8] sm:$0x3] %v2621_v32  ;;  %v13572_v37 = vld [vmem:[#allocation55_spill] sm:$0xff] }
 0x87b   :  { %v2835_v3 = vadd.f32 %v4164_v61, %v7737_v0 }
 0x8b7   :  { %v2763_v48 = vpop.f32.mrf.mxu0 }
 0x8b8   :  { %v2764_v34 = vadd.f32 %v2763_v48, %v2693_v52  ;;  %v13575_v52 = vld [vmem:[#allocation60_spill] sm:$0xff]  ;;  %v13576_v48 = vld [vmem:[#allocation59_spill] sm:$0xff] }
 0x8b9   :  { %v2765_v46 = vpop.f32.mrf.mxu0 }
 0x8ba   :  { %v2766_v7 = vadd.f32 %v2765_v46, %v2695_v17  ;;  %v13577_v17 = vld [vmem:[#allocation62_spill] sm:$0xff]  ;;  %v13579_v46 = vld [vmem:[#allocation64_spill] sm:$0xff] }
 0x8bc   :  { %4709 = vtanh.f32 %v2766_v7  ;;  %v13580_v7 = vld [vmem:[#allocation63_spill] sm:$0xff] }
 0x8bd   :  { %4711 = vtanh.f32 %v2764_v34  ;;  %v13578_v34 = vld [vmem:[#allocation61_spill] sm:$0xff] }
 0x8c9   :  { %v4710_v21 = vpop.eup %4709 }
 0x8ca   :  { %v4712_v43 = vpop.eup %4711  ;;  %3046 = vmatprep.mubr.f32.mxu0 %v4710_v21 }
 0x8cb   :  { %3047 = vmatmul.mubr.f32.vlgmr.msra.gmra.mxu0 %v4712_v43 }
 0x8cc   :  { %4218 = vmatpush3.msra.mxu0 %v10573_v55  ;;  %3188 = vmatprep.mubr.f32.mxu0 %v4710_v21  ;;  %v13581_v21 = vld [vmem:[#allocation65_spill] sm:$0xff] }
 0x8cd   :  { %4219 = vmatprep.subr.mxu0 %v10579_v27 }
 0x8ce   :  { %4220 = vmatpush3.msra.mxu0 %v10585_v42 }
 0x8cf   :  { %4221 = vmatprep.subr.mxu0 %v10591_v40 }
 0x8d0   :  { %4222 = vmatpush3.msra.mxu0 %v13563_v2 }
 0x8d1   :  { %4223 = vmatprep.subr.mxu0 %v13564_v23 }
 0x8d2   :  { %4224 = vmatpush3.msra.mxu0 %v13565_v18 }
 0x8d3   :  { %4225 = vmatprep.subr.mxu0 %v13566_v29 }
 0x8d4   :  { %4226 = vmatpush3.msra.mxu0 %v13567_v57 }
 0x8d5   :  { %4227 = vmatprep.subr.mxu0 %v13568_v24 }
 0x8d6   :  { %4228 = vmatpush3.msra.mxu0 %v13569_v51 }
 0x8d7   :  { %4229 = vmatprep.subr.mxu0 %v13570_v28  ;;  %v4197_v20 = vpop.f32.mrf.mxu0 }
 0x8d8   :  { %4230 = vmatpush3.msra.mxu0 %v13571_v35 }
 0x8d9   :  { %4231 = vmatprep.subr.mxu0 %v10651_v10  ;;  %v4198_v33 = vpop.f32.mrf.mxu0 }
 0x8da   :  { %v4199_v39 = vadd.f32 %v4198_v33, %v4197_v20  ;;  %4232 = vmatpush3.msra.mxu0 %v10658_v22  ;;  %v5334_v20 = vld [vmem:[%s11765_s1 + $0x468] sm:$0xff]  ;;  %v5335_v33 = vld [vmem:[%s11765_s1 + $0x458] sm:$0xff] }
 0x8db   :  { %4233 = vmatprep.subr.mxu0 %v10664_v12 }
 0x8dc   :  { %v2905_v32 = vadd.f32 %v4199_v39, %v2835_v3  ;;  %4234 = vmatpush3.msra.mxu0 %v10670_v16  ;;  %v5337_v3 = vld [vmem:[%s11765_s1 + $0x440] sm:$0xff]  ;;  %v5338_v39 = vld [vmem:[%s11765_s1 + $0x438] sm:$0xff] }
 0x8dd   :  { %4235 = vmatprep.subr.mxu0 %v10676_v45 }
 0x8de   :  { %4713 = vtanh.f32 %v2905_v32  ;;  %4236 = vmatpush3.msra.mxu0 %v13572_v37  ;;  %v5339_v32 = vld [vmem:[%s11765_s1 + $0x428] sm:$0xff] }
 0x8df   :  { %4237 = vmatprep.subr.mxu0 %v13573_v36 }
 0x8e0   :  { %4238 = vmatpush3.msra.mxu0 %v13574_v50 }
 0x8e1   :  { %4239 = vmatprep.subr.mxu0 %v13575_v52 }
 0x8e2   :  { %4240 = vmatpush3.msra.mxu0 %v13576_v48 }
 0x8e3   :  { %4241 = vmatprep.subr.mxu0 %v13577_v17 }
 0x8e4   :  { %4242 = vmatpush3.msra.mxu0 %v13578_v34 }
 0x8e5   :  { %4243 = vmatprep.subr.mxu0 %v13579_v46 }
 0x8e6   :  { %4244 = vmatpush3.msra.mxu0 %v13580_v7 }
 0x8e7   :  { %4245 = vmatprep.subr.mxu0 %v13581_v21 }
 0x8e8   :  { %4246 = vmatpush3.msra.mxu0 %v13582_v19 }
 0x8e9   :  { %4247 = vmatprep.subr.mxu0 %v13583_v31 }
 0x8ea   :  { %4248 = vmatpush3.msra.mxu0 %v10754_v25 }
 0x8eb   :  { %v11480_v61 = vpop.eup %4713  ;;  %3189 = vmatmul.mubr.f32.vlgmr.msra.gmra.mxu0 %v4712_v43  ;;  %4601 = vmatprep.subr.mxu0 %v12563_v62  ;;  %v5336_v43 = vld [vmem:[%s11765_s1 + $0x450] sm:$0xff] }
 0x8ec   :  { %4599 = vmatmul.mubr.f32.vlgmr.msra.gmra.mxu1 %v11480_v61  ;;  %4602 = vmatpush3.msra.mxu0 %v10770_v6 }
 0x8ed   :  { %3054 = vmatpush1.msra.mxu1 %v5334_v20  ;;  %3117 = vmatprep.mubr.f32.mxu1 %v12563_v62  ;;  %v5340_v20 = vld [vmem:[%s11765_s1 + $0x420] sm:$0xff] }
 0x8ee   :  { %3055 = vmatprep.subr.mxu1 %v5335_v33  ;;  %4603 = vmatprep.subr.mxu0 %v12563_v62  ;;  %v5341_v33 = vld [vmem:[%s11765_s1 + $0x410] sm:$0xff] }
 0x8ef   :  { %3056 = vmatpush1.msra.mxu1 %v5336_v43  ;;  %4604 = vmatpush3.msra.mxu0 %v10781_v47  ;;  %v5342_v43 = vld [vmem:[%s11765_s1 + $0x408] sm:$0xff] }
 0x8f0   :  { %3057 = vmatprep.subr.mxu1 %v5337_v3  ;;  %4605 = vmatprep.subr.mxu0 %v12563_v62  ;;  %v5343_v3 = vld [vmem:[%s11765_s1 + $0x3f8] sm:$0xff] }
 0x8f1   :  { %3058 = vmatpush1.msra.mxu1 %v5338_v39  ;;  %4606 = vmatpush3.msra.mxu0 %v10790_v54  ;;  %v5344_v39 = vld [vmem:[%s11765_s1 + $0x3f0] sm:$0xff] }
 0x8f2   :  { %3059 = vmatprep.subr.mxu1 %v5339_v32  ;;  %4607 = vmatprep.subr.mxu0 %v12563_v62  ;;  %v5345_v32 = vld [vmem:[%s11765_s1 + $0x3e0] sm:$0xff] }
 0x8f3   :  { %3060 = vmatpush1.msra.mxu1 %v5340_v20  ;;  %4608 = vmatpush3.msra.mxu0 %v10799_v59  ;;  %v5346_v20 = vld [vmem:[%s11765_s1 + $0x3d8] sm:$0xff] }
 0x8f4   :  { %3061 = vmatprep.subr.mxu1 %v5341_v33  ;;  %4609 = vmatprep.subr.mxu0 %v12563_v62  ;;  %v5347_v33 = vld [vmem:[%s11765_s1 + $0x3c8] sm:$0xff] }
 0x8f5   :  { %3062 = vmatpush1.msra.mxu1 %v5342_v43  ;;  %4610 = vmatpush3.msra.mxu0 %v10808_v15  ;;  %v5348_v43 = vld [vmem:[%s11765_s1 + $0x3c0] sm:$0xff] }
 0x8f6   :  { %3063 = vmatprep.subr.mxu1 %v5343_v3  ;;  %4611 = vmatprep.subr.mxu0 %v12563_v62  ;;  %v5349_v3 = vld [vmem:[%s11765_s1 + $0x3b0] sm:$0xff] }
 0x8f7   :  { %3064 = vmatpush1.msra.mxu1 %v5344_v39  ;;  %4612 = vmatpush3.msra.mxu0 %v10817_v26  ;;  %v5350_v39 = vld [vmem:[%s11765_s1 + $0x3a8] sm:$0xff] }
 0x8f8   :  { %3065 = vmatprep.subr.mxu1 %v5345_v32  ;;  %4613 = vmatprep.subr.mxu0 %v12563_v62  ;;  %v13584_v32 = vld [vmem:[#allocation73_spill] sm:$0xff] }
 0x8f9   :  { %3066 = vmatpush1.msra.mxu1 %v5346_v20  ;;  %4614 = vmatpush3.msra.mxu0 %v10826_v60  ;;  %v13585_v20 = vld [vmem:[#allocation75_spill] sm:$0xff] }
 0x8fa   :  { %3067 = vmatprep.subr.mxu1 %v5347_v33  ;;  %4615 = vmatprep.subr.mxu0 %v12563_v62  ;;  %v13587_v33 = vld [vmem:[#allocation110_spill] sm:$0xff] }
 0x8fb   :  { %3068 = vmatpush1.msra.mxu1 %v5348_v43  ;;  %4616 = vmatpush3.msra.mxu0 %v10835_v5  ;;  %v13590_v43 = vld [vmem:[#allocation116_spill] sm:$0xff] }
 0x8fc   :  { %3069 = vmatprep.subr.mxu1 %v5349_v3  ;;  %4617 = vmatprep.subr.mxu0 %v12563_v62  ;;  %v13592_v3 = vld [vmem:[#allocation120_spill] sm:$0xff] }
 0x8fd   :  { %3070 = vmatpush1.msra.mxu1 %v5350_v39  ;;  %4618 = vmatpush3.msra.mxu0 %v10844_v63  ;;  %v13593_v39 = vld [vmem:[#allocation122_spill] sm:$0xff] }
 0x8fe   :  { %3071 = vmatprep.subr.mxu1 %v10850_v56  ;;  %4619 = vmatprep.subr.mxu0 %v12563_v62  ;;  %v13586_v56 = vld [vmem:[#allocation78_spill] sm:$0xff] }
 0x8ff   :  { %3072 = vmatpush1.msra.mxu1 %v10857_v30  ;;  %4620 = vmatpush3.msra.mxu0 %v10863_v53  ;;  %v13588_v30 = vld [vmem:[#allocation112_spill] sm:$0xff] }
 0x900   :  { %3073 = vmatprep.subr.mxu1 %v10869_v58  ;;  %4621 = vmatprep.subr.mxu0 %v12563_v62  ;;  %v13589_v58 = vld [vmem:[#allocation114_spill] sm:$0xff] }
 0x901   :  { %3074 = vmatpush1.msra.mxu1 %v10876_v49  ;;  %4622 = vmatpush3.msra.mxu0 %v10882_v9  ;;  %v13591_v49 = vld [vmem:[#allocation118_spill] sm:$0xff]  ;;  %v13611_v9 = vld [vmem:[#allocation109_spill] sm:$0xff] }
 0x902   :  { %3075 = vmatprep.subr.mxu1 %v13584_v32  ;;  %4623 = vmatprep.subr.mxu0 %v12563_v62  ;;  %v13594_v32 = vld [vmem:[#allocation126_spill] sm:$0xff] }
 0x903   :  { %3076 = vmatpush1.msra.mxu1 %v13585_v20  ;;  %4624 = vmatpush3.msra.mxu0 %v13586_v56  ;;  %v13595_v20 = vld [vmem:[#allocation128_spill] sm:$0xff]  ;;  %v13609_v56 = vld [vmem:[#allocation107_spill] sm:$0xff] }
 0x904   :  { %3077 = vmatprep.subr.mxu1 %v13587_v33  ;;  %4625 = vmatprep.subr.mxu0 %v12563_v62  ;;  %v13596_v33 = vld [vmem:[#allocation130_spill] sm:$0xff] }
 0x905   :  { %3078 = vmatpush1.msra.mxu1 %v13588_v30  ;;  %4626 = vmatpush3.msra.mxu0 %v13589_v58  ;;  %v13597_v30 = vld [vmem:[#allocation77_spill] sm:$0xff] }
 0x906   :  { %3079 = vmatprep.subr.mxu1 %v13590_v43  ;;  %4627 = vmatprep.subr.mxu0 %v12563_v62  ;;  %v13598_v43 = vld [vmem:[#allocation79_spill] sm:$0xff]  ;;  %v13599_v58 = vld [vmem:[#allocation81_spill] sm:$0xff] }
 0x907   :  { %3080 = vmatpush1.msra.mxu1 %v13591_v49  ;;  %4628 = vmatpush3.msra.mxu0 %v13592_v3  ;;  %v13600_v49 = vld [vmem:[#allocation83_spill] sm:$0xff]  ;;  %v13608_v3 = vld [vmem:[#allocation105_spill] sm:$0xff] }
 0x908   :  { %3081 = vmatprep.subr.mxu1 %v13593_v39  ;;  %4629 = vmatprep.subr.mxu0 %v12563_v62  ;;  %v13601_v39 = vld [vmem:[#allocation85_spill] sm:$0xff] }
 0x909   :  { %3082 = vmatpush1.msra.mxu1 %v13594_v32  ;;  %4630 = vmatpush3.msra.mxu0 %v13595_v20  ;;  %v13602_v32 = vld [vmem:[#allocation97_spill] sm:$0xff]  ;;  %v13604_v20 = vld [vmem:[#allocation87_spill] sm:$0xff] }
 0x90a   :  { %3083 = vmatprep.subr.mxu1 %v13596_v33  ;;  %4631 = vmatprep.subr.mxu0 %v12563_v62  ;;  %v13603_v33 = vld [vmem:[#allocation99_spill] sm:$0xff] }
 0x90b   :  { %3084 = vmatpush1.msra.mxu1 %v13597_v30  ;;  %4632 = vmatpush3.msra.mxu0 %v13598_v43  ;;  %v13605_v30 = vld [vmem:[#allocation101_spill] sm:$0xff]  ;;  %v13606_v43 = vld [vmem:[#allocation103_spill] sm:$0xff] }
 0x90c   :  { %3085 = vmatprep.subr.mxu1 %v13599_v58  ;;  %4633 = vmatprep.mubr.msk.f32.mxu0 %vm5352_vm0, %v12563_v62  ;;  %v13607_v58 = vld [vmem:[#allocation89_spill] sm:$0xff] }
 0x90d   :  { %3086 = vmatpush2.msra.mxu1 %v13600_v49  ;;  %4339 = vmatprep.subr.mxu0 %v11181_v8  ;;  %v13610_v49 = vld [vmem:[#allocation91_spill] sm:$0xff] }
 0x90e   :  { %3087 = vmatprep.subr.mxu1 %v13601_v39  ;;  %v13612_v39 = vld [vmem:[#allocation111_spill] sm:$0xff] }
 0x90f   :  { %3088 = vmatpush2.msra.mxu1 %v13602_v32  ;;  %v13613_v32 = vld [vmem:[#allocation93_spill] sm:$0xff] }
 0x910   :  { %3089 = vmatprep.subr.mxu1 %v13603_v33  ;;  %v13614_v33 = vld [vmem:[#allocation113_spill] sm:$0xff] }
 0x911   :  { %3090 = vmatpush2.msra.mxu1 %v13604_v20  ;;  %v13615_v20 = vld [vmem:[#allocation115_spill] sm:$0xff] }
 0x912   :  { %3091 = vmatprep.subr.mxu1 %v13605_v30  ;;  %v13616_v30 = vld [vmem:[#allocation95_spill] sm:$0xff] }
 0x913   :  { %3092 = vmatpush2.msra.mxu1 %v13606_v43  ;;  %v13617_v43 = vld [vmem:[#allocation117_spill] sm:$0xff] }
 0x914   :  { %3093 = vmatprep.subr.mxu1 %v13607_v58  ;;  %v13618_v58 = vld [vmem:[#allocation119_spill] sm:$0xff] }
 0x915   :  { %3094 = vmatpush2.msra.mxu1 %v13608_v3  ;;  %v13619_v3 = vld [vmem:[#allocation121_spill] sm:$0xff] }
 0x916   :  { %3095 = vmatprep.subr.mxu1 %v13609_v56  ;;  %v13620_v56 = vld [vmem:[#allocation123_spill] sm:$0xff] }
 0x917   :  { %3096 = vmatpush2.msra.mxu1 %v13610_v49  ;;  %v13621_v49 = vld [vmem:[#allocation125_spill] sm:$0xff] }
 0x918   :  { %3097 = vmatprep.subr.mxu1 %v13611_v9  ;;  %v13622_v9 = vld [vmem:[#allocation127_spill] sm:$0xff] }
 0x919   :  { %3098 = vmatpush2.msra.mxu1 %v13612_v39  ;;  %v13623_v39 = vld [vmem:[#allocation129_spill] sm:$0xff] }
 0x91a   :  { %3099 = vmatprep.subr.mxu1 %v13613_v32  ;;  %v13624_v32 = vld [vmem:[#allocation131_spill] sm:$0xff] }
 0x91b   :  { %3100 = vmatpush2.msra.mxu1 %v13614_v33  ;;  %v13625_v33 = vld [vmem:[#allocation133_spill] sm:$0xff] }
 0x91c   :  { %3101 = vmatprep.subr.mxu1 %v13615_v20  ;;  %v13626_v20 = vld [vmem:[#allocation134_spill] sm:$0xff] }
 0x91d   :  { %3102 = vmatpush2.msra.mxu1 %v13616_v30  ;;  %v13627_v30 = vld [vmem:[#allocation135_spill] sm:$0xff] }
 0x91e   :  { %3103 = vmatprep.subr.mxu1 %v13617_v43  ;;  %v13628_v43 = vld [vmem:[#allocation80_spill] sm:$0xff] }
 0x91f   :  { %3104 = vmatpush2.msra.mxu1 %v13618_v58  ;;  %v13629_v58 = vld [vmem:[#allocation82_spill] sm:$0xff] }
 0x920   :  { %3105 = vmatprep.subr.mxu1 %v13619_v3  ;;  %v13630_v3 = vld [vmem:[#allocation84_spill] sm:$0xff] }
 0x921   :  { %3106 = vmatpush2.msra.mxu1 %v13620_v56  ;;  %v13631_v56 = vld [vmem:[#allocation66_spill] sm:$0xff] }
 0x922   :  { %3107 = vmatprep.subr.mxu1 %v13621_v49  ;;  %v13632_v49 = vld [vmem:[#allocation86_spill] sm:$0xff] }
 0x923   :  { %3108 = vmatpush2.msra.mxu1 %v13622_v9  ;;  %v13633_v9 = vld [vmem:[#allocation68_spill] sm:$0xff] }
 0x924   :  { %3109 = vmatprep.subr.mxu1 %v13623_v39  ;;  %v13634_v39 = vld [vmem:[#allocation88_spill] sm:$0xff] }
 0x925   :  { %3110 = vmatpush2.msra.mxu1 %v13624_v32  ;;  %v13635_v32 = vld [vmem:[#allocation70_spill] sm:$0xff] }
 0x926   :  { %3111 = vmatprep.subr.mxu1 %v13625_v33  ;;  %v13636_v33 = vld [vmem:[#allocation90_spill] sm:$0xff] }
 0x927   :  { %3112 = vmatpush2.msra.mxu1 %v13626_v20  ;;  %v13637_v20 = vld [vmem:[#allocation72_spill] sm:$0xff] }
 0x928   :  { %3113 = vmatprep.subr.mxu1 %v13627_v30  ;;  %v13638_v30 = vld [vmem:[#allocation92_spill] sm:$0xff] }
 0x929   :  { %3114 = vmatpush2.msra.mxu1 %v13628_v43  ;;  %v13639_v43 = vld [vmem:[#allocation74_spill] sm:$0xff] }
 0x92a   :  { %3115 = vmatprep.subr.mxu1 %v13629_v58  ;;  %v13641_v58 = vld [vmem:[#allocation76_spill] sm:$0xff] }
 0x92b   :  { %3116 = vmatpush2.msra.mxu1 %v13630_v3  ;;  %v13642_v3 = vld [vmem:[#allocation96_spill] sm:$0xff] }
 0x92c   :  { %3118 = vmatmul.mubr.f32.vlgmr.msra.gmra.mxu1 %v11480_v61  ;;  %4252 = vmatprep.subr.mxu1 %v11181_v8  ;;  %v13640_v8 = vld [vmem:[#allocation94_spill] sm:$0xff] }
 0x92d   :  { %4253 = vmatpush3.msra.mxu1 %v13631_v56  ;;  %3258 = vmatprep.mubr.f32.mxu1 %v12563_v62 }
 0x92e   :  { %4254 = vmatprep.subr.mxu1 %v13632_v49  ;;  %v13643_v49 = vld [vmem:[#allocation98_spill] sm:$0xff] }
 0x92f   :  { %4255 = vmatpush3.msra.mxu1 %v13633_v9  ;;  %v13644_v9 = vld [vmem:[#allocation100_spill] sm:$0xff] }
 0x930   :  { %4256 = vmatprep.subr.mxu1 %v13634_v39  ;;  %v13645_v39 = vld [vmem:[#allocation102_spill] sm:$0xff] }
 0x931   :  { %4257 = vmatpush3.msra.mxu1 %v13635_v32  ;;  %v13646_v32 = vld [vmem:[#allocation104_spill] sm:$0xff] }
 0x932   :  { %4258 = vmatprep.subr.mxu1 %v13636_v33  ;;  %v13647_v33 = vld [vmem:[#allocation106_spill] sm:$0xff] }
 0x933   :  { %4259 = vmatpush3.msra.mxu1 %v13637_v20  ;;  %v13648_v20 = vld [vmem:[#allocation108_spill] sm:$0xff] }
 0x934   :  { %4260 = vmatprep.subr.mxu1 %v13638_v30  ;;  %v13649_v30 = vld [vmem:[#allocation124_spill] sm:$0xff] }
 0x935   :  { %4261 = vmatpush3.msra.mxu1 %v13639_v43  ;;  %v13650_v43 = vld [vmem:[#allocation132_spill] sm:$0xff] }
 0x936   :  { %4262 = vmatprep.subr.mxu1 %v13640_v8  ;;  %v13651_v8 = vld [vmem:[#allocation136_spill] sm:$0xff] }
 0x937   :  { %4263 = vmatpush3.msra.mxu1 %v13641_v58  ;;  %v13652_v58 = vld [vmem:[#allocation137_spill] sm:$0xff] }
 0x938   :  { %4264 = vmatprep.subr.mxu1 %v13642_v3  ;;  %v13653_v3 = vld [vmem:[#allocation19_spill] sm:$0xff] }
 0x939   :  { %4265 = vmatpush3.msra.mxu1 %v13643_v49  ;;  %v13654_v49 = vld [vmem:[#allocation22_spill] sm:$0xff] }
 0x93a   :  { %4266 = vmatprep.subr.mxu1 %v13644_v9  ;;  %v13655_v9 = vld [vmem:[#allocation21_spill] sm:$0xff] }
 0x93b   :  { %4267 = vmatpush3.msra.mxu1 %v13645_v39  ;;  %v13656_v39 = vld [vmem:[#allocation2_spill] sm:$0xff] }
 0x93c   :  { %4268 = vmatprep.subr.mxu1 %v13646_v32  ;;  %v13657_v32 = vld [vmem:[#allocation4_spill] sm:$0xff] }
 0x93d   :  { %4269 = vmatpush3.msra.mxu1 %v13647_v33 }
 0x93e   :  { %4270 = vmatprep.subr.mxu1 %v13648_v20 }
 0x93f   :  { %4271 = vmatpush3.msra.mxu1 %v13649_v30 }
 0x940   :  { %4272 = vmatprep.subr.mxu1 %v13650_v43 }
 0x941   :  { %4273 = vmatpush3.msra.mxu1 %v13651_v8 }
 0x942   :  { %4274 = vmatprep.subr.mxu1 %v13652_v58 }
 0x943   :  { %4275 = vmatpush3.msra.mxu1 %v13653_v3 }
 0x944   :  { %4276 = vmatprep.subr.mxu1 %v13654_v49 }
 0x945   :  { %4277 = vmatpush3.msra.mxu1 %v13655_v9 }
 0x946   :  { %4278 = vmatprep.subr.mxu1 %v13656_v39 }
 0x947   :  { %4279 = vmatpush3.msra.mxu1 %v13657_v32 }
 0x948   :  { %4280 = vmatprep.subr.mxu1 %v11350_v4 }
 0x949   :  { %4281 = vmatpush3.msra.mxu1 %v11356_v44 }
 0x94a   :  { %4282 = vmatprep.subr.mxu1 %v11362_v13 }
 0x94b   :  { %4283 = vmatpush3.msra.mxu1 %v11368_v11 }
 0x94c   :  { %3259 = vmatmul.mubr.f32.vlgmr.msra.gmra.mxu1 %v11480_v61  ;;  %4304 = vmatprep.subr.mxu1 %v13562_v38 }
 0x94d   :  { %4305 = vmatpush3.msra.mxu1 %v10573_v55 }
 0x94e   :  { %4306 = vmatprep.subr.mxu1 %v10579_v27 }
 0x94f   :  { %4307 = vmatpush3.msra.mxu1 %v10585_v42 }
 0x950   :  { %4308 = vmatprep.subr.mxu1 %v10591_v40 }
 0x951   :  { %4309 = vmatpush3.msra.mxu1 %v13563_v2 }
 0x952   :  { %4310 = vmatprep.subr.mxu1 %v13564_v23 }
 0x953   :  { %4311 = vmatpush3.msra.mxu1 %v13565_v18 }
 0x954   :  { %4312 = vmatprep.subr.mxu1 %v13566_v29  ;;  %v13662_v29 = vld [vmem:[#allocation128_spill] sm:$0xff] }
 0x955   :  { %4313 = vmatpush3.msra.mxu1 %v13567_v57 }
 0x956   :  { %4314 = vmatprep.subr.mxu1 %v13568_v24  ;;  %v13664_v24 = vld [vmem:[#allocation86_spill] sm:$0xff] }
 0x957   :  { %4315 = vmatpush3.msra.mxu1 %v13569_v51  ;;  %v13665_v51 = vld [vmem:[#allocation68_spill] sm:$0xff] }
 0x958   :  { %4316 = vmatprep.subr.mxu1 %v13570_v28  ;;  %v13666_v28 = vld [vmem:[#allocation88_spill] sm:$0xff] }
 0x959   :  { %4317 = vmatpush3.msra.mxu1 %v13571_v35  ;;  %v13667_v35 = vld [vmem:[#allocation70_spill] sm:$0xff] }
 0x95a   :  { %4318 = vmatprep.subr.mxu1 %v10651_v10 }
 0x95b   :  { %4319 = vmatpush3.msra.mxu1 %v10658_v22 }
 0x95c   :  { %4320 = vmatprep.subr.mxu1 %v10664_v12 }
 0x95d   :  { %4321 = vmatpush3.msra.mxu1 %v10670_v16 }
 0x95e   :  { %4322 = vmatprep.subr.mxu1 %v10676_v45 }
 0x95f   :  { %4323 = vmatpush3.msra.mxu1 %v13572_v37  ;;  %v13668_v37 = vld [vmem:[#allocation90_spill] sm:$0xff] }
 0x960   :  { %4324 = vmatprep.subr.mxu1 %v13573_v36  ;;  %v13669_v36 = vld [vmem:[#allocation72_spill] sm:$0xff] }
 0x961   :  { %4325 = vmatpush3.msra.mxu1 %v13574_v50  ;;  %v13670_v50 = vld [vmem:[#allocation92_spill] sm:$0xff] }
 0x962   :  { %4326 = vmatprep.subr.mxu1 %v13575_v52  ;;  %v13671_v52 = vld [vmem:[#allocation74_spill] sm:$0xff] }
 0x963   :  { %4327 = vmatpush3.msra.mxu1 %v13576_v48  ;;  %v13672_v48 = vld [vmem:[#allocation94_spill] sm:$0xff] }
 0x964   :  { %4328 = vmatprep.subr.mxu1 %v13577_v17  ;;  %v13673_v17 = vld [vmem:[#allocation76_spill] sm:$0xff] }
 0x965   :  { %4329 = vmatpush3.msra.mxu1 %v13578_v34  ;;  %v13675_v34 = vld [vmem:[#allocation98_spill] sm:$0xff] }
 0x966   :  { %4330 = vmatprep.subr.mxu1 %v13579_v46  ;;  %v13676_v46 = vld [vmem:[#allocation100_spill] sm:$0xff] }
 0x967   :  { %4331 = vmatpush3.msra.mxu1 %v13580_v7  ;;  %v13677_v7 = vld [vmem:[#allocation102_spill] sm:$0xff] }
 0x968   :  { %4332 = vmatprep.subr.mxu1 %v13581_v21  ;;  %v13678_v21 = vld [vmem:[#allocation104_spill] sm:$0xff] }
 0x969   :  { %4333 = vmatpush3.msra.mxu1 %v13582_v19 }
 0x96a   :  { %4334 = vmatprep.subr.mxu1 %v13583_v31 }
 0x96b   :  { %4335 = vmatpush3.msra.mxu1 %v10754_v25 }
 0x96c   :  { %4636 = vmatprep.subr.mxu1 %v12563_v62 }
 0x98b   :  { %v3048_v40 = vpop.f32.mrf.mxu0 }
 0x98c   :  { %v3049_v12 = vadd.f32 %v3048_v40, %v12888_v14 }
 0x98d   :  { %v3050_v22 = vpop.f32.mrf.mxu0 }
 0x98e   :  { %v3051_v16 = vadd.f32 %v3050_v22, %v7411_v1 }
 0x9ab   :  { %v4249_v14 = vpop.f32.mrf.mxu0 }
 0x9ac   :  { %v2977_v55 = vpop.f32.mrf.mxu1 }
 0x9ad   :  { %v2978_v27 = vadd.f32 %v11440_v41, %v2977_v55  ;;  %v4250_v1 = vpop.f32.mrf.mxu0 }
 0x9ae   :  { %v4600_v42 = vpop.f32.mrf.mxu1 }
 0x9af   :  { %2981 = vst [vmem:[%s11770_s5 + $0xa] sm:$0x3] %v2978_v27 }
 0x9ec   :  { %v3119_v10 = vpop.f32.mrf.mxu1 }
 0x9ed   :  { %v3120_v45 = vadd.f32 %v3119_v10, %v3049_v12 }
 0x9ee   :  { %v3121_v38 = vpop.f32.mrf.mxu1 }
 0x9ef   :  { %v3122_v25 = vadd.f32 %v3121_v38, %v3051_v16 }
 0x9f1   :  { %4715 = vtanh.f32 %v3122_v25 }
 0x9f2   :  { %4717 = vtanh.f32 %v3120_v45 }
 0x9fe   :  { %v4716_v2 = vpop.eup %4715 }
 0x9ff   :  { %v4718_v23 = vpop.eup %4717  ;;  %3402 = vmatprep.mubr.f32.mxu1 %v4716_v2 }
 0xa00   :  { %3403 = vmatmul.mubr.f32.vlgmr.msra.gmra.mxu1 %v4718_v23 }
 0xa01   :  { %4637 = vmatpush3.msra.mxu1 %v10770_v6  ;;  %4668 = vmatprep.mubr.msk.f32.mxu1 %vm5352_vm0, %v12563_v62  ;;  %v4251_v6 = vadd.f32 %v4250_v1, %v4249_v14 }
 0xa02   :  { %4638 = vmatprep.subr.mxu1 %v12563_v62 }
 0xa03   :  { %4639 = vmatpush3.msra.mxu1 %v10781_v47 }
 0xa04   :  { %4640 = vmatprep.subr.mxu1 %v12563_v62 }
 0xa05   :  { %4641 = vmatpush3.msra.mxu1 %v10790_v54 }
 0xa06   :  { %4642 = vmatprep.subr.mxu1 %v12563_v62 }
 0xa07   :  { %4643 = vmatpush3.msra.mxu1 %v10799_v59  ;;  %v3191_v59 = vadd.f32 %v4251_v6, %v7737_v0 }
 0xa08   :  { %4644 = vmatprep.subr.mxu1 %v12563_v62 }
 0xa09   :  { %4645 = vmatpush3.msra.mxu1 %v10808_v15 }
 0xa0a   :  { %4646 = vmatprep.subr.mxu1 %v12563_v62 }
 0xa0b   :  { %4647 = vmatpush3.msra.mxu1 %v10817_v26  ;;  %v13658_v26 = vld [vmem:[#allocation71_spill] sm:$0xff] }
 0xa0c   :  { %v4284_v47 = vpop.f32.mrf.mxu1  ;;  %4648 = vmatprep.subr.mxu1 %v12563_v62 }
 0xa0d   :  { %4649 = vmatpush3.msra.mxu1 %v10826_v60  ;;  %v13659_v60 = vld [vmem:[#allocation78_spill] sm:$0xff] }
 0xa0e   :  { %v4285_v54 = vpop.f32.mrf.mxu1  ;;  %4650 = vmatprep.subr.mxu1 %v12563_v62 }
 0xa0f   :  { %v4286_v18 = vadd.f32 %v4285_v54, %v4284_v47  ;;  %4651 = vmatpush3.msra.mxu1 %v10835_v5  ;;  %v13660_v5 = vld [vmem:[#allocation114_spill] sm:$0xff] }
 0xa10   :  { %4652 = vmatprep.subr.mxu1 %v12563_v62 }
 0xa11   :  { %v3261_v15 = vadd.f32 %v4286_v18, %v3191_v59  ;;  %4653 = vmatpush3.msra.mxu1 %v10844_v63  ;;  %v13661_v63 = vld [vmem:[#allocation120_spill] sm:$0xff] }
 0xa12   :  { %4654 = vmatprep.subr.mxu1 %v12563_v62 }
 0xa13   :  { %4719 = vtanh.f32 %v3261_v15  ;;  %4655 = vmatpush3.msra.mxu1 %v10863_v53  ;;  %v13663_v53 = vld [vmem:[#allocation79_spill] sm:$0xff] }
 0xa14   :  { %4656 = vmatprep.subr.mxu1 %v12563_v62 }
 0xa15   :  { %4657 = vmatpush3.msra.mxu1 %v13658_v26 }
 0xa16   :  { %4658 = vmatprep.subr.mxu1 %v12563_v62 }
 0xa17   :  { %4659 = vmatpush3.msra.mxu1 %v13659_v60 }
 0xa18   :  { %4660 = vmatprep.subr.mxu1 %v12563_v62 }
 0xa19   :  { %4661 = vmatpush3.msra.mxu1 %v13660_v5 }
 0xa1a   :  { %4662 = vmatprep.subr.mxu1 %v12563_v62 }
 0xa1b   :  { %4663 = vmatpush3.msra.mxu1 %v13661_v63 }
 0xa1c   :  { %4664 = vmatprep.subr.mxu1 %v12563_v62 }
 0xa1d   :  { %4665 = vmatpush3.msra.mxu1 %v13662_v29 }
 0xa1e   :  { %4666 = vmatprep.subr.mxu1 %v12563_v62 }
 0xa1f   :  { %4667 = vmatpush3.msra.mxu1 %v13663_v53 }
 0xa20   :  { %v4720_v57 = vpop.eup %4719 }
 0xa21   :  { %4634 = vmatmul.mubr.f32.vlgmr.msra.gmra.mxu0 %v4720_v57 }
 0xa22   :  { %4340 = vmatpush3.msra.mxu0 %v13631_v56  ;;  %3472 = vmatprep.mubr.f32.mxu0 %v12563_v62  ;;  %v13674_v62 = vld [vmem:[#allocation96_spill] sm:$0xff] }
 0xa23   :  { %4341 = vmatprep.subr.mxu0 %v13664_v24 }
 0xa24   :  { %4342 = vmatpush3.msra.mxu0 %v13665_v51 }
 0xa25   :  { %4343 = vmatprep.subr.mxu0 %v13666_v28 }
 0xa26   :  { %4344 = vmatpush3.msra.mxu0 %v13667_v35 }
 0xa27   :  { %4345 = vmatprep.subr.mxu0 %v13668_v37 }
 0xa28   :  { %4346 = vmatpush3.msra.mxu0 %v13669_v36 }
 0xa29   :  { %4347 = vmatprep.subr.mxu0 %v13670_v50 }
 0xa2a   :  { %4348 = vmatpush3.msra.mxu0 %v13671_v52 }
 0xa2b   :  { %4349 = vmatprep.subr.mxu0 %v13672_v48 }
 0xa2c   :  { %4350 = vmatpush3.msra.mxu0 %v13673_v17 }
 0xa2d   :  { %4351 = vmatprep.subr.mxu0 %v13674_v62 }
 0xa2e   :  { %4352 = vmatpush3.msra.mxu0 %v13675_v34 }
 0xa2f   :  { %4353 = vmatprep.subr.mxu0 %v13676_v46 }
 0xa30   :  { %4354 = vmatpush3.msra.mxu0 %v13677_v7 }
 0xa31   :  { %4355 = vmatprep.subr.mxu0 %v13678_v21 }
 0xa32   :  { %4356 = vmatpush3.msra.mxu0 %v13647_v33 }
 0xa33   :  { %4357 = vmatprep.subr.mxu0 %v13648_v20 }
 0xa34   :  { %4358 = vmatpush3.msra.mxu0 %v13649_v30 }
 0xa35   :  { %4359 = vmatprep.subr.mxu0 %v13650_v43 }
 0xa36   :  { %4360 = vmatpush3.msra.mxu0 %v13651_v8 }
 0xa37   :  { %4361 = vmatprep.subr.mxu0 %v13652_v58 }
 0xa38   :  { %4362 = vmatpush3.msra.mxu0 %v13653_v3 }
 0xa39   :  { %4363 = vmatprep.subr.mxu0 %v13654_v49 }
 0xa3a   :  { %4364 = vmatpush3.msra.mxu0 %v13655_v9 }
 0xa3b   :  { %4365 = vmatprep.subr.mxu0 %v13656_v39 }
 0xa3c   :  { %4366 = vmatpush3.msra.mxu0 %v13657_v32 }
 0xa3d   :  { %4367 = vmatprep.subr.mxu0 %v11350_v4 }
 0xa3e   :  { %4368 = vmatpush3.msra.mxu0 %v11356_v44 }
 0xa3f   :  { %4369 = vmatprep.subr.mxu0 %v11362_v13 }
 0xa40   :  { %4370 = vmatpush3.msra.mxu0 %v11368_v11 }
 0xa41   :  { %3473 = vmatmul.mubr.f32.vlgmr.msra.gmra.mxu0 %v4720_v57 }
 0xac0   :  { %v4336_v56 = vpop.f32.mrf.mxu1 }
 0xac2   :  { %v4337_v49 = vpop.f32.mrf.mxu1 }
 0xac3   :  { %v4338_v9 = vadd.f32 %v4337_v49, %v4336_v56 }
 0xac5   :  { %v3405_v44 = vadd.f32 %v4338_v9, %v7737_v0 }
 0xae1   :  { %v3333_v19 = vpop.f32.mrf.mxu0 }
 0xae2   :  { %v3334_v31 = vadd.f32 %v11440_v41, %v3333_v19 }
 0xae3   :  { %v4635_v61 = vpop.f32.mrf.mxu0 }
 0xae4   :  { %3337 = vst [vmem:[%s11770_s5 + $0xc] sm:$0x3] %v3334_v31 }
 0xb01   :  { %v4371_v39 = vpop.f32.mrf.mxu0 }
 0xb03   :  { %v4372_v4 = vpop.f32.mrf.mxu0 }
 0xb04   :  { %v4373_v32 = vadd.f32 %v4372_v4, %v4371_v39 }
 0xb06   :  { %v3475_v13 = vadd.f32 %v4373_v32, %v3405_v44 }
 0xb08   :  { %4721 = vtanh.f32 %v3475_v13 }
 0xb15   :  { %v4722_v11 = vpop.eup %4721 }
 0xb16   :  { %4669 = vmatmul.mubr.f32.vlgmr.msra.gmra.mxu1 %v4722_v11 }
 0xbd6   :  { %v3545_v33 = vpop.f32.mrf.mxu1 }
 0xbd7   :  { %v3546_v20 = vadd.f32 %v11440_v41, %v3545_v33 }
 0xbd8   :  { %v4670_v30 = vpop.f32.mrf.mxu1 }
 0xbd9   :  { %3549 = vst [vmem:[%s11770_s5 + $0xe] sm:$0x3] %v3546_v20 }

</bundles_post_ra>
